<compile_context>
chip_gen: v5e
topology: v5e:2x2
jax: 0.10.0
libtpu: 0.0.40
codegen_flags: <defaults>
</compile_context>

<pallas_src>
import math
import numpy as np
import jax
import jax.numpy as jnp
from jax.experimental import pallas as pl
from jax.experimental.pallas import tpu as pltpu

# Full-precision matmuls for both the kernel and the pure-JAX reference so the numerical
# check below is meaningful.  (Production: bf16 MXU operands, see TODO above.)
jax.config.update("jax_default_matmul_precision", "highest")


def _make_divisible(v, divisor, min_value=None):
    if min_value is None:
        min_value = divisor
    new_v = max(min_value, int(v + divisor / 2) // divisor * divisor)
    if new_v < 0.9 * v:
        new_v += divisor
    return new_v


# ----------------------------- Pallas kernel -----------------------------

def make_msblock_kernel(cfg, H, W, BT):
    c1, c2, hidden = cfg["c1"], cfg["c2"], cfg["hidden"]
    ke = max(cfg["ks"])                 # MixConv branches folded into one ke x ke tap grid
    N = H * W                           # lanes per image
    L = BT * N                          # lanes per grid step (batch folded onto lanes)
    cpg = c2 // 2
    p_mix = ke // 2
    inv_n = 1.0 / float(N)

    def kernel(x_ref,
               w_g1c1, b_g1c1, w_g1dw, b_g1dw,
               w_mix, b_mix,
               se_w1, se_b1, se_w2, se_b2,
               w_g2c1, b_g2c1, w_g2dw, b_g2dw,
               o_ref):
        # ---- hoisted lane indices + one boundary mask per unique dy / dx (shared) ----
        lane = jax.lax.broadcasted_iota(jnp.int32, (1, L), 1)
        if (N & (N - 1)) == 0:
            flat = jnp.bitwise_and(lane, N - 1)          # position within its image
        else:
            flat = lane - (lane // N) * N
        if (W & (W - 1)) == 0:
            col = jnp.bitwise_and(lane, W - 1)           # column within its image row
        else:
            col = lane - (lane // W) * W

        row_mask, col_mask = {}, {}
        for d in range(1, p_mix + 1):
            row_mask[d] = flat < (N - d * W)             # valid after shifting rows by +d
            row_mask[-d] = flat >= (d * W)
            col_mask[d] = col < (W - d)                  # valid after shifting cols by +d
            col_mask[-d] = col >= d

        def shift_rows(v, dy):
            # v[(lane + dy*W) mod L] with zero fill outside the image (also gates
            # cross-image wrap of the circular roll over the folded batch axis)
            if dy == 0:
                return v
            s = pltpu.roll(v, (-(dy * W)) % L, 1)
            return jnp.where(row_mask[dy], s, 0.0)

        def shift_cols(v, dx):
            if dx == 0:
                return v
            s = pltpu.roll(v, (-dx) % L, 1)
            return jnp.where(col_mask[dx], s, 0.0)

        def mish(v):
            # Mish(x) = x * tanh(softplus(x)) = x * g/(g+2), g = t*(t+2), t = exp(x);
            # one transcendental, clamp keeps g finite (==1 to f32 precision for x>20).
            t = jnp.exp(jnp.minimum(v, 20.0))
            g = t * (t + 2.0)
            return v * (g / (g + 2.0))

        def sigmoid(v):
            return 1.0 / (1.0 + jnp.exp(-v))

        def conv_dw(v, w_ref, b_ref, k):
            # depthwise k x k conv on (C, L): two-stage shift -> 2*(k-1) rolls instead of
            # k*k-1; w_ref is (k, k*C, 1) per-dx columns (BN scale folded), rows = (dy, c).
            C = v.shape[0]
            p = k // 2
            R = jnp.concatenate([shift_rows(v, dy) for dy in range(-p, p + 1)], axis=0)
            acc = None
            for dxi, dx in enumerate(range(-p, p + 1)):
                tmp = w_ref[dxi] * shift_cols(R, dx)                # (k*C, L)
                part = tmp[0:C]
                for dyi in range(1, k):
                    part = part + tmp[dyi * C:(dyi + 1) * C]
                acc = part if acc is None else acc + part
            return acc + b_ref[...]

        x = x_ref[...]                                              # (c1, L)

        # ---- GhostConv(c1 -> hidden): 1x1 (MXU) + depthwise 5x5 (BN folded, Mish) ----
        y1 = mish(jnp.dot(w_g1c1[...], x, preferred_element_type=jnp.float32) + b_g1c1[...])
        y2 = mish(conv_dw(y1, w_g1dw, b_g1dw, 5))
        # single tiny concat kept on purpose: rolling the combined slab below halves the
        # XLU roll work versus building two separate per-half tap stacks.
        g1 = jnp.concatenate([y1, y2], axis=0)                      # (hidden, L)

        # ---- MixConv2d(hidden -> hidden, k=(3,5,7,9)) as ONE K-stacked MXU matmul ----
        # stack = all ke*ke shifted copies of g1, rows ordered (dx, dy, cin); K = ke*ke*hidden.
        R = jnp.concatenate([shift_rows(g1, dy) for dy in range(-p_mix, p_mix + 1)], axis=0)
        S = jnp.concatenate([shift_cols(R, dx) for dx in range(-p_mix, p_mix + 1)], axis=0)
        m = mish(jnp.dot(w_mix[...], S, preferred_element_type=jnp.float32) + b_mix[...])

        # ---- SELayer at width 1 per image: masked GAP -> Linear -> Mish -> Linear -> Sigmoid ----
        se_gate = None
        for b in range(BT):
            in_img = jnp.logical_and(lane >= b * N, lane < (b + 1) * N)    # (1, L)
            gap = jnp.sum(jnp.where(in_img, m, 0.0), axis=1, keepdims=True) * inv_n
            z = mish(jnp.dot(se_w1[...], gap, preferred_element_type=jnp.float32) + se_b1[...])
            attn = sigmoid(jnp.dot(se_w2[...], z, preferred_element_type=jnp.float32) + se_b2[...])
            gate = jnp.where(in_img, attn, 0.0)                            # (hidden, L)
            se_gate = gate if se_gate is None else se_gate + gate
        se = m * se_gate

        # ---- GhostConv(hidden -> c2, act=False), BN folded ----
        u1 = jnp.dot(w_g2c1[...], se, preferred_element_type=jnp.float32) + b_g2c1[...]
        u2 = conv_dw(u1, w_g2dw, b_g2dw, 5)

        # ---- identity residual + channel_shuffle(groups=2) as two dense stores ----
        # even shuffled channels <- x[:cpg] + u1 ; odd <- x[cpg:] + u2 ; the (2, cpg) -> c2
        # interleave is a free reshape/transpose in the wrapper.
        o_ref[0, :, :] = (x[0:cpg, :] + u1).astype(o_ref.dtype)
        o_ref[1, :, :] = (x[cpg:c1, :] + u2).astype(o_ref.dtype)

    return kernel


def msblock_forward(x, kernel_params, cfg, images_per_step=None):
    B, C1, H, W = x.shape
    C2 = cfg["c2"]
    assert C1 == C2, "identity residual configuration"
    cpg = C2 // 2
    N = H * W
    BT = B if images_per_step is None else images_per_step
    assert B % BT == 0
    L = BT * N

    # lane-dense (C, B*N) layout, images contiguous along lanes
    xs = x.reshape(B, C1, N).transpose(1, 0, 2).reshape(C1, B * N)

    kernel = make_msblock_kernel(cfg, H, W, BT)
    vmem = pl.BlockSpec(memory_space=pltpu.MemorySpace.VMEM)        # whole-array weights
    out = pl.pallas_call(
        kernel,
        out_shape=jax.ShapeDtypeStruct((2, cpg, B * N), jnp.float32),
        grid=(B // BT,),
        in_specs=[pl.BlockSpec((C1, L), lambda g: (0, g))] + [vmem] * len(kernel_params),
        out_specs=pl.BlockSpec((2, cpg, L), lambda g: (0, 0, g)),
        compiler_params=pltpu.CompilerParams(dimension_semantics=("parallel",)),
    )(xs, *kernel_params)

    # (2, cpg, B, N) -> (B, cpg, 2, N) -> (B, c2, H, W): this IS channel_shuffle(groups=2)
    return out.reshape(2, cpg, B, N).transpose(2, 1, 0, 3).reshape(B, C2, H, W)


# ----------------------------- parameter packing -----------------------------

def pack_kernel_params(P, cfg):
    """Fold PyTorch weights (+ eval-mode BN scales) into the kernel's dense layouts (exact)."""
    c1, c2, hidden = cfg["c1"], cfg["c2"], cfg["hidden"]
    ks, counts = cfg["ks"], cfg["counts"]
    ch = hidden // 2
    c2h = c2 // 2
    ke = max(ks)

    def bias_col(b):
        return jnp.asarray(np.asarray(b, np.float32).reshape(-1, 1))

    def pw_scaled(w, scale, cin):
        # 1x1 conv (Cout, Cin, 1, 1) with BN scale folded into the rows
        cout = w.shape[0]
        return jnp.asarray((np.asarray(scale, np.float32)[:, None]
                            * w.reshape(cout, cin)).astype(np.float32))

    def dw_pack(w, scale):
        # depthwise (C, 1, k, k) -> per-dx columns (k, k*C, 1), rows ordered (dy, c),
        # BN scale folded in.
        C, _, k, _ = w.shape
        out = np.zeros((k, k * C, 1), np.float32)
        for dxi in range(k):
            for dyi in range(k):
                for c in range(C):
                    out[dxi, dyi * C + c, 0] = scale[c] * w[c, 0, dyi, dxi]
        return jnp.asarray(out)

    def mix_pack(ws, scale):
        # embed every MixConv branch (own kernel size + group structure) into one
        # (hidden, ke*ke*hidden) matrix; column index = (dxi*ke + dyi)*hidden + cin,
        # matching the in-kernel stacked-slab row order.  Extra entries are exactly zero.
        # TODO(synk): per-branch block-sparse packing for realistic hidden widths.
        packed = np.zeros((hidden, ke * ke * hidden), np.float32)
        o0 = 0
        for w, kk, cg in zip(ws, ks, counts):
            grp = math.gcd(hidden, cg)
            cin_g = hidden // grp
            cout_g = cg // grp
            pad = (ke - kk) // 2
            for oo in range(cg):
                g = oo // cout_g
                for cc in range(cin_g):
                    cin = g * cin_g + cc
                    for ky in range(kk):
                        for kx in range(kk):
                            dyi, dxi = ky + pad, kx + pad
                            packed[o0 + oo, (dxi * ke + dyi) * hidden + cin] = w[oo, cc, ky, kx]
            o0 += cg
        packed *= np.asarray(scale, np.float32)[:, None]
        return jnp.asarray(packed)

    return [
        pw_scaled(P["g1w1"], P["g1s1"], c1),                 # GhostConv1.cv1 (1x1, BN scale folded)
        bias_col(P["g1b1"]),
        dw_pack(P["g1w2"], P["g1s2"]),                       # GhostConv1.cv2 (dw 5x5)
        bias_col(P["g1b2"]),
        mix_pack([P[f"mw{kk}"] for kk in ks], P["ms"]),      # MixConv2d -> one packed matrix
        bias_col(P["mb"]),
        jnp.asarray(P["sew1"].astype(np.float32)),           # SE Linear(hidden -> mid)
        bias_col(P["seb1"]),
        jnp.asarray(P["sew2"].astype(np.float32)),           # SE Linear(mid -> hidden)
        bias_col(P["seb2"]),
        pw_scaled(P["g2w1"], P["g2s1"], hidden),             # GhostConv2.cv1 (1x1, act=False)
        bias_col(P["g2b1"]),
        dw_pack(P["g2w2"], P["g2s2"]),                       # GhostConv2.cv2 (dw 5x5, act=False)
        bias_col(P["g2b2"]),
    ]


def build_params(key, c1, c2, expand_ratio=1):
    assert c1 == c2, "this script instantiates the stride=1 identity configuration"
    hidden = int(round(c1 * expand_ratio))
    ks = (3, 5, 7, 9)
    n = len(ks)
    idx = np.floor(np.linspace(0.0, n - 1e-6, hidden)).astype(np.int64)
    counts = [int((idx == g).sum()) for g in range(n)]               # MixConv equal_ch split
    mid = _make_divisible(c1 // 4, 8)                                # SELayer hidden width

    keys = iter(jax.random.split(key, 40))

    def nrm(shape, scale):
        return np.asarray(scale * jax.random.normal(next(keys), shape, jnp.float32))

    def bn_fold(c):
        gamma = np.asarray(1.0 + 0.1 * jax.random.normal(next(keys), (c,), jnp.float32))
        beta = np.asarray(0.1 * jax.random.normal(next(keys), (c,), jnp.float32))
        mean = np.asarray(0.1 * jax.random.normal(next(keys), (c,), jnp.float32))
        var = np.asarray(0.9 + 0.2 * jax.random.uniform(next(keys), (c,), jnp.float32))
        s = (gamma / np.sqrt(var + 1e-5)).astype(np.float32)
        b = (beta - mean * s).astype(np.float32)
        return s, b

    P = {}
    ch = hidden // 2
    P["g1w1"] = nrm((ch, c1, 1, 1), 0.5)                 # GhostConv.cv1 (1x1)
    P["g1s1"], P["g1b1"] = bn_fold(ch)
    P["g1w2"] = nrm((ch, 1, 5, 5), 0.2)                  # GhostConv.cv2 (depthwise 5x5)
    P["g1s2"], P["g1b2"] = bn_fold(ch)
    for kk, cg in zip(ks, counts):                       # MixConv2d branches
        grp = math.gcd(hidden, cg)
        P[f"mw{kk}"] = nrm((cg, hidden // grp, kk, kk), 0.15)
    P["ms"], P["mb"] = bn_fold(hidden)
    P["sew1"] = nrm((mid, hidden), 0.5)                  # SE Linear(hidden -> mid)
    P["seb1"] = nrm((mid,), 0.1)
    P["sew2"] = nrm((hidden, mid), 0.5)                  # SE Linear(mid -> hidden)
    P["seb2"] = nrm((hidden,), 0.1)
    c2h = c2 // 2
    P["g2w1"] = nrm((c2h, hidden, 1, 1), 0.5)            # GhostConv2.cv1 (1x1, act=False)
    P["g2s1"], P["g2b1"] = bn_fold(c2h)
    P["g2w2"] = nrm((c2h, 1, 5, 5), 0.2)                 # GhostConv2.cv2 (dw 5x5, act=False)
    P["g2s2"], P["g2b2"] = bn_fold(c2h)

    cfg = dict(c1=c1, c2=c2, hidden=hidden, ks=ks, counts=counts, mid=mid)
    kernel_params = pack_kernel_params(P, cfg)
    return P, kernel_params, cfg


# ----------------------------- pure-JAX reference -----------------------------

def reference_forward(x, P, cfg):
    ks, counts = cfg["ks"], cfg["counts"]
    hidden, c2 = cfg["hidden"], cfg["c2"]

    def conv(xx, w, groups=1):
        k = w.shape[-1]
        p = k // 2
        return jax.lax.conv_general_dilated(
            xx, jnp.asarray(w), (1, 1), [(p, p), (p, p)],
            dimension_numbers=("NCHW", "OIHW", "NCHW"),
            feature_group_count=groups)

    def bn(xx, s, b):
        return xx * jnp.asarray(s).reshape(1, -1, 1, 1) + jnp.asarray(b).reshape(1, -1, 1, 1)

    def mish(v):
        return v * jnp.tanh(jnp.log(1.0 + jnp.exp(v)))

    def sigmoid(v):
        return 1.0 / (1.0 + jnp.exp(-v))

    ch = hidden // 2
    y1 = mish(bn(conv(x, P["g1w1"]), P["g1s1"], P["g1b1"]))
    y2 = mish(bn(conv(y1, P["g1w2"], groups=ch), P["g1s2"], P["g1b2"]))
    g1 = jnp.concatenate([y1, y2], axis=1)

    mlist = []
    for kk, cg in zip(ks, counts):
        grp = math.gcd(hidden, cg)
        mlist.append(conv(g1, P[f"mw{kk}"], groups=grp))
    m = mish(bn(jnp.concatenate(mlist, axis=1), P["ms"], P["mb"]))

    gap = m.mean(axis=(2, 3))                                        # (B, hidden)
    z = mish(gap @ jnp.asarray(P["sew1"]).T + jnp.asarray(P["seb1"]))
    a = sigmoid(z @ jnp.asarray(P["sew2"]).T + jnp.asarray(P["seb2"]))
    se = m * a[:, :, None, None]

    c2h = c2 // 2
    u1 = bn(conv(se, P["g2w1"]), P["g2s1"], P["g2b1"])
    u2 = bn(conv(u1, P["g2w2"], groups=c2h), P["g2s2"], P["g2b2"])
    g2 = jnp.concatenate([u1, u2], axis=1)

    out = x + g2
    B, C, H, W = out.shape
    return out.reshape(B, 2, C // 2, H, W).transpose(0, 2, 1, 3, 4).reshape(B, C, H, W)


# ----------------------------- main -----------------------------

if __name__ == "__main__":
    B, C, H, W = 2, 4, 16, 16          # MSBlock(c1=4, c2=4, stride=1, use_se=True)
    key = jax.random.PRNGKey(0)
    kx, kp = jax.random.split(key)
    x = jax.random.normal(kx, (B, C, H, W), jnp.float32)

    P, kernel_params, cfg = build_params(kp, C, C)

    out = jax.block_until_ready(msblock_forward(x, kernel_params, cfg))
    ref = jax.block_until_ready(reference_forward(x, P, cfg))

    assert out.shape == (B, C, H, W)
    np.testing.assert_allclose(np.asarray(out), np.asarray(ref), rtol=2e-3, atol=2e-3)
    print("KERNEL_OK")
</pallas_src>

<mosaic_0001>
module attributes {stable_mosaic.version = 11 : i64} {
  func.func @kernel(%arg0: i32, %arg1: memref<4x512xf32, #tpu.memory_space<vmem>>, %arg2: memref<2x4xf32, #tpu.memory_space<vmem>>, %arg3: memref<2x1xf32, #tpu.memory_space<vmem>>, %arg4: memref<5x10x1xf32, #tpu.memory_space<vmem>>, %arg5: memref<2x1xf32, #tpu.memory_space<vmem>>, %arg6: memref<4x324xf32, #tpu.memory_space<vmem>>, %arg7: memref<4x1xf32, #tpu.memory_space<vmem>>, %arg8: memref<8x4xf32, #tpu.memory_space<vmem>>, %arg9: memref<8x1xf32, #tpu.memory_space<vmem>>, %arg10: memref<4x8xf32, #tpu.memory_space<vmem>>, %arg11: memref<4x1xf32, #tpu.memory_space<vmem>>, %arg12: memref<2x4xf32, #tpu.memory_space<vmem>>, %arg13: memref<2x1xf32, #tpu.memory_space<vmem>>, %arg14: memref<5x10x1xf32, #tpu.memory_space<vmem>>, %arg15: memref<2x1xf32, #tpu.memory_space<vmem>>, %arg16: memref<2x2x512xf32, #tpu.memory_space<vmem>>) attributes {dimension_semantics = [#tpu.dimension_semantics<parallel>], iteration_bounds = array<i64: 1>, scalar_prefetch = 0 : i64, scratch_operands = 0 : i64, tpu.core_type = #tpu.core_type<tc>, window_params = [{transform_indices = @transform_0, window_bounds = array<i64: 4, 512>}, {pipeline_mode = #tpu.pipeline_mode<synchronous>, transform_indices = @transform_1, window_bounds = array<i64: 2, 4>}, {pipeline_mode = #tpu.pipeline_mode<synchronous>, transform_indices = @transform_2, window_bounds = array<i64: 2, 1>}, {pipeline_mode = #tpu.pipeline_mode<synchronous>, transform_indices = @transform_3, window_bounds = array<i64: 5, 10, 1>}, {pipeline_mode = #tpu.pipeline_mode<synchronous>, transform_indices = @transform_4, window_bounds = array<i64: 2, 1>}, {pipeline_mode = #tpu.pipeline_mode<synchronous>, transform_indices = @transform_5, window_bounds = array<i64: 4, 324>}, {pipeline_mode = #tpu.pipeline_mode<synchronous>, transform_indices = @transform_6, window_bounds = array<i64: 4, 1>}, {pipeline_mode = #tpu.pipeline_mode<synchronous>, transform_indices = @transform_7, window_bounds = array<i64: 8, 4>}, {pipeline_mode = #tpu.pipeline_mode<synchronous>, transform_indices = @transform_8, window_bounds = array<i64: 8, 1>}, {pipeline_mode = #tpu.pipeline_mode<synchronous>, transform_indices = @transform_9, window_bounds = array<i64: 4, 8>}, {pipeline_mode = #tpu.pipeline_mode<synchronous>, transform_indices = @transform_10, window_bounds = array<i64: 4, 1>}, {pipeline_mode = #tpu.pipeline_mode<synchronous>, transform_indices = @transform_11, window_bounds = array<i64: 2, 4>}, {pipeline_mode = #tpu.pipeline_mode<synchronous>, transform_indices = @transform_12, window_bounds = array<i64: 2, 1>}, {pipeline_mode = #tpu.pipeline_mode<synchronous>, transform_indices = @transform_13, window_bounds = array<i64: 5, 10, 1>}, {pipeline_mode = #tpu.pipeline_mode<synchronous>, transform_indices = @transform_14, window_bounds = array<i64: 2, 1>}, {transform_indices = @transform_15, window_bounds = array<i64: 2, 2, 512>}]} {
    %0 = tpu.iota {dimensions = array<i32: 1>} : vector<1x512xi32>
    %c255_i32 = arith.constant 255 : i32
    %1 = vector.broadcast %c255_i32 : i32 to vector<1x512xi32>
    %2 = arith.andi %0, %1 : vector<1x512xi32>
    %c15_i32 = arith.constant 15 : i32
    %3 = vector.broadcast %c15_i32 : i32 to vector<1x512xi32>
    %4 = arith.andi %0, %3 : vector<1x512xi32>
    %c240_i32 = arith.constant 240 : i32
    %5 = vector.broadcast %c240_i32 : i32 to vector<1x512xi32>
    %6 = arith.cmpi slt, %2, %5 : vector<1x512xi32>
    %c16_i32 = arith.constant 16 : i32
    %7 = vector.broadcast %c16_i32 : i32 to vector<1x512xi32>
    %8 = arith.cmpi sge, %2, %7 : vector<1x512xi32>
    %c15_i32_0 = arith.constant 15 : i32
    %9 = vector.broadcast %c15_i32_0 : i32 to vector<1x512xi32>
    %10 = arith.cmpi slt, %4, %9 : vector<1x512xi32>
    %c1_i32 = arith.constant 1 : i32
    %11 = vector.broadcast %c1_i32 : i32 to vector<1x512xi32>
    %12 = arith.cmpi sge, %4, %11 : vector<1x512xi32>
    %c224_i32 = arith.constant 224 : i32
    %13 = vector.broadcast %c224_i32 : i32 to vector<1x512xi32>
    %14 = arith.cmpi slt, %2, %13 : vector<1x512xi32>
    %c32_i32 = arith.constant 32 : i32
    %15 = vector.broadcast %c32_i32 : i32 to vector<1x512xi32>
    %16 = arith.cmpi sge, %2, %15 : vector<1x512xi32>
    %c14_i32 = arith.constant 14 : i32
    %17 = vector.broadcast %c14_i32 : i32 to vector<1x512xi32>
    %18 = arith.cmpi slt, %4, %17 : vector<1x512xi32>
    %c2_i32 = arith.constant 2 : i32
    %19 = vector.broadcast %c2_i32 : i32 to vector<1x512xi32>
    %20 = arith.cmpi sge, %4, %19 : vector<1x512xi32>
    %c208_i32 = arith.constant 208 : i32
    %21 = vector.broadcast %c208_i32 : i32 to vector<1x512xi32>
    %22 = arith.cmpi slt, %2, %21 : vector<1x512xi32>
    %c48_i32 = arith.constant 48 : i32
    %23 = vector.broadcast %c48_i32 : i32 to vector<1x512xi32>
    %24 = arith.cmpi sge, %2, %23 : vector<1x512xi32>
    %c13_i32 = arith.constant 13 : i32
    %25 = vector.broadcast %c13_i32 : i32 to vector<1x512xi32>
    %26 = arith.cmpi slt, %4, %25 : vector<1x512xi32>
    %c3_i32 = arith.constant 3 : i32
    %27 = vector.broadcast %c3_i32 : i32 to vector<1x512xi32>
    %28 = arith.cmpi sge, %4, %27 : vector<1x512xi32>
    %c192_i32 = arith.constant 192 : i32
    %29 = vector.broadcast %c192_i32 : i32 to vector<1x512xi32>
    %30 = arith.cmpi slt, %2, %29 : vector<1x512xi32>
    %c64_i32 = arith.constant 64 : i32
    %31 = vector.broadcast %c64_i32 : i32 to vector<1x512xi32>
    %32 = arith.cmpi sge, %2, %31 : vector<1x512xi32>
    %c12_i32 = arith.constant 12 : i32
    %33 = vector.broadcast %c12_i32 : i32 to vector<1x512xi32>
    %34 = arith.cmpi slt, %4, %33 : vector<1x512xi32>
    %c4_i32 = arith.constant 4 : i32
    %35 = vector.broadcast %c4_i32 : i32 to vector<1x512xi32>
    %36 = arith.cmpi sge, %4, %35 : vector<1x512xi32>
    %c0 = arith.constant 0 : index
    %c0_1 = arith.constant 0 : index
    %37 = vector.load %arg1[%c0, %c0_1] : memref<4x512xf32, #tpu.memory_space<vmem>>, vector<4x512xf32>
    %c0_2 = arith.constant 0 : index
    %c0_3 = arith.constant 0 : index
    %38 = vector.load %arg2[%c0_2, %c0_3] : memref<2x4xf32, #tpu.memory_space<vmem>>, vector<2x4xf32>
    %cst = arith.constant dense<0.000000e+00> : vector<2x512xf32>
    %39 = tpu.matmul %38, %37, %cst {dimension_numbers = #tpu.dot_dimension_numbers<[1], [0], [0], [1], [0, 0, 1, 1], [], []>, precision = #tpu.contract_precision<fp32>} : vector<2x4xf32>, vector<4x512xf32>, vector<2x512xf32> -> vector<2x512xf32>
    %c0_4 = arith.constant 0 : index
    %c0_5 = arith.constant 0 : index
    %40 = vector.load %arg3[%c0_4, %c0_5] : memref<2x1xf32, #tpu.memory_space<vmem>>, vector<2x1xf32>
    %41 = vector.broadcast %40 : vector<2x1xf32> to vector<2x512xf32>
    %42 = arith.addf %39, %41 : vector<2x512xf32>
    %cst_6 = arith.constant 2.000000e+01 : f32
    %43 = vector.broadcast %cst_6 : f32 to vector<2x512xf32>
    %44 = arith.minimumf %42, %43 : vector<2x512xf32>
    %45 = math.exp %44 : vector<2x512xf32>
    %cst_7 = arith.constant 2.000000e+00 : f32
    %46 = vector.broadcast %cst_7 : f32 to vector<2x512xf32>
    %47 = arith.addf %45, %46 : vector<2x512xf32>
    %48 = arith.mulf %45, %47 : vector<2x512xf32>
    %cst_8 = arith.constant 2.000000e+00 : f32
    %49 = vector.broadcast %cst_8 : f32 to vector<2x512xf32>
    %50 = arith.addf %48, %49 : vector<2x512xf32>
    %51 = arith.divf %48, %50 : vector<2x512xf32>
    %52 = arith.mulf %42, %51 : vector<2x512xf32>
    %c32_i32_9 = arith.constant 32 : i32
    %53 = tpu.dynamic_rotate %52 by %c32_i32_9 dim 1 : vector<2x512xf32>, i32 -> vector<2x512xf32>
    %cst_10 = arith.constant 0.000000e+00 : f32
    %54 = vector.shape_cast %16 : vector<1x512xi1> to vector<1x512xi1>
    %55 = vector.broadcast %54 : vector<1x512xi1> to vector<2x512xi1>
    %56 = vector.broadcast %cst_10 : f32 to vector<2x512xf32>
    %57 = arith.select %55, %53, %56 : vector<2x512xi1>, vector<2x512xf32>
    %c16_i32_11 = arith.constant 16 : i32
    %58 = tpu.dynamic_rotate %52 by %c16_i32_11 dim 1 : vector<2x512xf32>, i32 -> vector<2x512xf32>
    %cst_12 = arith.constant 0.000000e+00 : f32
    %59 = vector.shape_cast %8 : vector<1x512xi1> to vector<1x512xi1>
    %60 = vector.broadcast %59 : vector<1x512xi1> to vector<2x512xi1>
    %61 = vector.broadcast %cst_12 : f32 to vector<2x512xf32>
    %62 = arith.select %60, %58, %61 : vector<2x512xi1>, vector<2x512xf32>
    %c496_i32 = arith.constant 496 : i32
    %63 = tpu.dynamic_rotate %52 by %c496_i32 dim 1 : vector<2x512xf32>, i32 -> vector<2x512xf32>
    %cst_13 = arith.constant 0.000000e+00 : f32
    %64 = vector.shape_cast %6 : vector<1x512xi1> to vector<1x512xi1>
    %65 = vector.broadcast %64 : vector<1x512xi1> to vector<2x512xi1>
    %66 = vector.broadcast %cst_13 : f32 to vector<2x512xf32>
    %67 = arith.select %65, %63, %66 : vector<2x512xi1>, vector<2x512xf32>
    %c480_i32 = arith.constant 480 : i32
    %68 = tpu.dynamic_rotate %52 by %c480_i32 dim 1 : vector<2x512xf32>, i32 -> vector<2x512xf32>
    %cst_14 = arith.constant 0.000000e+00 : f32
    %69 = vector.shape_cast %14 : vector<1x512xi1> to vector<1x512xi1>
    %70 = vector.broadcast %69 : vector<1x512xi1> to vector<2x512xi1>
    %71 = vector.broadcast %cst_14 : f32 to vector<2x512xf32>
    %72 = arith.select %70, %68, %71 : vector<2x512xi1>, vector<2x512xf32>
    %73 = tpu.concatenate %57, %62, %52, %67, %72 in 0 : vector<2x512xf32>, vector<2x512xf32>, vector<2x512xf32>, vector<2x512xf32>, vector<2x512xf32> -> vector<10x512xf32>
    %c0_15 = arith.constant 0 : index
    %c0_16 = arith.constant 0 : index
    %c0_17 = arith.constant 0 : index
    %74 = vector.load %arg4[%c0_15, %c0_16, %c0_17] : memref<5x10x1xf32, #tpu.memory_space<vmem>>, vector<1x10x1xf32>
    %75 = vector.shape_cast %74 : vector<1x10x1xf32> to vector<10x1xf32>
    %c2_i32_18 = arith.constant 2 : i32
    %76 = tpu.dynamic_rotate %73 by %c2_i32_18 dim 1 : vector<10x512xf32>, i32 -> vector<10x512xf32>
    %cst_19 = arith.constant 0.000000e+00 : f32
    %77 = vector.shape_cast %20 : vector<1x512xi1> to vector<1x512xi1>
    %78 = vector.broadcast %77 : vector<1x512xi1> to vector<10x512xi1>
    %79 = vector.broadcast %cst_19 : f32 to vector<10x512xf32>
    %80 = arith.select %78, %76, %79 : vector<10x512xi1>, vector<10x512xf32>
    %81 = vector.broadcast %75 : vector<10x1xf32> to vector<10x512xf32>
    %82 = arith.mulf %81, %80 : vector<10x512xf32>
    %83 = vector.extract_strided_slice %82 {offsets = [0, 0], sizes = [2, 512], strides = [1, 1]} : vector<10x512xf32> to vector<2x512xf32>
    %84 = vector.extract_strided_slice %82 {offsets = [2, 0], sizes = [2, 512], strides = [1, 1]} : vector<10x512xf32> to vector<2x512xf32>
    %85 = arith.addf %83, %84 : vector<2x512xf32>
    %86 = vector.extract_strided_slice %82 {offsets = [4, 0], sizes = [2, 512], strides = [1, 1]} : vector<10x512xf32> to vector<2x512xf32>
    %87 = arith.addf %85, %86 : vector<2x512xf32>
    %88 = vector.extract_strided_slice %82 {offsets = [6, 0], sizes = [2, 512], strides = [1, 1]} : vector<10x512xf32> to vector<2x512xf32>
    %89 = arith.addf %87, %88 : vector<2x512xf32>
    %90 = vector.extract_strided_slice %82 {offsets = [8, 0], sizes = [2, 512], strides = [1, 1]} : vector<10x512xf32> to vector<2x512xf32>
    %91 = arith.addf %89, %90 : vector<2x512xf32>
    %c1 = arith.constant 1 : index
    %c0_20 = arith.constant 0 : index
    %c0_21 = arith.constant 0 : index
    %92 = vector.load %arg4[%c1, %c0_20, %c0_21] : memref<5x10x1xf32, #tpu.memory_space<vmem>>, vector<1x10x1xf32>
    %93 = vector.shape_cast %92 : vector<1x10x1xf32> to vector<10x1xf32>
    %c1_i32_22 = arith.constant 1 : i32
    %94 = tpu.dynamic_rotate %73 by %c1_i32_22 dim 1 : vector<10x512xf32>, i32 -> vector<10x512xf32>
    %cst_23 = arith.constant 0.000000e+00 : f32
    %95 = vector.shape_cast %12 : vector<1x512xi1> to vector<1x512xi1>
    %96 = vector.broadcast %95 : vector<1x512xi1> to vector<10x512xi1>
    %97 = vector.broadcast %cst_23 : f32 to vector<10x512xf32>
    %98 = arith.select %96, %94, %97 : vector<10x512xi1>, vector<10x512xf32>
    %99 = vector.broadcast %93 : vector<10x1xf32> to vector<10x512xf32>
    %100 = arith.mulf %99, %98 : vector<10x512xf32>
    %101 = vector.extract_strided_slice %100 {offsets = [0, 0], sizes = [2, 512], strides = [1, 1]} : vector<10x512xf32> to vector<2x512xf32>
    %102 = vector.extract_strided_slice %100 {offsets = [2, 0], sizes = [2, 512], strides = [1, 1]} : vector<10x512xf32> to vector<2x512xf32>
    %103 = arith.addf %101, %102 : vector<2x512xf32>
    %104 = vector.extract_strided_slice %100 {offsets = [4, 0], sizes = [2, 512], strides = [1, 1]} : vector<10x512xf32> to vector<2x512xf32>
    %105 = arith.addf %103, %104 : vector<2x512xf32>
    %106 = vector.extract_strided_slice %100 {offsets = [6, 0], sizes = [2, 512], strides = [1, 1]} : vector<10x512xf32> to vector<2x512xf32>
    %107 = arith.addf %105, %106 : vector<2x512xf32>
    %108 = vector.extract_strided_slice %100 {offsets = [8, 0], sizes = [2, 512], strides = [1, 1]} : vector<10x512xf32> to vector<2x512xf32>
    %109 = arith.addf %107, %108 : vector<2x512xf32>
    %110 = arith.addf %91, %109 : vector<2x512xf32>
    %c2 = arith.constant 2 : index
    %c0_24 = arith.constant 0 : index
    %c0_25 = arith.constant 0 : index
    %111 = vector.load %arg4[%c2, %c0_24, %c0_25] : memref<5x10x1xf32, #tpu.memory_space<vmem>>, vector<1x10x1xf32>
    %112 = vector.shape_cast %111 : vector<1x10x1xf32> to vector<10x1xf32>
    %113 = vector.broadcast %112 : vector<10x1xf32> to vector<10x512xf32>
    %114 = arith.mulf %113, %73 : vector<10x512xf32>
    %115 = vector.extract_strided_slice %114 {offsets = [0, 0], sizes = [2, 512], strides = [1, 1]} : vector<10x512xf32> to vector<2x512xf32>
    %116 = vector.extract_strided_slice %114 {offsets = [2, 0], sizes = [2, 512], strides = [1, 1]} : vector<10x512xf32> to vector<2x512xf32>
    %117 = arith.addf %115, %116 : vector<2x512xf32>
    %118 = vector.extract_strided_slice %114 {offsets = [4, 0], sizes = [2, 512], strides = [1, 1]} : vector<10x512xf32> to vector<2x512xf32>
    %119 = arith.addf %117, %118 : vector<2x512xf32>
    %120 = vector.extract_strided_slice %114 {offsets = [6, 0], sizes = [2, 512], strides = [1, 1]} : vector<10x512xf32> to vector<2x512xf32>
    %121 = arith.addf %119, %120 : vector<2x512xf32>
    %122 = vector.extract_strided_slice %114 {offsets = [8, 0], sizes = [2, 512], strides = [1, 1]} : vector<10x512xf32> to vector<2x512xf32>
    %123 = arith.addf %121, %122 : vector<2x512xf32>
    %124 = arith.addf %110, %123 : vector<2x512xf32>
    %c3 = arith.constant 3 : index
    %c0_26 = arith.constant 0 : index
    %c0_27 = arith.constant 0 : index
    %125 = vector.load %arg4[%c3, %c0_26, %c0_27] : memref<5x10x1xf32, #tpu.memory_space<vmem>>, vector<1x10x1xf32>
    %126 = vector.shape_cast %125 : vector<1x10x1xf32> to vector<10x1xf32>
    %c511_i32 = arith.constant 511 : i32
    %127 = tpu.dynamic_rotate %73 by %c511_i32 dim 1 : vector<10x512xf32>, i32 -> vector<10x512xf32>
    %cst_28 = arith.constant 0.000000e+00 : f32
    %128 = vector.shape_cast %10 : vector<1x512xi1> to vector<1x512xi1>
    %129 = vector.broadcast %128 : vector<1x512xi1> to vector<10x512xi1>
    %130 = vector.broadcast %cst_28 : f32 to vector<10x512xf32>
    %131 = arith.select %129, %127, %130 : vector<10x512xi1>, vector<10x512xf32>
    %132 = vector.broadcast %126 : vector<10x1xf32> to vector<10x512xf32>
    %133 = arith.mulf %132, %131 : vector<10x512xf32>
    %134 = vector.extract_strided_slice %133 {offsets = [0, 0], sizes = [2, 512], strides = [1, 1]} : vector<10x512xf32> to vector<2x512xf32>
    %135 = vector.extract_strided_slice %133 {offsets = [2, 0], sizes = [2, 512], strides = [1, 1]} : vector<10x512xf32> to vector<2x512xf32>
    %136 = arith.addf %134, %135 : vector<2x512xf32>
    %137 = vector.extract_strided_slice %133 {offsets = [4, 0], sizes = [2, 512], strides = [1, 1]} : vector<10x512xf32> to vector<2x512xf32>
    %138 = arith.addf %136, %137 : vector<2x512xf32>
    %139 = vector.extract_strided_slice %133 {offsets = [6, 0], sizes = [2, 512], strides = [1, 1]} : vector<10x512xf32> to vector<2x512xf32>
    %140 = arith.addf %138, %139 : vector<2x512xf32>
    %141 = vector.extract_strided_slice %133 {offsets = [8, 0], sizes = [2, 512], strides = [1, 1]} : vector<10x512xf32> to vector<2x512xf32>
    %142 = arith.addf %140, %141 : vector<2x512xf32>
    %143 = arith.addf %124, %142 : vector<2x512xf32>
    %c4 = arith.constant 4 : index
    %c0_29 = arith.constant 0 : index
    %c0_30 = arith.constant 0 : index
    %144 = vector.load %arg4[%c4, %c0_29, %c0_30] : memref<5x10x1xf32, #tpu.memory_space<vmem>>, vector<1x10x1xf32>
    %145 = vector.shape_cast %144 : vector<1x10x1xf32> to vector<10x1xf32>
    %c510_i32 = arith.constant 510 : i32
    %146 = tpu.dynamic_rotate %73 by %c510_i32 dim 1 : vector<10x512xf32>, i32 -> vector<10x512xf32>
    %cst_31 = arith.constant 0.000000e+00 : f32
    %147 = vector.shape_cast %18 : vector<1x512xi1> to vector<1x512xi1>
    %148 = vector.broadcast %147 : vector<1x512xi1> to vector<10x512xi1>
    %149 = vector.broadcast %cst_31 : f32 to vector<10x512xf32>
    %150 = arith.select %148, %146, %149 : vector<10x512xi1>, vector<10x512xf32>
    %151 = vector.broadcast %145 : vector<10x1xf32> to vector<10x512xf32>
    %152 = arith.mulf %151, %150 : vector<10x512xf32>
    %153 = vector.extract_strided_slice %152 {offsets = [0, 0], sizes = [2, 512], strides = [1, 1]} : vector<10x512xf32> to vector<2x512xf32>
    %154 = vector.extract_strided_slice %152 {offsets = [2, 0], sizes = [2, 512], strides = [1, 1]} : vector<10x512xf32> to vector<2x512xf32>
    %155 = arith.addf %153, %154 : vector<2x512xf32>
    %156 = vector.extract_strided_slice %152 {offsets = [4, 0], sizes = [2, 512], strides = [1, 1]} : vector<10x512xf32> to vector<2x512xf32>
    %157 = arith.addf %155, %156 : vector<2x512xf32>
    %158 = vector.extract_strided_slice %152 {offsets = [6, 0], sizes = [2, 512], strides = [1, 1]} : vector<10x512xf32> to vector<2x512xf32>
    %159 = arith.addf %157, %158 : vector<2x512xf32>
    %160 = vector.extract_strided_slice %152 {offsets = [8, 0], sizes = [2, 512], strides = [1, 1]} : vector<10x512xf32> to vector<2x512xf32>
    %161 = arith.addf %159, %160 : vector<2x512xf32>
    %162 = arith.addf %143, %161 : vector<2x512xf32>
    %c0_32 = arith.constant 0 : index
    %c0_33 = arith.constant 0 : index
    %163 = vector.load %arg5[%c0_32, %c0_33] : memref<2x1xf32, #tpu.memory_space<vmem>>, vector<2x1xf32>
    %164 = vector.broadcast %163 : vector<2x1xf32> to vector<2x512xf32>
    %165 = arith.addf %162, %164 : vector<2x512xf32>
    %cst_34 = arith.constant 2.000000e+01 : f32
    %166 = vector.broadcast %cst_34 : f32 to vector<2x512xf32>
    %167 = arith.minimumf %165, %166 : vector<2x512xf32>
    %168 = math.exp %167 : vector<2x512xf32>
    %cst_35 = arith.constant 2.000000e+00 : f32
    %169 = vector.broadcast %cst_35 : f32 to vector<2x512xf32>
    %170 = arith.addf %168, %169 : vector<2x512xf32>
    %171 = arith.mulf %168, %170 : vector<2x512xf32>
    %cst_36 = arith.constant 2.000000e+00 : f32
    %172 = vector.broadcast %cst_36 : f32 to vector<2x512xf32>
    %173 = arith.addf %171, %172 : vector<2x512xf32>
    %174 = arith.divf %171, %173 : vector<2x512xf32>
    %175 = arith.mulf %165, %174 : vector<2x512xf32>
    %176 = tpu.concatenate %52, %175 in 0 : vector<2x512xf32>, vector<2x512xf32> -> vector<4x512xf32>
    %c64_i32_37 = arith.constant 64 : i32
    %177 = tpu.dynamic_rotate %176 by %c64_i32_37 dim 1 : vector<4x512xf32>, i32 -> vector<4x512xf32>
    %cst_38 = arith.constant 0.000000e+00 : f32
    %178 = vector.shape_cast %32 : vector<1x512xi1> to vector<1x512xi1>
    %179 = vector.broadcast %178 : vector<1x512xi1> to vector<4x512xi1>
    %180 = vector.broadcast %cst_38 : f32 to vector<4x512xf32>
    %181 = arith.select %179, %177, %180 : vector<4x512xi1>, vector<4x512xf32>
    %c48_i32_39 = arith.constant 48 : i32
    %182 = tpu.dynamic_rotate %176 by %c48_i32_39 dim 1 : vector<4x512xf32>, i32 -> vector<4x512xf32>
    %cst_40 = arith.constant 0.000000e+00 : f32
    %183 = vector.shape_cast %24 : vector<1x512xi1> to vector<1x512xi1>
    %184 = vector.broadcast %183 : vector<1x512xi1> to vector<4x512xi1>
    %185 = vector.broadcast %cst_40 : f32 to vector<4x512xf32>
    %186 = arith.select %184, %182, %185 : vector<4x512xi1>, vector<4x512xf32>
    %c32_i32_41 = arith.constant 32 : i32
    %187 = tpu.dynamic_rotate %176 by %c32_i32_41 dim 1 : vector<4x512xf32>, i32 -> vector<4x512xf32>
    %cst_42 = arith.constant 0.000000e+00 : f32
    %188 = vector.shape_cast %16 : vector<1x512xi1> to vector<1x512xi1>
    %189 = vector.broadcast %188 : vector<1x512xi1> to vector<4x512xi1>
    %190 = vector.broadcast %cst_42 : f32 to vector<4x512xf32>
    %191 = arith.select %189, %187, %190 : vector<4x512xi1>, vector<4x512xf32>
    %c16_i32_43 = arith.constant 16 : i32
    %192 = tpu.dynamic_rotate %176 by %c16_i32_43 dim 1 : vector<4x512xf32>, i32 -> vector<4x512xf32>
    %cst_44 = arith.constant 0.000000e+00 : f32
    %193 = vector.shape_cast %8 : vector<1x512xi1> to vector<1x512xi1>
    %194 = vector.broadcast %193 : vector<1x512xi1> to vector<4x512xi1>
    %195 = vector.broadcast %cst_44 : f32 to vector<4x512xf32>
    %196 = arith.select %194, %192, %195 : vector<4x512xi1>, vector<4x512xf32>
    %c496_i32_45 = arith.constant 496 : i32
    %197 = tpu.dynamic_rotate %176 by %c496_i32_45 dim 1 : vector<4x512xf32>, i32 -> vector<4x512xf32>
    %cst_46 = arith.constant 0.000000e+00 : f32
    %198 = vector.shape_cast %6 : vector<1x512xi1> to vector<1x512xi1>
    %199 = vector.broadcast %198 : vector<1x512xi1> to vector<4x512xi1>
    %200 = vector.broadcast %cst_46 : f32 to vector<4x512xf32>
    %201 = arith.select %199, %197, %200 : vector<4x512xi1>, vector<4x512xf32>
    %c480_i32_47 = arith.constant 480 : i32
    %202 = tpu.dynamic_rotate %176 by %c480_i32_47 dim 1 : vector<4x512xf32>, i32 -> vector<4x512xf32>
    %cst_48 = arith.constant 0.000000e+00 : f32
    %203 = vector.shape_cast %14 : vector<1x512xi1> to vector<1x512xi1>
    %204 = vector.broadcast %203 : vector<1x512xi1> to vector<4x512xi1>
    %205 = vector.broadcast %cst_48 : f32 to vector<4x512xf32>
    %206 = arith.select %204, %202, %205 : vector<4x512xi1>, vector<4x512xf32>
    %c464_i32 = arith.constant 464 : i32
    %207 = tpu.dynamic_rotate %176 by %c464_i32 dim 1 : vector<4x512xf32>, i32 -> vector<4x512xf32>
    %cst_49 = arith.constant 0.000000e+00 : f32
    %208 = vector.shape_cast %22 : vector<1x512xi1> to vector<1x512xi1>
    %209 = vector.broadcast %208 : vector<1x512xi1> to vector<4x512xi1>
    %210 = vector.broadcast %cst_49 : f32 to vector<4x512xf32>
    %211 = arith.select %209, %207, %210 : vector<4x512xi1>, vector<4x512xf32>
    %c448_i32 = arith.constant 448 : i32
    %212 = tpu.dynamic_rotate %176 by %c448_i32 dim 1 : vector<4x512xf32>, i32 -> vector<4x512xf32>
    %cst_50 = arith.constant 0.000000e+00 : f32
    %213 = vector.shape_cast %30 : vector<1x512xi1> to vector<1x512xi1>
    %214 = vector.broadcast %213 : vector<1x512xi1> to vector<4x512xi1>
    %215 = vector.broadcast %cst_50 : f32 to vector<4x512xf32>
    %216 = arith.select %214, %212, %215 : vector<4x512xi1>, vector<4x512xf32>
    %217 = tpu.concatenate %181, %186, %191, %196, %176, %201, %206, %211, %216 in 0 : vector<4x512xf32>, vector<4x512xf32>, vector<4x512xf32>, vector<4x512xf32>, vector<4x512xf32>, vector<4x512xf32>, vector<4x512xf32>, vector<4x512xf32>, vector<4x512xf32> -> vector<36x512xf32>
    %c4_i32_51 = arith.constant 4 : i32
    %218 = tpu.dynamic_rotate %217 by %c4_i32_51 dim 1 : vector<36x512xf32>, i32 -> vector<36x512xf32>
    %cst_52 = arith.constant 0.000000e+00 : f32
    %219 = vector.shape_cast %36 : vector<1x512xi1> to vector<1x512xi1>
    %220 = vector.broadcast %219 : vector<1x512xi1> to vector<36x512xi1>
    %221 = vector.broadcast %cst_52 : f32 to vector<36x512xf32>
    %222 = arith.select %220, %218, %221 : vector<36x512xi1>, vector<36x512xf32>
    %c3_i32_53 = arith.constant 3 : i32
    %223 = tpu.dynamic_rotate %217 by %c3_i32_53 dim 1 : vector<36x512xf32>, i32 -> vector<36x512xf32>
    %cst_54 = arith.constant 0.000000e+00 : f32
    %224 = vector.shape_cast %28 : vector<1x512xi1> to vector<1x512xi1>
    %225 = vector.broadcast %224 : vector<1x512xi1> to vector<36x512xi1>
    %226 = vector.broadcast %cst_54 : f32 to vector<36x512xf32>
    %227 = arith.select %225, %223, %226 : vector<36x512xi1>, vector<36x512xf32>
    %c2_i32_55 = arith.constant 2 : i32
    %228 = tpu.dynamic_rotate %217 by %c2_i32_55 dim 1 : vector<36x512xf32>, i32 -> vector<36x512xf32>
    %cst_56 = arith.constant 0.000000e+00 : f32
    %229 = vector.shape_cast %20 : vector<1x512xi1> to vector<1x512xi1>
    %230 = vector.broadcast %229 : vector<1x512xi1> to vector<36x512xi1>
    %231 = vector.broadcast %cst_56 : f32 to vector<36x512xf32>
    %232 = arith.select %230, %228, %231 : vector<36x512xi1>, vector<36x512xf32>
    %c1_i32_57 = arith.constant 1 : i32
    %233 = tpu.dynamic_rotate %217 by %c1_i32_57 dim 1 : vector<36x512xf32>, i32 -> vector<36x512xf32>
    %cst_58 = arith.constant 0.000000e+00 : f32
    %234 = vector.shape_cast %12 : vector<1x512xi1> to vector<1x512xi1>
    %235 = vector.broadcast %234 : vector<1x512xi1> to vector<36x512xi1>
    %236 = vector.broadcast %cst_58 : f32 to vector<36x512xf32>
    %237 = arith.select %235, %233, %236 : vector<36x512xi1>, vector<36x512xf32>
    %c511_i32_59 = arith.constant 511 : i32
    %238 = tpu.dynamic_rotate %217 by %c511_i32_59 dim 1 : vector<36x512xf32>, i32 -> vector<36x512xf32>
    %cst_60 = arith.constant 0.000000e+00 : f32
    %239 = vector.shape_cast %10 : vector<1x512xi1> to vector<1x512xi1>
    %240 = vector.broadcast %239 : vector<1x512xi1> to vector<36x512xi1>
    %241 = vector.broadcast %cst_60 : f32 to vector<36x512xf32>
    %242 = arith.select %240, %238, %241 : vector<36x512xi1>, vector<36x512xf32>
    %c510_i32_61 = arith.constant 510 : i32
    %243 = tpu.dynamic_rotate %217 by %c510_i32_61 dim 1 : vector<36x512xf32>, i32 -> vector<36x512xf32>
    %cst_62 = arith.constant 0.000000e+00 : f32
    %244 = vector.shape_cast %18 : vector<1x512xi1> to vector<1x512xi1>
    %245 = vector.broadcast %244 : vector<1x512xi1> to vector<36x512xi1>
    %246 = vector.broadcast %cst_62 : f32 to vector<36x512xf32>
    %247 = arith.select %245, %243, %246 : vector<36x512xi1>, vector<36x512xf32>
    %c509_i32 = arith.constant 509 : i32
    %248 = tpu.dynamic_rotate %217 by %c509_i32 dim 1 : vector<36x512xf32>, i32 -> vector<36x512xf32>
    %cst_63 = arith.constant 0.000000e+00 : f32
    %249 = vector.shape_cast %26 : vector<1x512xi1> to vector<1x512xi1>
    %250 = vector.broadcast %249 : vector<1x512xi1> to vector<36x512xi1>
    %251 = vector.broadcast %cst_63 : f32 to vector<36x512xf32>
    %252 = arith.select %250, %248, %251 : vector<36x512xi1>, vector<36x512xf32>
    %c508_i32 = arith.constant 508 : i32
    %253 = tpu.dynamic_rotate %217 by %c508_i32 dim 1 : vector<36x512xf32>, i32 -> vector<36x512xf32>
    %cst_64 = arith.constant 0.000000e+00 : f32
    %254 = vector.shape_cast %34 : vector<1x512xi1> to vector<1x512xi1>
    %255 = vector.broadcast %254 : vector<1x512xi1> to vector<36x512xi1>
    %256 = vector.broadcast %cst_64 : f32 to vector<36x512xf32>
    %257 = arith.select %255, %253, %256 : vector<36x512xi1>, vector<36x512xf32>
    %258 = tpu.concatenate %222, %227, %232, %237, %217, %242, %247, %252, %257 in 0 : vector<36x512xf32>, vector<36x512xf32>, vector<36x512xf32>, vector<36x512xf32>, vector<36x512xf32>, vector<36x512xf32>, vector<36x512xf32>, vector<36x512xf32>, vector<36x512xf32> -> vector<324x512xf32>
    %c0_65 = arith.constant 0 : index
    %c0_66 = arith.constant 0 : index
    %259 = vector.load %arg6[%c0_65, %c0_66] : memref<4x324xf32, #tpu.memory_space<vmem>>, vector<4x324xf32>
    %cst_67 = arith.constant dense<0.000000e+00> : vector<4x512xf32>
    %260 = tpu.matmul %259, %258, %cst_67 {dimension_numbers = #tpu.dot_dimension_numbers<[1], [0], [0], [1], [0, 0, 1, 1], [], []>, precision = #tpu.contract_precision<fp32>} : vector<4x324xf32>, vector<324x512xf32>, vector<4x512xf32> -> vector<4x512xf32>
    %c0_68 = arith.constant 0 : index
    %c0_69 = arith.constant 0 : index
    %261 = vector.load %arg7[%c0_68, %c0_69] : memref<4x1xf32, #tpu.memory_space<vmem>>, vector<4x1xf32>
    %262 = vector.broadcast %261 : vector<4x1xf32> to vector<4x512xf32>
    %263 = arith.addf %260, %262 : vector<4x512xf32>
    %cst_70 = arith.constant 2.000000e+01 : f32
    %264 = vector.broadcast %cst_70 : f32 to vector<4x512xf32>
    %265 = arith.minimumf %263, %264 : vector<4x512xf32>
    %266 = math.exp %265 : vector<4x512xf32>
    %cst_71 = arith.constant 2.000000e+00 : f32
    %267 = vector.broadcast %cst_71 : f32 to vector<4x512xf32>
    %268 = arith.addf %266, %267 : vector<4x512xf32>
    %269 = arith.mulf %266, %268 : vector<4x512xf32>
    %cst_72 = arith.constant 2.000000e+00 : f32
    %270 = vector.broadcast %cst_72 : f32 to vector<4x512xf32>
    %271 = arith.addf %269, %270 : vector<4x512xf32>
    %272 = arith.divf %269, %271 : vector<4x512xf32>
    %273 = arith.mulf %263, %272 : vector<4x512xf32>
    %c0_i32 = arith.constant 0 : i32
    %274 = vector.broadcast %c0_i32 : i32 to vector<1x512xi32>
    %275 = arith.cmpi sge, %0, %274 : vector<1x512xi32>
    %c256_i32 = arith.constant 256 : i32
    %276 = vector.broadcast %c256_i32 : i32 to vector<1x512xi32>
    %277 = arith.cmpi slt, %0, %276 : vector<1x512xi32>
    %278 = arith.andi %275, %277 : vector<1x512xi1>
    %cst_73 = arith.constant 0.000000e+00 : f32
    %279 = vector.shape_cast %278 : vector<1x512xi1> to vector<1x512xi1>
    %280 = vector.broadcast %279 : vector<1x512xi1> to vector<4x512xi1>
    %281 = vector.broadcast %cst_73 : f32 to vector<4x512xf32>
    %282 = arith.select %280, %273, %281 : vector<4x512xi1>, vector<4x512xf32>
    %cst_74 = arith.constant dense<0.000000e+00> : vector<4xf32>
    %283 = vector.multi_reduction <add>, %282, %cst_74 [1] : vector<4x512xf32> to vector<4xf32>
    %284 = vector.shape_cast %283 : vector<4xf32> to vector<4x1xf32>
    %cst_75 = arith.constant 3.906250e-03 : f32
    %285 = vector.broadcast %cst_75 : f32 to vector<4x1xf32>
    %286 = arith.mulf %284, %285 : vector<4x1xf32>
    %c0_76 = arith.constant 0 : index
    %c0_77 = arith.constant 0 : index
    %287 = vector.load %arg8[%c0_76, %c0_77] : memref<8x4xf32, #tpu.memory_space<vmem>>, vector<8x4xf32>
    %cst_78 = arith.constant dense<0.000000e+00> : vector<8x1xf32>
    %288 = tpu.matmul %287, %286, %cst_78 {dimension_numbers = #tpu.dot_dimension_numbers<[1], [0], [0], [1], [0, 0, 1, 1], [], []>, precision = #tpu.contract_precision<fp32>} : vector<8x4xf32>, vector<4x1xf32>, vector<8x1xf32> -> vector<8x1xf32>
    %c0_79 = arith.constant 0 : index
    %c0_80 = arith.constant 0 : index
    %289 = vector.load %arg9[%c0_79, %c0_80] : memref<8x1xf32, #tpu.memory_space<vmem>>, vector<8x1xf32>
    %290 = arith.addf %288, %289 : vector<8x1xf32>
    %cst_81 = arith.constant 2.000000e+01 : f32
    %291 = vector.broadcast %cst_81 : f32 to vector<8x1xf32>
    %292 = arith.minimumf %290, %291 : vector<8x1xf32>
    %293 = math.exp %292 : vector<8x1xf32>
    %cst_82 = arith.constant 2.000000e+00 : f32
    %294 = vector.broadcast %cst_82 : f32 to vector<8x1xf32>
    %295 = arith.addf %293, %294 : vector<8x1xf32>
    %296 = arith.mulf %293, %295 : vector<8x1xf32>
    %cst_83 = arith.constant 2.000000e+00 : f32
    %297 = vector.broadcast %cst_83 : f32 to vector<8x1xf32>
    %298 = arith.addf %296, %297 : vector<8x1xf32>
    %299 = arith.divf %296, %298 : vector<8x1xf32>
    %300 = arith.mulf %290, %299 : vector<8x1xf32>
    %c0_84 = arith.constant 0 : index
    %c0_85 = arith.constant 0 : index
    %301 = vector.load %arg10[%c0_84, %c0_85] : memref<4x8xf32, #tpu.memory_space<vmem>>, vector<4x8xf32>
    %cst_86 = arith.constant dense<0.000000e+00> : vector<4x1xf32>
    %302 = tpu.matmul %301, %300, %cst_86 {dimension_numbers = #tpu.dot_dimension_numbers<[1], [0], [0], [1], [0, 0, 1, 1], [], []>, precision = #tpu.contract_precision<fp32>} : vector<4x8xf32>, vector<8x1xf32>, vector<4x1xf32> -> vector<4x1xf32>
    %c0_87 = arith.constant 0 : index
    %c0_88 = arith.constant 0 : index
    %303 = vector.load %arg11[%c0_87, %c0_88] : memref<4x1xf32, #tpu.memory_space<vmem>>, vector<4x1xf32>
    %304 = arith.addf %302, %303 : vector<4x1xf32>
    %cst_89 = arith.constant 0.000000e+00 : f32
    %305 = vector.broadcast %cst_89 : f32 to vector<4x1xf32>
    %306 = arith.subf %305, %304 : vector<4x1xf32>
    %307 = math.exp %306 : vector<4x1xf32>
    %cst_90 = arith.constant 1.000000e+00 : f32
    %308 = vector.broadcast %cst_90 : f32 to vector<4x1xf32>
    %309 = arith.addf %308, %307 : vector<4x1xf32>
    %cst_91 = arith.constant 1.000000e+00 : f32
    %310 = vector.broadcast %cst_91 : f32 to vector<4x1xf32>
    %311 = arith.divf %310, %309 : vector<4x1xf32>
    %cst_92 = arith.constant 0.000000e+00 : f32
    %312 = vector.shape_cast %278 : vector<1x512xi1> to vector<1x512xi1>
    %313 = vector.broadcast %312 : vector<1x512xi1> to vector<4x512xi1>
    %314 = vector.shape_cast %311 : vector<4x1xf32> to vector<4x1xf32>
    %315 = vector.broadcast %314 : vector<4x1xf32> to vector<4x512xf32>
    %316 = vector.broadcast %cst_92 : f32 to vector<4x512xf32>
    %317 = arith.select %313, %315, %316 : vector<4x512xi1>, vector<4x512xf32>
    %c256_i32_93 = arith.constant 256 : i32
    %318 = vector.broadcast %c256_i32_93 : i32 to vector<1x512xi32>
    %319 = arith.cmpi sge, %0, %318 : vector<1x512xi32>
    %c512_i32 = arith.constant 512 : i32
    %320 = vector.broadcast %c512_i32 : i32 to vector<1x512xi32>
    %321 = arith.cmpi slt, %0, %320 : vector<1x512xi32>
    %322 = arith.andi %319, %321 : vector<1x512xi1>
    %cst_94 = arith.constant 0.000000e+00 : f32
    %323 = vector.shape_cast %322 : vector<1x512xi1> to vector<1x512xi1>
    %324 = vector.broadcast %323 : vector<1x512xi1> to vector<4x512xi1>
    %325 = vector.broadcast %cst_94 : f32 to vector<4x512xf32>
    %326 = arith.select %324, %273, %325 : vector<4x512xi1>, vector<4x512xf32>
    %cst_95 = arith.constant dense<0.000000e+00> : vector<4xf32>
    %327 = vector.multi_reduction <add>, %326, %cst_95 [1] : vector<4x512xf32> to vector<4xf32>
    %328 = vector.shape_cast %327 : vector<4xf32> to vector<4x1xf32>
    %cst_96 = arith.constant 3.906250e-03 : f32
    %329 = vector.broadcast %cst_96 : f32 to vector<4x1xf32>
    %330 = arith.mulf %328, %329 : vector<4x1xf32>
    %c0_97 = arith.constant 0 : index
    %c0_98 = arith.constant 0 : index
    %331 = vector.load %arg8[%c0_97, %c0_98] : memref<8x4xf32, #tpu.memory_space<vmem>>, vector<8x4xf32>
    %cst_99 = arith.constant dense<0.000000e+00> : vector<8x1xf32>
    %332 = tpu.matmul %331, %330, %cst_99 {dimension_numbers = #tpu.dot_dimension_numbers<[1], [0], [0], [1], [0, 0, 1, 1], [], []>, precision = #tpu.contract_precision<fp32>} : vector<8x4xf32>, vector<4x1xf32>, vector<8x1xf32> -> vector<8x1xf32>
    %c0_100 = arith.constant 0 : index
    %c0_101 = arith.constant 0 : index
    %333 = vector.load %arg9[%c0_100, %c0_101] : memref<8x1xf32, #tpu.memory_space<vmem>>, vector<8x1xf32>
    %334 = arith.addf %332, %333 : vector<8x1xf32>
    %cst_102 = arith.constant 2.000000e+01 : f32
    %335 = vector.broadcast %cst_102 : f32 to vector<8x1xf32>
    %336 = arith.minimumf %334, %335 : vector<8x1xf32>
    %337 = math.exp %336 : vector<8x1xf32>
    %cst_103 = arith.constant 2.000000e+00 : f32
    %338 = vector.broadcast %cst_103 : f32 to vector<8x1xf32>
    %339 = arith.addf %337, %338 : vector<8x1xf32>
    %340 = arith.mulf %337, %339 : vector<8x1xf32>
    %cst_104 = arith.constant 2.000000e+00 : f32
    %341 = vector.broadcast %cst_104 : f32 to vector<8x1xf32>
    %342 = arith.addf %340, %341 : vector<8x1xf32>
    %343 = arith.divf %340, %342 : vector<8x1xf32>
    %344 = arith.mulf %334, %343 : vector<8x1xf32>
    %c0_105 = arith.constant 0 : index
    %c0_106 = arith.constant 0 : index
    %345 = vector.load %arg10[%c0_105, %c0_106] : memref<4x8xf32, #tpu.memory_space<vmem>>, vector<4x8xf32>
    %cst_107 = arith.constant dense<0.000000e+00> : vector<4x1xf32>
    %346 = tpu.matmul %345, %344, %cst_107 {dimension_numbers = #tpu.dot_dimension_numbers<[1], [0], [0], [1], [0, 0, 1, 1], [], []>, precision = #tpu.contract_precision<fp32>} : vector<4x8xf32>, vector<8x1xf32>, vector<4x1xf32> -> vector<4x1xf32>
    %c0_108 = arith.constant 0 : index
    %c0_109 = arith.constant 0 : index
    %347 = vector.load %arg11[%c0_108, %c0_109] : memref<4x1xf32, #tpu.memory_space<vmem>>, vector<4x1xf32>
    %348 = arith.addf %346, %347 : vector<4x1xf32>
    %cst_110 = arith.constant 0.000000e+00 : f32
    %349 = vector.broadcast %cst_110 : f32 to vector<4x1xf32>
    %350 = arith.subf %349, %348 : vector<4x1xf32>
    %351 = math.exp %350 : vector<4x1xf32>
    %cst_111 = arith.constant 1.000000e+00 : f32
    %352 = vector.broadcast %cst_111 : f32 to vector<4x1xf32>
    %353 = arith.addf %352, %351 : vector<4x1xf32>
    %cst_112 = arith.constant 1.000000e+00 : f32
    %354 = vector.broadcast %cst_112 : f32 to vector<4x1xf32>
    %355 = arith.divf %354, %353 : vector<4x1xf32>
    %cst_113 = arith.constant 0.000000e+00 : f32
    %356 = vector.shape_cast %322 : vector<1x512xi1> to vector<1x512xi1>
    %357 = vector.broadcast %356 : vector<1x512xi1> to vector<4x512xi1>
    %358 = vector.shape_cast %355 : vector<4x1xf32> to vector<4x1xf32>
    %359 = vector.broadcast %358 : vector<4x1xf32> to vector<4x512xf32>
    %360 = vector.broadcast %cst_113 : f32 to vector<4x512xf32>
    %361 = arith.select %357, %359, %360 : vector<4x512xi1>, vector<4x512xf32>
    %362 = arith.addf %317, %361 : vector<4x512xf32>
    %363 = arith.mulf %273, %362 : vector<4x512xf32>
    %c0_114 = arith.constant 0 : index
    %c0_115 = arith.constant 0 : index
    %364 = vector.load %arg12[%c0_114, %c0_115] : memref<2x4xf32, #tpu.memory_space<vmem>>, vector<2x4xf32>
    %cst_116 = arith.constant dense<0.000000e+00> : vector<2x512xf32>
    %365 = tpu.matmul %364, %363, %cst_116 {dimension_numbers = #tpu.dot_dimension_numbers<[1], [0], [0], [1], [0, 0, 1, 1], [], []>, precision = #tpu.contract_precision<fp32>} : vector<2x4xf32>, vector<4x512xf32>, vector<2x512xf32> -> vector<2x512xf32>
    %c0_117 = arith.constant 0 : index
    %c0_118 = arith.constant 0 : index
    %366 = vector.load %arg13[%c0_117, %c0_118] : memref<2x1xf32, #tpu.memory_space<vmem>>, vector<2x1xf32>
    %367 = vector.broadcast %366 : vector<2x1xf32> to vector<2x512xf32>
    %368 = arith.addf %365, %367 : vector<2x512xf32>
    %c32_i32_119 = arith.constant 32 : i32
    %369 = tpu.dynamic_rotate %368 by %c32_i32_119 dim 1 : vector<2x512xf32>, i32 -> vector<2x512xf32>
    %cst_120 = arith.constant 0.000000e+00 : f32
    %370 = vector.shape_cast %16 : vector<1x512xi1> to vector<1x512xi1>
    %371 = vector.broadcast %370 : vector<1x512xi1> to vector<2x512xi1>
    %372 = vector.broadcast %cst_120 : f32 to vector<2x512xf32>
    %373 = arith.select %371, %369, %372 : vector<2x512xi1>, vector<2x512xf32>
    %c16_i32_121 = arith.constant 16 : i32
    %374 = tpu.dynamic_rotate %368 by %c16_i32_121 dim 1 : vector<2x512xf32>, i32 -> vector<2x512xf32>
    %cst_122 = arith.constant 0.000000e+00 : f32
    %375 = vector.shape_cast %8 : vector<1x512xi1> to vector<1x512xi1>
    %376 = vector.broadcast %375 : vector<1x512xi1> to vector<2x512xi1>
    %377 = vector.broadcast %cst_122 : f32 to vector<2x512xf32>
    %378 = arith.select %376, %374, %377 : vector<2x512xi1>, vector<2x512xf32>
    %c496_i32_123 = arith.constant 496 : i32
    %379 = tpu.dynamic_rotate %368 by %c496_i32_123 dim 1 : vector<2x512xf32>, i32 -> vector<2x512xf32>
    %cst_124 = arith.constant 0.000000e+00 : f32
    %380 = vector.shape_cast %6 : vector<1x512xi1> to vector<1x512xi1>
    %381 = vector.broadcast %380 : vector<1x512xi1> to vector<2x512xi1>
    %382 = vector.broadcast %cst_124 : f32 to vector<2x512xf32>
    %383 = arith.select %381, %379, %382 : vector<2x512xi1>, vector<2x512xf32>
    %c480_i32_125 = arith.constant 480 : i32
    %384 = tpu.dynamic_rotate %368 by %c480_i32_125 dim 1 : vector<2x512xf32>, i32 -> vector<2x512xf32>
    %cst_126 = arith.constant 0.000000e+00 : f32
    %385 = vector.shape_cast %14 : vector<1x512xi1> to vector<1x512xi1>
    %386 = vector.broadcast %385 : vector<1x512xi1> to vector<2x512xi1>
    %387 = vector.broadcast %cst_126 : f32 to vector<2x512xf32>
    %388 = arith.select %386, %384, %387 : vector<2x512xi1>, vector<2x512xf32>
    %389 = tpu.concatenate %373, %378, %368, %383, %388 in 0 : vector<2x512xf32>, vector<2x512xf32>, vector<2x512xf32>, vector<2x512xf32>, vector<2x512xf32> -> vector<10x512xf32>
    %c0_127 = arith.constant 0 : index
    %c0_128 = arith.constant 0 : index
    %c0_129 = arith.constant 0 : index
    %390 = vector.load %arg14[%c0_127, %c0_128, %c0_129] : memref<5x10x1xf32, #tpu.memory_space<vmem>>, vector<1x10x1xf32>
    %391 = vector.shape_cast %390 : vector<1x10x1xf32> to vector<10x1xf32>
    %c2_i32_130 = arith.constant 2 : i32
    %392 = tpu.dynamic_rotate %389 by %c2_i32_130 dim 1 : vector<10x512xf32>, i32 -> vector<10x512xf32>
    %cst_131 = arith.constant 0.000000e+00 : f32
    %393 = vector.shape_cast %20 : vector<1x512xi1> to vector<1x512xi1>
    %394 = vector.broadcast %393 : vector<1x512xi1> to vector<10x512xi1>
    %395 = vector.broadcast %cst_131 : f32 to vector<10x512xf32>
    %396 = arith.select %394, %392, %395 : vector<10x512xi1>, vector<10x512xf32>
    %397 = vector.broadcast %391 : vector<10x1xf32> to vector<10x512xf32>
    %398 = arith.mulf %397, %396 : vector<10x512xf32>
    %399 = vector.extract_strided_slice %398 {offsets = [0, 0], sizes = [2, 512], strides = [1, 1]} : vector<10x512xf32> to vector<2x512xf32>
    %400 = vector.extract_strided_slice %398 {offsets = [2, 0], sizes = [2, 512], strides = [1, 1]} : vector<10x512xf32> to vector<2x512xf32>
    %401 = arith.addf %399, %400 : vector<2x512xf32>
    %402 = vector.extract_strided_slice %398 {offsets = [4, 0], sizes = [2, 512], strides = [1, 1]} : vector<10x512xf32> to vector<2x512xf32>
    %403 = arith.addf %401, %402 : vector<2x512xf32>
    %404 = vector.extract_strided_slice %398 {offsets = [6, 0], sizes = [2, 512], strides = [1, 1]} : vector<10x512xf32> to vector<2x512xf32>
    %405 = arith.addf %403, %404 : vector<2x512xf32>
    %406 = vector.extract_strided_slice %398 {offsets = [8, 0], sizes = [2, 512], strides = [1, 1]} : vector<10x512xf32> to vector<2x512xf32>
    %407 = arith.addf %405, %406 : vector<2x512xf32>
    %c1_132 = arith.constant 1 : index
    %c0_133 = arith.constant 0 : index
    %c0_134 = arith.constant 0 : index
    %408 = vector.load %arg14[%c1_132, %c0_133, %c0_134] : memref<5x10x1xf32, #tpu.memory_space<vmem>>, vector<1x10x1xf32>
    %409 = vector.shape_cast %408 : vector<1x10x1xf32> to vector<10x1xf32>
    %c1_i32_135 = arith.constant 1 : i32
    %410 = tpu.dynamic_rotate %389 by %c1_i32_135 dim 1 : vector<10x512xf32>, i32 -> vector<10x512xf32>
    %cst_136 = arith.constant 0.000000e+00 : f32
    %411 = vector.shape_cast %12 : vector<1x512xi1> to vector<1x512xi1>
    %412 = vector.broadcast %411 : vector<1x512xi1> to vector<10x512xi1>
    %413 = vector.broadcast %cst_136 : f32 to vector<10x512xf32>
    %414 = arith.select %412, %410, %413 : vector<10x512xi1>, vector<10x512xf32>
    %415 = vector.broadcast %409 : vector<10x1xf32> to vector<10x512xf32>
    %416 = arith.mulf %415, %414 : vector<10x512xf32>
    %417 = vector.extract_strided_slice %416 {offsets = [0, 0], sizes = [2, 512], strides = [1, 1]} : vector<10x512xf32> to vector<2x512xf32>
    %418 = vector.extract_strided_slice %416 {offsets = [2, 0], sizes = [2, 512], strides = [1, 1]} : vector<10x512xf32> to vector<2x512xf32>
    %419 = arith.addf %417, %418 : vector<2x512xf32>
    %420 = vector.extract_strided_slice %416 {offsets = [4, 0], sizes = [2, 512], strides = [1, 1]} : vector<10x512xf32> to vector<2x512xf32>
    %421 = arith.addf %419, %420 : vector<2x512xf32>
    %422 = vector.extract_strided_slice %416 {offsets = [6, 0], sizes = [2, 512], strides = [1, 1]} : vector<10x512xf32> to vector<2x512xf32>
    %423 = arith.addf %421, %422 : vector<2x512xf32>
    %424 = vector.extract_strided_slice %416 {offsets = [8, 0], sizes = [2, 512], strides = [1, 1]} : vector<10x512xf32> to vector<2x512xf32>
    %425 = arith.addf %423, %424 : vector<2x512xf32>
    %426 = arith.addf %407, %425 : vector<2x512xf32>
    %c2_137 = arith.constant 2 : index
    %c0_138 = arith.constant 0 : index
    %c0_139 = arith.constant 0 : index
    %427 = vector.load %arg14[%c2_137, %c0_138, %c0_139] : memref<5x10x1xf32, #tpu.memory_space<vmem>>, vector<1x10x1xf32>
    %428 = vector.shape_cast %427 : vector<1x10x1xf32> to vector<10x1xf32>
    %429 = vector.broadcast %428 : vector<10x1xf32> to vector<10x512xf32>
    %430 = arith.mulf %429, %389 : vector<10x512xf32>
    %431 = vector.extract_strided_slice %430 {offsets = [0, 0], sizes = [2, 512], strides = [1, 1]} : vector<10x512xf32> to vector<2x512xf32>
    %432 = vector.extract_strided_slice %430 {offsets = [2, 0], sizes = [2, 512], strides = [1, 1]} : vector<10x512xf32> to vector<2x512xf32>
    %433 = arith.addf %431, %432 : vector<2x512xf32>
    %434 = vector.extract_strided_slice %430 {offsets = [4, 0], sizes = [2, 512], strides = [1, 1]} : vector<10x512xf32> to vector<2x512xf32>
    %435 = arith.addf %433, %434 : vector<2x512xf32>
    %436 = vector.extract_strided_slice %430 {offsets = [6, 0], sizes = [2, 512], strides = [1, 1]} : vector<10x512xf32> to vector<2x512xf32>
    %437 = arith.addf %435, %436 : vector<2x512xf32>
    %438 = vector.extract_strided_slice %430 {offsets = [8, 0], sizes = [2, 512], strides = [1, 1]} : vector<10x512xf32> to vector<2x512xf32>
    %439 = arith.addf %437, %438 : vector<2x512xf32>
    %440 = arith.addf %426, %439 : vector<2x512xf32>
    %c3_140 = arith.constant 3 : index
    %c0_141 = arith.constant 0 : index
    %c0_142 = arith.constant 0 : index
    %441 = vector.load %arg14[%c3_140, %c0_141, %c0_142] : memref<5x10x1xf32, #tpu.memory_space<vmem>>, vector<1x10x1xf32>
    %442 = vector.shape_cast %441 : vector<1x10x1xf32> to vector<10x1xf32>
    %c511_i32_143 = arith.constant 511 : i32
    %443 = tpu.dynamic_rotate %389 by %c511_i32_143 dim 1 : vector<10x512xf32>, i32 -> vector<10x512xf32>
    %cst_144 = arith.constant 0.000000e+00 : f32
    %444 = vector.shape_cast %10 : vector<1x512xi1> to vector<1x512xi1>
    %445 = vector.broadcast %444 : vector<1x512xi1> to vector<10x512xi1>
    %446 = vector.broadcast %cst_144 : f32 to vector<10x512xf32>
    %447 = arith.select %445, %443, %446 : vector<10x512xi1>, vector<10x512xf32>
    %448 = vector.broadcast %442 : vector<10x1xf32> to vector<10x512xf32>
    %449 = arith.mulf %448, %447 : vector<10x512xf32>
    %450 = vector.extract_strided_slice %449 {offsets = [0, 0], sizes = [2, 512], strides = [1, 1]} : vector<10x512xf32> to vector<2x512xf32>
    %451 = vector.extract_strided_slice %449 {offsets = [2, 0], sizes = [2, 512], strides = [1, 1]} : vector<10x512xf32> to vector<2x512xf32>
    %452 = arith.addf %450, %451 : vector<2x512xf32>
    %453 = vector.extract_strided_slice %449 {offsets = [4, 0], sizes = [2, 512], strides = [1, 1]} : vector<10x512xf32> to vector<2x512xf32>
    %454 = arith.addf %452, %453 : vector<2x512xf32>
    %455 = vector.extract_strided_slice %449 {offsets = [6, 0], sizes = [2, 512], strides = [1, 1]} : vector<10x512xf32> to vector<2x512xf32>
    %456 = arith.addf %454, %455 : vector<2x512xf32>
    %457 = vector.extract_strided_slice %449 {offsets = [8, 0], sizes = [2, 512], strides = [1, 1]} : vector<10x512xf32> to vector<2x512xf32>
    %458 = arith.addf %456, %457 : vector<2x512xf32>
    %459 = arith.addf %440, %458 : vector<2x512xf32>
    %c4_145 = arith.constant 4 : index
    %c0_146 = arith.constant 0 : index
    %c0_147 = arith.constant 0 : index
    %460 = vector.load %arg14[%c4_145, %c0_146, %c0_147] : memref<5x10x1xf32, #tpu.memory_space<vmem>>, vector<1x10x1xf32>
    %461 = vector.shape_cast %460 : vector<1x10x1xf32> to vector<10x1xf32>
    %c510_i32_148 = arith.constant 510 : i32
    %462 = tpu.dynamic_rotate %389 by %c510_i32_148 dim 1 : vector<10x512xf32>, i32 -> vector<10x512xf32>
    %cst_149 = arith.constant 0.000000e+00 : f32
    %463 = vector.shape_cast %18 : vector<1x512xi1> to vector<1x512xi1>
    %464 = vector.broadcast %463 : vector<1x512xi1> to vector<10x512xi1>
    %465 = vector.broadcast %cst_149 : f32 to vector<10x512xf32>
    %466 = arith.select %464, %462, %465 : vector<10x512xi1>, vector<10x512xf32>
    %467 = vector.broadcast %461 : vector<10x1xf32> to vector<10x512xf32>
    %468 = arith.mulf %467, %466 : vector<10x512xf32>
    %469 = vector.extract_strided_slice %468 {offsets = [0, 0], sizes = [2, 512], strides = [1, 1]} : vector<10x512xf32> to vector<2x512xf32>
    %470 = vector.extract_strided_slice %468 {offsets = [2, 0], sizes = [2, 512], strides = [1, 1]} : vector<10x512xf32> to vector<2x512xf32>
    %471 = arith.addf %469, %470 : vector<2x512xf32>
    %472 = vector.extract_strided_slice %468 {offsets = [4, 0], sizes = [2, 512], strides = [1, 1]} : vector<10x512xf32> to vector<2x512xf32>
    %473 = arith.addf %471, %472 : vector<2x512xf32>
    %474 = vector.extract_strided_slice %468 {offsets = [6, 0], sizes = [2, 512], strides = [1, 1]} : vector<10x512xf32> to vector<2x512xf32>
    %475 = arith.addf %473, %474 : vector<2x512xf32>
    %476 = vector.extract_strided_slice %468 {offsets = [8, 0], sizes = [2, 512], strides = [1, 1]} : vector<10x512xf32> to vector<2x512xf32>
    %477 = arith.addf %475, %476 : vector<2x512xf32>
    %478 = arith.addf %459, %477 : vector<2x512xf32>
    %c0_150 = arith.constant 0 : index
    %c0_151 = arith.constant 0 : index
    %479 = vector.load %arg15[%c0_150, %c0_151] : memref<2x1xf32, #tpu.memory_space<vmem>>, vector<2x1xf32>
    %480 = vector.broadcast %479 : vector<2x1xf32> to vector<2x512xf32>
    %481 = arith.addf %478, %480 : vector<2x512xf32>
    %482 = vector.extract_strided_slice %37 {offsets = [0, 0], sizes = [2, 512], strides = [1, 1]} : vector<4x512xf32> to vector<2x512xf32>
    %483 = arith.addf %482, %368 : vector<2x512xf32>
    %c0_152 = arith.constant 0 : index
    %c0_153 = arith.constant 0 : index
    %c0_154 = arith.constant 0 : index
    %484 = vector.load %arg16[%c0_152, %c0_153, %c0_154] : memref<2x2x512xf32, #tpu.memory_space<vmem>>, vector<1x2x512xf32>
    %485 = vector.shape_cast %484 : vector<1x2x512xf32> to vector<2x512xf32>
    %486 = vector.shape_cast %483 : vector<2x512xf32> to vector<1x2x512xf32>
    tpu.vector_store %arg16[%c0_152, %c0_153, %c0_154], %486 {strides = array<i32>} : memref<2x2x512xf32, #tpu.memory_space<vmem>>, vector<1x2x512xf32>,
    %487 = vector.extract_strided_slice %37 {offsets = [2, 0], sizes = [2, 512], strides = [1, 1]} : vector<4x512xf32> to vector<2x512xf32>
    %488 = arith.addf %487, %481 : vector<2x512xf32>
    %c1_155 = arith.constant 1 : index
    %c0_156 = arith.constant 0 : index
    %c0_157 = arith.constant 0 : index
    %489 = vector.load %arg16[%c1_155, %c0_156, %c0_157] : memref<2x2x512xf32, #tpu.memory_space<vmem>>, vector<1x2x512xf32>
    %490 = vector.shape_cast %489 : vector<1x2x512xf32> to vector<2x512xf32>
    %491 = vector.shape_cast %488 : vector<2x512xf32> to vector<1x2x512xf32>
    tpu.vector_store %arg16[%c1_155, %c0_156, %c0_157], %491 {strides = array<i32>} : memref<2x2x512xf32, #tpu.memory_space<vmem>>, vector<1x2x512xf32>,
    return
  }
  func.func @transform_0(%arg0: i32) -> (i32, i32) {
    %c0_i32 = arith.constant 0 : i32
    %c0_i32_0 = arith.constant 0 : i32
    return %c0_i32, %arg0 : i32, i32
  }
  func.func @transform_1(%arg0: i32) -> (i32, i32) {
    %c0_i32 = arith.constant 0 : i32
    %c0_i32_0 = arith.constant 0 : i32
    %c0_i32_1 = arith.constant 0 : i32
    return %c0_i32, %c0_i32_0 : i32, i32
  }
  func.func @transform_2(%arg0: i32) -> (i32, i32) {
    %c0_i32 = arith.constant 0 : i32
    %c0_i32_0 = arith.constant 0 : i32
    %c0_i32_1 = arith.constant 0 : i32
    return %c0_i32, %c0_i32_0 : i32, i32
  }
  func.func @transform_3(%arg0: i32) -> (i32, i32, i32) {
    %c0_i32 = arith.constant 0 : i32
    %c0_i32_0 = arith.constant 0 : i32
    %c0_i32_1 = arith.constant 0 : i32
    %c0_i32_2 = arith.constant 0 : i32
    return %c0_i32, %c0_i32_0, %c0_i32_1 : i32, i32, i32
  }
  func.func @transform_4(%arg0: i32) -> (i32, i32) {
    %c0_i32 = arith.constant 0 : i32
    %c0_i32_0 = arith.constant 0 : i32
    %c0_i32_1 = arith.constant 0 : i32
    return %c0_i32, %c0_i32_0 : i32, i32
  }
  func.func @transform_5(%arg0: i32) -> (i32, i32) {
    %c0_i32 = arith.constant 0 : i32
    %c0_i32_0 = arith.constant 0 : i32
    %c0_i32_1 = arith.constant 0 : i32
    return %c0_i32, %c0_i32_0 : i32, i32
  }
  func.func @transform_6(%arg0: i32) -> (i32, i32) {
    %c0_i32 = arith.constant 0 : i32
    %c0_i32_0 = arith.constant 0 : i32
    %c0_i32_1 = arith.constant 0 : i32
    return %c0_i32, %c0_i32_0 : i32, i32
  }
  func.func @transform_7(%arg0: i32) -> (i32, i32) {
    %c0_i32 = arith.constant 0 : i32
    %c0_i32_0 = arith.constant 0 : i32
    %c0_i32_1 = arith.constant 0 : i32
    return %c0_i32, %c0_i32_0 : i32, i32
  }
  func.func @transform_8(%arg0: i32) -> (i32, i32) {
    %c0_i32 = arith.constant 0 : i32
    %c0_i32_0 = arith.constant 0 : i32
    %c0_i32_1 = arith.constant 0 : i32
    return %c0_i32, %c0_i32_0 : i32, i32
  }
  func.func @transform_9(%arg0: i32) -> (i32, i32) {
    %c0_i32 = arith.constant 0 : i32
    %c0_i32_0 = arith.constant 0 : i32
    %c0_i32_1 = arith.constant 0 : i32
    return %c0_i32, %c0_i32_0 : i32, i32
  }
  func.func @transform_10(%arg0: i32) -> (i32, i32) {
    %c0_i32 = arith.constant 0 : i32
    %c0_i32_0 = arith.constant 0 : i32
    %c0_i32_1 = arith.constant 0 : i32
    return %c0_i32, %c0_i32_0 : i32, i32
  }
  func.func @transform_11(%arg0: i32) -> (i32, i32) {
    %c0_i32 = arith.constant 0 : i32
    %c0_i32_0 = arith.constant 0 : i32
    %c0_i32_1 = arith.constant 0 : i32
    return %c0_i32, %c0_i32_0 : i32, i32
  }
  func.func @transform_12(%arg0: i32) -> (i32, i32) {
    %c0_i32 = arith.constant 0 : i32
    %c0_i32_0 = arith.constant 0 : i32
    %c0_i32_1 = arith.constant 0 : i32
    return %c0_i32, %c0_i32_0 : i32, i32
  }
  func.func @transform_13(%arg0: i32) -> (i32, i32, i32) {
    %c0_i32 = arith.constant 0 : i32
    %c0_i32_0 = arith.constant 0 : i32
    %c0_i32_1 = arith.constant 0 : i32
    %c0_i32_2 = arith.constant 0 : i32
    return %c0_i32, %c0_i32_0, %c0_i32_1 : i32, i32, i32
  }
  func.func @transform_14(%arg0: i32) -> (i32, i32) {
    %c0_i32 = arith.constant 0 : i32
    %c0_i32_0 = arith.constant 0 : i32
    %c0_i32_1 = arith.constant 0 : i32
    return %c0_i32, %c0_i32_0 : i32, i32
  }
  func.func @transform_15(%arg0: i32) -> (i32, i32, i32) {
    %c0_i32 = arith.constant 0 : i32
    %c0_i32_0 = arith.constant 0 : i32
    %c0_i32_1 = arith.constant 0 : i32
    return %c0_i32, %c0_i32_0, %arg0 : i32, i32, i32
  }
}

</mosaic_0001>

<bundles_post_ra>
// kernel: tpu_custom_call.1
= control target key start
LH: loop header
LB: loop body
LE: loop exit
PB: predicated region body
PF: predicated region fallthrough
CT: control target
= control target key end

     0   :  { %vm15321_vm0 = vcmask 31744   ;;  %v8818_v3 = vmov 0   ;;  %s15304_s0 = inlined_call_operand.vmem [shape: f32[4,512], index: 0, kind: input, shape index: {}]   ;;  %s15305_s1 = inlined_call_operand.vmem [shape: f32[2,4], index: 1, kind: input, shape index: {}]   ;;  %s15306_s2 = inlined_call_operand.vmem [shape: f32[2,1], index: 2, kind: input, shape index: {}]   ;;  %s15307_s3 = inlined_call_operand.vmem [shape: f32[5,10,1], index: 3, kind: input, shape index: {}]   ;;  %s15308_s4 = inlined_call_operand.vmem [shape: f32[2,1], index: 4, kind: input, shape index: {}]   ;;  %s15309_s5 = inlined_call_operand.vmem [shape: f32[4,324], index: 5, kind: input, shape index: {}]   ;;  %s15310_s6 = inlined_call_operand.vmem [shape: f32[4,1], index: 6, kind: input, shape index: {}]   ;;  %s15311_s7 = inlined_call_operand.vmem [shape: f32[8,4], index: 7, kind: input, shape index: {}]   ;;  %s15312_s8 = inlined_call_operand.vmem [shape: f32[8,1], index: 8, kind: input, shape index: {}]   ;;  %s15313_s9 = inlined_call_operand.vmem [shape: f32[4,8], index: 9, kind: input, shape index: {}]   ;;  %s15314_s10 = inlined_call_operand.vmem [shape: f32[4,1], index: 10, kind: input, shape index: {}]   ;;  %s15315_s11 = inlined_call_operand.vmem [shape: f32[2,4], index: 11, kind: input, shape index: {}]   ;;  %s15316_s12 = inlined_call_operand.vmem [shape: f32[2,1], index: 12, kind: input, shape index: {}]   ;;  %s15317_s13 = inlined_call_operand.vmem [shape: f32[5,10,1], index: 13, kind: input, shape index: {}]   ;;  %s15318_s14 = inlined_call_operand.vmem [shape: f32[2,1], index: 14, kind: input, shape index: {}]   ;;  %s15319_s15 = inlined_call_operand.hbm [shape: f32[2,2,512], index: 15, kind: output, shape index: {}]  }
   0x1   :  { %v8920_v0 = vld [vmem:[%s15304_s0] sm:$0xff]  ;;  %8725 = vset.pattern.permute.xlu0 %v8818_v3  ;;  %8726 = vset.pattern.permute.xlu1 %v8818_v3  ;;  %v8935_v6 = vld [vmem:[%s15304_s0 + $0x8] sm:$0xff] }
   0x2   :  { %15685 = vst [vmem:[#allocation5_spill] sm:$0xff] %v8920_v0  ;;  %v130_v1 = vld [vmem:[%s15305_s1] sm:$0x3]  ;;  %8727 = vset.pattern.permute.xlu2 %v8818_v3 }
   0x3   :  { %139 = vst [vmem:[#allocation1] ss:$2 sm:$0xff] %v8920_v0  ;;  %v148_v2 = vsel %vm15321_vm0, %v130_v1, 0  ;;  %v131_v4 = vld [vmem:[%s15306_s2] sm:$0x3] }
   0x4   :  { %v8930_v5 = vand.u32 4294901760, %v148_v2  ;;  %134 = vperm.xlu0 %8725, %v131_v4   ;;  %15686 = vst [vmem:[#allocation6_spill] sm:$0xff] %v8935_v6 }
   0x5   :  { %20 = vsyncpa [#allocation3], 0  ;;  %141 = vst [vmem:[#allocation1 + $0x10] ss:$2 sm:$0xff] %v8935_v6  ;;  %vm15334_vm1 = vcmask 1043456   ;;  %v2810_v9 = vld [vmem:[%s15309_s5] sm:$0xff] }
   0x6   :  { %v8939_v7 = vsub.f32 %v148_v2, %v8930_v5  ;;  %v8692_v10 = vld [vmem:[%s15307_s3 + $0x20] sm:$0xff]  ;;  %v2811_v27 = vld [vmem:[%s15309_s5 + $0x8] sm:$0xf]  ;;  %v8690_v44 = vld [vmem:[%s15307_s3 + $0x10] sm:$0xff]  ;;  %s8821_s30 = smov 16   ;;  %s8822_s5 = smov 112  }
   0x7   :  { %v8693_v31 = vld [vmem:[%s15307_s3 + $0x28] sm:$0x3]  ;;  %v981_v43 = vld [vmem:[%s15307_s3] sm:$0xff]  ;;  %1132 = vperm.xlu2 %8727, %v8690_v44   ;;  %v8694_v46 = vld [vmem:[%s15307_s3 + $0x30] sm:$0xff]  ;;  %s8823_s16 = smov 126   ;;  %s8824_s17 = smov 2  }
   0x8   :  { %v8942_v8 = vand.u32 4294901760, %v8939_v7  ;;  %1026 = vperm.xlu1 %8726, %v981_v43   ;;  %v8696_v45 = vld [vmem:[%s15307_s3 + $0x40] sm:$0xff]  ;;  %v982_v47 = vld [vmem:[%s15307_s3 + $0x8] sm:$0x3]  ;;  %v8691_v49 = vld [vmem:[%s15307_s3 + $0x18] sm:$0x3] }
   0x9   :  { %v8697_v50 = vld [vmem:[%s15307_s3 + $0x48] sm:$0x3]  ;;  %v8695_v58 = vld [vmem:[%s15307_s3 + $0x38] sm:$0x3]  ;;  %s8819_s3 = smov 96   ;;  %s8825_s18 = smov 1  }
   0xa   :  { %v142_v11 = vld.sshfl [vmem:[#allocation1] sm:$0xff pattern:$0x75316420]  ;;  %v179_v12 = vsub.f32 %v8939_v7, %v8942_v8  ;;  %v143_v13 = vld.sshfl [vmem:[#allocation1 + $0x8] sm:$0xff pattern:$0x75316420] }
   0xb   :  { %v151_v14 = vsel %vm15334_vm1, %v142_v11, 0  ;;  %v153_v15 = vsel %vm15334_vm1, %v143_v13, 0  ;;  %2820 = vst [vmem:[#allocation1] ss:$2 sm:$0xff] %v2810_v9  ;;  %s8826_s19 = smov 127   ;;  %s8827_s20 = smov 64  }
   0xc   :  { %v174_v16 = vand.u32 4294901760, %v151_v14  ;;  %v8954_v17 = vand.u32 4294901760, %v179_v12  ;;  %v320_v18 = vand.u32 4294901760, %v153_v15  ;;  %1201 = vperm.xlu0 %8725, %v8692_v10   ;;  %v144_v19 = vld.sshfl [vmem:[#allocation1 + $0x10] sm:$0xff pattern:$0x75316420] }
   0xd   :  { %v155_v20 = vsel %vm15334_vm1, %v144_v19, 0  ;;  %v145_v21 = vld.sshfl [vmem:[#allocation1 + $0x18] sm:$0xff pattern:$0x75316420]  ;;  %s8828_s21 = smov 48   ;;  %s8829_s22 = smov 80  }
   0xe   :  { %175 = vmatpush.msra.mxu0 %v174_v16  ;;  %v201_v22 = vsub.f32 %v151_v14, %v174_v16  ;;  %251 = vmatpush.msra.mxu3 %v174_v16  ;;  %v347_v23 = vsub.f32 %v153_v15, %v320_v18  ;;  %v466_v24 = vand.u32 4294901760, %v155_v20  ;;  %v157_v25 = vsel %vm15334_vm1, %v145_v21, 0  ;;  %2822 = vst [vmem:[#allocation1 + $0x10] ss:$2 sm:$0xff] %v2811_v27  ;;  %s8830_s23 = smov 124   ;;  %s8831_s24 = smov 3  }
   0xf   :  { %181 = vmatmul.f32.vlgmr.msra.gmra.mxu0 %v8954_v17  ;;  %255 = vmatmul.f32.vlgmr.msra.gmra.mxu3 %v8942_v8  ;;  %v612_v26 = vand.u32 4294901760, %v157_v25  ;;  %s8832_s25 = smov 125   ;;  %s8833_s1 = smov 4  }
  0x10   :  { %228 = vmatpush.msra.mxu2 %v201_v22  ;;  %v202_v28 = vand.u32 4294901760, %v201_v22  ;;  %v348_v29 = vand.u32 4294901760, %v347_v23  ;;  %v493_v30 = vsub.f32 %v155_v20, %v466_v24  ;;  %1421 = vperm.xlu1 %8726, %v8696_v45  }
  0x11   :  { %231 = vmatmul.f32.vlgmr.msra.gmra.mxu2 %v8939_v7  ;;  %v639_v34 = vsub.f32 %v157_v25, %v612_v26  ;;  %1311 = vperm.xlu2 %8727, %v8694_v46  }
  0x12   :  { %v203_v32 = vsub.f32 %v201_v22, %v202_v28  ;;  %277 = vmatpush.msrb.mxu0 %v202_v28  ;;  %321 = vmatpush.msrb.mxu2 %v320_v18  ;;  %v349_v33 = vsub.f32 %v347_v23, %v348_v29  ;;  %v494_v37 = vand.u32 4294901760, %v493_v30 }
  0x13   :  { %v640_v38 = vand.u32 4294901760, %v639_v34 }
  0x14   :  { %374 = vmatpush.msra.mxu0 %v347_v23  ;;  %423 = vmatpush.msra.mxu2 %v348_v29  ;;  %v204_v35 = vand.u32 4294901760, %v203_v32  ;;  %v350_v36 = vand.u32 4294901760, %v349_v33  ;;  %v495_v39 = vsub.f32 %v493_v30, %v494_v37 }
  0x15   :  { %1206 = vperm.xlu0 %8725, %v8693_v31   ;;  %v641_v40 = vsub.f32 %v639_v34, %v640_v38 }
  0x16   :  { %205 = vmatpush.msra.mxu1 %v204_v35  ;;  %351 = vmatpush.msrb.mxu3 %v350_v36  ;;  %v496_v41 = vand.u32 4294901760, %v495_v39 }
  0x17   :  { %207 = vmatmul.f32.vlgmr.msra.gmra.mxu1 %v8930_v5  ;;  %279 = vmatmul.f32.vlgmr.msrb.gmra.mxu0 %v8930_v5  ;;  %v642_v42 = vand.u32 4294901760, %v641_v40 }
  0x18   :  { %353 = vmatmul.f32.vlgmr.msrb.gmra.mxu3 %v8930_v5  ;;  %299 = vmatpush.msrb.mxu1 %v174_v16 }
  0x19   :  { %327 = vmatmul.f32.vlgmr.msrb.gmra.mxu2 %v8954_v17  ;;  %445 = vmatpush.msra.mxu3 %v320_v18 }
  0x1a   :  { %397 = vmatpush.msra.mxu1 %v320_v18  ;;  %467 = vmatpush.msrb.mxu0 %v466_v24 }
  0x1b   :  { %520 = vmatpush.msrb.mxu2 %v493_v30  ;;  %543 = vmatpush.msrb.mxu3 %v466_v24 }
  0x1c   :  { %1031 = vperm.xlu1 %8726, %v982_v47   ;;  %1137 = vperm.xlu2 %8727, %v8691_v49  }
  0x1f   :  { %301 = vmatmul.f32.vlgmr.msrb.gmra.mxu1 %v8930_v5  ;;  %377 = vmatmul.f32.vlgmr.msra.gmra.mxu0 %v8939_v7 }
  0x20   :  { %447 = vmatmul.f32.vlgmr.msra.gmra.mxu3 %v8930_v5  ;;  %497 = vmatpush.msrb.mxu1 %v496_v41 }
  0x21   :  { %425 = vmatmul.f32.vlgmr.msra.gmra.mxu2 %v8930_v5  ;;  %569 = vmatpush.msra.mxu0 %v494_v37 }
  0x22   :  { %613 = vmatpush.msra.mxu2 %v612_v26  ;;  %643 = vmatpush.msra.mxu3 %v642_v42 }
  0x24   :  { %1426 = vperm.xlu1 %8726, %v8697_v50   ;;  %1316 = vperm.xlu2 %8727, %v8695_v58  }
  0x27   :  { %401 = vmatmul.f32.vlgmr.msra.gmra.mxu1 %v8942_v8  ;;  %473 = vmatmul.f32.vlgmr.msrb.gmra.mxu0 %v8954_v17 }
  0x28   :  { %547 = vmatmul.f32.vlgmr.msrb.gmra.mxu3 %v8942_v8  ;;  %591 = vmatpush.msra.mxu1 %v466_v24 }
  0x29   :  { %523 = vmatmul.f32.vlgmr.msrb.gmra.mxu2 %v8939_v7  ;;  %666 = vmatpush.msrb.mxu0 %v639_v34 }
  0x2a   :  { %715 = vmatpush.msrb.mxu2 %v640_v38  ;;  %737 = vmatpush.msrb.mxu3 %v612_v26 }
  0x2f   :  { %499 = vmatmul.f32.vlgmr.msrb.gmra.mxu1 %v8930_v5  ;;  %571 = vmatmul.f32.vlgmr.msra.gmra.mxu0 %v8930_v5 }
  0x30   :  { %645 = vmatmul.f32.vlgmr.msra.gmra.mxu3 %v8930_v5  ;;  %689 = vmatpush.msrb.mxu1 %v612_v26 }
  0x31   :  { %619 = vmatmul.f32.vlgmr.msra.gmra.mxu2 %v8954_v17 }
  0x37   :  { %593 = vmatmul.f32.vlgmr.msra.gmra.mxu1 %v8930_v5  ;;  %669 = vmatmul.f32.vlgmr.msrb.gmra.mxu0 %v8939_v7 }
  0x38   :  { %739 = vmatmul.f32.vlgmr.msrb.gmra.mxu3 %v8930_v5 }
  0x39   :  { %717 = vmatmul.f32.vlgmr.msrb.gmra.mxu2 %v8930_v5  ;;  %v1485_v5 = vld [vmem:[%s15308_s4] sm:$0x3]  ;;  %s8820_s4 = smov 32  }
  0x3a   :  { %1488 = vperm.xlu2 %8727, %v1485_v5  }
  0x3f   :  { %693 = vmatmul.f32.vlgmr.msrb.gmra.mxu1 %v8942_v8 }
  0x76   :  { %v135_v51 = vpop.permute.xlu0 %134 }
  0x8c   :  { %v182_v48 = vpop.f32.mrf.mxu0 }
  0x8d   :  { %v183_v52 = vadd.f32 %v182_v48, %v135_v51 }
  0x92   :  { %v256_v53 = vpop.f32.mrf.mxu3 }
  0x94   :  { %v208_v54 = vpop.f32.mrf.mxu1  ;;  %v232_v55 = vpop.f32.mrf.mxu2 }
  0x95   :  { %v209_v56 = vadd.f32 %v208_v54, %v183_v52  ;;  %v280_v57 = vpop.f32.mrf.mxu0 }
  0x97   :  { %v233_v59 = vadd.f32 %v232_v55, %v209_v56 }
  0x99   :  { %v257_v60 = vadd.f32 %v256_v53, %v233_v59 }
  0x9b   :  { %v281_v61 = vadd.f32 %v280_v57, %v257_v60  ;;  %v354_v62 = vpop.f32.mrf.mxu3 }
  0x9c   :  { %v302_v63 = vpop.f32.mrf.mxu1  ;;  %v328_v1 = vpop.f32.mrf.mxu2 }
  0x9d   :  { %v9012_v2 = vadd.f32 %v302_v63, %v281_v61  ;;  %v329_v3 = vadd.f32 %v328_v1, %v135_v51  ;;  %v378_v4 = vpop.f32.mrf.mxu0 }
  0x9f   :  { %v743_v7 = vmin.f32 %v9012_v2, 20.0  ;;  %v355_v8 = vadd.f32 %v354_v62, %v329_v3 }
  0xa1   :  { %v747_v9 = vmul.f32 1.442695, %v743_v7  ;;  %v379_v10 = vadd.f32 %v378_v4, %v355_v8 }
  0xa3   :  { %8728 = vpow2.f32 %v747_v9  ;;  %v448_v11 = vpop.f32.mrf.mxu3 }
  0xa4   :  { %v402_v12 = vpop.f32.mrf.mxu1  ;;  %v426_v13 = vpop.f32.mrf.mxu2 }
  0xa5   :  { %v403_v14 = vadd.f32 %v402_v12, %v379_v10  ;;  %v474_v15 = vpop.f32.mrf.mxu0 }
  0xa6   :  { %v475_v20 = vadd.f32 %v474_v15, %v135_v51 }
  0xa7   :  { %v427_v16 = vadd.f32 %v426_v13, %v403_v14 }
  0xa9   :  { %v8729_v17 = vpop.eup %8728  ;;  %v9018_v18 = vadd.f32 %v448_v11, %v427_v16 }
  0xaa   :  { %v755_v19 = vadd.f32 2.0, %v8729_v17 }
  0xab   :  { %v744_v21 = vmin.f32 %v9018_v18, 20.0  ;;  %v548_v22 = vpop.f32.mrf.mxu3 }
  0xac   :  { %v759_v23 = vmul.f32 %v8729_v17, %v755_v19  ;;  %v500_v24 = vpop.f32.mrf.mxu1  ;;  %v524_v25 = vpop.f32.mrf.mxu2 }
  0xad   :  { %v749_v26 = vmul.f32 1.442695, %v744_v21  ;;  %v501_v27 = vadd.f32 %v500_v24, %v475_v20  ;;  %v572_v29 = vpop.f32.mrf.mxu0 }
  0xae   :  { %v763_v28 = vadd.f32 2.0, %v759_v23 }
  0xaf   :  { %8730 = vpow2.f32 %v749_v26  ;;  %v525_v30 = vadd.f32 %v524_v25, %v501_v27 }
  0xb0   :  { %8732 = vrcp.f32 %v763_v28  ;;  %v776_v48 = vand.u32 2147483647, %v763_v28  ;;  %v778_v49 = vand.u32 2147483648, %v763_v28  ;;  %vm772_vm3 = vweird.f32 %v763_v28 }
  0xb1   :  { %v549_v31 = vadd.f32 %v548_v22, %v525_v30 }
  0xb2   :  { %v779_v57 = vor.u32 1.1754944e-38, %v778_v49  ;;  %vm777_vm5 = vcmp.eq.f32.partialorder %v776_v48, 8.507059e+37  ;;  %v9071_v49 = vpop.permute.xlu2 %1132 }
  0xb3   :  { %v573_v32 = vadd.f32 %v572_v29, %v549_v31  ;;  %v646_v33 = vpop.f32.mrf.mxu3 }
  0xb4   :  { %v594_v34 = vpop.f32.mrf.mxu1  ;;  %v620_v35 = vpop.f32.mrf.mxu2 }
  0xb5   :  { %v8731_v36 = vpop.eup %8730  ;;  %v9021_v37 = vadd.f32 %v594_v34, %v573_v32  ;;  %v621_v38 = vadd.f32 %v620_v35, %v135_v51  ;;  %v670_v45 = vpop.f32.mrf.mxu0 }
  0xb6   :  { %v8733_v39 = vpop.eup %8732  ;;  %v756_v40 = vadd.f32 2.0, %v8731_v36 }
  0xb7   :  { %v768_v41 = vmul.f32 %v8733_v39, %v763_v28  ;;  %v745_v42 = vmin.f32 %v9021_v37, 20.0  ;;  %v647_v43 = vadd.f32 %v646_v33, %v621_v38  ;;  %vm773_vm2 = vweird.f32 %v8733_v39 }
  0xb8   :  { %v760_v44 = vmul.f32 %v8731_v36, %v756_v40  ;;  %vm774_vm4 = vmor %vm772_vm3, %vm773_vm2 }
  0xb9   :  { %v769_v46 = vsub.f32 1.0, %v768_v41  ;;  %v751_v47 = vmul.f32 1.442695, %v745_v42  ;;  %v671_v53 = vadd.f32 %v670_v45, %v647_v43 }
  0xba   :  { %v764_v50 = vadd.f32 2.0, %v760_v44 }
  0xbb   :  { %v770_v52 = vmul.f32 %v8733_v39, %v769_v46  ;;  %8734 = vpow2.f32 %v751_v47  ;;  %v740_v58 = vpop.f32.mrf.mxu3 }
  0xbc   :  { %8736 = vrcp.f32 %v764_v50  ;;  %v694_v54 = vpop.f32.mrf.mxu1  ;;  %v718_v51 = vpop.f32.mrf.mxu2  ;;  %v793_v12 = vand.u32 2147483648, %v764_v50  ;;  %v791_v14 = vand.u32 2147483647, %v764_v50  ;;  %vm787_vm7 = vweird.f32 %v764_v50 }
  0xbd   :  { %v771_v55 = vadd.f32 %v8733_v39, %v770_v52  ;;  %v695_v56 = vadd.f32 %v694_v54, %v671_v53  ;;  %v9075_v52 = vpop.permute.xlu2 %1311  ;;  %v9079_v54 = vpop.permute.xlu0 %1201 }
  0xbe   :  { %v794_v16 = vor.u32 1.1754944e-38, %v793_v12  ;;  %vm792_vm9 = vcmp.eq.f32.partialorder %v791_v14, 8.507059e+37 }
  0xbf   :  { %v775_v59 = vsel %vm774_vm4, %v8733_v39, %v771_v55  ;;  %v719_v60 = vadd.f32 %v718_v51, %v695_v56 }
  0xc0   :  { %v780_v61 = vsel %vm777_vm5, %v779_v57, %v775_v59 }
  0xc1   :  { %v8735_v62 = vpop.eup %8734  ;;  %v781_v63 = vmul.f32 %v780_v61, %v759_v23  ;;  %v9024_v1 = vadd.f32 %v740_v58, %v719_v60 }
  0xc2   :  { %v8737_v3 = vpop.eup %8736  ;;  %v757_v4 = vadd.f32 2.0, %v8735_v62 }
  0xc3   :  { %v9027_v5 = vmul.f32 %v781_v63, %v9012_v2  ;;  %v783_v7 = vmul.f32 %v8737_v3, %v764_v50  ;;  %v746_v8 = vmin.f32 %v9024_v1, 20.0  ;;  %vm788_vm6 = vweird.f32 %v8737_v3  ;;  %v9073_v50 = vpop.permute.xlu1 %1026 }
  0xc4   :  { %v761_v9 = vmul.f32 %v8735_v62, %v757_v4  ;;  %vm789_vm8 = vmor %vm787_vm7, %vm788_vm6  ;;  %vm15335_vm7 = vcmask 1041408  }
  0xc5   :  { %15687 = vst [vmem:[#allocation7_spill] sm:$0xff] %v9027_v5  ;;  %v784_v10 = vsub.f32 1.0, %v783_v7  ;;  %v753_v11 = vmul.f32 1.442695, %v746_v8  ;;  %906 = vrot.lane.b32.xlu1 %v9027_v5, %s8819_s3  ;;  %831 = vrot.lane.b32.xlu2 %v9027_v5, %s8820_s4  ;;  %v9081_v51 = vpop.permute.xlu2 %1137  ;;  %v9085_v56 = vpop.permute.xlu0 %1206 }
  0xc6   :  { %v765_v13 = vadd.f32 2.0, %v761_v9  ;;  %856 = vrot.lane.b32.xlu0 %v9027_v5, %s8821_s30 }
  0xc7   :  { %v785_v2 = vmul.f32 %v8737_v3, %v784_v10  ;;  %8738 = vpow2.f32 %v753_v11 }
  0xc8   :  { %8740 = vrcp.f32 %v765_v13  ;;  %v808_v28 = vand.u32 2147483648, %v765_v13  ;;  %v806_v31 = vand.u32 2147483647, %v765_v13  ;;  %vm802_vm11 = vweird.f32 %v765_v13 }
  0xc9   :  { %v786_v15 = vadd.f32 %v8737_v3, %v785_v2 }
  0xca   :  { %vm807_vm13 = vcmp.eq.f32.partialorder %v806_v31, 8.507059e+37 }
  0xcb   :  { %v790_v17 = vsel %vm789_vm8, %v8737_v3, %v786_v15  ;;  %v9077_v53 = vpop.permute.xlu1 %1421  ;;  %v51_v3 = vlaneseq }
  0xcc   :  { %v795_v19 = vsel %vm792_vm9, %v794_v16, %v790_v17 }
  0xcd   :  { %v8739_v20 = vpop.eup %8738  ;;  %v796_v21 = vmul.f32 %v795_v19, %v760_v44  ;;  %v9087_v57 = vpop.permute.xlu2 %1316  ;;  %v9101_v7 = vand.u32 127, %v51_v3 }
  0xce   :  { %v8741_v22 = vpop.eup %8740  ;;  %v758_v23 = vadd.f32 2.0, %v8739_v20  ;;  %881 = vrot.lane.b32.xlu0 %v9027_v5, %s8822_s5 }
  0xcf   :  { %v9039_v24 = vmul.f32 %v796_v21, %v9018_v18  ;;  %v798_v25 = vmul.f32 %v8741_v22, %v765_v13  ;;  %vm803_vm10 = vweird.f32 %v8741_v22  ;;  %v809_v18 = vor.u32 1.1754944e-38, %v808_v28 }
  0xd0   :  { %v762_v26 = vmul.f32 %v8739_v20, %v758_v23  ;;  %vm804_vm12 = vmor %vm802_vm11, %vm803_vm10  ;;  %vm15330_vm4 = vcmp.lt.s32.totalorder %v9101_v7, 96  ;;  %vm15333_vm5 = vcmp.lt.s32.totalorder %v9101_v7, 16  ;;  %vm15332_vm6 = vcmp.lt.s32.totalorder %v9101_v7, 32 }
  0xd1   :  { %15688 = vst [vmem:[#allocation8_spill] sm:$0xff] %v9039_v24  ;;  %v799_v27 = vsub.f32 1.0, %v798_v25  ;;  %858 = vrot.lane.b32.xlu1 %v9039_v24, %s8821_s30  ;;  %883 = vrot.lane.b32.xlu2 %v9039_v24, %s8822_s5  ;;  %v9130_v16 = vadd.s32 256, %v9101_v7  ;;  %vm15331_vm9 = vcmp.lt.s32.totalorder %v9101_v7, 112  ;;  %v948_v25 = vrot.slane %v9039_v24, 4 }
  0xd2   :  { %v766_v29 = vadd.f32 2.0, %v762_v26  ;;  %vm15320_vm10 = vcmask 1045504  }
  0xd3   :  { %v800_v30 = vmul.f32 %v8741_v22, %v799_v27  ;;  %v9083_v55 = vpop.permute.xlu1 %1031 }
  0xd4   :  { %8742 = vrcp.f32 %v766_v29  ;;  %v823_v41 = vand.u32 2147483648, %v766_v29  ;;  %v821_v43 = vand.u32 2147483647, %v766_v29  ;;  %vm817_vm15 = vweird.f32 %v766_v29 }
  0xd5   :  { %v801_v32 = vadd.f32 %v8741_v22, %v800_v30  ;;  %v9093_v60 = vpop.permute.xlu2 %1488 }
  0xd6   :  { %833 = vrot.lane.b32.xlu0 %v9039_v24, %s8820_s4  ;;  %v824_v45 = vor.u32 1.1754944e-38, %v823_v41  ;;  %vm822_vm3 = vcmp.eq.f32.partialorder %v821_v43, 8.507059e+37  ;;  %15691 = vst [vmem:[#allocation11_spill] sm:$0xff] %v9093_v60 }
  0xd7   :  { %v805_v33 = vsel %vm804_vm12, %v8741_v22, %v801_v32 }
  0xd8   :  { %v810_v34 = vsel %vm807_vm13, %v809_v18, %v805_v33  ;;  %v9159_v18 = vadd.s32 384, %v9101_v7 }
  0xd9   :  { %v811_v35 = vmul.f32 %v810_v34, %v761_v9  ;;  %v9105_v9 = vadd.s32 128, %v9101_v7 }
  0xda   :  { %v8743_v36 = vpop.eup %8742 }
  0xdb   :  { %v9048_v38 = vmul.f32 %v811_v35, %v9021_v37  ;;  %v813_v39 = vmul.f32 %v8743_v36, %v766_v29  ;;  %vm818_vm14 = vweird.f32 %v8743_v36  ;;  %v9089_v58 = vpop.permute.xlu1 %1426  ;;  %v9121_v13 = vand.u32 255, %v9105_v9 }
  0xdc   :  { %vm819_vm2 = vmor %vm817_vm15, %vm818_vm14 }
  0xdd   :  { %15689 = vst [vmem:[#allocation9_spill] sm:$0xff] %v9048_v38  ;;  %v814_v40 = vsub.f32 1.0, %v813_v39  ;;  %860 = vrot.lane.b32.xlu1 %v9048_v38, %s8821_s30  ;;  %vm15324_vm8 = vcmp.lt.s32.totalorder %v9121_v13, 240  ;;  %vm15325_vm11 = vcmp.lt.s32.totalorder %v9121_v13, 224 }
  0xde   :  { %908 = vrot.lane.b32.xlu0 %v9039_v24, %s8819_s3  ;;  %15692 = vst [vmem:[#allocation12_spill] sm:$0xff] %v9121_v13 }
  0xdf   :  { %v815_v42 = vmul.f32 %v8743_v36, %v814_v40 }
  0xe1   :  { %v816_v44 = vadd.f32 %v8743_v36, %v815_v42 }
  0xe3   :  { %v820_v46 = vsel %vm819_vm2, %v8743_v36, %v816_v44  ;;  %v9180_v44 = vand.u32 255, %v9159_v18 }
  0xe4   :  { %v825_v37 = vsel %vm822_vm3, %v824_v45, %v820_v46 }
  0xe5   :  { %v826_v47 = vmul.f32 %v825_v37, %v762_v26  ;;  %835 = vrot.lane.b32.xlu1 %v9048_v38, %s8820_s4  ;;  %v9146_v26 = vand.u32 255, %v9130_v16  ;;  %15694 = vst [vmem:[#allocation14_spill] sm:$0xff] %v9180_v44  ;;  %vm15327_vm14 = vcmp.lt.s32.totalorder %v9180_v44, 240  ;;  %vm15326_vm15 = vcmp.lt.s32.totalorder %v9180_v44, 224 }
  0xe6   :  { %885 = vrot.lane.b32.xlu0 %v9048_v38, %s8822_s5 }
  0xe7   :  { %v9059_v48 = vmul.f32 %v826_v47, %v9024_v1  ;;  %15693 = vst [vmem:[#allocation13_spill] sm:$0xff] %v9146_v26  ;;  %vm15323_vm12 = vcmp.ge.s32.totalorder %v9146_v26, 16  ;;  %vm15322_vm13 = vcmp.ge.s32.totalorder %v9146_v26, 32 }
  0xe9   :  { %15690 = vst [vmem:[#allocation10_spill] sm:$0xff] %v9059_v48  ;;  %862 = vrot.lane.b32.xlu2 %v9059_v48, %s8821_s30 }
  0xed   :  { %910 = vrot.lane.b32.xlu1 %v9048_v38, %s8819_s3 }
  0xf1   :  { %837 = vrot.lane.b32.xlu2 %v9059_v48, %s8820_s4 }
  0xf5   :  { %887 = vrot.lane.b32.xlu1 %v9059_v48, %s8822_s5 }
  0xf9   :  { %912 = vrot.lane.b32.xlu2 %v9059_v48, %s8819_s3 }
 0x11f   :  { %v9099_v1 = vpop.permute.xlu2 %831 }
 0x12b   :  { %v9107_v10 = vpop.permute.xlu2 %883 }
 0x137   :  { %v9095_v61 = vpop.permute.xlu1 %906 }
 0x138   :  { %v9091_v59 = vpop.permute.xlu0 %856 }
 0x140   :  { %v9097_v62 = vpop.permute.xlu0 %881 }
 0x143   :  { %v859_v63 = vpop.permute.xlu1 %858  ;;  %v9134_v19 = vpop.permute.xlu2 %862 }
 0x144   :  { %v867_v2 = vsel %vm15333_vm5, %v9091_v59, %v859_v63 }
 0x145   :  { %v936_v15 = vrot.slane %v867_v2, 6 }
 0x148   :  { %v834_v4 = vpop.permute.xlu0 %833 }
 0x149   :  { %v842_v14 = vsel %vm15332_vm6, %v9099_v1, %v834_v4 }
 0x14a   :  { %v969_v21 = vsel %vm15335_vm7, %v842_v14, %v936_v15  ;;  %v949_v14 = vrot.slane %v9048_v38, 4 }
 0x14b   :  { %v973_v28 = vsel %vm15334_vm1, %v969_v21, %v948_v25  ;;  %v9168_v39 = vpop.permute.xlu2 %837 }
 0x14f   :  { %v861_v8 = vpop.permute.xlu1 %860 }
 0x150   :  { %v909_v11 = vpop.permute.xlu0 %908  ;;  %v866_v31 = vsel %vm15333_vm5, %v859_v63, %v861_v8  ;;  %v865_v43 = vsel %vm15333_vm5, %v861_v8, %v9134_v19 }
 0x151   :  { %v9113_v12 = vsel %vm15330_vm4, %v9095_v61, %v909_v11  ;;  %v879_v40 = vsel %vm15323_vm12, %v866_v31, 0.0  ;;  %v938_v3 = vrot.slane %v865_v43, 6  ;;  %vm1105_vm12 = vcmp.lt.s32.totalorder %v9101_v7, 1 }
 0x152   :  { %1380 = vrot.lane.b32.xlu0 %v9113_v12, %s8823_s16  ;;  %985 = vrot.lane.b32.xlu1 %v9113_v12, %s8824_s17  ;;  %v937_v47 = vrot.slane %v879_v40, 6 }
 0x157   :  { %v836_v17 = vpop.permute.xlu1 %835 }
 0x158   :  { %v886_v20 = vpop.permute.xlu0 %885  ;;  %v841_v35 = vsel %vm15332_vm6, %v834_v4, %v836_v17  ;;  %v840_v63 = vsel %vm15332_vm6, %v836_v17, %v9168_v39 }
 0x159   :  { %v891_v22 = vsel %vm15331_vm9, %v9107_v10, %v886_v20  ;;  %v854_v45 = vsel %vm15322_vm13, %v841_v35, 0.0  ;;  %v971_v15 = vsel %vm15335_vm7, %v840_v63, %v938_v3  ;;  %vm1284_vm13 = vcmp.lt.s32.totalorder %v9101_v7, 127 }
 0x15a   :  { %v903_v23 = vsel %vm15324_vm8, %v891_v22, 0.0  ;;  %1091 = vrot.lane.b32.xlu1 %v9113_v12, %s8825_s18 }
 0x15b   :  { %v960_v27 = vrot.slane %v903_v23, 2 }
 0x15d   :  { %v9150_v29 = vsel %vm15320_vm10, %v973_v28, %v960_v27  ;;  %v950_v27 = vrot.slane %v9059_v48, 4 }
 0x15e   :  { %v1210_v30 = vmul.f32 %v9079_v54, %v9150_v29 }
 0x15f   :  { %v911_v32 = vpop.permute.xlu1 %910  ;;  %v975_v31 = vsel %vm15334_vm1, %v971_v15, %v950_v27 }
 0x160   :  { %v916_v33 = vsel %vm15330_vm4, %v909_v11, %v911_v32  ;;  %v1222_v34 = vrot.slane %v1210_v30, 2  ;;  %v1234_v42 = vrot.slane %v1210_v30, 4  ;;  %v1246_v37 = vrot.slane %v1210_v30, 6 }
 0x161   :  { %v928_v36 = vsel %vm15325_vm11, %v916_v33, 0.0  ;;  %v970_v11 = vsel %vm15335_vm7, %v854_v45, %v937_v47  ;;  %v913_v33 = vpop.permute.xlu2 %912 }
 0x162   :  { %1270 = vrot.lane.b32.xlu1 %v9113_v12, %s8826_s19  ;;  %1095 = vrot.lane.b32.xlu0 %v928_v36, %s8825_s18  ;;  %v1230_v41 = vadd.f32 %v1222_v34, %v1210_v30  ;;  %v1214_v4 = vmul.f32 %v9085_v56, %v928_v36 }
 0x163   :  { %989 = vrot.lane.b32.xlu2 %v928_v36, %s8824_s17 }
 0x164   :  { %v1242_v46 = vadd.f32 %v1234_v42, %v1230_v41  ;;  %v918_v42 = vsel %vm15330_vm4, %v913_v33, %v9095_v61 }
 0x165   :  { %v930_v63 = vsel %vm15326_vm15, %v918_v42, 0.0 }
 0x166   :  { %v1254_v8 = vadd.f32 %v1246_v37, %v1242_v46  ;;  %v915_v46 = vsel %vm15330_vm4, %v911_v32, %v913_v33 }
 0x167   :  { %v888_v2 = vpop.permute.xlu1 %887 }
 0x168   :  { %v890_v21 = vsel %vm15331_vm9, %v886_v20, %v888_v2  ;;  %v893_v17 = vsel %vm15331_vm9, %v888_v2, %v9097_v62  ;;  %v9197_v22 = vadd.f32 %v1254_v8, %v1214_v4  ;;  %v974_v20 = vsel %vm15334_vm1, %v970_v11, %v949_v14 }
 0x169   :  { %v905_v23 = vsel %vm15327_vm14, %v893_v17, 0.0  ;;  %v961_v25 = vrot.slane %v890_v21, 2  ;;  %v1215_v11 = vmul.f32 %v9085_v56, %v915_v46  ;;  %v1216_v2 = vmul.f32 %v9085_v56, %v930_v63 }
 0x16a   :  { %v962_v28 = vrot.slane %v905_v23, 2  ;;  %1384 = vrot.lane.b32.xlu1 %v928_v36, %s8823_s16  ;;  %1093 = vrot.lane.b32.xlu0 %v9150_v29, %s8825_s18  ;;  %v9239_v17 = vand.u32 255, %v9101_v7  ;;  %v843_v23 = vsel %vm15332_vm6, %v9168_v39, %v9099_v1  ;;  %v892_v1 = vsel %vm15331_vm9, %v9097_v62, %v9107_v10 }
 0x16b   :  { %1274 = vrot.lane.b32.xlu2 %v928_v36, %s8826_s19  ;;  %v979_v30 = vsel %vm15320_vm10, %v974_v20, %v961_v25  ;;  %v959_v20 = vrot.slane %v892_v1, 2  ;;  %vm15603_vm14 = vcmp.lt.s32.totalorder %v9101_v7, 126 }
 0x16c   :  { %v1211_v34 = vmul.f32 %v9079_v54, %v979_v30  ;;  %v980_v35 = vsel %vm15320_vm10, %v975_v31, %v962_v28  ;;  %15696 = vst [vmem:[#allocation16_spill] sm:$0xff] %v9239_v17  ;;  %vm15329_vm2 = vcmp.ge.s32.totalorder %v9239_v17, 16  ;;  %vm15328_vm3 = vcmp.ge.s32.totalorder %v9239_v17, 32 }
 0x16d   :  { %v1212_v40 = vmul.f32 %v9079_v54, %v980_v35  ;;  %v852_v27 = vsel %vm15328_vm3, %v843_v23, 0.0 }
 0x16e   :  { %v1223_v41 = vrot.slane %v1211_v34, 2  ;;  %v1235_v45 = vrot.slane %v1211_v34, 4  ;;  %v1247_v4 = vrot.slane %v1211_v34, 6 }
 0x16f   :  { %v1224_v43 = vrot.slane %v1212_v40, 2  ;;  %v1236_v47 = vrot.slane %v1212_v40, 4  ;;  %v1248_v8 = vrot.slane %v1212_v40, 6 }
 0x170   :  { %v1231_v36 = vadd.f32 %v1223_v41, %v1211_v34 }
 0x171   :  { %v1232_v37 = vadd.f32 %v1224_v43, %v1212_v40 }
 0x172   :  { %1382 = vrot.lane.b32.xlu1 %v9150_v29, %s8823_s16  ;;  %1388 = vrot.lane.b32.xlu0 %v915_v46, %s8823_s16  ;;  %v1243_v3 = vadd.f32 %v1235_v45, %v1231_v36 }
 0x173   :  { %987 = vrot.lane.b32.xlu2 %v9150_v29, %s8824_s17  ;;  %v1244_v61 = vadd.f32 %v1236_v47, %v1232_v37 }
 0x174   :  { %v1255_v32 = vadd.f32 %v1247_v4, %v1243_v3 }
 0x175   :  { %v1256_v14 = vadd.f32 %v1248_v8, %v1244_v61 }
 0x176   :  { %v9227_v15 = vadd.f32 %v1255_v32, %v1215_v11 }
 0x177   :  { %v9229_v21 = vadd.f32 %v1256_v14, %v1216_v2  ;;  %v9303_v14 = vand.u32 15, %v9105_v9  ;;  %v1213_v9 = vmul.f32 %v9085_v56, %v9113_v12 }
 0x179   :  { %15695 = vst [vmem:[#allocation15_spill] sm:$0xff] %v9229_v21  ;;  %vm15569_vm0 = vcmp.ge.s32.totalorder %v9303_v14, 2  ;;  %vm15337_vm11 = vcmp.ge.s32.totalorder %v9303_v14, 1  ;;  %vm89_vm4 = vcmp.lt.s32.totalorder %v9303_v14, 14 }
 0x17a   :  { %1278 = vrot.lane.b32.xlu1 %v915_v46, %s8826_s19  ;;  %997 = vrot.lane.b32.xlu0 %v930_v63, %s8824_s17  ;;  %15697 = vst [vmem:[#allocation17_spill] sm:$0xff] %v9303_v14 }
 0x17b   :  { %1272 = vrot.lane.b32.xlu2 %v9150_v29, %s8826_s19  ;;  %v868_v29 = vsel %vm15333_vm5, %v9134_v19, %v9091_v59  ;;  %v947_v19 = vrot.slane %v9027_v5, 4 }
 0x17c   :  { %v877_v25 = vsel %vm15329_vm2, %v868_v29, 0.0  ;;  %vm15338_vm2 = vcmp.lt.s32.totalorder %v9303_v14, 15 }
 0x17d   :  { %v935_v28 = vrot.slane %v877_v25, 6  ;;  %v9311_v25 = vand.u32 15, %v9101_v7 }
 0x17f   :  { %v968_v59 = vsel %vm15335_vm7, %v852_v27, %v935_v28  ;;  %15698 = vst [vmem:[#allocation18_spill] sm:$0xff] %v9311_v25  ;;  %v9314_v27 = vand.u32 15, %v9130_v16  ;;  %vm15336_vm8 = vcmp.lt.s32.totalorder %v9311_v25, 15  ;;  %vm15339_vm15 = vcmp.lt.s32.totalorder %v9311_v25, 14 }
 0x180   :  { %v972_v39 = vsel %vm15334_vm1, %v968_v59, %v947_v19  ;;  %v9327_v19 = vand.u32 15, %v9159_v18  ;;  %vm15602_vm6 = vcmp.ge.s32.totalorder %v9311_v25, 2 }
 0x181   :  { %v977_v31 = vsel %vm15320_vm10, %v972_v39, %v959_v20  ;;  %vm999_vm10 = vcmp.lt.s32.totalorder %v9101_v7, 2  ;;  %15699 = vst [vmem:[#allocation19_spill] sm:$0xff] %v9314_v27  ;;  %vm15346_vm3 = vcmp.ge.s32.totalorder %v9314_v27, 2  ;;  %vm15361_vm9 = vcmp.ge.s32.totalorder %v9314_v27, 1 }
 0x182   :  { %1276 = vrot.lane.b32.xlu1 %v979_v30, %s8826_s19  ;;  %1103 = vrot.lane.b32.xlu0 %v930_v63, %s8825_s18  ;;  %15700 = vst [vmem:[#allocation20_spill] sm:$0xff] %v9327_v19  ;;  %vm15363_vm5 = vcmp.ge.s32.totalorder %v9327_v19, 2  ;;  %vm15360_vm1 = vcmp.lt.s32.totalorder %v9314_v27, 14  ;;  %vm15358_vm7 = vcmp.lt.s32.totalorder %v9327_v19, 14 }
 0x183   :  { %993 = vrot.lane.b32.xlu2 %v915_v46, %s8824_s17 }
 0x18a   :  { %995 = vrot.lane.b32.xlu1 %v980_v35, %s8824_s17  ;;  %1282 = vrot.lane.b32.xlu0 %v930_v63, %s8826_s19 }
 0x18b   :  { %1099 = vrot.lane.b32.xlu2 %v915_v46, %s8825_s18  ;;  %v1209_v46 = vmul.f32 %v9079_v54, %v977_v31 }
 0x18d   :  { %v1221_v3 = vrot.slane %v1209_v46, 2  ;;  %v1233_v61 = vrot.slane %v1209_v46, 4  ;;  %v1245_v29 = vrot.slane %v1209_v46, 6 }
 0x18f   :  { %v1229_v4 = vadd.f32 %v1221_v3, %v1209_v46 }
 0x191   :  { %v1241_v2 = vadd.f32 %v1233_v61, %v1229_v4 }
 0x192   :  { %1101 = vrot.lane.b32.xlu1 %v980_v35, %s8825_s18  ;;  %991 = vrot.lane.b32.xlu0 %v979_v30, %s8824_s17 }
 0x193   :  { %1392 = vrot.lane.b32.xlu2 %v930_v63, %s8823_s16  ;;  %v1253_v54 = vadd.f32 %v1245_v29, %v1241_v2 }
 0x195   :  { %v9329_v39 = vadd.f32 %v1253_v54, %v1213_v9 }
 0x197   :  { %15701 = vst [vmem:[#allocation21_spill] sm:$0xff] %v9329_v39 }
 0x19a   :  { %1268 = vrot.lane.b32.xlu1 %v977_v31, %s8826_s19  ;;  %1097 = vrot.lane.b32.xlu0 %v979_v30, %s8825_s18 }
 0x19b   :  { %1390 = vrot.lane.b32.xlu2 %v980_v35, %s8823_s16 }
 0x1a2   :  { %1386 = vrot.lane.b32.xlu0 %v979_v30, %s8823_s16 }
 0x1a3   :  { %983 = vrot.lane.b32.xlu2 %v977_v31, %s8824_s17 }
 0x1aa   :  { %1280 = vrot.lane.b32.xlu0 %v980_v35, %s8826_s19 }
 0x1ab   :  { %1089 = vrot.lane.b32.xlu2 %v977_v31, %s8825_s18 }
 0x1b2   :  { %1378 = vrot.lane.b32.xlu0 %v977_v31, %s8823_s16 }
 0x1bd   :  { %v990_v62 = vpop.permute.xlu2 %989 }
 0x1c4   :  { %v9277_v10 = vpop.permute.xlu1 %985  ;;  %v9279_v34 = vpop.permute.xlu0 %1380 }
 0x1c5   :  { %v1275_v33 = vpop.permute.xlu2 %1274  ;;  %v1005_v23 = vsel %vm999_vm10, %v9277_v10, %v990_v62 }
 0x1c6   :  { %v1021_v16 = vsel %vm15569_vm0, %v1005_v23, 0.0 }
 0x1c7   :  { %v9350_v20 = vmul.f32 %v9083_v55, %v1021_v16 }
 0x1cc   :  { %v9281_v40 = vpop.permute.xlu1 %1091 }
 0x1cd   :  { %v9283_v41 = vpop.permute.xlu2 %987 }
 0x1d4   :  { %v9285_v42 = vpop.permute.xlu1 %1270  ;;  %v1096_v30 = vpop.permute.xlu0 %1095 }
 0x1d5   :  { %v9287_v43 = vpop.permute.xlu2 %1272  ;;  %v1290_v12 = vsel %vm1284_vm13, %v9285_v42, %v1275_v33  ;;  %v1111_v18 = vsel %vm1105_vm12, %v9281_v40, %v1096_v30 }
 0x1d6   :  { %v1305_v46 = vsel %vm15336_vm8, %v1290_v12, 0.0  ;;  %v1127_v3 = vsel %vm15337_vm11, %v1111_v18, 0.0  ;;  %vm15567_vm8 = vcmp.ge.s32.totalorder %v9311_v25, 1  ;;  %vm79_vm11 = vcmp.ge.s32.totalorder %v9327_v19, 1 }
 0x1dc   :  { %v1385_v35 = vpop.permute.xlu1 %1384  ;;  %v9289_v36 = vpop.permute.xlu0 %1093 }
 0x1dd   :  { %v994_v45 = vpop.permute.xlu2 %993  ;;  %v1400_v4 = vsel %vm15603_vm14, %v9279_v34, %v1385_v35 }
 0x1de   :  { %v1003_v61 = vsel %vm999_vm10, %v990_v62, %v994_v45 }
 0x1df   :  { %v1022_v12 = vsel %vm15346_vm3, %v1003_v61, 0.0 }
 0x1e4   :  { %v9292_v37 = vpop.permute.xlu1 %1382  ;;  %v9294_v47 = vpop.permute.xlu0 %1388 }
 0x1e5   :  { %v9296_v63 = vpop.permute.xlu2 %1099  ;;  %v1398_v2 = vsel %vm15603_vm14, %v1385_v35, %v9294_v47  ;;  %v9384_v35 = vmul.f32 %v9087_v57, %v1305_v46 }
 0x1e6   :  { %v1109_v29 = vsel %vm1105_vm12, %v1096_v30, %v9296_v63 }
 0x1ec   :  { %v9298_v8 = vpop.permute.xlu1 %1278  ;;  %v998_v11 = vpop.permute.xlu0 %997 }
 0x1ed   :  { %v9300_v32 = vpop.permute.xlu2 %1392  ;;  %v1288_v54 = vsel %vm1284_vm13, %v1275_v33, %v9298_v8  ;;  %v1007_v23 = vsel %vm999_vm10, %v998_v11, %v9277_v10  ;;  %v1001_v30 = vsel %vm999_vm10, %v994_v45, %v998_v11  ;;  %v1415_v10 = vsel %vm15339_vm15, %v1400_v4, 0.0 }
 0x1ee   :  { %v1128_v45 = vsel %vm15361_vm9, %v1109_v29, 0.0  ;;  %v1306_v11 = vsel %vm15338_vm2, %v1288_v54, 0.0  ;;  %v1020_v46 = vsel %vm15602_vm6, %v1007_v23, 0.0  ;;  %v9417_v29 = vmul.f32 %v9089_v58, %v1415_v10 }
 0x1ef   :  { %v1396_v54 = vsel %vm15603_vm14, %v9294_v47, %v9300_v32  ;;  %vm15362_vm15 = vcmp.lt.s32.totalorder %v9327_v19, 15  ;;  %v9426_v23 = vmul.f32 %v9083_v55, %v1022_v12  ;;  %v9435_v10 = vmul.f32 %v9087_v57, %v1306_v11 }
 0x1f0   :  { %15702 = vst [vmem:[#allocation22_spill] sm:$0xff] %v9417_v29 }
 0x1f4   :  { %v9320_v28 = vpop.permute.xlu1 %1276  ;;  %v9322_v59 = vpop.permute.xlu0 %1103 }
 0x1f5   :  { %v9324_v1 = vpop.permute.xlu2 %1390  ;;  %v1287_v56 = vsel %vm1284_vm13, %v9287_v43, %v9320_v28 }
 0x1f6   :  { %v1302_v31 = vsel %vm15338_vm2, %v1287_v56, 0.0  ;;  %v9387_v56 = vmul.f32 %v9081_v51, %v1127_v3  ;;  %v1023_v3 = vsel %vm15363_vm5, %v1001_v30, 0.0  ;;  %vm15359_vm2 = vcmp.lt.s32.totalorder %v9314_v27, 15 }
 0x1f7   :  { %v9381_v62 = vmul.f32 %v9075_v52, %v1302_v31  ;;  %v1416_v31 = vsel %vm89_vm4, %v1398_v2, 0.0  ;;  %v9441_v47 = vmul.f32 %v9083_v55, %v1023_v3 }
 0x1f8   :  { %v9429_v30 = vmul.f32 %v9089_v58, %v1416_v31  ;;  %v1402_v31 = vsel %vm15603_vm14, %v9300_v32, %v9279_v34 }
 0x1f9   :  { %v1332_v4 = vrot.slane %v9381_v62, 2 }
 0x1fa   :  { %15703 = vst [vmem:[#allocation23_spill] sm:$0xff] %v9429_v30 }
 0x1fb   :  { %v1340_v11 = vadd.f32 %v1332_v4, %v9381_v62 }
 0x1fc   :  { %v996_v9 = vpop.permute.xlu1 %995  ;;  %v1283_v16 = vpop.permute.xlu0 %1282 }
 0x1fd   :  { %v984_v33 = vpop.permute.xlu2 %983 }
 0x1fe   :  { %v1006_v18 = vsel %vm999_vm10, %v996_v9, %v984_v33  ;;  %v1004_v61 = vsel %vm999_vm10, %v984_v33, %v9283_v41  ;;  %v9432_v33 = vmul.f32 %v9081_v51, %v1128_v45  ;;  %v1417_v45 = vsel %vm15360_vm1, %v1396_v54, 0.0 }
 0x1ff   :  { %v1016_v2 = vsel %vm15602_vm6, %v1006_v18, 0.0  ;;  %v9438_v18 = vmul.f32 %v9083_v55, %v1020_v46  ;;  %v1017_v6 = vsel %vm15569_vm0, %v1004_v61, 0.0  ;;  %v1107_v55 = vsel %vm1105_vm12, %v9296_v63, %v9322_v59 }
 0x200   :  { %v9446_v12 = vmul.f32 %v9073_v50, %v1016_v2  ;;  %v1344_v61 = vrot.slane %v9381_v62, 4  ;;  %v1113_v2 = vsel %vm1105_vm12, %v9322_v59, %v9281_v40  ;;  %v1286_v63 = vsel %vm1284_vm13, %v9298_v8, %v1283_v16 }
 0x201   :  { %v9473_v54 = vmul.f32 %v9073_v50, %v1017_v6  ;;  %v1292_v59 = vsel %vm1284_vm13, %v1283_v16, %v9285_v42  ;;  %v9491_v8 = vsel %vm15358_vm7, %v1402_v31, 0.0  ;;  %v9498_v42 = vmul.f32 %v9089_v58, %v1417_v45 }
 0x202   :  { %v1129_v16 = vsel %vm79_vm11, %v1107_v55, 0.0 }
 0x203   :  { %v1047_v45 = vrot.slane %v9473_v54, 2 }
 0x204   :  { %v1102_v46 = vpop.permute.xlu1 %1101  ;;  %v992_v3 = vpop.permute.xlu0 %991 }
 0x205   :  { %v1000_v34 = vsel %vm999_vm10, %v992_v3, %v996_v9  ;;  %v1002_v32 = vsel %vm999_vm10, %v9283_v41, %v992_v3  ;;  %v1090_v4 = vpop.permute.xlu2 %1089  ;;  %v1046_v41 = vrot.slane %v9446_v12, 2  ;;  %v1352_v3 = vadd.f32 %v1344_v61, %v1340_v11 }
 0x206   :  { %v1018_v0 = vsel %vm15346_vm3, %v1002_v32, 0.0  ;;  %v1110_v40 = vsel %vm1105_vm12, %v1090_v4, %v9289_v36  ;;  %v1112_v6 = vsel %vm1105_vm12, %v1102_v46, %v1090_v4  ;;  %v1019_v32 = vsel %vm15363_vm5, %v1000_v34, 0.0 }
 0x207   :  { %v9485_v9 = vmul.f32 %v9073_v50, %v1018_v0  ;;  %v1122_v13 = vsel %vm15567_vm8, %v1112_v6, 0.0  ;;  %v1126_v0 = vsel %vm15567_vm8, %v1113_v2, 0.0  ;;  %vm15704_vm3 = vcmp.ge.s32.totalorder %v9303_v14, 1 }
 0x208   :  { %v1123_v31 = vsel %vm15704_vm3, %v1110_v40, 0.0  ;;  %v1356_v11 = vrot.slane %v9381_v62, 6  ;;  %v1307_v61 = vsel %vm15359_vm2, %v1286_v63, 0.0  ;;  %v1308_v34 = vsel %vm15362_vm15, %v1292_v59, 0.0 }
 0x209   :  { %v1054_v4 = vadd.f32 %v1046_v41, %v9446_v12  ;;  %v9514_v2 = vmul.f32 %v9073_v50, %v1019_v32  ;;  %v1048_v55 = vrot.slane %v9485_v9, 2  ;;  %v1140_v6 = vmul.f32 %v9071_v49, %v1122_v13 }
 0x20a   :  { %v9518_v40 = vadd.f32 %v1356_v11, %v1352_v3  ;;  %v9521_v62 = vmul.f32 %v9081_v51, %v1126_v0  ;;  %v9524_v63 = vmul.f32 %v9081_v51, %v1129_v16  ;;  %v1141_v59 = vmul.f32 %v9071_v49, %v1123_v31 }
 0x20b   :  { %v9530_v50 = vmul.f32 %v9087_v57, %v1307_v61  ;;  %v9533_v32 = vmul.f32 %v9087_v57, %v1308_v34  ;;  %v1058_v13 = vrot.slane %v9446_v12, 4  ;;  %v1152_v3 = vrot.slane %v1140_v6, 2 }
 0x20c   :  { %v9527_v26 = vpop.permute.xlu1 %1268  ;;  %v1098_v41 = vpop.permute.xlu0 %1097  ;;  %v1055_v0 = vadd.f32 %v1047_v45, %v9473_v54  ;;  %v1059_v11 = vrot.slane %v9473_v54, 4  ;;  %v1070_v51 = vrot.slane %v9446_v12, 6  ;;  %v1153_v16 = vrot.slane %v1141_v59, 2 }
 0x20d   :  { %v1066_v31 = vadd.f32 %v1058_v13, %v1054_v4  ;;  %v1049_v44 = vrot.slane %v9514_v2, 2  ;;  %v1056_v17 = vadd.f32 %v1048_v55, %v9485_v9  ;;  %v1289_v57 = vsel %vm1284_vm13, %v9527_v26, %v9287_v43 }
 0x20e   :  { %v1161_v61 = vadd.f32 %v1153_v16, %v1141_v59  ;;  %vm15705_vm3 = vcmp.lt.s32.totalorder %v9311_v25, 15  ;;  %v1106_v45 = vsel %vm1105_vm12, %v1098_v41, %v1102_v46  ;;  %v1108_v12 = vsel %vm1105_vm12, %v9289_v36, %v1098_v41 }
 0x20f   :  { %v1301_v34 = vsel %vm15705_vm3, %v1289_v57, 0.0  ;;  %v1071_v4 = vrot.slane %v9473_v54, 6  ;;  %v1160_v13 = vadd.f32 %v1152_v3, %v1140_v6  ;;  %v1165_v55 = vrot.slane %v1141_v59, 4 }
 0x210   :  { %v9554_v24 = vmul.f32 %v9075_v52, %v1301_v34  ;;  %v1067_v5 = vadd.f32 %v1059_v11, %v1055_v0  ;;  %v1060_v43 = vrot.slane %v9485_v9, 4  ;;  %v1124_v16 = vsel %vm15361_vm9, %v1108_v12, 0.0 }
 0x211   :  { %v1125_v46 = vsel %vm79_vm11, %v1106_v45, 0.0  ;;  %v1078_v57 = vadd.f32 %v1070_v51, %v1066_v31  ;;  %v1057_v48 = vadd.f32 %v1049_v44, %v9514_v2  ;;  %v1164_v36 = vrot.slane %v1140_v6, 4 }
 0x212   :  { %v1173_v41 = vadd.f32 %v1165_v55, %v1161_v61  ;;  %v1061_v54 = vrot.slane %v9514_v2, 4  ;;  %v1068_v3 = vadd.f32 %v1060_v43, %v1056_v17  ;;  %v1142_v34 = vmul.f32 %v9071_v49, %v1124_v16 }
 0x213   :  { %v1143_v0 = vmul.f32 %v9071_v49, %v1125_v46  ;;  %v1072_v38 = vrot.slane %v9485_v9, 6  ;;  %v1172_v60 = vadd.f32 %v1164_v36, %v1160_v13  ;;  %v1177_v12 = vrot.slane %v1141_v59, 6 }
 0x214   :  { %v1387_v11 = vpop.permute.xlu0 %1386  ;;  %v1331_v29 = vrot.slane %v9554_v24, 2  ;;  %v1154_v45 = vrot.slane %v1142_v34, 2  ;;  %v1079_v31 = vadd.f32 %v1071_v4, %v1067_v5  ;;  %v1069_v61 = vadd.f32 %v1061_v54, %v1057_v48 }
 0x215   :  { %v1155_v51 = vrot.slane %v1143_v0, 2  ;;  %v1395_v44 = vsel %vm15603_vm14, %v1387_v11, %v9324_v1  ;;  %v1397_v17 = vsel %vm15603_vm14, %v9292_v37, %v1387_v11  ;;  %v1176_v49 = vrot.slane %v1140_v6, 6 }
 0x216   :  { %v1185_v55 = vadd.f32 %v1177_v12, %v1173_v41  ;;  %v1080_v43 = vadd.f32 %v1072_v38, %v1068_v3  ;;  %v1162_v9 = vadd.f32 %v1154_v45, %v1142_v34  ;;  %v1166_v59 = vrot.slane %v1142_v34, 4 }
 0x217   :  { %v1163_v13 = vadd.f32 %v1155_v51, %v1143_v0  ;;  %v1184_v16 = vadd.f32 %v1176_v49, %v1172_v60  ;;  %v1167_v46 = vrot.slane %v1143_v0, 4  ;;  %v1412_v36 = vsel %vm89_vm4, %v1397_v17, 0.0 }
 0x218   :  { %v1413_v21 = vsel %vm15360_vm1, %v1395_v44, 0.0  ;;  %v1339_v30 = vadd.f32 %v1331_v29, %v9554_v24  ;;  %v1174_v39 = vadd.f32 %v1166_v59, %v1162_v9  ;;  %v1178_v11 = vrot.slane %v1142_v34, 6 }
 0x219   :  { %v9579_v5 = vmul.f32 %v9077_v53, %v1412_v36  ;;  %v1073_v38 = vrot.slane %v9514_v2, 6  ;;  %v1189_v48 = vadd.f32 %v1185_v55, %v9387_v56  ;;  %v1175_v6 = vadd.f32 %v1167_v46, %v1163_v13 }
 0x21a   :  { %v1431_v60 = vmul.f32 %v9077_v53, %v1413_v21  ;;  %v1083_v4 = vadd.f32 %v1079_v31, %v9350_v20  ;;  %v1343_v41 = vrot.slane %v9554_v24, 4  ;;  %v1186_v54 = vadd.f32 %v1178_v11, %v1174_v39 }
 0x21b   :  { %v1442_v3 = vrot.slane %v9579_v5, 2  ;;  %v1081_v12 = vadd.f32 %v1073_v38, %v1069_v61  ;;  %v1188_v34 = vadd.f32 %v1184_v16, %v9521_v62  ;;  %v1179_v45 = vrot.slane %v1143_v0, 6 }
 0x21c   :  { %v1281_v29 = vpop.permute.xlu0 %1280  ;;  %v1443_v51 = vrot.slane %v1431_v60, 2  ;;  %v1082_v2 = vadd.f32 %v1078_v57, %v9438_v18  ;;  %v1084_v56 = vadd.f32 %v1080_v43, %v9426_v23  ;;  %v1351_v44 = vadd.f32 %v1343_v41, %v1339_v30 }
 0x21d   :  { %v1355_v21 = vrot.slane %v9554_v24, 6  ;;  %v1193_v17 = vadd.f32 %v1189_v48, %v1083_v4  ;;  %v1187_v20 = vadd.f32 %v1179_v45, %v1175_v6  ;;  %v1285_v39 = vsel %vm1284_vm13, %v9320_v28, %v1281_v29 }
 0x21e   :  { %v1291_v31 = vsel %vm1284_vm13, %v1281_v29, %v9527_v26  ;;  %v1190_v62 = vadd.f32 %v1186_v54, %v9432_v33  ;;  %v1450_v0 = vadd.f32 %v1442_v3, %v9579_v5  ;;  %v1451_v18 = vadd.f32 %v1443_v51, %v1431_v60 }
 0x21f   :  { %v1303_v23 = vsel %vm15359_vm2, %v1285_v39, 0.0  ;;  %v1085_v24 = vadd.f32 %v1081_v12, %v9441_v47  ;;  %v1192_v30 = vadd.f32 %v1188_v34, %v1082_v2  ;;  %v1304_v57 = vsel %vm15362_vm15, %v1291_v31, 0.0 }
 0x220   :  { %v1321_v28 = vmul.f32 %v9075_v52, %v1303_v23  ;;  %v1363_v61 = vadd.f32 %v1355_v21, %v1351_v44  ;;  %v1454_v49 = vrot.slane %v9579_v5, 4  ;;  %v1455_v26 = vrot.slane %v1431_v60, 4 }
 0x221   :  { %v1322_v33 = vmul.f32 %v9075_v52, %v1304_v57  ;;  %v1262_v55 = vadd.f32 %v9197_v22, %v1193_v17  ;;  %v1191_v43 = vadd.f32 %v1187_v20, %v9524_v63  ;;  %v1467_v9 = vrot.slane %v1431_v60, 6 }
 0x222   :  { %v1333_v13 = vrot.slane %v1321_v28, 2  ;;  %v1194_v59 = vadd.f32 %v1190_v62, %v1084_v56  ;;  %v1462_v47 = vadd.f32 %v1454_v49, %v1450_v0  ;;  %v1463_v16 = vadd.f32 %v1455_v26, %v1451_v18  ;;  %v15707_v49 = vld [vmem:[#allocation21_spill] sm:$0xff] }
 0x223   :  { %v1334_v46 = vrot.slane %v1322_v33, 2  ;;  %v1345_v38 = vrot.slane %v1321_v28, 4  ;;  %v1346_v6 = vrot.slane %v1322_v33, 4  ;;  %vm15706_vm3 = vcmp.lt.s32.totalorder %v9311_v25, 14 }
 0x224   :  { %v1379_v36 = vpop.permute.xlu0 %1378  ;;  %v1341_v11 = vadd.f32 %v1333_v13, %v1321_v28  ;;  %v1357_v41 = vrot.slane %v1321_v28, 6  ;;  %v1475_v29 = vadd.f32 %v1467_v9, %v1463_v16  ;;  %v1358_v34 = vrot.slane %v1322_v33, 6  ;;  %v15710_v16 = vld [vmem:[#allocation22_spill] sm:$0xff] }
 0x225   :  { %v1399_v48 = vsel %vm15603_vm14, %v1379_v36, %v9292_v37  ;;  %v1401_v52 = vsel %vm15603_vm14, %v9324_v1, %v1379_v36  ;;  %v1342_v22 = vadd.f32 %v1334_v46, %v1322_v33  ;;  %v1466_v37 = vrot.slane %v9579_v5, 6  ;;  %v15708_v33 = vld [vmem:[#allocation23_spill] sm:$0xff] }
 0x226   :  { %v1411_v63 = vsel %vm15706_vm3, %v1399_v48, 0.0  ;;  %v1414_v60 = vsel %vm15358_vm7, %v1401_v52, 0.0  ;;  %v1353_v4 = vadd.f32 %v1345_v38, %v1341_v11  ;;  %v1195_v1 = vadd.f32 %v1191_v43, %v1085_v24  ;;  %v15711_v11 = vld [vmem:[#allocation11_spill] sm:$0xff] }
 0x227   :  { %v1429_v54 = vmul.f32 %v9077_v53, %v1411_v63  ;;  %v1432_v3 = vmul.f32 %v9077_v53, %v1414_v60  ;;  %v1354_v12 = vadd.f32 %v1346_v6, %v1342_v22  ;;  %v1474_v56 = vadd.f32 %v1466_v37, %v1462_v47 }
 0x228   :  { %v1365_v45 = vadd.f32 %v1357_v41, %v1353_v4  ;;  %v1263_v44 = vadd.f32 %v9227_v15, %v1194_v59  ;;  %v1367_v53 = vadd.f32 %v1363_v61, %v9384_v35  ;;  %v1479_v5 = vadd.f32 %v1475_v29, %v9498_v42  ;;  %v15709_v35 = vld [vmem:[#allocation15_spill] sm:$0xff] }
 0x229   :  { %v1441_v51 = vrot.slane %v1429_v54, 2  ;;  %v1444_v2 = vrot.slane %v1432_v3, 2  ;;  %v1366_v21 = vadd.f32 %v1358_v34, %v1354_v12  ;;  %v1453_v17 = vrot.slane %v1429_v54, 4 }
 0x22a   :  { %v1369_v20 = vadd.f32 %v1365_v45, %v9530_v50  ;;  %v1456_v62 = vrot.slane %v1432_v3, 4  ;;  %v1465_v0 = vrot.slane %v1429_v54, 6  ;;  %v1468_v18 = vrot.slane %v1432_v3, 6 }
 0x22b   :  { %v1449_v39 = vadd.f32 %v1441_v51, %v1429_v54  ;;  %v1452_v31 = vadd.f32 %v1444_v2, %v1432_v3  ;;  %v1370_v23 = vadd.f32 %v1366_v21, %v9533_v32  ;;  %v1436_v15 = vmul.f32 %v9089_v58, %v9491_v8 }
 0x22c   :  { %v1373_v24 = vadd.f32 %v1369_v20, %v1263_v44  ;;  %v1368_v50 = vadd.f32 %v9518_v40, %v9435_v10  ;;  %v1261_v26 = vadd.f32 %v15707_v49, %v1192_v30  ;;  %v1478_v43 = vadd.f32 %v1474_v56, %v15708_v33 }
 0x22d   :  { %v1461_v57 = vadd.f32 %v1453_v17, %v1449_v39  ;;  %v1464_v28 = vadd.f32 %v1456_v62, %v1452_v31  ;;  %v1264_v61 = vadd.f32 %v15709_v35, %v1195_v1 }
 0x22e   :  { %v1483_v42 = vadd.f32 %v1479_v5, %v1373_v24  ;;  %v1371_v59 = vadd.f32 %v1367_v53, %v1261_v26  ;;  %v1372_v32 = vadd.f32 %v1368_v50, %v1262_v55 }
 0x22f   :  { %v1473_v9 = vadd.f32 %v1465_v0, %v1461_v57  ;;  %v1476_v13 = vadd.f32 %v1468_v18, %v1464_v28  ;;  %v1374_v47 = vadd.f32 %v1370_v23, %v1264_v61 }
 0x230   :  { %v9636_v58 = vadd.f32 %v15711_v11, %v1483_v42  ;;  %v1482_v8 = vadd.f32 %v1478_v43, %v1372_v32 }
 0x231   :  { %v1477_v46 = vadd.f32 %v1473_v9, %v15710_v16  ;;  %v1480_v36 = vadd.f32 %v1476_v13, %v1436_v15 }
 0x232   :  { %v1497_v30 = vmin.f32 %v9636_v58, 20.0  ;;  %v9646_v55 = vadd.f32 %v15711_v11, %v1482_v8  ;;  %v15712_v8 = vld [vmem:[#allocation9_spill] sm:$0xff] }
 0x233   :  { %v1481_v10 = vadd.f32 %v1477_v46, %v1371_v59  ;;  %v1484_v40 = vadd.f32 %v1480_v36, %v1374_v47 }
 0x234   :  { %v1503_v52 = vmul.f32 1.442695, %v1497_v30  ;;  %v1496_v4 = vmin.f32 %v9646_v55, 20.0 }
 0x235   :  { %v9640_v38 = vadd.f32 %v15711_v11, %v1481_v10  ;;  %v9643_v48 = vadd.f32 %v15711_v11, %v1484_v40 }
 0x236   :  { %8744 = vpow2.f32 %v1503_v52  ;;  %v1501_v54 = vmul.f32 1.442695, %v1496_v4 }
 0x237   :  { %v1495_v22 = vmin.f32 %v9640_v38, 20.0  ;;  %v1498_v6 = vmin.f32 %v9643_v48, 20.0 }
 0x239   :  { %v1499_v63 = vmul.f32 1.442695, %v1495_v22  ;;  %v1505_v60 = vmul.f32 1.442695, %v1498_v6 }
 0x23b   :  { %8746 = vpow2.f32 %v1499_v63 }
 0x23c   :  { %8748 = vpow2.f32 %v1505_v60  ;;  %v8745_v41 = vpop.eup %8744 }
 0x23d   :  { %v1509_v3 = vadd.f32 2.0, %v8745_v41  ;;  %8750 = vpow2.f32 %v1501_v54 }
 0x23f   :  { %v1513_v37 = vmul.f32 %v8745_v41, %v1509_v3  ;;  %v15714_v41 = vld [vmem:[#allocation10_spill] sm:$0xff] }
 0x241   :  { %v8747_v29 = vpop.eup %8746  ;;  %v1517_v34 = vadd.f32 2.0, %v1513_v37 }
 0x242   :  { %v8749_v12 = vpop.eup %8748  ;;  %v1507_v1 = vadd.f32 2.0, %v8747_v29 }
 0x243   :  { %v1510_v45 = vadd.f32 2.0, %v8749_v12  ;;  %8752 = vrcp.f32 %v1517_v34  ;;  %v8751_v21 = vpop.eup %8750  ;;  %v1560_v62 = vand.u32 2147483648, %v1517_v34  ;;  %v1558_v0 = vand.u32 2147483647, %v1517_v34 }
 0x244   :  { %v9651_v2 = vmul.f32 %v8747_v29, %v1507_v1  ;;  %v1508_v39 = vadd.f32 2.0, %v8751_v21  ;;  %vm1554_vm7 = vweird.f32 %v1517_v34 }
 0x245   :  { %v1514_v51 = vmul.f32 %v8749_v12, %v1510_v45  ;;  %v1561_v15 = vor.u32 1.1754944e-38, %v1560_v62  ;;  %vm1559_vm1 = vcmp.eq.f32.partialorder %v1558_v0, 8.507059e+37 }
 0x246   :  { %v1515_v44 = vadd.f32 2.0, %v9651_v2  ;;  %v9654_v18 = vmul.f32 %v8751_v21, %v1508_v39 }
 0x247   :  { %v1518_v56 = vadd.f32 2.0, %v1514_v51 }
 0x248   :  { %v1516_v33 = vadd.f32 2.0, %v9654_v18  ;;  %v1530_v52 = vand.u32 2147483648, %v1515_v44  ;;  %v1528_v6 = vand.u32 2147483647, %v1515_v44 }
 0x249   :  { %8754 = vrcp.f32 %v1518_v56  ;;  %v8753_v17 = vpop.eup %8752  ;;  %v1575_v26 = vand.u32 2147483648, %v1518_v56  ;;  %v1573_v61 = vand.u32 2147483647, %v1518_v56  ;;  %vm1569_vm15 = vweird.f32 %v1518_v56 }
 0x24a   :  { %8756 = vrcp.f32 %v1515_v44  ;;  %v1550_v20 = vmul.f32 %v8753_v17, %v1517_v34  ;;  %vm1555_vm3 = vweird.f32 %v8753_v17  ;;  %v1531_v4 = vor.u32 1.1754944e-38, %v1530_v52 }
 0x24b   :  { %vm1556_vm2 = vmor %vm1554_vm7, %vm1555_vm3  ;;  %v1576_v32 = vor.u32 1.1754944e-38, %v1575_v26  ;;  %vm1574_vm7 = vcmp.eq.f32.partialorder %v1573_v61, 8.507059e+37  ;;  %8758 = vrcp.f32 %v1516_v33  ;;  %vm1529_vm3 = vcmp.eq.f32.partialorder %v1528_v6, 8.507059e+37 }
 0x24c   :  { %v1551_v31 = vsub.f32 1.0, %v1550_v20  ;;  %v1545_v1 = vand.u32 2147483648, %v1516_v33 }
 0x24e   :  { %v1552_v5 = vmul.f32 %v8753_v17, %v1551_v31  ;;  %v15718_v31 = vld [vmem:[#allocation8_spill] sm:$0xff] }
 0x24f   :  { %v8755_v53 = vpop.eup %8754 }
 0x250   :  { %v8757_v23 = vpop.eup %8756  ;;  %v1565_v24 = vmul.f32 %v8755_v53, %v1518_v56  ;;  %v1553_v57 = vadd.f32 %v8753_v17, %v1552_v5  ;;  %vm1570_vm9 = vweird.f32 %v8755_v53  ;;  %v1546_v56 = vor.u32 1.1754944e-38, %v1545_v1 }
 0x251   :  { %v1520_v28 = vmul.f32 %v8757_v23, %v1515_v44  ;;  %vm1571_vm5 = vmor %vm1569_vm15, %vm1570_vm9  ;;  %v8759_v30 = vpop.eup %8758  ;;  %vm1524_vm9 = vweird.f32 %v1515_v44 }
 0x252   :  { %v1566_v50 = vsub.f32 1.0, %v1565_v24  ;;  %v1557_v49 = vsel %vm1556_vm2, %v8753_v17, %v1553_v57  ;;  %v1535_v60 = vmul.f32 %v8759_v30, %v1516_v33 }
 0x253   :  { %v1562_v43 = vsel %vm1559_vm1, %v1561_v15, %v1557_v49  ;;  %v1521_v9 = vsub.f32 1.0, %v1520_v28  ;;  %vm15713_vm1 = vcmask 1041408  }
 0x254   :  { %v1567_v35 = vmul.f32 %v8755_v53, %v1566_v50  ;;  %v1563_v42 = vmul.f32 %v1562_v43, %v1513_v37  ;;  %vm15715_vm2 = vmmov %vm15713_vm1  ;;  %v1536_v3 = vsub.f32 1.0, %v1535_v60 }
 0x255   :  { %v1522_v36 = vmul.f32 %v8757_v23, %v1521_v9 }
 0x256   :  { %v1568_v13 = vadd.f32 %v8755_v53, %v1567_v35  ;;  %v1581_v59 = vmul.f32 %v1563_v42, %v9636_v58  ;;  %v1537_v29 = vmul.f32 %v8759_v30, %v1536_v3  ;;  %v15719_v42 = vld [vmem:[#allocation16_spill] sm:$0xff] }
 0x257   :  { %v1523_v40 = vadd.f32 %v8757_v23, %v1522_v36  ;;  %v15725_v3 = vld [vmem:[#allocation12_spill] sm:$0xff] }
 0x258   :  { %v1572_v47 = vsel %vm1571_vm5, %v8755_v53, %v1568_v13  ;;  %v1589_v16 = vrot.slane %v1581_v59, 6  ;;  %vm1525_vm5 = vweird.f32 %v8757_v23  ;;  %v1538_v34 = vadd.f32 %v8759_v30, %v1537_v29 }
 0x259   :  { %v1577_v46 = vsel %vm1574_vm7, %v1576_v32, %v1572_v47  ;;  %vm1526_vm15 = vmor %vm1524_vm9, %vm1525_vm5  ;;  %vm1540_vm7 = vweird.f32 %v8759_v30 }
 0x25a   :  { %v1578_v11 = vmul.f32 %v1577_v46, %v1514_v51  ;;  %v9660_v10 = vsel %vm15713_vm1, %v15712_v8, %v1589_v16  ;;  %v1527_v63 = vsel %vm1526_vm15, %v8757_v23, %v1523_v40  ;;  %vm1539_vm1 = vweird.f32 %v1516_v33  ;;  %vm15717_vm9 = vmmov %vm15715_vm2 }
 0x25b   :  { %1685 = vrot.lane.b32.xlu0 %v9660_v10, %s8822_s5  ;;  %1653 = vrot.lane.b32.xlu2 %v9660_v10, %s8820_s4  ;;  %v1543_v51 = vand.u32 2147483647, %v1516_v33  ;;  %vm1541_vm5 = vmor %vm1539_vm1, %vm1540_vm7  ;;  %vm100_vm7 = vcmp.ge.s32.totalorder %v15719_v42, 48  ;;  %vm1607_vm1 = vcmp.lt.s32.totalorder %v9101_v7, 64 }
 0x25c   :  { %v1582_v58 = vmul.f32 %v1578_v11, %v9643_v48  ;;  %1669 = vrot.lane.b32.xlu1 %v9660_v10, %s8821_s30  ;;  %v1532_v48 = vsel %vm1529_vm3, %v1531_v4, %v1527_v63  ;;  %vm1632_vm3 = vcmp.lt.s32.totalorder %v9101_v7, 48 }
 0x25d   :  { %v1533_v37 = vmul.f32 %v1532_v48, %v9651_v2  ;;  %v1542_v2 = vsel %vm1541_vm5, %v8759_v30, %v1538_v34  ;;  %vm1544_vm15 = vcmp.eq.f32.partialorder %v1543_v51, 8.507059e+37  ;;  %vm116_vm5 = vcmp.ge.s32.totalorder %v15719_v42, 64 }
 0x25e   :  { %v1590_v22 = vrot.slane %v1582_v58, 6  ;;  %v1547_v21 = vsel %vm1544_vm15, %v1546_v56, %v1542_v2  ;;  %v15722_v58 = vld [vmem:[#allocation14_spill] sm:$0xff] }
 0x25f   :  { %v1579_v12 = vmul.f32 %v1533_v37, %v9640_v38  ;;  %v15716_v38 = vld [vmem:[#allocation7_spill] sm:$0xff]  ;;  %v1548_v17 = vmul.f32 %v1547_v21, %v9654_v18  ;;  %vm115_vm15 = vcmp.lt.s32.totalorder %v15722_v58, 192 }
 0x260   :  { %v9671_v54 = vsel %vm15715_vm2, %v15714_v41, %v1590_v22  ;;  %v15724_v22 = vld [vmem:[#allocation13_spill] sm:$0xff] }
 0x261   :  { %v1587_v45 = vrot.slane %v1579_v12, 6  ;;  %v1580_v20 = vmul.f32 %v1548_v17, %v9646_v55 }
 0x263   :  { %1687 = vrot.lane.b32.xlu0 %v9671_v54, %s8822_s5  ;;  %1603 = vrot.lane.b32.xlu2 %v9660_v10, %s8827_s20  ;;  %v9689_v44 = vsel %vm15717_vm9, %v15716_v38, %v1587_v45  ;;  %v1588_v39 = vrot.slane %v1580_v20, 6  ;;  %vm15721_vm9 = vcmask 1043456  }
 0x264   :  { %1628 = vrot.lane.b32.xlu1 %v9660_v10, %s8828_s21 }
 0x265   :  { %v9707_v62 = vsel %vm15715_vm2, %v15718_v31, %v1588_v39  ;;  %vm102_vm2 = vcmp.ge.s32.totalorder %v15724_v22, 48 }
 0x26b   :  { %1655 = vrot.lane.b32.xlu0 %v9671_v54, %s8820_s4  ;;  %1717 = vrot.lane.b32.xlu2 %v9660_v10, %s8829_s22 }
 0x26c   :  { %1701 = vrot.lane.b32.xlu1 %v9660_v10, %s8819_s3 }
 0x273   :  { %1703 = vrot.lane.b32.xlu2 %v9671_v54, %s8819_s3  ;;  %1665 = vrot.lane.b32.xlu0 %v9689_v44, %s8821_s30 }
 0x274   :  { %1671 = vrot.lane.b32.xlu1 %v9671_v54, %s8821_s30 }
 0x27b   :  { %1681 = vrot.lane.b32.xlu2 %v9689_v44, %s8822_s5  ;;  %1624 = vrot.lane.b32.xlu0 %v9689_v44, %s8828_s21 }
 0x27c   :  { %1630 = vrot.lane.b32.xlu1 %v9671_v54, %s8828_s21 }
 0x283   :  { %1599 = vrot.lane.b32.xlu0 %v9689_v44, %s8827_s20  ;;  %1683 = vrot.lane.b32.xlu2 %v9707_v62, %s8822_s5 }
 0x284   :  { %1605 = vrot.lane.b32.xlu1 %v9671_v54, %s8827_s20 }
 0x28b   :  { %1713 = vrot.lane.b32.xlu0 %v9689_v44, %s8829_s22  ;;  %1649 = vrot.lane.b32.xlu2 %v9689_v44, %s8820_s4 }
 0x28c   :  { %1719 = vrot.lane.b32.xlu1 %v9671_v54, %s8829_s22 }
 0x293   :  { %1715 = vrot.lane.b32.xlu0 %v9707_v62, %s8829_s22  ;;  %1601 = vrot.lane.b32.xlu2 %v9707_v62, %s8827_s20 }
 0x294   :  { %1697 = vrot.lane.b32.xlu1 %v9689_v44, %s8819_s3 }
 0x29b   :  { %1699 = vrot.lane.b32.xlu0 %v9707_v62, %s8819_s3  ;;  %1667 = vrot.lane.b32.xlu2 %v9707_v62, %s8821_s30 }
 0x29c   :  { %1626 = vrot.lane.b32.xlu1 %v9707_v62, %s8828_s21 }
 0x2a3   :  { %1651 = vrot.lane.b32.xlu0 %v9707_v62, %s8820_s4 }
 0x2b5   :  { %v9735_v55 = vpop.permute.xlu2 %1653 }
 0x2bd   :  { %v9737_v53 = vpop.permute.xlu2 %1603 }
 0x2c5   :  { %v9739_v5 = vpop.permute.xlu2 %1717 }
 0x2cd   :  { %v9741_v0 = vpop.permute.xlu0 %1685  ;;  %v9743_v18 = vpop.permute.xlu2 %1703 }
 0x2ce   :  { %v9745_v23 = vpop.permute.xlu1 %1669 }
 0x2d5   :  { %v9747_v24 = vpop.permute.xlu0 %1687  ;;  %v9749_v28 = vpop.permute.xlu2 %1681 }
 0x2d6   :  { %v1629_v57 = vpop.permute.xlu1 %1628 }
 0x2dd   :  { %v9751_v15 = vpop.permute.xlu0 %1655  ;;  %v9755_v49 = vpop.permute.xlu2 %1683 }
 0x2de   :  { %v9753_v50 = vpop.permute.xlu1 %1701 }
 0x2e5   :  { %v9757_v26 = vpop.permute.xlu0 %1665  ;;  %v9761_v43 = vpop.permute.xlu2 %1649 }
 0x2e6   :  { %v9759_v33 = vpop.permute.xlu1 %1671 }
 0x2ed   :  { %v1625_v35 = vpop.permute.xlu0 %1624  ;;  %v1602_v59 = vpop.permute.xlu2 %1601 }
 0x2ee   :  { %v1631_v61 = vpop.permute.xlu1 %1630  ;;  %v1609_v63 = vsel %vm1607_vm1, %v1602_v59, %v9737_v53 }
 0x2ef   :  { %v1636_v9 = vsel %vm1632_vm3, %v1631_v61, %v1625_v35  ;;  %v1633_v12 = vsel %vm1632_vm3, %v1629_v57, %v1631_v61 }
 0x2f0   :  { %v1645_v13 = vsel %vm100_vm7, %v1636_v9, 0.0  ;;  %vm118_vm7 = vcmp.ge.s32.totalorder %v15724_v22, 64  ;;  %v1757_v45 = vrot.slane %v1633_v12, 4 }
 0x2f1   :  { %v1754_v46 = vrot.slane %v1645_v13, 4  ;;  %v1622_v48 = vsel %vm118_vm7, %v1609_v63, 0.0 }
 0x2f5   :  { %v1600_v32 = vpop.permute.xlu0 %1599  ;;  %v9888_v9 = vpop.permute.xlu2 %1667 }
 0x2f6   :  { %v1606_v47 = vpop.permute.xlu1 %1605  ;;  %v9771_v16 = vsel %vm1607_vm1, %v1600_v32, %v1602_v59 }
 0x2f7   :  { %15720 = vst [vmem:[#allocation21_spill] sm:$0xff] %v9771_v16  ;;  %v1611_v36 = vsel %vm1607_vm1, %v1606_v47, %v1600_v32  ;;  %2080 = vrot.lane.b32.xlu0 %v9771_v16, %s8825_s18  ;;  %2240 = vrot.lane.b32.xlu2 %v9771_v16, %s8823_s16  ;;  %v9835_v1 = vsel %vm1607_vm1, %v9737_v53, %v1606_v47  ;;  %vm15732_vm1 = vcmp.lt.s32.totalorder %v9101_v7, 32 }
 0x2f8   :  { %v1620_v11 = vsel %vm116_vm5, %v1611_v36, 0.0  ;;  %2000 = vrot.lane.b32.xlu1 %v9771_v16, %s8824_s17  ;;  %v9785_v40 = vsel %vm115_vm15, %v1611_v36, 0.0  ;;  %vm113_vm5 = vcmp.lt.s32.totalorder %v15725_v3, 192  ;;  %15728 = vst [vmem:[#allocation11_spill] sm:$0xff] %v9835_v1  ;;  %vm15729_vm15 = vcmp.lt.s32.totalorder %v9101_v7, 16 }
 0x2f9   :  { %v9782_v8 = vsel %vm15721_vm9, %v1620_v11, %v1754_v46  ;;  %15723 = vst [vmem:[#allocation23_spill] sm:$0xff] %v9785_v40  ;;  %v9820_v29 = vsel %vm113_vm5, %v1609_v63, 0.0  ;;  %v1673_v51 = vsel %vm15729_vm15, %v9745_v23, %v9759_v33  ;;  %v1657_v17 = vsel %vm15732_vm1, %v9735_v55, %v9751_v15 }
 0x2fa   :  { %15727 = vst [vmem:[#allocation22_spill] sm:$0xff] %v9820_v29  ;;  %v1769_v38 = vrot.slane %v1673_v51, 4  ;;  %vm1721_vm15 = vcmp.lt.s32.totalorder %v9101_v7, 80  ;;  %vm15741_vm1 = vcmp.lt.s32.totalorder %v9101_v7, 96 }
 0x2fd   :  { %v9830_v34 = vpop.permute.xlu0 %1713 }
 0x2fe   :  { %v9787_v30 = vpop.permute.xlu1 %1719 }
 0x2ff   :  { %2409 = vrot.lane.b32.xlu0 %v9771_v16, %s8830_s23  ;;  %2030 = vrot.lane.b32.xlu2 %v9785_v40, %s8824_s17  ;;  %v1725_v51 = vsel %vm1721_vm15, %v9787_v30, %v9830_v34 }
 0x300   :  { %1911 = vrot.lane.b32.xlu1 %v9771_v16, %s8831_s24 }
 0x305   :  { %v9857_v20 = vpop.permute.xlu0 %1715 }
 0x306   :  { %v9795_v52 = vpop.permute.xlu1 %1697 }
 0x307   :  { %2320 = vrot.lane.b32.xlu0 %v9771_v16, %s8832_s25  ;;  %1852 = vrot.lane.b32.xlu2 %v9785_v40, %s8833_s1 }
 0x308   :  { %1822 = vrot.lane.b32.xlu1 %v9771_v16, %s8833_s1 }
 0x30d   :  { %v9880_v61 = vpop.permute.xlu0 %1699 }
 0x30e   :  { %v1627_v6 = vpop.permute.xlu1 %1626  ;;  %v1707_v32 = vsel %vm15741_vm1, %v9795_v52, %v9880_v61 }
 0x30f   :  { %v1634_v60 = vsel %vm1632_vm3, %v1627_v6, %v1629_v57  ;;  %1941 = vrot.lane.b32.xlu0 %v9785_v40, %s8831_s24  ;;  %2110 = vrot.lane.b32.xlu2 %v9785_v40, %s8825_s18  ;;  %v1635_v56 = vsel %vm1632_vm3, %v1625_v35, %v1627_v6  ;;  %vm15737_vm3 = vcmp.lt.s32.totalorder %v9101_v7, 112 }
 0x310   :  { %v1647_v4 = vsel %vm102_vm2, %v1634_v60, 0.0  ;;  %2160 = vrot.lane.b32.xlu1 %v9771_v16, %s8826_s19  ;;  %vm15730_vm2 = vmmov %vm15721_vm9  ;;  %v1755_v21 = vrot.slane %v1635_v56, 4  ;;  %v1691_v53 = vsel %vm15737_vm3, %v9749_v28, %v9755_v49 }
 0x311   :  { %v1756_v41 = vrot.slane %v1647_v4, 4  ;;  %v9845_v2 = vsel %vm15730_vm2, %v9835_v1, %v1757_v45  ;;  %vm15733_vm7 = vmmov %vm15730_vm2  ;;  %v1778_v57 = vrot.slane %v1691_v53, 4 }
 0x312   :  { %15731 = vst [vmem:[#allocation9_spill] sm:$0xff] %v9845_v2  ;;  %v9860_v39 = vsel %vm15733_vm7, %v1657_v17, %v1769_v38  ;;  %vm15735_vm5 = vmmov %vm15730_vm2  ;;  %vm15742_vm7 = vcmp.lt.s32.totalorder %v9101_v7, 32 }
 0x313   :  { %v9818_v37 = vsel %vm15721_vm9, %v1622_v48, %v1756_v41  ;;  %15734 = vst [vmem:[#allocation10_spill] sm:$0xff] %v9860_v39  ;;  %v9864_v31 = vsel %vm15735_vm5, %v9771_v16, %v1755_v21  ;;  %vm15738_vm9 = vmmov %vm15730_vm2  ;;  %vm15740_vm2 = vcmp.lt.s32.totalorder %v9101_v7, 16 }
 0x314   :  { %15726 = vst [vmem:[#allocation15_spill] sm:$0xff] %v9818_v37  ;;  %v9878_v35 = vsel %vm15738_vm9, %v9689_v44, %v1778_v57  ;;  %v1724_v44 = vsel %vm1721_vm15, %v9830_v34, %v9857_v20  ;;  %v1675_v59 = vsel %vm15740_vm2, %v9757_v26, %v9888_v9  ;;  %vm15744_vm3 = vmmov %vm15735_vm5 }
 0x315   :  { %15736 = vst [vmem:[#allocation7_spill] sm:$0xff] %v9864_v31  ;;  %v9901_v13 = vpop.permute.xlu0 %1651  ;;  %v1790_v47 = vrot.slane %v1724_v44, 4  ;;  %v1767_v36 = vrot.slane %v1675_v59, 4  ;;  %vm15746_vm9 = vmmov %vm15740_vm2  ;;  %vm15747_vm2 = vcmp.ge.s32.totalorder %v15719_v42, 16 }
 0x316   :  { %15739 = vst [vmem:[#allocation8_spill] sm:$0xff] %v9878_v35  ;;  %v1659_v46 = vsel %vm15742_vm7, %v9761_v43, %v9901_v13  ;;  %v1676_v63 = vsel %vm15746_vm9, %v9759_v33, %v9757_v26  ;;  %vm15749_vm1 = vmmov %vm15742_vm7  ;;  %vm15750_vm7 = vcmp.lt.s32.totalorder %v9101_v7, 112  ;;  %vm15752_vm9 = vcmp.lt.s32.totalorder %v15722_v58, 240 }
 0x317   :  { %2330 = vrot.lane.b32.xlu2 %v9820_v29, %s8832_s25  ;;  %2250 = vrot.lane.b32.xlu0 %v9820_v29, %s8823_s16  ;;  %v9916_v11 = vsel %vm15735_vm5, %v1707_v32, %v1790_v47  ;;  %v9919_v6 = vsel %vm15744_vm3, %v1659_v46, %v1767_v36  ;;  %v1677_v60 = vsel %vm15747_vm2, %v1676_v63, 0.0  ;;  %v1660_v26 = vsel %vm15749_vm1, %v9751_v15, %v9761_v43  ;;  %vm15754_vm2 = vmmov %vm15744_vm3 }
 0x318   :  { %2419 = vrot.lane.b32.xlu1 %v9820_v29, %s8830_s23  ;;  %15743 = vst [vmem:[#allocation24_spill] sm:$0xff] %v9916_v11  ;;  %v1766_v41 = vrot.slane %v1677_v60, 4  ;;  %v1692_v33 = vsel %vm15750_vm7, %v9747_v24, %v9749_v28  ;;  %vm15751_vm5 = vcmp.ge.s32.totalorder %v15719_v42, 32  ;;  %vm99_vm1 = vcmp.lt.s32.totalorder %v15722_v58, 208 }
 0x319   :  { %15745 = vst [vmem:[#allocation25_spill] sm:$0xff] %v9919_v6  ;;  %v1661_v48 = vsel %vm15751_vm5, %v1660_v26, 0.0  ;;  %v1696_v15 = vsel %vm15752_vm9, %v1692_v33, 0.0  ;;  %vm15756_vm7 = vcmp.lt.s32.totalorder %v9101_v7, 96  ;;  %v1737_v38 = vsel %vm99_vm1, %v1725_v51, 0.0 }
 0x31a   :  { %v9958_v12 = vsel %vm15744_vm3, %v1661_v48, %v1766_v41  ;;  %v1781_v28 = vrot.slane %v1696_v15, 4  ;;  %vm15758_vm5 = vcmp.lt.s32.totalorder %v15722_v58, 224  ;;  %v1793_v21 = vrot.slane %v1737_v38, 4  ;;  %vm15759_vm3 = vmmov %vm15754_vm2 }
 0x31b   :  { %vm97_vm9 = vcmp.lt.s32.totalorder %v15725_v3, 208  ;;  %v1723_v26 = vsel %vm1721_vm15, %v9857_v20, %v9739_v5  ;;  %vm15777_vm1 = vcmp.lt.s32.totalorder %v15725_v3, 224 }
 0x31c   :  { %v9972_v45 = vsel %vm15754_vm2, %v9671_v54, %v1781_v28  ;;  %v1708_v54 = vsel %vm15756_vm7, %v9743_v18, %v9795_v52  ;;  %vm15773_vm2 = vmmov %vm15756_vm7  ;;  %v1735_v28 = vsel %vm97_vm9, %v1723_v26, 0.0 }
 0x31d   :  { %15755 = vst [vmem:[#allocation28_spill] sm:$0xff] %v9972_v45  ;;  %v1712_v34 = vsel %vm15758_vm5, %v1708_v54, 0.0  ;;  %v1706_v33 = vsel %vm15773_vm2, %v9880_v61, %v9753_v50  ;;  %v1791_v54 = vrot.slane %v1735_v28, 4  ;;  %vm15778_vm7 = vmmov %vm15759_vm3  ;;  %vm15792_vm5 = vcmp.lt.s32.totalorder %v9101_v7, 112 }
 0x31e   :  { %v9994_v17 = vsel %vm15759_vm3, %v1712_v34, %v1793_v21  ;;  %v1710_v51 = vsel %vm15777_vm1, %v1706_v33, 0.0  ;;  %vm15793_vm3 = vcmp.lt.s32.totalorder %v15725_v3, 240  ;;  %vm15797_vm9 = vmmov %vm15778_vm7 }
 0x31f   :  { %2010 = vrot.lane.b32.xlu2 %v9820_v29, %s8824_s17  ;;  %2170 = vrot.lane.b32.xlu0 %v9820_v29, %s8826_s19  ;;  %15760 = vst [vmem:[#allocation30_spill] sm:$0xff] %v9994_v17  ;;  %v10068_v38 = vsel %vm15778_vm7, %v1710_v51, %v1791_v54  ;;  %vm15812_vm2 = vmmov %vm15778_vm7 }
 0x320   :  { %1844 = vrot.lane.b32.xlu1 %v9845_v2, %s8833_s1  ;;  %15779 = vst [vmem:[#allocation46_spill] sm:$0xff] %v10068_v38  ;;  %vm15819_vm1 = vmmov %vm15792_vm5 }
 0x321   :  { %vm15823_vm7 = vmmov %vm15812_vm2 }
 0x327   :  { %1921 = vrot.lane.b32.xlu2 %v9820_v29, %s8831_s24  ;;  %2104 = vrot.lane.b32.xlu0 %v9860_v39, %s8825_s18 }
 0x328   :  { %2322 = vrot.lane.b32.xlu1 %v9864_v31, %s8832_s25 }
 0x32f   :  { %2024 = vrot.lane.b32.xlu2 %v9860_v39, %s8824_s17  ;;  %2102 = vrot.lane.b32.xlu0 %v9845_v2, %s8825_s18 }
 0x330   :  { %2236 = vrot.lane.b32.xlu1 %v9878_v35, %s8823_s16 }
 0x337   :  { %2022 = vrot.lane.b32.xlu2 %v9845_v2, %s8824_s17  ;;  %1935 = vrot.lane.b32.xlu0 %v9860_v39, %s8831_s24 }
 0x338   :  { %2162 = vrot.lane.b32.xlu1 %v9864_v31, %s8826_s19 }
 0x33f   :  { %1933 = vrot.lane.b32.xlu2 %v9845_v2, %s8831_s24  ;;  %1998 = vrot.lane.b32.xlu0 %v9916_v11, %s8824_s17 }
 0x340   :  { %2084 = vrot.lane.b32.xlu1 %v9919_v6, %s8825_s18 }
 0x347   :  { %1846 = vrot.lane.b32.xlu2 %v9860_v39, %s8833_s1  ;;  %1909 = vrot.lane.b32.xlu0 %v9916_v11, %s8831_s24 }
 0x348   :  { %2413 = vrot.lane.b32.xlu1 %v9919_v6, %s8830_s23 }
 0x34f   :  { %2076 = vrot.lane.b32.xlu2 %v9878_v35, %s8825_s18  ;;  %1907 = vrot.lane.b32.xlu0 %v9878_v35, %s8831_s24 }
 0x350   :  { %2411 = vrot.lane.b32.xlu1 %v9864_v31, %s8830_s23 }
 0x351   :  { %v9945_v4 = vpop.permute.xlu2 %2240 }
 0x352   :  { %15748 = vst [vmem:[#allocation26_spill] sm:$0xff] %v9945_v4 }
 0x357   :  { %1996 = vrot.lane.b32.xlu2 %v9878_v35, %s8824_s17  ;;  %2238 = vrot.lane.b32.xlu0 %v9916_v11, %s8823_s16 }
 0x358   :  { %2074 = vrot.lane.b32.xlu1 %v9958_v12, %s8825_s18 }
 0x359   :  { %v9968_v43 = vpop.permute.xlu2 %2030 }
 0x35a   :  { %15753 = vst [vmem:[#allocation27_spill] sm:$0xff] %v9968_v43 }
 0x35f   :  { %1820 = vrot.lane.b32.xlu2 %v9916_v11, %s8833_s1  ;;  %1818 = vrot.lane.b32.xlu0 %v9878_v35, %s8833_s1 }
 0x360   :  { %2106 = vrot.lane.b32.xlu1 %v9972_v45, %s8825_s18 }
 0x361   :  { %v9989_v56 = vpop.permute.xlu2 %1852 }
 0x362   :  { %15757 = vst [vmem:[#allocation29_spill] sm:$0xff] %v9989_v56 }
 0x367   :  { %2242 = vrot.lane.b32.xlu2 %v9864_v31, %s8823_s16  ;;  %2244 = vrot.lane.b32.xlu0 %v9919_v6, %s8823_s16 }
 0x368   :  { %2028 = vrot.lane.b32.xlu1 %v9994_v17, %s8824_s17 }
 0x369   :  { %v10002_v52 = vpop.permute.xlu0 %2080  ;;  %v10004_v53 = vpop.permute.xlu2 %2110 }
 0x36a   :  { %15761 = vst [vmem:[#allocation31_spill] sm:$0xff] %v10002_v52  ;;  %v10006_v57 = vpop.permute.xlu1 %2000 }
 0x36b   :  { %15762 = vst [vmem:[#allocation32_spill] sm:$0xff] %v10004_v53 }
 0x36c   :  { %15763 = vst [vmem:[#allocation33_spill] sm:$0xff] %v10006_v57 }
 0x36f   :  { %2156 = vrot.lane.b32.xlu2 %v9878_v35, %s8826_s19  ;;  %2158 = vrot.lane.b32.xlu0 %v9916_v11, %s8826_s19 }
 0x370   :  { %1994 = vrot.lane.b32.xlu1 %v9958_v12, %s8824_s17 }
 0x371   :  { %v10014_v44 = vpop.permute.xlu0 %2409  ;;  %v10016_v59 = vpop.permute.xlu2 %2330 }
 0x372   :  { %15764 = vst [vmem:[#allocation34_spill] sm:$0xff] %v10014_v44  ;;  %v10018_v32 = vpop.permute.xlu1 %1911 }
 0x373   :  { %15765 = vst [vmem:[#allocation35_spill] sm:$0xff] %v10016_v59 }
 0x374   :  { %15766 = vst [vmem:[#allocation36_spill] sm:$0xff] %v10018_v32 }
 0x377   :  { %2164 = vrot.lane.b32.xlu2 %v9919_v6, %s8826_s19  ;;  %2405 = vrot.lane.b32.xlu0 %v9878_v35, %s8830_s23 }
 0x378   :  { %1992 = vrot.lane.b32.xlu1 %v9782_v8, %s8824_s17 }
 0x379   :  { %v10026_v47 = vpop.permute.xlu0 %2320  ;;  %v10028_v46 = vpop.permute.xlu2 %2010 }
 0x37a   :  { %15767 = vst [vmem:[#allocation37_spill] sm:$0xff] %v10026_v47  ;;  %v10030_v36 = vpop.permute.xlu1 %1822 }
 0x37b   :  { %15768 = vst [vmem:[#allocation38_spill] sm:$0xff] %v10028_v46 }
 0x37c   :  { %15769 = vst [vmem:[#allocation39_spill] sm:$0xff] %v10030_v36 }
 0x37f   :  { %2078 = vrot.lane.b32.xlu2 %v9916_v11, %s8825_s18  ;;  %2316 = vrot.lane.b32.xlu0 %v9878_v35, %s8832_s25 }
 0x380   :  { %1937 = vrot.lane.b32.xlu1 %v9972_v45, %s8831_s24 }
 0x381   :  { %v10038_v63 = vpop.permute.xlu0 %1941  ;;  %v10040_v60 = vpop.permute.xlu2 %1921 }
 0x382   :  { %15770 = vst [vmem:[#allocation40_spill] sm:$0xff] %v10038_v63  ;;  %v10042_v41 = vpop.permute.xlu1 %2160 }
 0x383   :  { %15771 = vst [vmem:[#allocation41_spill] sm:$0xff] %v10040_v60  ;;  %v1690_v60 = vsel %vm15792_vm5, %v9755_v49, %v9741_v0  ;;  %vm15829_vm5 = vmmov %vm15812_vm2 }
 0x384   :  { %15772 = vst [vmem:[#allocation42_spill] sm:$0xff] %v10042_v41  ;;  %v1694_v46 = vsel %vm15793_vm3, %v1690_v60, 0.0  ;;  %vm15834_vm3 = vmmov %vm15812_vm2 }
 0x385   :  { %v1779_v59 = vrot.slane %v1694_v46, 4 }
 0x387   :  { %2407 = vrot.lane.b32.xlu2 %v9916_v11, %s8830_s23  ;;  %2324 = vrot.lane.b32.xlu0 %v9919_v6, %s8832_s25  ;;  %v10138_v49 = vsel %vm15797_vm9, %v9707_v62, %v1779_v59  ;;  %vm15835_vm9 = vmmov %vm15812_vm2 }
 0x388   :  { %1903 = vrot.lane.b32.xlu1 %v9782_v8, %s8831_s24  ;;  %15798 = vst [vmem:[#allocation62_spill] sm:$0xff] %v10138_v49 }
 0x389   :  { %v10059_v48 = vpop.permute.xlu0 %2250  ;;  %v10061_v15 = vpop.permute.xlu2 %2024 }
 0x38a   :  { %15774 = vst [vmem:[#allocation43_spill] sm:$0xff] %v10059_v48  ;;  %v10063_v20 = vpop.permute.xlu1 %2419 }
 0x38b   :  { %15775 = vst [vmem:[#allocation44_spill] sm:$0xff] %v10061_v15 }
 0x38c   :  { %15776 = vst [vmem:[#allocation45_spill] sm:$0xff] %v10063_v20 }
 0x38f   :  { %2082 = vrot.lane.b32.xlu2 %v9864_v31, %s8825_s18  ;;  %2004 = vrot.lane.b32.xlu0 %v9919_v6, %s8824_s17 }
 0x390   :  { %2248 = vrot.lane.b32.xlu1 %v10068_v38, %s8823_s16 }
 0x391   :  { %v10076_v61 = vpop.permute.xlu0 %2170  ;;  %v10078_v34 = vpop.permute.xlu2 %2022 }
 0x392   :  { %15780 = vst [vmem:[#allocation47_spill] sm:$0xff] %v10076_v61  ;;  %v10080_v21 = vpop.permute.xlu1 %1844 }
 0x393   :  { %15781 = vst [vmem:[#allocation48_spill] sm:$0xff] %v10078_v34 }
 0x394   :  { %15782 = vst [vmem:[#allocation49_spill] sm:$0xff] %v10080_v21 }
 0x397   :  { %2318 = vrot.lane.b32.xlu2 %v9916_v11, %s8832_s25  ;;  %2002 = vrot.lane.b32.xlu0 %v9864_v31, %s8824_s17 }
 0x398   :  { %1848 = vrot.lane.b32.xlu1 %v9972_v45, %s8833_s1 }
 0x399   :  { %v10088_v26 = vpop.permute.xlu0 %2104  ;;  %v10090_v33 = vpop.permute.xlu2 %1933 }
 0x39a   :  { %15783 = vst [vmem:[#allocation50_spill] sm:$0xff] %v10088_v26  ;;  %v10092_v28 = vpop.permute.xlu1 %2322 }
 0x39b   :  { %15784 = vst [vmem:[#allocation51_spill] sm:$0xff] %v10090_v33 }
 0x39c   :  { %15785 = vst [vmem:[#allocation52_spill] sm:$0xff] %v10092_v28 }
 0x39f   :  { %2072 = vrot.lane.b32.xlu2 %v9782_v8, %s8825_s18  ;;  %2026 = vrot.lane.b32.xlu0 %v9972_v45, %s8824_s17 }
 0x3a0   :  { %1816 = vrot.lane.b32.xlu1 %v9958_v12, %s8833_s1 }
 0x3a1   :  { %v10100_v51 = vpop.permute.xlu0 %2102  ;;  %v10102_v54 = vpop.permute.xlu2 %1846 }
 0x3a2   :  { %15786 = vst [vmem:[#allocation53_spill] sm:$0xff] %v10100_v51  ;;  %v10104_v42 = vpop.permute.xlu1 %2236 }
 0x3a3   :  { %15787 = vst [vmem:[#allocation54_spill] sm:$0xff] %v10102_v54 }
 0x3a4   :  { %15788 = vst [vmem:[#allocation55_spill] sm:$0xff] %v10104_v42 }
 0x3a7   :  { %1939 = vrot.lane.b32.xlu2 %v9994_v17, %s8831_s24  ;;  %2312 = vrot.lane.b32.xlu0 %v9782_v8, %s8832_s25 }
 0x3a8   :  { %1832 = vrot.lane.b32.xlu1 %v9820_v29, %s8833_s1 }
 0x3a9   :  { %v10112_v58 = vpop.permute.xlu0 %1935  ;;  %v10114_v27 = vpop.permute.xlu2 %2076 }
 0x3aa   :  { %15789 = vst [vmem:[#allocation56_spill] sm:$0xff] %v10112_v58  ;;  %v10116_v19 = vpop.permute.xlu1 %2162 }
 0x3ab   :  { %15790 = vst [vmem:[#allocation57_spill] sm:$0xff] %v10114_v27 }
 0x3ac   :  { %15791 = vst [vmem:[#allocation58_spill] sm:$0xff] %v10116_v19 }
 0x3af   :  { %1905 = vrot.lane.b32.xlu2 %v9958_v12, %s8831_s24  ;;  %1850 = vrot.lane.b32.xlu0 %v9994_v17, %s8833_s1 }
 0x3b0   :  { %1826 = vrot.lane.b32.xlu1 %v9919_v6, %s8833_s1 }
 0x3b1   :  { %v10130_v14 = vpop.permute.xlu0 %1998  ;;  %v10132_v47 = vpop.permute.xlu2 %1996 }
 0x3b2   :  { %15794 = vst [vmem:[#allocation59_spill] sm:$0xff] %v10130_v14  ;;  %v10134_v45 = vpop.permute.xlu1 %2084 }
 0x3b3   :  { %15795 = vst [vmem:[#allocation60_spill] sm:$0xff] %v10132_v47 }
 0x3b4   :  { %15796 = vst [vmem:[#allocation61_spill] sm:$0xff] %v10134_v45 }
 0x3b7   :  { %2246 = vrot.lane.b32.xlu2 %v10138_v49, %s8823_s16  ;;  %1913 = vrot.lane.b32.xlu0 %v9864_v31, %s8831_s24 }
 0x3b8   :  { %2232 = vrot.lane.b32.xlu1 %v9782_v8, %s8823_s16 }
 0x3b9   :  { %v10146_v60 = vpop.permute.xlu0 %1909  ;;  %v10148_v3 = vpop.permute.xlu2 %1820 }
 0x3ba   :  { %15799 = vst [vmem:[#allocation63_spill] sm:$0xff] %v10146_v60  ;;  %v10150_v46 = vpop.permute.xlu1 %2413 }
 0x3bb   :  { %15800 = vst [vmem:[#allocation64_spill] sm:$0xff] %v10148_v3 }
 0x3bc   :  { %15801 = vst [vmem:[#allocation65_spill] sm:$0xff] %v10150_v46 }
 0x3bf   :  { %2234 = vrot.lane.b32.xlu2 %v9958_v12, %s8823_s16  ;;  %1814 = vrot.lane.b32.xlu0 %v9782_v8, %s8833_s1 }
 0x3c0   :  { %2154 = vrot.lane.b32.xlu1 %v9958_v12, %s8826_s19 }
 0x3c1   :  { %v10158_v62 = vpop.permute.xlu0 %1907  ;;  %v10160_v59 = vpop.permute.xlu2 %2242 }
 0x3c2   :  { %15802 = vst [vmem:[#allocation66_spill] sm:$0xff] %v10158_v62  ;;  %v10162_v45 = vpop.permute.xlu1 %2411 }
 0x3c3   :  { %15803 = vst [vmem:[#allocation67_spill] sm:$0xff] %v10160_v59 }
 0x3c4   :  { %15804 = vst [vmem:[#allocation68_spill] sm:$0xff] %v10162_v45 }
 0x3c7   :  { %2168 = vrot.lane.b32.xlu2 %v10068_v38, %s8826_s19  ;;  %2166 = vrot.lane.b32.xlu0 %v10138_v49, %s8826_s19 }
 0x3c8   :  { %2108 = vrot.lane.b32.xlu1 %v9994_v17, %s8825_s18 }
 0x3c9   :  { %v10170_v46 = vpop.permute.xlu0 %2238  ;;  %v10172_v44 = vpop.permute.xlu2 %2156 }
 0x3ca   :  { %15805 = vst [vmem:[#allocation69_spill] sm:$0xff] %v10170_v46  ;;  %v10174_v20 = vpop.permute.xlu1 %2074 }
 0x3cb   :  { %15806 = vst [vmem:[#allocation70_spill] sm:$0xff] %v10172_v44  ;;  %v2128_v45 = vsel %vm1105_vm12, %v10088_v26, %v10174_v20 }
 0x3cc   :  { %15807 = vst [vmem:[#allocation71_spill] sm:$0xff] %v10174_v20  ;;  %v10192_v2 = vsel %vm15567_vm8, %v2128_v45, 0.0 }
 0x3cd   :  { %v2590_v20 = vrot.slane %v10192_v2, 4 }
 0x3cf   :  { %1915 = vrot.lane.b32.xlu2 %v9919_v6, %s8831_s24  ;;  %2152 = vrot.lane.b32.xlu0 %v9782_v8, %s8826_s19 }
 0x3d0   :  { %2415 = vrot.lane.b32.xlu1 %v10138_v49, %s8830_s23 }
 0x3d1   :  { %v10186_v17 = vpop.permute.xlu0 %1818  ;;  %v10188_v39 = vpop.permute.xlu2 %2164 }
 0x3d2   :  { %15808 = vst [vmem:[#allocation72_spill] sm:$0xff] %v10186_v17  ;;  %v10194_v35 = vpop.permute.xlu1 %2106 }
 0x3d3   :  { %15809 = vst [vmem:[#allocation73_spill] sm:$0xff] %v10188_v39  ;;  %v2129_v6 = vsel %vm1105_vm12, %v10194_v35, %v10114_v27 }
 0x3d4   :  { %15810 = vst [vmem:[#allocation74_spill] sm:$0xff] %v10194_v35  ;;  %v10202_v26 = vsel %vm15567_vm8, %v2129_v6, 0.0 }
 0x3d5   :  { %15811 = vst [vmem:[#allocation75_spill] sm:$0xff] %v10202_v26  ;;  %v15402_v40 = vrot.slane %v10202_v26, 4 }
 0x3d7   :  { %1824 = vrot.lane.b32.xlu2 %v9864_v31, %s8833_s1  ;;  %2417 = vrot.lane.b32.xlu0 %v10068_v38, %s8830_s23  ;;  %v2599_v45 = vsel %vm15812_vm2, %v2590_v20, %v15402_v40  ;;  %vm15836_vm2 = vcmp.lt.s32.totalorder %v9101_v7, 16 }
 0x3d8   :  { %2328 = vrot.lane.b32.xlu1 %v10068_v38, %s8832_s25  ;;  %v10215_v35 = vand.u32 4294901760, %v2599_v45 }
 0x3d9   :  { %v10217_v6 = vpop.permute.xlu0 %2244  ;;  %v10219_v2 = vpop.permute.xlu2 %2078 }
 0x3da   :  { %15813 = vst [vmem:[#allocation76_spill] sm:$0xff] %v10217_v6  ;;  %v10221_v27 = vpop.permute.xlu1 %2028  ;;  %2844 = vmatpush.msra.mxu0 %v10215_v35  ;;  %3040 = vmatpush.msra.mxu3 %v10215_v35  ;;  %v10226_v31 = vsub.f32 %v2599_v45, %v10215_v35 }
 0x3db   :  { %15814 = vst [vmem:[#allocation77_spill] sm:$0xff] %v10219_v2 }
 0x3dc   :  { %15815 = vst [vmem:[#allocation78_spill] sm:$0xff] %v10221_v27  ;;  %2987 = vmatpush.msra.mxu2 %v10226_v31  ;;  %v15408_v40 = vand.u32 4294901760, %v10226_v31 }
 0x3de   :  { %v2887_v26 = vsub.f32 %v10226_v31, %v15408_v40  ;;  %v1689_v40 = vsel %vm15819_vm1, %v9741_v0, %v9747_v24  ;;  %v1722_v0 = vsel %vm1721_vm15, %v9739_v5, %v9787_v30  ;;  %vm15828_vm15 = vcmp.lt.s32.totalorder %v9101_v7, 96 }
 0x3df   :  { %2086 = vrot.lane.b32.xlu2 %v10138_v49, %s8825_s18  ;;  %2403 = vrot.lane.b32.xlu0 %v9958_v12, %s8830_s23  ;;  %v1780_v16 = vrot.slane %v1689_v40, 4  ;;  %v1705_v5 = vsel %vm15828_vm15, %v9753_v50, %v9743_v18  ;;  %v2050_v30 = vsel %vm999_vm10, %v10221_v27, %v10130_v14  ;;  %vm15837_vm1 = vcmp.lt.s32.totalorder %v9101_v7, 32 }
 0x3e0   :  { %2326 = vrot.lane.b32.xlu1 %v10138_v49, %s8832_s25  ;;  %v2888_v11 = vand.u32 4294901760, %v2887_v26  ;;  %vm15842_vm15 = vcmp.ge.s32.totalorder %v15724_v22, 32 }
 0x3e1   :  { %v10239_v45 = vpop.permute.xlu0 %2158  ;;  %v10241_v53 = vpop.permute.xlu2 %2407  ;;  %v10263_v2 = vsel %vm15823_vm7, %v9660_v10, %v1780_v16  ;;  %v1792_v10 = vrot.slane %v1722_v0, 4  ;;  %v2064_v0 = vsel %vm15602_vm6, %v2050_v30, 0.0  ;;  %vm15840_vm7 = vcmp.ge.s32.totalorder %v15724_v22, 16 }
 0x3e2   :  { %15816 = vst [vmem:[#allocation79_spill] sm:$0xff] %v10239_v45  ;;  %v10243_v52 = vpop.permute.xlu1 %1994  ;;  %2889 = vmatpush.msra.mxu1 %v2888_v11  ;;  %v10314_v30 = vand.u32 4294901760, %v2064_v0 }
 0x3e3   :  { %15817 = vst [vmem:[#allocation80_spill] sm:$0xff] %v10241_v53 }
 0x3e4   :  { %15818 = vst [vmem:[#allocation81_spill] sm:$0xff] %v10243_v52 }
 0x3e5   :  { %15824 = vst [vmem:[#allocation85_spill] sm:$0xff] %v10263_v2 }
 0x3e7   :  { %2314 = vrot.lane.b32.xlu2 %v9958_v12, %s8832_s25  ;;  %2401 = vrot.lane.b32.xlu0 %v9782_v8, %s8830_s23 }
 0x3e8   :  { %2008 = vrot.lane.b32.xlu1 %v10068_v38, %s8824_s17 }
 0x3e9   :  { %v10255_v26 = vpop.permute.xlu0 %2405  ;;  %v10257_v53 = vpop.permute.xlu2 %2082 }
 0x3ea   :  { %15820 = vst [vmem:[#allocation82_spill] sm:$0xff] %v10255_v26  ;;  %v10259_v11 = vpop.permute.xlu1 %1992 }
 0x3eb   :  { %15821 = vst [vmem:[#allocation83_spill] sm:$0xff] %v10257_v53  ;;  %v10290_v53 = vsel %vm15829_vm5, %v1705_v5, %v1792_v10  ;;  %v2051_v10 = vsel %vm999_vm10, %v9968_v43, %v10006_v57  ;;  %v1674_v57 = vsel %vm15836_vm2, %v9888_v9, %v9745_v23  ;;  %v1658_v23 = vsel %vm15837_vm1, %v9901_v13, %v9735_v55  ;;  %vm15850_vm1 = vmmov %vm15834_vm3 }
 0x3ec   :  { %15822 = vst [vmem:[#allocation84_spill] sm:$0xff] %v10259_v11  ;;  %vm1943_vm5 = vcmp.lt.s32.totalorder %v9101_v7, 3  ;;  %vm1854_vm2 = vcmp.lt.s32.totalorder %v9101_v7, 4 }
 0x3ed   :  { %15830 = vst [vmem:[#allocation89_spill] sm:$0xff] %v10290_v53 }
 0x3ef   :  { %2006 = vrot.lane.b32.xlu2 %v10138_v49, %s8824_s17  ;;  %2256 = vrot.lane.b32.xlu0 %v10263_v2, %s8823_s16 }
 0x3f0   :  { %1919 = vrot.lane.b32.xlu1 %v10068_v38, %s8831_s24 }
 0x3f1   :  { %v10275_v24 = vpop.permute.xlu0 %2316  ;;  %v10277_v40 = vpop.permute.xlu2 %2318 }
 0x3f2   :  { %15825 = vst [vmem:[#allocation86_spill] sm:$0xff] %v10275_v24  ;;  %v10279_v16 = vpop.permute.xlu1 %1937  ;;  %v2068_v24 = vsel %vm15602_vm6, %v2051_v10, 0.0  ;;  %v10335_v10 = vsub.f32 %v2064_v0, %v10314_v30 }
 0x3f3   :  { %15826 = vst [vmem:[#allocation87_spill] sm:$0xff] %v10277_v40 }
 0x3f4   :  { %15827 = vst [vmem:[#allocation88_spill] sm:$0xff] %v10279_v16  ;;  %v15844_v22 = vand.u32 4294901760, %v10335_v10 }
 0x3f7   :  { %2258 = vrot.lane.b32.xlu2 %v10290_v53, %s8823_s16  ;;  %2180 = vrot.lane.b32.xlu0 %v9835_v1, %s8826_s19 }
 0x3f8   :  { %1917 = vrot.lane.b32.xlu1 %v10138_v49, %s8831_s24 }
 0x3f9   :  { %v10300_v18 = vpop.permute.xlu0 %2324  ;;  %v10302_v50 = vpop.permute.xlu2 %2072 }
 0x3fa   :  { %15831 = vst [vmem:[#allocation90_spill] sm:$0xff] %v10300_v18  ;;  %v10308_v5 = vpop.permute.xlu1 %1903  ;;  %v2127_v27 = vsel %vm1105_vm12, %v10100_v51, %v10302_v50 }
 0x3fb   :  { %15832 = vst [vmem:[#allocation91_spill] sm:$0xff] %v10302_v50  ;;  %v2132_v14 = vsel %vm15567_vm8, %v2127_v27, 0.0 }
 0x3fc   :  { %15833 = vst [vmem:[#allocation92_spill] sm:$0xff] %v10308_v5  ;;  %v2586_v18 = vrot.slane %v2132_v14, 4 }
 0x3fe   :  { %v2591_v40 = vsel %vm15834_vm3, %v2586_v18, %v2590_v20  ;;  %v2798_v43 = vsel %vm15835_vm9, %v2068_v24, %v2586_v18  ;;  %v1679_v18 = vsel %vm15840_vm7, %v1674_v57, 0.0  ;;  %vm108_vm9 = vcmp.ge.s32.totalorder %v9311_v25, 3 }
 0x3ff   :  { %1830 = vrot.lane.b32.xlu2 %v10068_v38, %s8833_s1  ;;  %1828 = vrot.lane.b32.xlu0 %v10138_v49, %s8833_s1  ;;  %v10330_v27 = vand.u32 4294901760, %v2591_v40  ;;  %v10332_v14 = vand.u32 4294901760, %v2798_v43  ;;  %v1768_v51 = vrot.slane %v1679_v18, 4  ;;  %vm124_vm7 = vcmp.ge.s32.totalorder %v9311_v25, 4 }
 0x400   :  { %2260 = vrot.lane.b32.xlu1 %v9835_v1, %s8823_s16 }
 0x401   :  { %v10343_v9 = vpop.permute.xlu0 %2004  ;;  %2846 = vmatpush.msra.mxu0 %v10330_v27  ;;  %3042 = vmatpush.msra.mxu3 %v10330_v27  ;;  %v10347_v20 = vpop.permute.xlu2 %1939  ;;  %v10350_v24 = vsub.f32 %v2591_v40, %v10330_v27  ;;  %v10353_v0 = vsub.f32 %v2798_v43, %v10332_v14  ;;  %v1663_v40 = vsel %vm15842_vm15, %v1658_v23, 0.0  ;;  %vm15852_vm15 = vmmov %vm15850_vm1 }
 0x402   :  { %15838 = vst [vmem:[#allocation93_spill] sm:$0xff] %v10343_v9  ;;  %v10357_v49 = vpop.permute.xlu1 %2248  ;;  %v10378_v13 = vsel %vm15834_vm3, %v1663_v40, %v1768_v51  ;;  %v1962_v18 = vsel %vm1943_vm5, %v10347_v20, %v10146_v60  ;;  %v2905_v9 = vsub.f32 %v10335_v10, %v15844_v22  ;;  %v1963_v51 = vsel %vm1943_vm5, %v10038_v63, %v10018_v32  ;;  %vm15854_vm3 = vmmov %vm15850_vm1 }
 0x403   :  { %15839 = vst [vmem:[#allocation94_spill] sm:$0xff] %v10347_v20  ;;  %2848 = vmatpush.msra.mxu0 %v10332_v14  ;;  %2990 = vmatpush.msra.mxu2 %v10350_v24  ;;  %v15423_v55 = vand.u32 4294901760, %v10350_v24  ;;  %v15426_v43 = vand.u32 4294901760, %v10353_v0  ;;  %v2048_v22 = vsel %vm999_vm10, %v10061_v15, %v10243_v52  ;;  %v1984_v20 = vsel %vm108_vm9, %v1962_v18, 0.0 }
 0x404   :  { %15841 = vst [vmem:[#allocation95_spill] sm:$0xff] %v10357_v49  ;;  %3044 = vmatpush.msra.mxu3 %v10332_v14  ;;  %v1961_v63 = vsel %vm1943_vm5, %v10279_v16, %v10158_v62  ;;  %v2047_v15 = vsel %vm999_vm10, %v10078_v34, %v10259_v11  ;;  %v2530_v52 = vrot.slane %v1984_v20, 4  ;;  %v1959_v34 = vsel %vm1943_vm5, %v10090_v33, %v10308_v5 }
 0x405   :  { %2850 = vmatpush.msra.mxu0 %v10314_v30  ;;  %2993 = vmatpush.msra.mxu2 %v10353_v0  ;;  %v2893_v57 = vsub.f32 %v10350_v24, %v15423_v55  ;;  %v2899_v23 = vsub.f32 %v10353_v0, %v15426_v43  ;;  %15843 = vst [vmem:[#allocation96_spill] sm:$0xff] %v10378_v13 }
 0x406   :  { %3046 = vmatpush.msra.mxu3 %v10314_v30 }
 0x407   :  { %2178 = vrot.lane.b32.xlu2 %v10290_v53, %s8826_s19  ;;  %2332 = vrot.lane.b32.xlu0 %v9818_v37, %s8832_s25  ;;  %v2894_v55 = vand.u32 4294901760, %v2893_v57  ;;  %v2900_v43 = vand.u32 4294901760, %v2899_v23  ;;  %v1988_v23 = vsel %vm108_vm9, %v1963_v51, 0.0  ;;  %v2052_v51 = vsel %vm15602_vm6, %v2047_v15, 0.0 }
 0x408   :  { %2254 = vrot.lane.b32.xlu1 %v10378_v13, %s8823_s16  ;;  %2996 = vmatpush.msra.mxu2 %v10335_v10 }
 0x409   :  { %v10399_v40 = vpop.permute.xlu0 %2002  ;;  %2895 = vmatpush.msra.mxu1 %v2894_v55  ;;  %v10401_v57 = vpop.permute.xlu2 %1905  ;;  %v2906_v55 = vand.u32 4294901760, %v2905_v9  ;;  %v1980_v9 = vsel %vm108_vm9, %v1961_v63, 0.0 }
 0x40a   :  { %15845 = vst [vmem:[#allocation97_spill] sm:$0xff] %v10399_v40  ;;  %v10409_v60 = vpop.permute.xlu1 %1848  ;;  %v1960_v18 = vsel %vm1943_vm5, %v10112_v58, %v10401_v57  ;;  %v2056_v40 = vsel %vm15602_vm6, %v2048_v22, 0.0  ;;  %v2522_v63 = vrot.slane %v1980_v9, 4 }
 0x40b   :  { %15846 = vst [vmem:[#allocation98_spill] sm:$0xff] %v10401_v57  ;;  %2901 = vmatpush.msra.mxu1 %v2900_v43  ;;  %v2538_v43 = vrot.slane %v1988_v23, 4  ;;  %v1976_v58 = vsel %vm108_vm9, %v1960_v18, 0.0  ;;  %v10441_v20 = vand.u32 4294901760, %v2056_v40  ;;  %v10451_v23 = vand.u32 4294901760, %v2052_v51 }
 0x40c   :  { %15847 = vst [vmem:[#allocation99_spill] sm:$0xff] %v10409_v60  ;;  %v1972_v18 = vsel %vm108_vm9, %v1959_v34, 0.0  ;;  %v2514_v33 = vrot.slane %v1976_v58, 4  ;;  %v1874_v34 = vsel %vm1854_vm2, %v9989_v56, %v10030_v36  ;;  %vm15855_vm9 = vmmov %vm15850_vm1 }
 0x40d   :  { %2907 = vmatpush.msra.mxu1 %v2906_v55  ;;  %v2539_v55 = vsel %vm15850_vm1, %v2530_v52, %v2538_v43  ;;  %v2531_v43 = vsel %vm15852_vm15, %v2522_v63, %v2530_v52  ;;  %v10472_v5 = vsub.f32 %v2056_v40, %v10441_v20  ;;  %v10482_v52 = vsub.f32 %v2052_v51, %v10451_v23 }
 0x40e   :  { %v10474_v11 = vand.u32 4294901760, %v2539_v55  ;;  %v10484_v62 = vand.u32 4294901760, %v2531_v43  ;;  %v2523_v56 = vsel %vm15854_vm3, %v2514_v33, %v2522_v63  ;;  %v1899_v40 = vsel %vm124_vm7, %v1874_v34, 0.0 }
 0x40f   :  { %2176 = vrot.lane.b32.xlu2 %v10263_v2, %s8826_s19  ;;  %2427 = vrot.lane.b32.xlu0 %v10290_v53, %s8830_s23  ;;  %vm104_vm1 = vcmp.lt.s32.totalorder %v9311_v25, 13  ;;  %vm2352_vm15 = vcmp.lt.s32.totalorder %v9101_v7, 125  ;;  %v10510_v51 = vand.u32 4294901760, %v2523_v56 }
 0x410   :  { %2252 = vrot.lane.b32.xlu1 %v9818_v37, %s8823_s16  ;;  %15853 = vst [vmem:[#allocation103_spill] sm:$0xff] %v10484_v62  ;;  %v10524_v50 = vsub.f32 %v2531_v43, %v10484_v62 }
 0x411   :  { %v10446_v15 = vpop.permute.xlu0 %2026  ;;  %v10448_v22 = vpop.permute.xlu2 %2246 }
 0x412   :  { %15848 = vst [vmem:[#allocation100_spill] sm:$0xff] %v10446_v15  ;;  %v10455_v16 = vpop.permute.xlu1 %1816  ;;  %v2049_v57 = vsel %vm999_vm10, %v10446_v15, %v10132_v47  ;;  %v2510_v15 = vrot.slane %v1972_v18, 4  ;;  %v10498_v18 = vsub.f32 %v2539_v55, %v10474_v11 }
 0x413   :  { %15849 = vst [vmem:[#allocation101_spill] sm:$0xff] %v10448_v22  ;;  %v2060_v9 = vsel %vm15602_vm6, %v2049_v57, 0.0 }
 0x414   :  { %15851 = vst [vmem:[#allocation102_spill] sm:$0xff] %v10455_v16  ;;  %v10469_v58 = vand.u32 4294901760, %v2060_v9  ;;  %v2794_v55 = vsel %vm15854_vm3, %v1899_v40, %v2510_v15 }
 0x416   :  { %2852 = vmatpush.msra.mxu0 %v10469_v58  ;;  %3048 = vmatpush.msra.mxu3 %v10469_v58  ;;  %v10479_v57 = vsub.f32 %v2060_v9, %v10469_v58  ;;  %v2515_v9 = vsel %vm15855_vm9, %v2510_v15, %v2514_v33  ;;  %v1872_v15 = vsel %vm1854_vm2, %v10409_v60, %v10186_v17  ;;  %vm15864_vm9 = vcmp.lt.s32.totalorder %v9311_v25, 14 }
 0x417   :  { %2429 = vrot.lane.b32.xlu2 %v9835_v1, %s8830_s23  ;;  %2174 = vrot.lane.b32.xlu0 %v10378_v13, %s8826_s19  ;;  %v1871_v17 = vsel %vm1854_vm2, %v10102_v54, %v10455_v16 }
 0x418   :  { %2172 = vrot.lane.b32.xlu1 %v9818_v37, %s8826_s19  ;;  %2854 = vmatpush.msra.mxu0 %v10441_v20  ;;  %v15859_v63 = vand.u32 4294901760, %v10479_v57 }
 0x419   :  { %2999 = vmatpush.msra.mxu2 %v10479_v57  ;;  %3050 = vmatpush.msra.mxu3 %v10441_v20  ;;  %v10506_v34 = vpop.permute.xlu0 %2312  ;;  %v10508_v36 = vpop.permute.xlu2 %2234 }
 0x41a   :  { %15856 = vst [vmem:[#allocation104_spill] sm:$0xff] %v10506_v34  ;;  %v10513_v47 = vpop.permute.xlu1 %1832  ;;  %v2363_v33 = vsel %vm2352_vm15, %v10506_v34, %v10092_v28  ;;  %2856 = vmatpush.msra.mxu0 %v10451_v23  ;;  %v2911_v32 = vsub.f32 %v10479_v57, %v15859_v63  ;;  %v10537_v34 = vand.u32 4294901760, %v2515_v9  ;;  %v15861_v63 = vand.u32 4294901760, %v10472_v5 }
 0x41b   :  { %15857 = vst [vmem:[#allocation105_spill] sm:$0xff] %v10508_v36  ;;  %v10533_v40 = vsel %vm104_vm1, %v2363_v33, 0.0  ;;  %3002 = vmatpush.msra.mxu2 %v10472_v5  ;;  %3052 = vmatpush.msra.mxu3 %v10451_v23  ;;  %v2286_v33 = vsel %vm15603_vm14, %v9945_v4, %v10059_v48  ;;  %v15862_v4 = vand.u32 4294901760, %v10482_v52  ;;  %v15870_v28 = vand.u32 4294901760, %v10524_v50 }
 0x41c   :  { %15858 = vst [vmem:[#allocation106_spill] sm:$0xff] %v10513_v47  ;;  %2858 = vmatpush.msra.mxu0 %v10474_v11  ;;  %v2912_v43 = vand.u32 4294901760, %v2911_v32  ;;  %v2917_v26 = vsub.f32 %v10472_v5, %v15861_v63  ;;  %v10543_v47 = vand.u32 4294901760, %v2794_v55  ;;  %v10557_v32 = vsub.f32 %v2523_v56, %v10510_v51 }
 0x41d   :  { %15860 = vst [vmem:[#allocation107_spill] sm:$0xff] %v10533_v40  ;;  %3005 = vmatpush.msra.mxu2 %v10482_v52  ;;  %3054 = vmatpush.msra.mxu3 %v10474_v11  ;;  %v1891_v63 = vsel %vm124_vm7, %v1872_v15, 0.0  ;;  %v2923_v48 = vsub.f32 %v10482_v52, %v15862_v4  ;;  %v10570_v56 = vsub.f32 %v2515_v9, %v10537_v34  ;;  %v1887_v15 = vsel %vm124_vm7, %v1871_v17, 0.0 }
 0x41e   :  { %2860 = vmatpush.msra.mxu0 %v10484_v62  ;;  %2913 = vmatpush.msra.mxu1 %v2912_v43  ;;  %v2918_v43 = vand.u32 4294901760, %v2917_v26  ;;  %v15863_v4 = vand.u32 4294901760, %v10498_v18  ;;  %v10582_v60 = vsub.f32 %v2794_v55, %v10543_v47  ;;  %v2308_v9 = vsel %vm15864_vm9, %v2286_v33, 0.0 }
 0x41f   :  { %3008 = vmatpush.msra.mxu2 %v10498_v18  ;;  %3056 = vmatpush.msra.mxu3 %v10484_v62  ;;  %v2285_v17 = vsel %vm15603_vm14, %v10170_v46, %v10357_v49  ;;  %v15868_v33 = vrot.slane %v10533_v40, 4  ;;  %v2924_v49 = vand.u32 4294901760, %v2923_v48  ;;  %v2935_v62 = vsub.f32 %v10524_v50, %v15870_v28 }
 0x420   :  { %2090 = vrot.lane.b32.xlu2 %v9820_v29, %s8825_s18  ;;  %2425 = vrot.lane.b32.xlu0 %v10263_v2, %s8830_s23  ;;  %v2929_v54 = vsub.f32 %v10498_v18, %v15863_v4  ;;  %v10590_v29 = vand.u32 4294901760, %v1891_v63  ;;  %v10613_v55 = vand.u32 4294901760, %v1887_v15  ;;  %v2284_v48 = vsel %vm15603_vm14, %v10104_v42, %v10448_v22 }
 0x421   :  { %2088 = vrot.lane.b32.xlu1 %v10068_v38, %s8825_s18  ;;  %2862 = vmatpush.msra.mxu0 %v10510_v51  ;;  %v10595_v26 = vpop.permute.xlu0 %1850  ;;  %v10597_v4 = vpop.permute.xlu2 %2168  ;;  %v2806_v16 = vsel %vm15854_vm3, %v2308_v9, %v15868_v33  ;;  %v15873_v9 = vand.u32 4294901760, %v10557_v32  ;;  %vm15874_vm3 = vmmov %vm15864_vm9 }
 0x422   :  { %15865 = vst [vmem:[#allocation108_spill] sm:$0xff] %v10590_v29  ;;  %2919 = vmatpush.msra.mxu1 %v2918_v43  ;;  %3011 = vmatpush.msra.mxu2 %v10524_v50  ;;  %v10604_v46 = vpop.permute.xlu1 %1826  ;;  %v1873_v38 = vsel %vm1854_vm2, %v10595_v26, %v10148_v3  ;;  %v2930_v28 = vand.u32 4294901760, %v2929_v54  ;;  %v2205_v54 = vsel %vm1284_vm13, %v10239_v45, %v10597_v4  ;;  %v2300_v22 = vsel %vm15874_vm3, %v2284_v48, 0.0 }
 0x423   :  { %15866 = vst [vmem:[#allocation109_spill] sm:$0xff] %v10595_v26  ;;  %3058 = vmatpush.msra.mxu3 %v10510_v51  ;;  %v1895_v43 = vsel %vm124_vm7, %v1873_v38, 0.0  ;;  %2864 = vmatpush.msra.mxu0 %v10537_v34  ;;  %v2304_v38 = vsel %vm15864_vm9, %v2285_v17, 0.0  ;;  %v2941_v42 = vsub.f32 %v10557_v32, %v15873_v9  ;;  %v2936_v17 = vand.u32 4294901760, %v2935_v62 }
 0x424   :  { %15867 = vst [vmem:[#allocation110_spill] sm:$0xff] %v10597_v4  ;;  %v10624_v33 = vand.u32 4294901760, %v1895_v43  ;;  %2925 = vmatpush.msra.mxu1 %v2924_v49  ;;  %3014 = vmatpush.msra.mxu2 %v10557_v32  ;;  %v10638_v49 = vsub.f32 %v1891_v63, %v10590_v29  ;;  %v2283_v63 = vsel %vm15603_vm14, %v10508_v36, %v10217_v6  ;;  %v15875_v9 = vand.u32 4294901760, %v10570_v56 }
 0x425   :  { %15869 = vst [vmem:[#allocation111_spill] sm:$0xff] %v10604_v46  ;;  %v10630_v46 = vand.u32 4294901760, %v2806_v16  ;;  %3060 = vmatpush.msra.mxu3 %v10537_v34  ;;  %2866 = vmatpush.msra.mxu0 %v10543_v47  ;;  %v10660_v62 = vsub.f32 %v1887_v15, %v10613_v55  ;;  %v10666_v48 = vand.u32 4294901760, %v2304_v38  ;;  %v15876_v36 = vand.u32 4294901760, %v10582_v60 }
 0x426   :  { %15871 = vst [vmem:[#allocation112_spill] sm:$0xff] %v10613_v55  ;;  %2931 = vmatpush.msra.mxu1 %v2930_v28  ;;  %3017 = vmatpush.msra.mxu2 %v10570_v56  ;;  %v10646_v26 = vsub.f32 %v1895_v43, %v10624_v33  ;;  %v2947_v28 = vsub.f32 %v10570_v56, %v15875_v9  ;;  %vm15878_vm9 = vcmp.lt.s32.totalorder %v9311_v25, 15  ;;  %v10688_v6 = vand.u32 4294901760, %v2300_v22 }
 0x427   :  { %15872 = vst [vmem:[#allocation113_spill] sm:$0xff] %v10624_v33  ;;  %3062 = vmatpush.msra.mxu3 %v10543_v47  ;;  %2868 = vmatpush.msra.mxu0 %v10624_v33  ;;  %v2206_v43 = vsel %vm1284_vm13, %v10042_v41, %v10076_v61  ;;  %v2953_v45 = vsub.f32 %v10582_v60, %v15876_v36  ;;  %v10678_v15 = vsel %vm15878_vm9, %v2205_v54, 0.0 }
 0x428   :  { %2937 = vmatpush.msra.mxu1 %v2936_v17  ;;  %3020 = vmatpush.msra.mxu2 %v10582_v60  ;;  %v10674_v9 = vsub.f32 %v2806_v16, %v10630_v46  ;;  %v2942_v17 = vand.u32 4294901760, %v2941_v42  ;;  %v2296_v16 = vsel %vm15874_vm3, %v2283_v63, 0.0  ;;  %v15882_v42 = vand.u32 4294901760, %v10646_v26 }
 0x429   :  { %3064 = vmatpush.msra.mxu3 %v10624_v33  ;;  %2338 = vrot.lane.b32.xlu2 %v10290_v53, %s8832_s25  ;;  %v10683_v41 = vpop.permute.xlu0 %1913  ;;  %v10685_v4 = vpop.permute.xlu2 %1915  ;;  %v2228_v36 = vsel %vm15878_vm9, %v2206_v43, 0.0  ;;  %v2948_v3 = vand.u32 4294901760, %v2947_v28  ;;  %v2954_v43 = vand.u32 4294901760, %v2953_v45  ;;  %v15883_v28 = vand.u32 4294901760, %v10638_v49 }
 0x42a   :  { %15877 = vst [vmem:[#allocation114_spill] sm:$0xff] %v10674_v9  ;;  %2340 = vrot.lane.b32.xlu0 %v9835_v1, %s8832_s25  ;;  %2423 = vrot.lane.b32.xlu1 %v10378_v13, %s8830_s23  ;;  %v10696_v54 = vpop.permute.xlu1 %2232  ;;  %v2959_v61 = vsub.f32 %v10646_v26, %v15882_v42  ;;  %v10715_v42 = vand.u32 4294901760, %v2296_v16  ;;  %v10723_v40 = vsub.f32 %v2300_v22, %v10688_v6  ;;  %v15885_v45 = vrot.slane %v10678_v15, 4 }
 0x42b   :  { %15879 = vst [vmem:[#allocation115_spill] sm:$0xff] %v10683_v41  ;;  %2870 = vmatpush.msra.mxu0 %v10590_v29  ;;  %2943 = vmatpush.msra.mxu1 %v2942_v17  ;;  %v2282_v63 = vsel %vm15603_vm14, %v10696_v54, %v10160_v59  ;;  %v10710_v41 = vsub.f32 %v2304_v38, %v10666_v48  ;;  %vm15886_vm9 = vcmask 1043456  }
 0x42c   :  { %15880 = vst [vmem:[#allocation116_spill] sm:$0xff] %v10685_v4  ;;  %3023 = vmatpush.msra.mxu2 %v10646_v26  ;;  %3066 = vmatpush.msra.mxu3 %v10590_v29  ;;  %v2960_v17 = vand.u32 4294901760, %v2959_v61  ;;  %v2965_v4 = vsub.f32 %v10638_v49, %v15883_v28  ;;  %v2292_v59 = vsel %vm15874_vm3, %v2282_v63, 0.0 }
 0x42d   :  { %15881 = vst [vmem:[#allocation117_spill] sm:$0xff] %v10696_v54  ;;  %2872 = vmatpush.msra.mxu0 %v10613_v55  ;;  %2949 = vmatpush.msra.mxu1 %v2948_v3  ;;  %v2690_v54 = vrot.slane %v2228_v36, 4  ;;  %v15884_v3 = vand.u32 4294901760, %v10660_v62  ;;  %v10738_v36 = vsub.f32 %v2296_v16, %v10715_v42  ;;  %v10740_v63 = vand.u32 4294901760, %v2292_v59 }
 0x42e   :  { %3026 = vmatpush.msra.mxu2 %v10638_v49  ;;  %3068 = vmatpush.msra.mxu3 %v10613_v55  ;;  %v2823_v55 = vld.sshfl [vmem:[#allocation1] sm:$0xff pattern:$0x75316420] }
 0x42f   :  { %2955 = vmatpush.msra.mxu1 %v2954_v43  ;;  %v2971_v61 = vsub.f32 %v10660_v62, %v15884_v3  ;;  %v2691_v28 = vsel %vm15886_vm9, %v15885_v45, %v2690_v54  ;;  %v2966_v43 = vand.u32 4294901760, %v2965_v4  ;;  %v15889_v54 = vand.u32 4294901760, %v10674_v9 }
 0x430   :  { %3029 = vmatpush.msra.mxu2 %v10660_v62  ;;  %v10762_v22 = vand.u32 4294901760, %v2691_v28  ;;  %v10769_v33 = vsub.f32 %v2292_v59, %v10740_v63  ;;  %v10784_v59 = vand.u32 4294901760, %v2823_v55 }
 0x431   :  { %2961 = vmatpush.msra.mxu1 %v2960_v17  ;;  %2336 = vrot.lane.b32.xlu2 %v10263_v2, %s8832_s25  ;;  %v10744_v38 = vpop.permute.xlu0 %1814  ;;  %v10746_v3 = vpop.permute.xlu2 %1824  ;;  %v3228_v45 = vsub.f32 %v10674_v9, %v15889_v54  ;;  %v15892_v9 = vand.u32 4294901760, %v10710_v41 }
 0x432   :  { %15887 = vst [vmem:[#allocation118_spill] sm:$0xff] %v10744_v38  ;;  %2334 = vrot.lane.b32.xlu0 %v10378_v13, %s8832_s25  ;;  %2421 = vrot.lane.b32.xlu1 %v9818_v37, %s8830_s23  ;;  %v10755_v16 = vpop.permute.xlu1 %2154  ;;  %v1870_v4 = vsel %vm1854_vm2, %v10080_v21, %v10744_v38 }
 0x433   :  { %15888 = vst [vmem:[#allocation119_spill] sm:$0xff] %v10746_v3  ;;  %2967 = vmatpush.msra.mxu1 %v2966_v43  ;;  %v1883_v54 = vsel %vm124_vm7, %v1870_v4, 0.0  ;;  %v2972_v3 = vand.u32 4294901760, %v2971_v61  ;;  %v3229_v37 = vand.u32 4294901760, %v3228_v45  ;;  %v3234_v21 = vsub.f32 %v10710_v41, %v15892_v9 }
 0x434   :  { %15890 = vst [vmem:[#allocation120_spill] sm:$0xff] %v10755_v16  ;;  %v10766_v29 = vand.u32 4294901760, %v1883_v54  ;;  %v2203_v43 = vsel %vm1284_vm13, %v10755_v16, %v10188_v39  ;;  %v15895_v9 = vand.u32 4294901760, %v10723_v40  ;;  %v10792_v4 = vsub.f32 %v2691_v28, %v10762_v22 }
 0x435   :  { %2973 = vmatpush.msra.mxu1 %v2972_v3  ;;  %15893 = vst [vmem:[#allocation122_spill] sm:$0xff] %v10784_v59  ;;  %v15894_v3 = vand.u32 4294901760, %v10226_v31  ;;  %vm15896_vm7 = vcmp.lt.s32.totalorder %v9311_v25, 15  ;;  %v15900_v28 = vand.u32 4294901760, %v10738_v36 }
 0x436   :  { %15891 = vst [vmem:[#allocation121_spill] sm:$0xff] %v10766_v29  ;;  %v10780_v61 = vsub.f32 %v1883_v54, %v10766_v29  ;;  %2874 = vmatpush.msra.mxu0 %v10766_v29  ;;  %3070 = vmatpush.msra.mxu3 %v10766_v29  ;;  %v3240_v45 = vsub.f32 %v10723_v40, %v15895_v9  ;;  %v10798_v17 = vsel %vm15896_vm7, %v2203_v43, 0.0  ;;  %vm15904_vm3 = vmmov %vm15896_vm7  ;;  %v15496_v38 = vand.u32 4294901760, %v10792_v4 }
 0x437   :  { %v3246_v16 = vsub.f32 %v10738_v36, %v15900_v28  ;;  %v10826_v28 = vsub.f32 %v2823_v55, %v10784_v59  ;;  %vm15908_vm7 = vmmov %vm15886_vm9 }
 0x438   :  { %3081 = vmatpush.msrb.mxu0 %v15894_v3  ;;  %3230 = vmatpush.msrb.mxu3 %v3229_v37  ;;  %v15898_v37 = vand.u32 4294901760, %v10350_v24  ;;  %v3235_v3 = vand.u32 4294901760, %v3234_v21  ;;  %v15902_v24 = vand.u32 4294901760, %v10780_v61  ;;  %v3241_v39 = vand.u32 4294901760, %v3240_v45 }
 0x439   :  { %3032 = vmatpush.msra.mxu2 %v10780_v61  ;;  %2096 = vrot.lane.b32.xlu2 %v10263_v2, %s8825_s18  ;;  %v10802_v31 = vpop.permute.xlu0 %2166  ;;  %v10806_v9 = vpop.permute.xlu2 %2086  ;;  %15903 = vst [vmem:[#allocation126_spill] sm:$0xff] %v10826_v28  ;;  %v3247_v55 = vand.u32 4294901760, %v3246_v16 }
 0x43a   :  { %15897 = vst [vmem:[#allocation123_spill] sm:$0xff] %v10802_v31  ;;  %3085 = vmatpush.msrb.mxu0 %v15898_v37  ;;  %2016 = vrot.lane.b32.xlu0 %v10263_v2, %s8824_s17  ;;  %v10816_v43 = vpop.permute.xlu1 %2108  ;;  %v2204_v21 = vsel %vm1284_vm13, %v10172_v44, %v10802_v31  ;;  %v2977_v37 = vsub.f32 %v10780_v61, %v15902_v24  ;;  %v15905_v44 = vand.u32 4294901760, %v10353_v0  ;;  %v15907_v24 = vrot.slane %v10678_v15, 4 }
 0x43b   :  { %15899 = vst [vmem:[#allocation124_spill] sm:$0xff] %v10806_v9  ;;  %2020 = vrot.lane.b32.xlu1 %v9835_v1, %s8824_s17  ;;  %v2220_v54 = vsel %vm15904_vm3, %v2204_v21, 0.0  ;;  %3185 = vmatpush.msrb.mxu2 %v10630_v46  ;;  %v2666_v9 = vrot.slane %v10798_v17, 4  ;;  %v15906_v21 = vand.u32 4294901760, %v10769_v33  ;;  %v15909_v0 = vand.u32 4294901760, %v10335_v10 }
 0x43c   :  { %15901 = vst [vmem:[#allocation125_spill] sm:$0xff] %v10816_v43  ;;  %3236 = vmatpush.msrb.mxu3 %v3235_v3  ;;  %v2674_v29 = vrot.slane %v2220_v54, 4  ;;  %3089 = vmatpush.msrb.mxu0 %v15905_v44  ;;  %v2978_v31 = vand.u32 4294901760, %v2977_v37  ;;  %v15910_v54 = vand.u32 4294901760, %v10479_v57 }
 0x43d   :  { %3035 = vmatmul.f32.vlgmr.msra.gmra.mxu2 %v10826_v28  ;;  %v3252_v3 = vsub.f32 %v10769_v33, %v15906_v21  ;;  %v15914_v21 = vand.u32 4294901760, %v10472_v5 }
 0x43e   :  { %3187 = vmatpush.msrb.mxu2 %v10666_v48  ;;  %3242 = vmatpush.msrb.mxu3 %v3241_v39  ;;  %v2675_v45 = vsel %vm15886_vm9, %v2666_v9, %v2674_v29  ;;  %v2683_v17 = vsel %vm15908_vm7, %v2674_v29, %v15907_v24  ;;  %v3258_v39 = vsub.f32 %v10792_v4, %v15496_v38  ;;  %vm15917_vm9 = vmmov %vm15908_vm7 }
 0x43f   :  { %3093 = vmatpush.msrb.mxu0 %v15909_v0  ;;  %2979 = vmatpush.msra.mxu1 %v2978_v31  ;;  %v10850_v44 = vand.u32 4294901760, %v2683_v17  ;;  %v10852_v16 = vand.u32 4294901760, %v2675_v45  ;;  %v3253_v29 = vand.u32 4294901760, %v3252_v3  ;;  %v15915_v0 = vld [vmem:[#allocation77_spill] sm:$0xff] }
 0x440   :  { %3189 = vmatpush.msrb.mxu2 %v10688_v6  ;;  %3248 = vmatpush.msrb.mxu3 %v3247_v55  ;;  %v3259_v3 = vand.u32 4294901760, %v3258_v39 }
 0x441   :  { %3097 = vmatpush.msrb.mxu0 %v15910_v54  ;;  %3148 = vmatpush.msrb.mxu1 %v10215_v35  ;;  %v10860_v10 = vpop.permute.xlu0 %2152  ;;  %v10862_v15 = vpop.permute.xlu2 %2314  ;;  %v10865_v31 = vsub.f32 %v2683_v17, %v10850_v44  ;;  %v10868_v37 = vsub.f32 %v2675_v45, %v10852_v16  ;;  %v2130_v54 = vsel %vm1105_vm12, %v10816_v43, %v15915_v0 }
 0x442   :  { %2018 = vrot.lane.b32.xlu2 %v10290_v53, %s8824_s17  ;;  %3191 = vmatpush.msrb.mxu2 %v10715_v42  ;;  %15911 = vst [vmem:[#allocation127_spill] sm:$0xff] %v10860_v10  ;;  %v10874_v35 = vpop.permute.xlu1 %2415  ;;  %v2202_v57 = vsel %vm1284_vm13, %v10860_v10, %v10116_v19  ;;  %v15928_v10 = vld [vmem:[#allocation8_spill] sm:$0xff] }
 0x443   :  { %15912 = vst [vmem:[#allocation128_spill] sm:$0xff] %v10862_v15  ;;  %1931 = vrot.lane.b32.xlu0 %v9835_v1, %s8831_s24  ;;  %1842 = vrot.lane.b32.xlu1 %v9835_v1, %s8833_s1  ;;  %v2212_v55 = vsel %vm15904_vm3, %v2202_v57, 0.0  ;;  %v15495_v45 = vand.u32 4294901760, %v10865_v31  ;;  %v15497_v17 = vand.u32 4294901760, %v10868_v37  ;;  %vm15931_vm3 = vmmov %vm15908_vm7 }
 0x444   :  { %15913 = vst [vmem:[#allocation129_spill] sm:$0xff] %v10874_v35  ;;  %3254 = vmatpush.msrb.mxu3 %v3253_v29  ;;  %3101 = vmatpush.msrb.mxu0 %v15914_v21  ;;  %v2662_v24 = vrot.slane %v2212_v55, 4  ;;  %v15916_v29 = vand.u32 4294901760, %v10482_v52  ;;  %v15919_v55 = vld [vmem:[#allocation31_spill] sm:$0xff]  ;;  %v15920_v21 = vld [vmem:[#allocation32_spill] sm:$0xff]  ;;  %v15921_v52 = vand.u32 4294901760, %v10498_v18 }
 0x445   :  { %3150 = vmatpush.msrb.mxu1 %v10330_v27  ;;  %3193 = vmatpush.msrb.mxu2 %v10740_v63  ;;  %v3264_v5 = vsub.f32 %v10865_v31, %v15495_v45  ;;  %v15918_v27 = vld [vmem:[#allocation21_spill] sm:$0xff]  ;;  %v3270_v18 = vsub.f32 %v10868_v37, %v15497_v17  ;;  %v15926_v17 = vld [vmem:[#allocation23_spill] sm:$0xff] }
 0x446   :  { %3260 = vmatpush.msrb.mxu3 %v3259_v3  ;;  %3105 = vmatpush.msrb.mxu0 %v15916_v29  ;;  %v2667_v39 = vsel %vm15917_vm9, %v2662_v24, %v2666_v9  ;;  %v2802_v57 = vsel %vm15908_vm7, %v15918_v27, %v2662_v24  ;;  %v2131_v3 = vsel %vm1105_vm12, %v15920_v21, %v15919_v55  ;;  %v15922_v9 = vld [vmem:[#allocation24_spill] sm:$0xff]  ;;  %v15923_v27 = vand.u32 4294901760, %v10524_v50  ;;  %vm15937_vm9 = vmmov %vm15931_vm3 }
 0x447   :  { %3152 = vmatpush.msrb.mxu1 %v10332_v14  ;;  %3195 = vmatpush.msrb.mxu2 %v10762_v22  ;;  %v10908_v29 = vand.u32 4294901760, %v2667_v39  ;;  %v10910_v45 = vand.u32 4294901760, %v2802_v57  ;;  %v10913_v38 = vand.u32 4294901760, %v15922_v9  ;;  %v2144_v14 = vsel %vm15567_vm8, %v2130_v54, 0.0 }
 0x448   :  { %3109 = vmatpush.msrb.mxu0 %v15921_v52  ;;  %2981 = vmatmul.f32.vlgmr.msra.gmra.mxu1 %v10784_v59  ;;  %v3265_v24 = vand.u32 4294901760, %v3264_v5  ;;  %v2148_v5 = vsel %vm15567_vm8, %v2131_v3, 0.0  ;;  %v15927_v3 = vand.u32 4294901760, %v10557_v32  ;;  %v3271_v43 = vand.u32 4294901760, %v3270_v18 }
 0x449   :  { %3154 = vmatpush.msrb.mxu1 %v10314_v30  ;;  %3197 = vmatpush.msrb.mxu2 %v10850_v44  ;;  %v10927_v52 = vpop.permute.xlu0 %2417  ;;  %v10929_v21 = vpop.permute.xlu2 %2006  ;;  %v10932_v54 = vsub.f32 %v2667_v39, %v10908_v29  ;;  %v10935_v30 = vsub.f32 %v2802_v57, %v10910_v45  ;;  %v10950_v57 = vsub.f32 %v15922_v9, %v10913_v38  ;;  %v10955_v55 = vand.u32 4294901760, %v15928_v10 }
 0x44a   :  { %1929 = vrot.lane.b32.xlu2 %v10290_v53, %s8831_s24  ;;  %3113 = vmatpush.msrb.mxu0 %v15923_v27  ;;  %15924 = vst [vmem:[#allocation21_spill] sm:$0xff] %v10927_v52  ;;  %v10943_v50 = vpop.permute.xlu1 %2328  ;;  %v2606_v27 = vrot.slane %v2144_v14, 4  ;;  %v2614_v0 = vrot.slane %v2148_v5, 4  ;;  %v15929_v14 = vand.u32 4294901760, %v10570_v56  ;;  %v10966_v32 = vand.u32 4294901760, %v9958_v12 }
 0x44b   :  { %15925 = vst [vmem:[#allocation24_spill] sm:$0xff] %v10929_v21  ;;  %2270 = vrot.lane.b32.xlu0 %v15926_v17, %s8823_s16  ;;  %2094 = vrot.lane.b32.xlu1 %v10378_v13, %s8825_s18  ;;  %v15500_v39 = vand.u32 4294901760, %v10932_v54  ;;  %v15501_v9 = vand.u32 4294901760, %v10935_v30  ;;  %v15505_v18 = vand.u32 4294901760, %v10950_v57  ;;  %v15932_v5 = vand.u32 4294901760, %v10582_v60  ;;  %v15939_v21 = vld [vmem:[#allocation103_spill] sm:$0xff] }
 0x44c   :  { %3156 = vmatpush.msrb.mxu1 %v10469_v58  ;;  %3199 = vmatpush.msrb.mxu2 %v10852_v16  ;;  %v10978_v56 = vand.u32 4294901760, %v9782_v8  ;;  %vm2441_vm7 = vcmp.lt.s32.totalorder %v9101_v7, 124  ;;  %vm16073_vm8 = vcmask 1043456  }
 0x44d   :  { %3117 = vmatpush.msrb.mxu0 %v15927_v3  ;;  %3266 = vmatpush.msrb.mxu3 %v3265_v24  ;;  %v3276_v58 = vsub.f32 %v10932_v54, %v15500_v39  ;;  %v10969_v24 = vand.u32 4294901760, %v10826_v28  ;;  %v3282_v60 = vsub.f32 %v10935_v30, %v15501_v9  ;;  %v15938_v9 = vand.u32 4294901760, %v10646_v26 }
 0x44e   :  { %3158 = vmatpush.msrb.mxu1 %v10441_v20  ;;  %3201 = vmatpush.msrb.mxu2 %v10908_v29  ;;  %v2615_v20 = vsel %vm15931_vm3, %v2606_v27, %v2614_v0  ;;  %v3288_v19 = vsub.f32 %v10950_v57, %v15505_v18  ;;  %v15940_v26 = vand.u32 4294901760, %v10638_v49  ;;  %v15941_v18 = vand.u32 4294901760, %v10660_v62 }
 0x44f   :  { %3121 = vmatpush.msrb.mxu0 %v15929_v14  ;;  %3272 = vmatpush.msrb.mxu3 %v3271_v43  ;;  %15930 = vst [vmem:[#allocation8_spill] sm:$0xff] %v10969_v24  ;;  %v10982_v43 = vsub.f32 %v15928_v10, %v10955_v55  ;;  %v3277_v0 = vand.u32 4294901760, %v3276_v58  ;;  %v11004_v14 = vsub.f32 %v9958_v12, %v10966_v32  ;;  %v15935_v58 = vld [vmem:[#allocation75_spill] sm:$0xff]  ;;  %vm120_vm3 = vcmp.lt.s32.totalorder %v9311_v25, 12 }
 0x450   :  { %3160 = vmatpush.msrb.mxu1 %v10451_v23  ;;  %3203 = vmatpush.msrb.mxu2 %v10910_v45 }
 0x451   :  { %3125 = vmatpush.msrb.mxu0 %v15932_v5  ;;  %3074 = vmatmul.f32.vlgmr.msra.gmra.mxu3 %v10969_v24  ;;  %v10987_v23 = vpop.permute.xlu0 %2403  ;;  %v10989_v3 = vpop.permute.xlu2 %2258  ;;  %v15936_v5 = vrot.slane %v15935_v58, 4  ;;  %v15507_v12 = vand.u32 4294901760, %v10982_v43 }
 0x452   :  { %3162 = vmatpush.msrb.mxu1 %v10474_v11  ;;  %3205 = vmatpush.msrb.mxu2 %v10913_v38  ;;  %15933 = vst [vmem:[#allocation130_spill] sm:$0xff] %v10987_v23  ;;  %v10998_v10 = vpop.permute.xlu1 %2326  ;;  %v11000_v11 = vand.u32 4294901760, %v2615_v20 }
 0x453   :  { %15934 = vst [vmem:[#allocation131_spill] sm:$0xff] %v10989_v3  ;;  %1927 = vrot.lane.b32.xlu2 %v10263_v2, %s8831_s24  ;;  %1840 = vrot.lane.b32.xlu0 %v10290_v53, %s8833_s1  ;;  %v2607_v39 = vsel %vm15937_vm9, %v15936_v5, %v2606_v27  ;;  %v2878_v3 = vsub.f32 %v10826_v28, %v10969_v24  ;;  %v15952_v24 = vld [vmem:[#allocation108_spill] sm:$0xff] }
 0x454   :  { %2014 = vrot.lane.b32.xlu1 %v10378_v13, %s8824_s17  ;;  %3129 = vmatpush.msrb.mxu0 %v15938_v9  ;;  %v11023_v27 = vsub.f32 %v9782_v8, %v10978_v56  ;;  %v3283_v9 = vand.u32 4294901760, %v3282_v60  ;;  %v11029_v58 = vand.u32 4294901760, %v2607_v39  ;;  %v11033_v5 = vsub.f32 %v2615_v20, %v11000_v11  ;;  %v15947_v60 = vld [vmem:[#allocation9_spill] sm:$0xff] }
 0x455   :  { %3164 = vmatpush.msrb.mxu1 %v15939_v21  ;;  %3207 = vmatpush.msrb.mxu2 %v10955_v55  ;;  %v15506_v21 = vand.u32 4294901760, %v11004_v14  ;;  %v3289_v8 = vand.u32 4294901760, %v3288_v19  ;;  %v11037_v49 = vand.u32 4294901760, %v2878_v3  ;;  %v15943_v20 = vand.u32 4294901760, %v10780_v61 }
 0x456   :  { %3133 = vmatpush.msrb.mxu0 %v15940_v26  ;;  %3278 = vmatpush.msrb.mxu3 %v3277_v0  ;;  %v15508_v0 = vand.u32 4294901760, %v11023_v27  ;;  %v15513_v3 = vand.u32 4294901760, %v11033_v5  ;;  %v11060_v61 = vsub.f32 %v2607_v39, %v11029_v58  ;;  %v15948_v26 = vld [vmem:[#allocation114_spill] sm:$0xff]  ;;  %v15950_v39 = vld [vmem:[#allocation113_spill] sm:$0xff] }
 0x457   :  { %3166 = vmatpush.msrb.mxu1 %v10510_v51  ;;  %3209 = vmatpush.msrb.mxu2 %v10966_v32  ;;  %15942 = vst [vmem:[#allocation75_spill] sm:$0xff] %v11037_v49  ;;  %v3294_v51 = vsub.f32 %v10982_v43, %v15507_v12 }
 0x458   :  { %3137 = vmatpush.msrb.mxu0 %v15941_v18  ;;  %3284 = vmatpush.msrb.mxu3 %v3283_v9  ;;  %v3312_v12 = vsub.f32 %v11033_v5, %v15513_v3 }
 0x459   :  { %3168 = vmatpush.msrb.mxu1 %v10537_v34  ;;  %3211 = vmatpush.msrb.mxu2 %v10978_v56  ;;  %v11047_v62 = vpop.permute.xlu0 %2401  ;;  %v11049_v18 = vpop.permute.xlu2 %1830  ;;  %v3300_v34 = vsub.f32 %v11004_v14, %v15506_v21  ;;  %v3295_v9 = vand.u32 4294901760, %v3294_v51  ;;  %v15957_v51 = vld [vmem:[#allocation112_spill] sm:$0xff] }
 0x45a   :  { %3141 = vmatpush.msrb.mxu0 %v15943_v20  ;;  %3290 = vmatpush.msrb.mxu3 %v3289_v8  ;;  %15944 = vst [vmem:[#allocation103_spill] sm:$0xff] %v11047_v62  ;;  %v11053_v19 = vpop.permute.xlu1 %2008  ;;  %v3306_v8 = vsub.f32 %v11023_v27, %v15508_v0  ;;  %v2824_v20 = vld.sshfl [vmem:[#allocation1 + $0x8] sm:$0xff pattern:$0x75316420]  ;;  %v15951_v0 = vand.u32 4294901760, %v15948_v26 }
 0x45b   :  { %15945 = vst [vmem:[#allocation132_spill] sm:$0xff] %v11049_v18  ;;  %3170 = vmatpush.msrb.mxu1 %v10543_v47  ;;  %3213 = vmatpush.msrb.mxu2 %v11000_v11  ;;  %v15949_v47 = vld [vmem:[#allocation15_spill] sm:$0xff]  ;;  %v3301_v21 = vand.u32 4294901760, %v3300_v34  ;;  %v11083_v28 = vand.u32 4294901760, %v2824_v20  ;;  %v15954_v34 = vand.u32 4294901760, %v10710_v41 }
 0x45c   :  { %15946 = vst [vmem:[#allocation133_spill] sm:$0xff] %v11053_v19  ;;  %2880 = vmatmul.f32.vlgmr.msra.gmra.mxu0 %v11037_v49  ;;  %2342 = vrot.lane.b32.xlu2 %v15947_v60, %s8832_s25 }
 0x45d   :  { %3328 = vmatpush.msra.mxu0 %v15948_v26  ;;  %2092 = vrot.lane.b32.xlu0 %v15949_v47, %s8825_s18  ;;  %15953 = vst [vmem:[#allocation114_spill] sm:$0xff] %v11083_v28  ;;  %v3313_v26 = vand.u32 4294901760, %v3312_v12  ;;  %v15963_v12 = vand.u32 4294901760, %v10738_v36 }
 0x45e   :  { %2012 = vrot.lane.b32.xlu1 %v15949_v47, %s8824_s17  ;;  %3172 = vmatpush.msrb.mxu1 %v15950_v39  ;;  %v3307_v39 = vand.u32 4294901760, %v3306_v8  ;;  %v15960_v8 = vand.u32 4294901760, %v10723_v40 }
 0x45f   :  { %3215 = vmatpush.msrb.mxu2 %v11029_v58  ;;  %3296 = vmatpush.msrb.mxu3 %v3295_v9 }
 0x460   :  { %3331 = vmatpush.msra.mxu0 %v10710_v41  ;;  %3174 = vmatpush.msrb.mxu1 %v15952_v24  ;;  %v15961_v41 = vld [vmem:[#allocation121_spill] sm:$0xff] }
 0x461   :  { %3422 = vmatpush.msra.mxu2 %v15951_v0  ;;  %3302 = vmatpush.msrb.mxu3 %v3301_v21  ;;  %v11088_v9 = vpop.permute.xlu0 %2256  ;;  %v11090_v3 = vpop.permute.xlu2 %2178  ;;  %v15958_v0 = vand.u32 4294901760, %v11060_v61 }
 0x462   :  { %3334 = vmatpush.msra.mxu0 %v10723_v40  ;;  %15955 = vst [vmem:[#allocation113_spill] sm:$0xff] %v11088_v9  ;;  %3176 = vmatpush.msrb.mxu1 %v15957_v51  ;;  %v11096_v21 = vpop.permute.xlu1 %1919  ;;  %v15964_v40 = vld [vmem:[#allocation10_spill] sm:$0xff] }
 0x463   :  { %3426 = vmatpush.msra.mxu2 %v15954_v34  ;;  %15956 = vst [vmem:[#allocation108_spill] sm:$0xff] %v11090_v3  ;;  %3308 = vmatpush.msrb.mxu3 %v3307_v39  ;;  %v3318_v24 = vsub.f32 %v11060_v61, %v15958_v0  ;;  %v11103_v34 = vsub.f32 %v2824_v20, %v11083_v28 }
 0x464   :  { %15959 = vst [vmem:[#allocation112_spill] sm:$0xff] %v11096_v21  ;;  %3337 = vmatpush.msra.mxu0 %v10738_v36  ;;  %3178 = vmatpush.msrb.mxu1 %v15961_v41  ;;  %v15966_v36 = vand.u32 4294901760, %v10769_v33 }
 0x465   :  { %3430 = vmatpush.msra.mxu2 %v15960_v8  ;;  %3314 = vmatpush.msrb.mxu3 %v3313_v26  ;;  %15962 = vst [vmem:[#allocation121_spill] sm:$0xff] %v11103_v34  ;;  %v3319_v51 = vand.u32 4294901760, %v3318_v24  ;;  %v11117_v20 = vand.u32 4294901760, %v11103_v34  ;;  %v15970_v24 = vand.u32 4294901760, %v10792_v4  ;;  %v15974_v8 = vld [vmem:[#allocation34_spill] sm:$0xff] }
 0x466   :  { %3340 = vmatpush.msra.mxu0 %v10769_v33  ;;  %3381 = vmatpush.msra.mxu1 %v10630_v46 }
 0x467   :  { %3434 = vmatpush.msra.mxu2 %v15963_v12  ;;  %1838 = vrot.lane.b32.xlu2 %v10263_v2, %s8833_s1  ;;  %15965 = vst [vmem:[#allocation134_spill] sm:$0xff] %v11117_v20  ;;  %v3219_v33 = vsub.f32 %v11103_v34, %v11117_v20 }
 0x468   :  { %2264 = vrot.lane.b32.xlu0 %v15964_v40, %s8823_s16  ;;  %2262 = vrot.lane.b32.xlu1 %v15947_v60, %s8823_s16 }
 0x469   :  { %3320 = vmatpush.msrb.mxu3 %v3319_v51  ;;  %3343 = vmatpush.msra.mxu0 %v10792_v4  ;;  %v11122_v39 = vpop.permute.xlu0 %2180  ;;  %v11124_v26 = vpop.permute.xlu2 %2176  ;;  %v15973_v4 = vld [vmem:[#allocation45_spill] sm:$0xff] }
 0x46a   :  { %3383 = vmatpush.msra.mxu1 %v10666_v48  ;;  %3438 = vmatpush.msra.mxu2 %v15966_v36  ;;  %15967 = vst [vmem:[#allocation135_spill] sm:$0xff] %v11122_v39  ;;  %v11128_v0 = vpop.permute.xlu1 %1917  ;;  %v2456_v41 = vsel %vm2441_vm7, %v15974_v8, %v15973_v4  ;;  %v15980_v36 = vand.u32 4294901760, %v10932_v54 }
 0x46b   :  { %15968 = vst [vmem:[#allocation136_spill] sm:$0xff] %v11124_v26  ;;  %3489 = vmatpush.msra.mxu3 %v10630_v46  ;;  %3346 = vmatpush.msra.mxu0 %v10865_v31  ;;  %v15971_v46 = vand.u32 4294901760, %v10865_v31  ;;  %v15975_v31 = vld [vmem:[#allocation30_spill] sm:$0xff]  ;;  %v2486_v51 = vsel %vm120_vm3, %v2456_v41, 0.0  ;;  %v15987_v41 = vand.u32 4294901760, %v10982_v43 }
 0x46c   :  { %15969 = vst [vmem:[#allocation137_spill] sm:$0xff] %v11128_v0  ;;  %3385 = vmatpush.msra.mxu1 %v10688_v6  ;;  %3442 = vmatpush.msra.mxu2 %v15970_v24  ;;  %v15981_v24 = vand.u32 4294901760, %v10935_v30 }
 0x46d   :  { %3491 = vmatpush.msra.mxu3 %v10666_v48  ;;  %3349 = vmatpush.msra.mxu0 %v10868_v37  ;;  %v15972_v48 = vand.u32 4294901760, %v10868_v37 }
 0x46e   :  { %3387 = vmatpush.msra.mxu1 %v10715_v42  ;;  %3446 = vmatpush.msra.mxu2 %v15971_v46 }
 0x46f   :  { %3493 = vmatpush.msra.mxu3 %v10688_v6  ;;  %3352 = vmatpush.msra.mxu0 %v10932_v54  ;;  %v11154_v6 = vand.u32 4294901760, %v3219_v33  ;;  %v2832_v33 = vsel %vm15937_vm9, %v2486_v51, 0  ;;  %v15988_v51 = vld [vmem:[#allocation82_spill] sm:$0xff]  ;;  %vm2828_vm9 = vcmask 556032  }
 0x470   :  { %3389 = vmatpush.msra.mxu1 %v10740_v63  ;;  %3450 = vmatpush.msra.mxu2 %v15972_v48  ;;  %v11186_v54 = vand.u32 4294901760, %v2832_v33 }
 0x471   :  { %3495 = vmatpush.msra.mxu3 %v10715_v42  ;;  %2268 = vrot.lane.b32.xlu2 %v15975_v31, %s8823_s16  ;;  %15976 = vst [vmem:[#allocation138_spill] sm:$0xff] %v11154_v6  ;;  %v11160_v37 = vpop.permute.xlu0 %1828  ;;  %v11162_v12 = vpop.permute.xlu2 %2429 }
 0x472   :  { %1925 = vrot.lane.b32.xlu0 %v10378_v13, %s8831_s24  ;;  %1923 = vrot.lane.b32.xlu1 %v15949_v47, %s8831_s24  ;;  %15977 = vst [vmem:[#allocation139_spill] sm:$0xff] %v11160_v37  ;;  %v11166_v42 = vpop.permute.xlu1 %2260  ;;  %s8835_s24 = smov 128  }
 0x473   :  { %15978 = vst [vmem:[#allocation140_spill] sm:$0xff] %v11162_v12  ;;  %3355 = vmatpush.msra.mxu0 %v10935_v30  ;;  %3391 = vmatpush.msra.mxu1 %v10762_v22 }
 0x474   :  { %15979 = vst [vmem:[#allocation141_spill] sm:$0xff] %v11166_v42  ;;  %3454 = vmatpush.msra.mxu2 %v15980_v36  ;;  %3497 = vmatpush.msra.mxu3 %v10740_v63  ;;  %v15982_v63 = vand.u32 4294901760, %v10950_v57  ;;  %v2454_v36 = vsel %vm2441_vm7, %v15988_v51, %v10874_v35  ;;  %v15993_v51 = vld [vmem:[#allocation35_spill] sm:$0xff] }
 0x475   :  { %3221 = vmatmul.f32.vlgmr.msrb.gmra.mxu2 %v11154_v6  ;;  %3358 = vmatpush.msra.mxu0 %v10950_v57  ;;  %v2478_v2 = vsel %vm120_vm3, %v2454_v36, 0.0 }
 0x476   :  { %3393 = vmatpush.msra.mxu1 %v10850_v44  ;;  %3458 = vmatpush.msra.mxu2 %v15981_v24  ;;  %v15989_v24 = vld [vmem:[#allocation28_spill] sm:$0xff] }
 0x477   :  { %3499 = vmatpush.msra.mxu3 %v10762_v22  ;;  %3143 = vmatmul.f32.vlgmr.msrb.gmra.mxu0 %v10784_v59  ;;  %v15984_v22 = vld [vmem:[#allocation80_spill] sm:$0xff] }
 0x478   :  { %3322 = vmatmul.f32.vlgmr.msrb.gmra.mxu3 %v11083_v28  ;;  %3361 = vmatpush.msra.mxu0 %v10982_v43  ;;  %v2455_v46 = vsel %vm2441_vm7, %v15984_v22, %v10927_v52  ;;  %v15994_v22 = vld [vmem:[#allocation37_spill] sm:$0xff] }
 0x479   :  { %3395 = vmatpush.msra.mxu1 %v10852_v16  ;;  %3462 = vmatpush.msra.mxu2 %v15982_v63  ;;  %v11190_v30 = vpop.permute.xlu0 %2332  ;;  %v2482_v43 = vsel %vm120_vm3, %v2455_v46, 0.0  ;;  %v2367_v8 = vsel %vm2352_vm15, %v15994_v22, %v15993_v51  ;;  %v2825_v51 = vld.sshfl [vmem:[#allocation1 + $0x10] sm:$0xff pattern:$0x75316420] }
 0x47a   :  { %3501 = vmatpush.msra.mxu3 %v10850_v44  ;;  %3180 = vmatmul.f32.vlgmr.msrb.gmra.mxu1 %v10784_v59  ;;  %15983 = vst [vmem:[#allocation142_spill] sm:$0xff] %v11190_v30  ;;  %v11198_v48 = vpop.permute.xlu1 %2254  ;;  %v11200_v57 = vpop.permute.xlu2 %2090  ;;  %v11210_v44 = vsub.f32 %v2832_v33, %v11186_v54  ;;  %v15991_v33 = vand.u32 4294901760, %v11004_v14  ;;  %v16051_v59 = vld [vmem:[#allocation63_spill] sm:$0xff] }
 0x47b   :  { %3364 = vmatpush.msra.mxu0 %v11004_v14  ;;  %3397 = vmatpush.msra.mxu1 %v10908_v29  ;;  %15985 = vst [vmem:[#allocation143_spill] sm:$0xff] %v11198_v48  ;;  %v15995_v14 = vld [vmem:[#allocation86_spill] sm:$0xff] }
 0x47c   :  { %15986 = vst [vmem:[#allocation144_spill] sm:$0xff] %v11200_v57  ;;  %3466 = vmatpush.msra.mxu2 %v15987_v41  ;;  %3503 = vmatpush.msra.mxu3 %v10852_v16  ;;  %v15990_v16 = vld [vmem:[#allocation87_spill] sm:$0xff]  ;;  %v15992_v41 = vld [vmem:[#allocation65_spill] sm:$0xff]  ;;  %v16063_v48 = vld [vmem:[#allocation98_spill] sm:$0xff] }
 0x47d   :  { %2188 = vrot.lane.b32.xlu2 %v15975_v31, %s8826_s19  ;;  %2190 = vrot.lane.b32.xlu0 %v15926_v17, %s8826_s19  ;;  %v2366_v63 = vsel %vm2352_vm15, %v15990_v16, %v10943_v50  ;;  %v2453_v46 = vsel %vm2441_vm7, %v10987_v23, %v15992_v41  ;;  %v11240_v16 = vand.u32 4294901760, %v2482_v43  ;;  %v15997_v41 = vld [vmem:[#allocation68_spill] sm:$0xff] }
 0x47e   :  { %2266 = vrot.lane.b32.xlu1 %v15989_v24, %s8823_s16  ;;  %3367 = vmatpush.msra.mxu0 %v11023_v27  ;;  %v2393_v23 = vsel %vm104_vm1, %v2366_v63, 0.0  ;;  %v2452_v36 = vsel %vm2441_vm7, %v11047_v62, %v15997_v41  ;;  %v15999_v63 = vand.u32 4294901760, %v11033_v5  ;;  %v11269_v62 = vand.u32 4294901760, %v2478_v2 }
 0x47f   :  { %3399 = vmatpush.msra.mxu1 %v10910_v45  ;;  %3470 = vmatpush.msra.mxu2 %v15991_v33  ;;  %v2365_v33 = vsel %vm2352_vm15, %v15995_v14, %v10998_v10  ;;  %v2758_v41 = vrot.slane %v2393_v23, 4  ;;  %v11282_v35 = vsub.f32 %v2482_v43, %v11240_v16  ;;  %v2829_v43 = vsel %vm2828_vm9, %v2825_v51, 0 }
 0x480   :  { %3505 = vmatpush.msra.mxu3 %v10908_v29  ;;  %3370 = vmatpush.msra.mxu0 %v11033_v5  ;;  %v15996_v29 = vand.u32 4294901760, %v11023_v27  ;;  %v2474_v27 = vsel %vm120_vm3, %v2453_v46, 0.0  ;;  %v2389_v22 = vsel %vm104_vm1, %v2365_v33, 0.0  ;;  %v16002_v5 = vld [vmem:[#allocation90_spill] sm:$0xff]  ;;  %v16003_v33 = vand.u32 4294901760, %v11060_v61 }
 0x481   :  { %3401 = vmatpush.msra.mxu1 %v10913_v38  ;;  %v11258_v14 = vpop.permute.xlu0 %2427  ;;  %v2750_v52 = vrot.slane %v2389_v22, 4 }
 0x482   :  { %3474 = vmatpush.msra.mxu2 %v15996_v29  ;;  %3507 = vmatpush.msra.mxu3 %v10910_v45  ;;  %15998 = vst [vmem:[#allocation145_spill] sm:$0xff] %v11258_v14  ;;  %v11265_v29 = vpop.permute.xlu1 %2252  ;;  %v2397_v45 = vsel %vm104_vm1, %v2367_v8, 0.0  ;;  %v2470_v8 = vsel %vm120_vm3, %v2452_v36, 0.0  ;;  %v16005_v36 = vld [vmem:[#allocation83_spill] sm:$0xff]  ;;  %vm16007_vm3 = vcmask 1043456  }
 0x483   :  { %3373 = vmatpush.msra.mxu0 %v11060_v61  ;;  %3403 = vmatpush.msra.mxu1 %v10955_v55  ;;  %16000 = vst [vmem:[#allocation146_spill] sm:$0xff] %v11265_v29  ;;  %v11275_v46 = vpop.permute.xlu2 %2338  ;;  %v16006_v14 = vld [vmem:[#allocation91_spill] sm:$0xff]  ;;  %v11310_v51 = vand.u32 4294901760, %v2470_v8  ;;  %vm16016_vm9 = vmmov %vm16007_vm3  ;;  %v16047_v29 = vld [vmem:[#allocation81_spill] sm:$0xff] }
 0x484   :  { %3478 = vmatpush.msra.mxu2 %v15999_v63  ;;  %3509 = vmatpush.msra.mxu3 %v10913_v38  ;;  %16001 = vst [vmem:[#allocation147_spill] sm:$0xff] %v11275_v46  ;;  %v2364_v63 = vsel %vm2352_vm15, %v10862_v15, %v16002_v5  ;;  %v11288_v38 = vand.u32 4294901760, %v2474_v27  ;;  %v16004_v15 = vand.u32 4294901760, %v11210_v44  ;;  %v2122_v61 = vsel %vm1105_vm12, %v16006_v14, %v16005_v36 }
 0x485   :  { %3376 = vmatmul.f32.vlgmr.msra.gmra.mxu0 %v11103_v34  ;;  %3405 = vmatpush.msra.mxu1 %v10966_v32  ;;  %v2766_v34 = vrot.slane %v2397_v45, 4  ;;  %v11323_v45 = vand.u32 4294901760, %v2829_v43 }
 0x486   :  { %3533 = vmatpush.msrb.mxu0 %v11186_v54  ;;  %3482 = vmatpush.msra.mxu2 %v16003_v33  ;;  %v3569_v23 = vsub.f32 %v11210_v44, %v16004_v15  ;;  %v2385_v15 = vsel %vm104_vm1, %v2364_v63, 0.0  ;;  %v16009_v63 = vld [vmem:[#allocation61_spill] sm:$0xff]  ;;  %v16010_v33 = vld [vmem:[#allocation71_spill] sm:$0xff]  ;;  %v11334_v36 = vsub.f32 %v2474_v27, %v11288_v38 }
 0x487   :  { %3511 = vmatpush.msra.mxu3 %v10955_v55  ;;  %1834 = vrot.lane.b32.xlu2 %v15949_v47, %s8833_s1  ;;  %v11306_v55 = vsub.f32 %v2478_v2, %v11269_v62  ;;  %v2767_v22 = vsel %vm16007_vm3, %v2758_v41, %v2766_v34  ;;  %v2361_v2 = vsel %vm2352_vm15, %v10943_v50, %v11275_v46  ;;  %v16011_v47 = vld [vmem:[#allocation124_spill] sm:$0xff]  ;;  %v16012_v34 = vld [vmem:[#allocation57_spill] sm:$0xff] }
 0x488   :  { %2186 = vrot.lane.b32.xlu0 %v15989_v24, %s8826_s19  ;;  %1836 = vrot.lane.b32.xlu1 %v10378_v13, %s8833_s1  ;;  %16008 = vst [vmem:[#allocation90_spill] sm:$0xff] %v11323_v45  ;;  %v2123_v25 = vsel %vm1105_vm12, %v16010_v33, %v16009_v63  ;;  %v2124_v13 = vsel %vm1105_vm12, %v16012_v34, %v16011_v47  ;;  %v3570_v50 = vand.u32 4294901760, %v3569_v23  ;;  %v16014_v46 = vld [vmem:[#allocation17_spill] sm:$0xff]  ;;  %v2742_v33 = vrot.slane %v2385_v15, 4 }
 0x489   :  { %3535 = vmatpush.msrb.mxu0 %v11240_v16  ;;  %3634 = vmatpush.msrb.mxu2 %v11210_v44  ;;  %v11338_v14 = vpop.permute.xlu0 %2174  ;;  %vm16015_vm1 = vcmp.ge.s32.totalorder %v16014_v46, 1  ;;  %v2759_v63 = vsel %vm16016_vm9, %v2750_v52, %v2758_v41  ;;  %vm105_vm3 = vcmp.lt.s32.totalorder %v16014_v46, 13  ;;  %v11355_v23 = vand.u32 4294901760, %v2767_v22 }
 0x48a   :  { %3407 = vmatpush.msra.mxu1 %v10978_v56  ;;  %3513 = vmatpush.msra.mxu3 %v10966_v32  ;;  %16013 = vst [vmem:[#allocation91_spill] sm:$0xff] %v11338_v14  ;;  %v11342_v6 = vsel %vm16015_vm1, %v2122_v61, 0.0  ;;  %v11348_v27 = vpop.permute.xlu1 %2172  ;;  %v11351_v32 = vsub.f32 %v2470_v8, %v11310_v51  ;;  %v11360_v41 = vsel %vm105_vm3, %v2361_v2, 0.0  ;;  %v11366_v34 = vsel %vm16015_vm1, %v2124_v13, 0.0  ;;  %v16050_v14 = vld [vmem:[#allocation60_spill] sm:$0xff] }
 0x48b   :  { %3484 = vmatmul.f32.vlgmr.msra.gmra.mxu2 %v11083_v28  ;;  %3537 = vmatpush.msrb.mxu0 %v11269_v62  ;;  %16017 = vst [vmem:[#allocation71_spill] sm:$0xff] %v11348_v27  ;;  %v11362_v15 = vpop.permute.xlu2 %2336  ;;  %v11374_v61 = vsub.f32 %v2829_v43, %v11323_v45  ;;  %v2751_v47 = vsel %vm16016_vm9, %v2742_v33, %v2750_v52  ;;  %v11383_v13 = vand.u32 4294901760, %v2759_v63  ;;  %v2137_v43 = vsel %vm16015_vm1, %v2123_v25, 0.0  ;;  %vm16028_vm1 = vmmov %vm16016_vm9  ;;  %v16046_v27 = vld [vmem:[#allocation93_spill] sm:$0xff] }
 0x48c   :  { %3637 = vmatpush.msrb.mxu2 %v11282_v35  ;;  %3409 = vmatpush.msra.mxu1 %v11000_v11  ;;  %16018 = vst [vmem:[#allocation57_spill] sm:$0xff] %v11360_v41  ;;  %v2360_v2 = vsel %vm2352_vm15, %v10998_v10, %v11362_v15  ;;  %v2587_v12 = vrot.slane %v11342_v6, 4  ;;  %v11405_v6 = vsub.f32 %v2767_v22, %v11355_v23 }
 0x48d   :  { %3515 = vmatpush.msra.mxu3 %v10978_v56  ;;  %16019 = vst [vmem:[#allocation148_spill] sm:$0xff] %v11362_v15  ;;  %3539 = vmatpush.msrb.mxu0 %v11288_v38  ;;  %v16021_v56 = vand.u32 4294901760, %v11282_v35 }
 0x48e   :  { %16020 = vst [vmem:[#allocation149_spill] sm:$0xff] %v11366_v34  ;;  %3640 = vmatpush.msrb.mxu2 %v11306_v55  ;;  %3411 = vmatpush.msra.mxu1 %v11029_v58 }
 0x48f   :  { %v3575_v8 = vsub.f32 %v11282_v35, %v16021_v56  ;;  %16022 = vst [vmem:[#allocation150_spill] sm:$0xff] %v11374_v61  ;;  %3517 = vmatpush.msra.mxu3 %v11000_v11  ;;  %v11388_v56 = vsel %vm105_vm3, %v2360_v2, 0.0  ;;  %3415 = vmatmul.f32.vlgmr.msra.gmra.mxu1 %v11117_v20  ;;  %v16023_v11 = vld [vmem:[#allocation107_spill] sm:$0xff]  ;;  %v16025_v2 = vand.u32 4294901760, %v11306_v55  ;;  %v11432_v20 = vsub.f32 %v2759_v63, %v11383_v13 }
 0x490   :  { %3541 = vmatpush.msrb.mxu0 %v11310_v51  ;;  %v15539_v10 = vrot.slane %v11388_v56, 4  ;;  %v16024_v15 = vrot.slane %v16023_v11, 4  ;;  %3571 = vmatpush.msrb.mxu1 %v3570_v50  ;;  %v11415_v50 = vand.u32 4294901760, %v11374_v61  ;;  %v2592_v11 = vrot.slane %v2137_v43, 4 }
 0x491   :  { %3643 = vmatpush.msrb.mxu2 %v11334_v36  ;;  %v3581_v25 = vsub.f32 %v11306_v55, %v16025_v2  ;;  %3519 = vmatpush.msra.mxu3 %v11029_v58  ;;  %v3576_v58 = vand.u32 4294901760, %v3575_v8  ;;  %v16030_v2 = vand.u32 4294901760, %v11334_v36  ;;  %v16034_v63 = vand.u32 4294901760, %v11351_v32 }
 0x492   :  { %v2743_v4 = vsel %vm16016_vm9, %v16024_v15, %v2742_v33  ;;  %2098 = vrot.lane.b32.xlu0 %v10290_v53, %s8825_s18  ;;  %v11412_v33 = vand.u32 4294901760, %v2751_v47  ;;  %16026 = vst [vmem:[#allocation107_spill] sm:$0xff] %v11415_v50  ;;  %v16027_v15 = vrot.slane %v11360_v41, 4  ;;  %2184 = vrot.lane.b32.xlu1 %v15964_v40, %s8826_s19  ;;  %v16031_v53 = vld [vmem:[#allocation38_spill] sm:$0xff]  ;;  %v16032_v41 = vld [vmem:[#allocation33_spill] sm:$0xff]  ;;  %vm16035_vm9 = vmmov %vm16028_vm1  ;;  %v15551_v57 = vand.u32 4294901760, %v11432_v20 }
 0x493   :  { %2182 = vrot.lane.b32.xlu2 %v15947_v60, %s8826_s19  ;;  %v3587_v52 = vsub.f32 %v11334_v36, %v16030_v2  ;;  %3521 = vmatmul.f32.vlgmr.msra.gmra.mxu3 %v11083_v28  ;;  %v11440_v43 = vand.u32 4294901760, %v2743_v4  ;;  %v3582_v8 = vand.u32 4294901760, %v3581_v25  ;;  %v3593_v2 = vsub.f32 %v11351_v32, %v16034_v63  ;;  %v11452_v28 = vpop.permute.xlu2 %2096 }
 0x494   :  { %v11422_v22 = vsel %vm16028_vm1, %v15539_v10, %v16027_v15  ;;  %v2046_v15 = vsel %vm999_vm10, %v16032_v41, %v16031_v53  ;;  %3543 = vmatpush.msrb.mxu0 %v11355_v23  ;;  %v11442_v10 = vpop.permute.xlu0 %2425  ;;  %3577 = vmatpush.msrb.mxu1 %v3576_v58  ;;  %v2593_v41 = vsel %vm16035_vm9, %v2587_v12, %v2592_v11  ;;  %v11450_v53 = vpop.permute.xlu1 %2088  ;;  %v16038_v63 = vrot.slane %v11366_v34, 4  ;;  %vm16039_vm9 = vmmov %vm16028_vm1 }
 0x495   :  { %16029 = vst [vmem:[#allocation151_spill] sm:$0xff] %v11422_v22  ;;  %3646 = vmatpush.msrb.mxu2 %v11351_v32  ;;  %3673 = vmatpush.msrb.mxu3 %v11186_v54  ;;  %v11457_v58 = vsub.f32 %v2751_v47, %v11412_v33  ;;  %v3553_v25 = vsub.f32 %v11374_v61, %v11415_v50 }
 0x496   :  { %16033 = vst [vmem:[#allocation33_spill] sm:$0xff] %v11442_v10  ;;  %3545 = vmatpush.msrb.mxu0 %v11383_v13  ;;  %v2601_v22 = vsel %vm16028_vm1, %v2592_v11, %v16038_v63  ;;  %v2069_v10 = vsel %vm15569_vm0, %v2046_v15, 0.0  ;;  %3583 = vmatpush.msrb.mxu1 %v3582_v8  ;;  %v11471_v47 = vsub.f32 %v2743_v4, %v11440_v43  ;;  %v3594_v11 = vand.u32 4294901760, %v3593_v2  ;;  %v2812_v2 = vld [vmem:[%s15310_s6] sm:$0xf] }
 0x497   :  { %16036 = vst [vmem:[#allocation152_spill] sm:$0xff] %v11450_v53  ;;  %3649 = vmatpush.msrb.mxu2 %v11405_v6  ;;  %3675 = vmatpush.msrb.mxu3 %v11240_v16  ;;  %v2799_v34 = vsel %vm16039_vm9, %v2069_v10, %v2587_v12  ;;  %v16040_v15 = vand.u32 4294901760, %v11405_v6  ;;  %v11480_v63 = vand.u32 4294901760, %v2593_v41  ;;  %v11484_v4 = vand.u32 4294901760, %v3553_v25  ;;  %v16043_v25 = vld [vmem:[#allocation41_spill] sm:$0xff]  ;;  %v16044_v12 = vld [vmem:[#allocation36_spill] sm:$0xff] }
 0x498   :  { %16037 = vst [vmem:[#allocation153_spill] sm:$0xff] %v11452_v28  ;;  %v3588_v28 = vand.u32 4294901760, %v3587_v52  ;;  %3547 = vmatpush.msrb.mxu0 %v11412_v33  ;;  %v11478_v52 = vand.u32 4294901760, %v2601_v22  ;;  %vm109_vm1 = vcmp.ge.s32.totalorder %v16014_v46, 3  ;;  %v1958_v53 = vsel %vm1943_vm5, %v16044_v12, %v16043_v25 }
 0x499   :  { %3652 = vmatpush.msrb.mxu2 %v11432_v20  ;;  %v3599_v8 = vsub.f32 %v11405_v6, %v16040_v15  ;;  %3677 = vmatpush.msrb.mxu3 %v11269_v62  ;;  %16041 = vst [vmem:[#allocation154_spill] sm:$0xff] %v11484_v4  ;;  %v3605_v15 = vsub.f32 %v11432_v20, %v15551_v57  ;;  %vm125_vm9 = vcmp.ge.s32.totalorder %v16014_v46, 4 }
 0x49a   :  { %3589 = vmatpush.msrb.mxu1 %v3588_v28  ;;  %3549 = vmatpush.msrb.mxu0 %v11440_v43  ;;  %v16042_v28 = vld [vmem:[#allocation59_spill] sm:$0xff]  ;;  %v2043_v57 = vsel %vm999_vm10, %v16047_v29, %v16046_v27  ;;  %v11518_v25 = vsub.f32 %v2601_v22, %v11478_v52  ;;  %v16052_v22 = vand.u32 4294901760, %v11457_v58 }
 0x49b   :  { %v2045_v10 = vsel %vm999_vm10, %v16042_v28, %v11053_v19  ;;  %3655 = vmatpush.msrb.mxu2 %v11457_v58  ;;  %3679 = vmatpush.msrb.mxu3 %v11288_v38  ;;  %v11506_v28 = vand.u32 4294901760, %v2799_v34  ;;  %v3600_v12 = vand.u32 4294901760, %v3599_v8  ;;  %v16049_v19 = vld [vmem:[#allocation24_spill] sm:$0xff]  ;;  %v1957_v8 = vsel %vm1943_vm5, %v16051_v59, %v11096_v21 }
 0x49c   :  { %3595 = vmatpush.msrb.mxu1 %v3594_v11  ;;  %v16045_v11 = vand.u32 4294901760, %v11210_v44  ;;  %2439 = vrot.lane.b32.xlu0 %v15926_v17, %s8830_s23  ;;  %v11521_v44 = vsub.f32 %v2593_v41, %v11480_v63  ;;  %v2044_v29 = vsel %vm999_vm10, %v16050_v14, %v16049_v19  ;;  %v2065_v27 = vsel %vm15569_vm0, %v2045_v10, 0.0 }
 0x49d   :  { %2100 = vrot.lane.b32.xlu1 %v9835_v1, %s8825_s18  ;;  %2815 = vperm.xlu2 %8727, %v2812_v2   ;;  %v3611_v41 = vsub.f32 %v11457_v58, %v16052_v22  ;;  %v11539_v1 = vpop.permute.xlu0 %2340  ;;  %v3606_v14 = vand.u32 4294901760, %v3605_v15  ;;  %v1989_v10 = vsel %vm109_vm1, %v1958_v53, 0.0  ;;  %v2057_v59 = vsel %vm15569_vm0, %v2043_v57, 0.0  ;;  %v16057_v57 = vld [vmem:[#allocation66_spill] sm:$0xff] }
 0x49e   :  { %3707 = vmatpush.msra.mxu0 %v16045_v11  ;;  %v11523_v11 = vpop.permute.xlu2 %2018  ;;  %16053 = vst [vmem:[#allocation36_spill] sm:$0xff] %v11539_v1  ;;  %3601 = vmatpush.msrb.mxu1 %v3600_v12  ;;  %v16055_v2 = vand.u32 4294901760, %v11282_v35  ;;  %v16056_v22 = vand.u32 4294901760, %v11471_v47  ;;  %v11555_v12 = vsub.f32 %v2799_v34, %v11506_v28  ;;  %v2061_v15 = vsel %vm15569_vm0, %v2044_v29, 0.0  ;;  %v16059_v34 = vld [vmem:[#allocation84_spill] sm:$0xff]  ;;  %v16060_v1 = vld [vmem:[#allocation115_spill] sm:$0xff] }
 0x49f   :  { %16048 = vst [vmem:[#allocation59_spill] sm:$0xff] %v11523_v11  ;;  %3555 = vmatmul.f32.vlgmr.msrb.gmra.mxu0 %v11484_v4  ;;  %v11541_v11 = vpop.permute.xlu1 %2423  ;;  %3658 = vmatpush.msrb.mxu2 %v11471_v47  ;;  %v11559_v21 = vand.u32 4294901760, %v2065_v27  ;;  %v11563_v53 = vsel %vm109_vm1, %v1957_v8, 0.0  ;;  %v1956_v35 = vsel %vm1943_vm5, %v16057_v57, %v11128_v0  ;;  %v3612_v29 = vand.u32 4294901760, %v3611_v41  ;;  %v16061_v57 = vld [vmem:[#allocation92_spill] sm:$0xff] }
 0x4a0   :  { %16054 = vst [vmem:[#allocation81_spill] sm:$0xff] %v11541_v11  ;;  %3681 = vmatpush.msrb.mxu3 %v11310_v51  ;;  %3711 = vmatpush.msra.mxu0 %v16055_v2  ;;  %v3617_v19 = vsub.f32 %v11471_v47, %v16056_v22  ;;  %v16058_v2 = vld [vmem:[#allocation97_spill] sm:$0xff]  ;;  %v2540_v11 = vrot.slane %v1989_v10, 4  ;;  %v16062_v0 = vld [vmem:[#allocation116_spill] sm:$0xff]  ;;  %v16065_v8 = vand.u32 4294901760, %v11306_v55  ;;  %v11593_v10 = vand.u32 4294901760, %v2061_v15 }
 0x4a1   :  { %3776 = vmatpush.msra.mxu2 %v11478_v52  ;;  %3607 = vmatpush.msrb.mxu1 %v3606_v14  ;;  %v2042_v22 = vsel %vm999_vm10, %v16059_v34, %v16058_v2  ;;  %v1954_v14 = vsel %vm1943_vm5, %v16061_v57, %v16060_v1  ;;  %v1955_v34 = vsel %vm1943_vm5, %v16063_v48, %v16062_v0  ;;  %v16064_v2 = vld [vmem:[#allocation52_spill] sm:$0xff]  ;;  %v2532_v4 = vrot.slane %v11563_v53, 4 }
 0x4a2   :  { %3683 = vmatpush.msrb.mxu3 %v11355_v23  ;;  %3661 = vmatmul.f32.vlgmr.msrb.gmra.mxu2 %v11374_v61  ;;  %v2358_v41 = vsel %vm2352_vm15, %v16064_v2, %v11190_v30  ;;  %v1981_v57 = vsel %vm109_vm1, %v1956_v35, 0.0  ;;  %v3618_v48 = vand.u32 4294901760, %v3617_v19  ;;  %v11599_v61 = vand.u32 4294901760, %v2057_v59 }
 0x4a3   :  { %3715 = vmatpush.msra.mxu0 %v16065_v8  ;;  %3778 = vmatpush.msra.mxu2 %v11480_v63  ;;  %v2053_v2 = vsel %vm15569_vm0, %v2042_v22, 0.0  ;;  %v11605_v55 = vsub.f32 %v2065_v27, %v11559_v21  ;;  %v16066_v8 = vand.u32 4294901760, %v11334_v36  ;;  %v11614_v19 = vsel %vm105_vm3, %v2358_v41, 0.0 }
 0x4a4   :  { %3613 = vmatpush.msrb.mxu1 %v3612_v29  ;;  %3685 = vmatpush.msrb.mxu3 %v11383_v13  ;;  %v16068_v35 = vand.u32 4294901760, %v11518_v25  ;;  %v16069_v27 = vand.u32 4294901760, %v11521_v44  ;;  %v1973_v41 = vsel %vm109_vm1, %v1954_v14, 0.0  ;;  %v2524_v1 = vrot.slane %v1981_v57, 4 }
 0x4a5   :  { %3719 = vmatpush.msra.mxu0 %v16066_v8  ;;  %3780 = vmatpush.msra.mxu2 %v11506_v28  ;;  %v11624_v8 = vpop.permute.xlu0 %2334  ;;  %v11639_v29 = vand.u32 4294901760, %v2053_v2  ;;  %v11642_v0 = vsub.f32 %v2061_v15, %v11593_v10  ;;  %v2541_v14 = vsel %vm16073_vm8, %v2532_v4, %v2540_v11 }
 0x4a6   :  { %v11610_v53 = vpop.permute.xlu2 %1929  ;;  %3619 = vmatpush.msrb.mxu1 %v3618_v48  ;;  %3687 = vmatpush.msrb.mxu3 %v11412_v33  ;;  %v3819_v22 = vsub.f32 %v11518_v25, %v16068_v35  ;;  %v3825_v36 = vsub.f32 %v11521_v44, %v16069_v27  ;;  %16070 = vst [vmem:[#allocation63_spill] sm:$0xff] %v11624_v8  ;;  %v1977_v48 = vsel %vm109_vm1, %v1955_v34, 0.0  ;;  %v16072_v35 = vand.u32 4294901760, %v11351_v32  ;;  %vm16077_vm1 = vmmov %vm16073_vm8 }
 0x4a7   :  { %16067 = vst [vmem:[#allocation60_spill] sm:$0xff] %v11610_v53  ;;  %v11626_v30 = vpop.permute.xlu1 %2421  ;;  %3621 = vmatmul.f32.vlgmr.msrb.gmra.mxu1 %v11323_v45  ;;  %v2359_v27 = vsel %vm2352_vm15, %v16002_v5, %v11624_v8  ;;  %3782 = vmatpush.msra.mxu2 %v11559_v21  ;;  %v11650_v34 = vsub.f32 %v2057_v59, %v11599_v61  ;;  %v2516_v15 = vrot.slane %v1977_v48, 4  ;;  %v16075_v8 = vand.u32 4294901760, %v11405_v6  ;;  %vm16079_vm0 = vmmov %vm16077_vm1 }
 0x4a8   :  { %16071 = vst [vmem:[#allocation66_spill] sm:$0xff] %v11626_v30  ;;  %3723 = vmatpush.msra.mxu0 %v16072_v35  ;;  %3753 = vmatpush.msra.mxu1 %v11186_v54  ;;  %v2386_v32 = vsel %vm105_vm3, %v2359_v27, 0.0  ;;  %v2511_v54 = vrot.slane %v1973_v41, 4  ;;  %v3820_v59 = vand.u32 4294901760, %v3819_v22  ;;  %v16074_v35 = vand.u32 4294901760, %v11555_v12 }
 0x4a9   :  { %2433 = vrot.lane.b32.xlu0 %v15964_v40, %s8830_s23  ;;  %2437 = vrot.lane.b32.xlu1 %v15975_v31, %s8830_s23  ;;  %v2744_v11 = vrot.slane %v2386_v32, 4  ;;  %v2533_v57 = vsel %vm16073_vm8, %v2524_v1, %v2532_v4  ;;  %v11668_v32 = vand.u32 4294901760, %v2541_v14  ;;  %v16076_v41 = vrot.slane %v11614_v19, 4  ;;  %v16080_v4 = vld [vmem:[#allocation106_spill] sm:$0xff]  ;;  %vm16082_vm8 = vmmov %vm16079_vm0 }
 0x4aa   :  { %2350 = vrot.lane.b32.xlu2 %v15926_v17, %s8832_s25  ;;  %3689 = vmatpush.msrb.mxu3 %v11440_v43  ;;  %v3831_v27 = vsub.f32 %v11555_v12, %v16074_v35  ;;  %v16078_v22 = vrot.slane %v11388_v56, 4  ;;  %v11681_v35 = vsub.f32 %v2053_v2, %v11639_v29  ;;  %v16081_v17 = vld [vmem:[#allocation39_spill] sm:$0xff]  ;;  %v2525_v56 = vsel %vm16082_vm8, %v2516_v15, %v2524_v1  ;;  %vm16090_vm8 = vmmov %vm16077_vm1 }
 0x4ab   :  { %3693 = vmatmul.f32.vlgmr.msrb.gmra.mxu3 %v11415_v50  ;;  %3727 = vmatpush.msra.mxu0 %v16075_v8  ;;  %v11673_v48 = vsel %vm16077_vm1, %v16076_v41, %v2744_v11  ;;  %v1869_v6 = vsel %vm1854_vm2, %v16081_v17, %v16080_v4  ;;  %v3826_v8 = vand.u32 4294901760, %v3825_v36  ;;  %v16084_v2 = vand.u32 4294901760, %v11605_v55  ;;  %v16085_v50 = vld [vmem:[#allocation20_spill] sm:$0xff]  ;;  %v16086_v17 = vld [vmem:[#allocation94_spill] sm:$0xff] }
 0x4ac   :  { %v11678_v5 = vsel %vm16079_vm0, %v2744_v11, %v16078_v22  ;;  %3755 = vmatpush.msra.mxu1 %v11240_v16  ;;  %3784 = vmatpush.msra.mxu2 %v11593_v10  ;;  %v16083_v11 = vand.u32 4294901760, %v11432_v20  ;;  %vm111_vm0 = vcmp.ge.s32.totalorder %v16085_v50, 3  ;;  %v1947_v16 = vsel %vm1943_vm5, %v11610_v53, %v16086_v17 }
 0x4ad   :  { %3821 = vmatpush.msra.mxu3 %v3820_v59  ;;  %v3837_v22 = vsub.f32 %v11605_v55, %v16084_v2  ;;  %v11703_v1 = vand.u32 4294901760, %v2533_v57  ;;  %v11706_v36 = vpop.permute.xlu0 %2016  ;;  %v16088_v2 = vand.u32 4294901760, %v11457_v58  ;;  %v3832_v17 = vand.u32 4294901760, %v3831_v27 }
 0x4ae   :  { %3731 = vmatpush.msra.mxu0 %v16083_v11  ;;  %3757 = vmatpush.msra.mxu1 %v11269_v62  ;;  %16087 = vst [vmem:[#allocation84_spill] sm:$0xff] %v11706_v36  ;;  %v1900_v11 = vsel %vm125_vm9, %v1869_v6, 0.0  ;;  %v2517_v62 = vsel %vm16077_vm1, %v2511_v54, %v2516_v15  ;;  %v11716_v41 = vsub.f32 %v2541_v14, %v11668_v32  ;;  %v11718_v4 = vpop.permute.xlu2 %1927  ;;  %v11723_v36 = vand.u32 4294901760, %v2525_v56  ;;  %v16091_v15 = vld [vmem:[#allocation64_spill] sm:$0xff] }
 0x4af   :  { %3786 = vmatpush.msra.mxu2 %v11599_v61  ;;  %v11708_v59 = vpop.permute.xlu1 %2020  ;;  %3827 = vmatpush.msra.mxu3 %v3826_v8  ;;  %16089 = vst [vmem:[#allocation92_spill] sm:$0xff] %v11718_v4  ;;  %v2795_v20 = vsel %vm16090_vm8, %v1900_v11, %v2511_v54  ;;  %v15578_v6 = vand.u32 4294901760, %v11681_v35  ;;  %v11728_v58 = vsel %vm111_vm0, %v1947_v16, 0.0  ;;  %v1868_v14 = vsel %vm1854_vm2, %v16091_v15, %v11049_v18  ;;  %v16094_v11 = vld [vmem:[#allocation88_spill] sm:$0xff]  ;;  %vm16124_vm8 = vmmov %vm16077_vm1 }
 0x4b0   :  { %3735 = vmatpush.msra.mxu0 %v16088_v2  ;;  %3759 = vmatpush.msra.mxu1 %v11288_v38  ;;  %v16092_v54 = vand.u32 4294901760, %v11471_v47  ;;  %v3838_v38 = vand.u32 4294901760, %v3837_v22  ;;  %v16093_v27 = vand.u32 4294901760, %v11642_v0  ;;  %v1946_v16 = vsel %vm1943_vm5, %v11718_v4, %v16094_v11 }
 0x4b1   :  { %3788 = vmatpush.msra.mxu2 %v11639_v29  ;;  %3833 = vmatpush.msra.mxu3 %v3832_v17  ;;  %v16095_v2 = vand.u32 4294901760, %v11650_v34  ;;  %v11748_v47 = vand.u32 4294901760, %v2517_v62  ;;  %v11751_v22 = vsub.f32 %v2533_v57, %v11703_v1  ;;  %v11755_v15 = vsel %vm111_vm0, %v1946_v16, 0.0 }
 0x4b2   :  { %3739 = vmatpush.msra.mxu0 %v16092_v54  ;;  %v3843_v8 = vsub.f32 %v11642_v0, %v16093_v27  ;;  %3761 = vmatpush.msra.mxu1 %v11310_v51  ;;  %v16096_v54 = vld [vmem:[#allocation72_spill] sm:$0xff]  ;;  %v2536_v11 = vrot.slane %v11728_v58, 4  ;;  %v11772_v16 = vand.u32 4294901760, %v2795_v20  ;;  %v16098_v27 = vld [vmem:[#allocation102_spill] sm:$0xff]  ;;  %v3855_v57 = vsub.f32 %v11681_v35, %v15578_v6 }
 0x4b3   :  { %3790 = vmatpush.msra.mxu2 %v11668_v32  ;;  %v3849_v17 = vsub.f32 %v11650_v34, %v16095_v2  ;;  %v1867_v51 = vsel %vm1854_vm2, %v16096_v54, %v11160_v37  ;;  %3839 = vmatpush.msra.mxu3 %v3838_v38  ;;  %v1896_v2 = vsel %vm125_vm9, %v1868_v14, 0.0  ;;  %v11775_v38 = vsub.f32 %v2525_v56, %v11723_v36  ;;  %v16097_v54 = vld [vmem:[#allocation111_spill] sm:$0xff]  ;;  %v16102_v37 = vld [vmem:[#allocation118_spill] sm:$0xff] }
 0x4b4   :  { %2431 = vrot.lane.b32.xlu0 %v15947_v60, %s8830_s23  ;;  %2348 = vrot.lane.b32.xlu1 %v15975_v31, %s8832_s25  ;;  %v1866_v58 = vsel %vm1854_vm2, %v16098_v27, %v16097_v54  ;;  %v3844_v14 = vand.u32 4294901760, %v3843_v8  ;;  %v16099_v60 = vrot.slane %v11755_v15, 4  ;;  %v16101_v56 = vld [vmem:[#allocation119_spill] sm:$0xff]  ;;  %v1892_v27 = vsel %vm125_vm9, %v1867_v51, 0.0  ;;  %v16104_v54 = vld [vmem:[#allocation40_spill] sm:$0xff] }
 0x4b5   :  { %2435 = vrot.lane.b32.xlu2 %v15989_v24, %s8830_s23  ;;  %3919 = vmatpush.msrb.mxu0 %v11518_v25  ;;  %v1865_v18 = vsel %vm1854_vm2, %v16102_v37, %v16101_v56  ;;  %v11801_v8 = vsub.f32 %v2517_v62, %v11748_v47  ;;  %v11803_v6 = vpop.permute.xlu0 %1931  ;;  %v3850_v37 = vand.u32 4294901760, %v3849_v17  ;;  %v16103_v51 = vand.u32 4294901760, %v11716_v41 }
 0x4b6   :  { %3763 = vmatpush.msra.mxu1 %v11355_v23  ;;  %v11789_v31 = vsel %vm16077_vm1, %v16099_v60, %v2536_v11  ;;  %3741 = vmatmul.f32.vlgmr.msra.gmra.mxu0 %v11323_v45  ;;  %v1948_v62 = vsel %vm1943_vm5, %v11803_v6, %v16104_v54  ;;  %v1888_v23 = vsel %vm125_vm9, %v1866_v58, 0.0  ;;  %v11823_v17 = vsub.f32 %v2795_v20, %v11772_v16 }
 0x4b7   :  { %16100 = vst [vmem:[#allocation98_spill] sm:$0xff] %v11789_v31  ;;  %3792 = vmatpush.msra.mxu2 %v11703_v1  ;;  %v11805_v60 = vpop.permute.xlu1 %1842  ;;  %v11807_v31 = vand.u32 4294901760, %v1896_v2  ;;  %3845 = vmatpush.msra.mxu3 %v3844_v14  ;;  %v3861_v56 = vsub.f32 %v11716_v41, %v16103_v51  ;;  %v1991_v51 = vsel %vm111_vm0, %v1948_v62, 0.0  ;;  %v1884_v4 = vsel %vm125_vm9, %v1865_v18, 0.0  ;;  %vm16106_vm9 = vmmov %vm16077_vm1 }
 0x4b8   :  { %3922 = vmatpush.msrb.mxu0 %v11521_v44  ;;  %3765 = vmatpush.msra.mxu1 %v11383_v13  ;;  %v11829_v53 = vand.u32 4294901760, %v1892_v27  ;;  %v3856_v54 = vand.u32 4294901760, %v3855_v57  ;;  %v2544_v13 = vrot.slane %v1991_v51, 4  ;;  %v16105_v20 = vand.u32 4294901760, %v11751_v22 }
 0x4b9   :  { %3794 = vmatpush.msra.mxu2 %v11723_v36  ;;  %3851 = vmatpush.msra.mxu3 %v3850_v37  ;;  %v15582_v62 = vand.u32 4294901760, %v11801_v8  ;;  %v11838_v14 = vand.u32 4294901760, %v1888_v23  ;;  %v11841_v18 = vsub.f32 %v1896_v2, %v11807_v31  ;;  %v3862_v57 = vand.u32 4294901760, %v3861_v56 }
 0x4ba   :  { %3925 = vmatpush.msrb.mxu0 %v11555_v12  ;;  %3767 = vmatpush.msra.mxu1 %v11412_v33  ;;  %v3867_v58 = vsub.f32 %v11751_v22, %v16105_v20  ;;  %v11845_v37 = vsel %vm16106_vm9, %v2536_v11, %v2544_v13  ;;  %v11847_v33 = vand.u32 4294901760, %v1884_v4  ;;  %v16108_v51 = vand.u32 4294901760, %v11775_v38 }
 0x4bb   :  { %3796 = vmatpush.msra.mxu2 %v11748_v47  ;;  %3857 = vmatpush.msra.mxu3 %v3856_v54  ;;  %16107 = vst [vmem:[#allocation52_spill] sm:$0xff] %v11845_v37  ;;  %v15583_v2 = vand.u32 4294901760, %v11823_v17  ;;  %v11856_v54 = vsub.f32 %v1892_v27, %v11829_v53  ;;  %v3879_v11 = vsub.f32 %v11801_v8, %v15582_v62  ;;  %v16117_v37 = vld [vmem:[#allocation131_spill] sm:$0xff]  ;;  %vm16129_vm1 = vcmp.lt.s32.totalorder %v16014_v46, 15 }
 0x4bc   :  { %3928 = vmatpush.msrb.mxu0 %v11605_v55  ;;  %3769 = vmatpush.msra.mxu1 %v11440_v43  ;;  %v3873_v20 = vsub.f32 %v11775_v38, %v16108_v51  ;;  %v3868_v43 = vand.u32 4294901760, %v3867_v58  ;;  %v11871_v27 = vsub.f32 %v1888_v23, %v11838_v14  ;;  %v11877_v51 = vsub.f32 %v1884_v4, %v11847_v33  ;;  %vm16131_vm9 = vmmov %vm16129_vm1 }
 0x4bd   :  { %3798 = vmatpush.msra.mxu2 %v11772_v16  ;;  %3863 = vmatpush.msra.mxu3 %v3862_v57  ;;  %v11866_v56 = vpop.permute.xlu0 %2270  ;;  %v3885_v62 = vsub.f32 %v11823_v17, %v15583_v2  ;;  %v3880_v57 = vand.u32 4294901760, %v3879_v11  ;;  %v16110_v4 = vand.u32 4294901760, %v11841_v18  ;;  %v16111_v11 = vand.u32 4294901760, %v11856_v54 }
 0x4be   :  { %2346 = vrot.lane.b32.xlu1 %v15989_v24, %s8832_s25  ;;  %2344 = vrot.lane.b32.xlu2 %v15964_v40, %s8832_s25  ;;  %16109 = vst [vmem:[#allocation39_spill] sm:$0xff] %v11866_v56  ;;  %v3874_v58 = vand.u32 4294901760, %v3873_v20  ;;  %v16114_v40 = vld [vmem:[#allocation43_spill] sm:$0xff]  ;;  %v16116_v24 = vand.u32 4294901760, %v11877_v51 }
 0x4bf   :  { %3771 = vmatmul.f32.vlgmr.msra.gmra.mxu1 %v11323_v45  ;;  %v11868_v13 = vpop.permute.xlu1 %2094  ;;  %3931 = vmatpush.msrb.mxu0 %v11642_v0  ;;  %v3891_v20 = vsub.f32 %v11841_v18, %v16110_v4  ;;  %v3886_v2 = vand.u32 4294901760, %v3885_v62 }
 0x4c0   :  { %3972 = vmatpush.msrb.mxu1 %v11478_v52  ;;  %3800 = vmatpush.msra.mxu2 %v11807_v31 }
 0x4c1   :  { %3869 = vmatpush.msra.mxu3 %v3868_v43  ;;  %3934 = vmatpush.msrb.mxu0 %v11650_v34  ;;  %v15586_v43 = vand.u32 4294901760, %v11871_v27  ;;  %v3892_v62 = vand.u32 4294901760, %v3891_v20  ;;  %v3909_v20 = vsub.f32 %v11877_v51, %v16116_v24  ;;  %v16121_v24 = vld [vmem:[#allocation47_spill] sm:$0xff] }
 0x4c2   :  { %3974 = vmatpush.msrb.mxu1 %v11480_v63  ;;  %3802 = vmatpush.msra.mxu2 %v11829_v53 }
 0x4c3   :  { %3875 = vmatpush.msra.mxu3 %v3874_v58  ;;  %3937 = vmatpush.msrb.mxu0 %v11681_v35  ;;  %v3897_v58 = vsub.f32 %v11856_v54, %v16111_v11  ;;  %v2281_v11 = vsel %vm15603_vm14, %v16114_v40, %v11166_v42  ;;  %v16119_v40 = vld [vmem:[#allocation101_spill] sm:$0xff] }
 0x4c4   :  { %3976 = vmatpush.msrb.mxu1 %v11506_v28  ;;  %3804 = vmatpush.msra.mxu2 %v11838_v14  ;;  %v2279_v42 = vsel %vm15603_vm14, %v16119_v40, %v11088_v9  ;;  %v3910_v9 = vand.u32 4294901760, %v3909_v20 }
 0x4c5   :  { %3881 = vmatpush.msra.mxu3 %v3880_v57  ;;  %3940 = vmatpush.msrb.mxu0 %v11716_v41  ;;  %v11901_v4 = vpop.permute.xlu0 %1840  ;;  %v3903_v57 = vsub.f32 %v11871_v27, %v15586_v43  ;;  %v3898_v43 = vand.u32 4294901760, %v3897_v58  ;;  %v2201_v58 = vsel %vm1284_vm13, %v16121_v24, %v11122_v39  ;;  %v16125_v24 = vand.u32 4294901760, %v11555_v12 }
 0x4c6   :  { %3978 = vmatpush.msrb.mxu1 %v11559_v21  ;;  %3806 = vmatpush.msra.mxu2 %v11847_v33  ;;  %16112 = vst [vmem:[#allocation94_spill] sm:$0xff] %v11901_v4  ;;  %v2229_v20 = vsel %vm16129_vm1, %v2201_v58, 0.0 }
 0x4c7   :  { %3887 = vmatpush.msra.mxu3 %v3886_v2  ;;  %3812 = vmatmul.f32.vlgmr.msra.gmra.mxu2 %v11037_v49  ;;  %v11908_v23 = vpop.permute.xlu1 %2014  ;;  %v16115_v2 = vand.u32 4294901760, %v11518_v25  ;;  %v16118_v49 = vld [vmem:[#allocation95_spill] sm:$0xff]  ;;  %v16120_v25 = vand.u32 4294901760, %v11521_v44  ;;  %v16123_v44 = vrot.slane %v11614_v19, 4 }
 0x4c8   :  { %3943 = vmatpush.msrb.mxu0 %v11751_v22  ;;  %16113 = vst [vmem:[#allocation64_spill] sm:$0xff] %v11908_v23  ;;  %3980 = vmatpush.msrb.mxu1 %v11593_v10  ;;  %v2280_v56 = vsel %vm15603_vm14, %v16118_v49, %v16117_v37  ;;  %v3904_v49 = vand.u32 4294901760, %v3903_v57  ;;  %v2301_v57 = vsel %vm89_vm4, %v2279_v42, 0.0  ;;  %v16130_v42 = vand.u32 4294901760, %v11605_v55  ;;  %v16144_v23 = vld [vmem:[#allocation67_spill] sm:$0xff] }
 0x4c9   :  { %4013 = vmatpush.msrb.mxu2 %v16115_v2  ;;  %3893 = vmatpush.msra.mxu3 %v3892_v62  ;;  %v2309_v62 = vsel %vm89_vm4, %v2281_v11, 0.0  ;;  %v16122_v2 = vld [vmem:[#allocation123_spill] sm:$0xff]  ;;  %v11949_v11 = vpop.permute.xlu2 %2342  ;;  %v16140_v37 = vand.u32 4294901760, %v11642_v0 }
 0x4ca   :  { %3946 = vmatpush.msrb.mxu0 %v11775_v38  ;;  %3982 = vmatpush.msrb.mxu1 %v11599_v61  ;;  %v2199_v40 = vsel %vm1284_vm13, %v16122_v2, %v11124_v26  ;;  %16126 = vst [vmem:[#allocation88_spill] sm:$0xff] %v11949_v11  ;;  %v16127_v2 = vld [vmem:[#allocation110_spill] sm:$0xff]  ;;  %v16137_v26 = vld [vmem:[#allocation91_spill] sm:$0xff] }
 0x4cb   :  { %4017 = vmatpush.msrb.mxu2 %v16120_v25  ;;  %3899 = vmatpush.msra.mxu3 %v3898_v43  ;;  %v2807_v25 = vsel %vm16124_vm8, %v2309_v62, %v16123_v44  ;;  %v2305_v43 = vsel %vm89_vm4, %v2280_v56, 0.0  ;;  %v2200_v19 = vsel %vm1284_vm13, %v16127_v2, %v11090_v3  ;;  %v16128_v62 = vld [vmem:[#allocation50_spill] sm:$0xff]  ;;  %v11971_v56 = vsel %vm16131_vm9, %v2199_v40, 0.0  ;;  %v16133_v44 = vld [vmem:[#allocation76_spill] sm:$0xff]  ;;  %vm16134_vm8 = vmmov %vm16129_vm1 }
 0x4cc   :  { %3949 = vmatpush.msrb.mxu0 %v11801_v8  ;;  %3984 = vmatpush.msrb.mxu1 %v11639_v29  ;;  %v2113_v12 = vsel %vm1105_vm12, %v11868_v13, %v16128_v62  ;;  %v11978_v2 = vand.u32 4294901760, %v2807_v25  ;;  %v11980_v58 = vand.u32 4294901760, %v2305_v43  ;;  %v11982_v62 = vand.u32 4294901760, %v2301_v57  ;;  %v16139_v3 = vld [vmem:[#allocation27_spill] sm:$0xff] }
 0x4cd   :  { %4021 = vmatpush.msrb.mxu2 %v16125_v24  ;;  %3905 = vmatpush.msra.mxu3 %v3904_v49  ;;  %v16132_v49 = vld [vmem:[#allocation143_spill] sm:$0xff]  ;;  %v2225_v55 = vsel %vm16134_vm8, %v2200_v19, 0.0  ;;  %v11990_v40 = vsel %vm79_vm11, %v2113_v12, 0.0  ;;  %v2036_v19 = vsel %vm999_vm10, %v11708_v59, %v16139_v3  ;;  %v16141_v12 = vld [vmem:[#allocation53_spill] sm:$0xff]  ;;  %v2676_v11 = vrot.slane %v11971_v56, 4 }
 0x4ce   :  { %3952 = vmatpush.msrb.mxu0 %v11823_v17  ;;  %3986 = vmatpush.msrb.mxu1 %v11668_v32  ;;  %v2278_v24 = vsel %vm15603_vm14, %v16133_v44, %v16132_v49  ;;  %16136 = vst [vmem:[#allocation72_spill] sm:$0xff] %v11990_v40  ;;  %v2692_v44 = vrot.slane %v2229_v20, 4  ;;  %v16138_v49 = vld [vmem:[#allocation73_spill] sm:$0xff]  ;;  %vm16148_vm9 = vcmp.ge.s32.totalorder %v16085_v50, 2  ;;  %vm16150_vm8 = vcmask 1043456  }
 0x4cf   :  { %4025 = vmatpush.msrb.mxu2 %v16130_v42  ;;  %3911 = vmatpush.msra.mxu3 %v3910_v9  ;;  %v16135_v42 = vld [vmem:[#allocation122_spill] sm:$0xff]  ;;  %v11992_v9 = vpop.permute.xlu0 %2092  ;;  %v2198_v39 = vsel %vm1284_vm13, %v16138_v49, %v16137_v26  ;;  %v2297_v49 = vsel %vm89_vm4, %v2278_v24, 0.0  ;;  %v15604_v24 = vrot.slane %v11990_v40, 4  ;;  %v16174_v40 = vld [vmem:[#allocation8_spill] sm:$0xff] }
 0x4d0   :  { %3955 = vmatpush.msrb.mxu0 %v11841_v18  ;;  %3913 = vmatmul.f32.vlgmr.msra.gmra.mxu3 %v16135_v42  ;;  %v2112_v20 = vsel %vm1105_vm12, %v11992_v9, %v16141_v12  ;;  %v12009_v4 = vpop.permute.xlu1 %2012  ;;  %v16143_v26 = vld [vmem:[#allocation146_spill] sm:$0xff]  ;;  %v16147_v12 = vand.u32 4294901760, %v11650_v34  ;;  %v2217_v45 = vsel %vm16129_vm1, %v2198_v39, 0.0  ;;  %vm16152_vm1 = vmmov %vm16150_vm8 }
 0x4d1   :  { %3988 = vmatpush.msrb.mxu1 %v11703_v1  ;;  %4029 = vmatpush.msrb.mxu2 %v16140_v37  ;;  %16142 = vst [vmem:[#allocation102_spill] sm:$0xff] %v12009_v4  ;;  %v2277_v3 = vsel %vm15603_vm14, %v16144_v23, %v16143_v26  ;;  %v2135_v0 = vsel %vm79_vm11, %v2112_v20, 0.0  ;;  %v16146_v37 = vld [vmem:[#allocation58_spill] sm:$0xff]  ;;  %v12031_v23 = vsub.f32 %v2807_v25, %v11978_v2  ;;  %v2684_v20 = vrot.slane %v2225_v55, 4  ;;  %vm16155_vm6 = vmmov %vm16152_vm1 }
 0x4d2   :  { %4080 = vmatpush.msrb.mxu3 %v11478_v52  ;;  %3958 = vmatpush.msrb.mxu0 %v11856_v54  ;;  %v16145_v52 = vld [vmem:[#allocation71_spill] sm:$0xff]  ;;  %v2589_v26 = vrot.slane %v2135_v0, 4  ;;  %v12034_v4 = vsub.f32 %v2305_v43, %v11980_v58  ;;  %v2293_v34 = vsel %vm89_vm4, %v2277_v3, 0.0  ;;  %v16149_v25 = vand.u32 4294901760, %v11681_v35 }
 0x4d3   :  { %3990 = vmatpush.msrb.mxu1 %v11723_v36  ;;  %v2197_v56 = vsel %vm1284_vm13, %v16146_v37, %v16145_v52  ;;  %4033 = vmatpush.msrb.mxu2 %v16147_v12  ;;  %v2071_v37 = vsel %vm16148_vm9, %v2036_v19, 0.0  ;;  %vm16154_vm9 = vmmov %vm16152_vm1  ;;  %v2685_v19 = vsel %vm16155_vm6, %v2676_v11, %v2684_v20  ;;  %vm16156_vm14 = vcmp.lt.s32.totalorder %v16014_v46, 15  ;;  %v16177_v52 = vld [vmem:[#allocation31_spill] sm:$0xff] }
 0x4d4   :  { %4082 = vmatpush.msrb.mxu3 %v11480_v63  ;;  %3961 = vmatpush.msrb.mxu0 %v11871_v27  ;;  %v12042_v63 = vand.u32 4294901760, %v2297_v49  ;;  %v12052_v39 = vsel %vm16150_vm8, %v2589_v26, %v15604_v24  ;;  %v12055_v43 = vsel %vm16152_vm1, %v2071_v37, %v2589_v26  ;;  %v2693_v55 = vsel %vm16154_vm9, %v2684_v20, %v2692_v44  ;;  %vm16161_vm6 = vmmov %vm16152_vm1  ;;  %v16171_v24 = vld [vmem:[#allocation77_spill] sm:$0xff] }
 0x4d5   :  { %3992 = vmatpush.msrb.mxu1 %v11748_v47  ;;  %4037 = vmatpush.msrb.mxu2 %v16149_v25  ;;  %16151 = vst [vmem:[#allocation118_spill] sm:$0xff] %v12052_v39  ;;  %v2213_v3 = vsel %vm16156_vm14, %v2197_v56, 0.0  ;;  %v12066_v35 = vsub.f32 %v2301_v57, %v11982_v62  ;;  %v2668_v0 = vrot.slane %v2217_v45, 4  ;;  %v16158_v26 = vand.u32 4294901760, %v11716_v41  ;;  %v16159_v45 = vld [vmem:[#allocation126_spill] sm:$0xff]  ;;  %vm16165_vm14 = vmmov %vm16152_vm1 }
 0x4d6   :  { %4084 = vmatpush.msrb.mxu3 %v11506_v28  ;;  %16153 = vst [vmem:[#allocation40_spill] sm:$0xff] %v12055_v43  ;;  %3964 = vmatpush.msrb.mxu0 %v11877_v51  ;;  %v12063_v28 = vpop.permute.xlu2 %1838  ;;  %v15606_v44 = vand.u32 4294901760, %v12031_v23  ;;  %v12072_v12 = vand.u32 4294901760, %v2293_v34  ;;  %v15605_v56 = vand.u32 4294901760, %v12034_v4  ;;  %v12078_v20 = vsub.f32 %v2297_v49, %v12042_v63  ;;  %vm16169_vm8 = vmmov %vm16152_vm1 }
 0x4d7   :  { %3994 = vmatpush.msrb.mxu1 %v11772_v16  ;;  %16157 = vst [vmem:[#allocation43_spill] sm:$0xff] %v12063_v28  ;;  %4041 = vmatpush.msrb.mxu2 %v16158_v26  ;;  %v2663_v57 = vrot.slane %v2213_v3, 4  ;;  %v16160_v41 = vand.u32 4294901760, %v11751_v22  ;;  %v12085_v37 = vand.u32 4294901760, %v2685_v19  ;;  %v2677_v25 = vsel %vm16161_vm6, %v2668_v0, %v2676_v11  ;;  %v16168_v3 = vld [vmem:[#allocation22_spill] sm:$0xff] }
 0x4d8   :  { %4086 = vmatpush.msrb.mxu3 %v11559_v21  ;;  %4117 = vmatpush.msra.mxu0 %v11978_v2  ;;  %v12083_v21 = vand.u32 4294901760, %v2693_v55  ;;  %v16162_v49 = vand.u32 4294901760, %v11775_v38  ;;  %v4160_v22 = vsub.f32 %v12031_v23, %v15606_v44  ;;  %v4166_v38 = vsub.f32 %v12034_v4, %v15605_v56 }
 0x4d9   :  { %3996 = vmatpush.msrb.mxu1 %v11807_v31  ;;  %3967 = vmatmul.f32.vlgmr.msrb.gmra.mxu0 %v16159_v45  ;;  %v2669_v11 = vsel %vm16165_vm14, %v2663_v57, %v2668_v0  ;;  %v12122_v56 = vand.u32 4294901760, %v2677_v25  ;;  %v16167_v0 = vld [vmem:[#allocation46_spill] sm:$0xff]  ;;  %v16173_v43 = vand.u32 4294901760, %v12066_v35  ;;  %vm16179_vm1 = vcmp.ge.s32.totalorder %v16014_v46, 1  ;;  %vm16193_vm14 = vmmov %vm16169_vm8 }
 0x4da   :  { %4045 = vmatpush.msrb.mxu2 %v16160_v41  ;;  %4088 = vmatpush.msrb.mxu3 %v11593_v10  ;;  %v12097_v26 = vpop.permute.xlu0 %2264  ;;  %v12099_v41 = vpop.permute.xlu1 %2262  ;;  %v12102_v10 = vsub.f32 %v2293_v34, %v12072_v12  ;;  %v12115_v34 = vsub.f32 %v2693_v55, %v12083_v21  ;;  %v12125_v44 = vand.u32 4294901760, %v16167_v0  ;;  %v12143_v45 = vand.u32 4294901760, %v2669_v11  ;;  %vm16182_vm9 = vmmov %vm16179_vm1 }
 0x4db   :  { %4119 = vmatpush.msra.mxu0 %v11980_v58  ;;  %3998 = vmatpush.msrb.mxu1 %v11829_v53  ;;  %16163 = vst [vmem:[#allocation95_spill] sm:$0xff] %v12097_v26  ;;  %v4172_v39 = vsub.f32 %v12066_v35, %v16173_v43  ;;  %v16178_v43 = vand.u32 4294901760, %v12078_v20  ;;  %vm127_vm6 = vcmp.ge.s32.totalorder %v16085_v50, 4 }
 0x4dc   :  { %4049 = vmatpush.msrb.mxu2 %v16162_v49  ;;  %16164 = vst [vmem:[#allocation101_spill] sm:$0xff] %v12099_v41  ;;  %4090 = vmatpush.msrb.mxu3 %v11599_v61  ;;  %v16166_v49 = vand.u32 4294901760, %v11801_v8  ;;  %v12118_v61 = vsub.f32 %v2685_v19, %v12085_v37  ;;  %v2803_v8 = vsel %vm16169_vm8, %v16168_v3, %v2663_v57  ;;  %v16172_v19 = vand.u32 4294901760, %v11823_v17 }
 0x4dd   :  { %4121 = vmatpush.msra.mxu0 %v11982_v62  ;;  %4000 = vmatpush.msrb.mxu1 %v11838_v14  ;;  %v4167_v57 = vand.u32 4294901760, %v4166_v38 }
 0x4de   :  { %4053 = vmatpush.msrb.mxu2 %v16166_v49  ;;  %4092 = vmatpush.msrb.mxu3 %v11639_v29  ;;  %v16170_v49 = vld [vmem:[#allocation152_spill] sm:$0xff]  ;;  %v4161_v29 = vand.u32 4294901760, %v4160_v22  ;;  %v12141_v3 = vpop.permute.xlu2 %2268  ;;  %v16181_v22 = vld [vmem:[#allocation62_spill] sm:$0xff] }
 0x4df   :  { %4123 = vmatpush.msra.mxu0 %v12042_v63  ;;  %v2125_v55 = vsel %vm1105_vm12, %v16171_v24, %v16170_v49  ;;  %4002 = vmatpush.msrb.mxu1 %v11847_v33  ;;  %16175 = vst [vmem:[#allocation47_spill] sm:$0xff] %v12141_v3  ;;  %v16176_v49 = vld [vmem:[#allocation144_spill] sm:$0xff]  ;;  %v16180_v24 = vand.u32 4294901760, %v11841_v18  ;;  %v12170_v38 = vand.u32 4294901760, %v16181_v22 }
 0x4e0   :  { %4057 = vmatpush.msrb.mxu2 %v16172_v19  ;;  %4094 = vmatpush.msrb.mxu3 %v11668_v32  ;;  %v2126_v17 = vsel %vm1105_vm12, %v16177_v52, %v16176_v49  ;;  %v4178_v32 = vsub.f32 %v12078_v20, %v16178_v43  ;;  %v12158_v19 = vsel %vm16179_vm1, %v2125_v55, 0.0  ;;  %v12163_v52 = vand.u32 4294901760, %v2803_v8 }
 0x4e1   :  { %4006 = vmatmul.f32.vlgmr.msrb.gmra.mxu1 %v16174_v40  ;;  %4125 = vmatpush.msra.mxu0 %v12072_v12  ;;  %v4173_v43 = vand.u32 4294901760, %v4172_v39  ;;  %v12174_v55 = vsub.f32 %v16167_v0, %v12125_v44  ;;  %v2149_v18 = vsel %vm16182_vm9, %v2126_v17, 0.0  ;;  %v16185_v39 = vld [vmem:[#allocation25_spill] sm:$0xff]  ;;  %v12188_v40 = vsub.f32 %v2669_v11, %v12143_v45 }
 0x4e2   :  { %4162 = vmatpush.msra.mxu1 %v4161_v29  ;;  %4061 = vmatpush.msrb.mxu2 %v16180_v24  ;;  %v12166_v29 = vsub.f32 %v2677_v25, %v12122_v56  ;;  %v16184_v25 = vand.u32 4294901760, %v12102_v10  ;;  %v12185_v24 = vand.u32 4294901760, %v16185_v39  ;;  %v2608_v0 = vrot.slane %v12158_v19, 4 }
 0x4e3   :  { %4096 = vmatpush.msrb.mxu3 %v11703_v1  ;;  %4127 = vmatpush.msra.mxu0 %v12083_v21  ;;  %v16183_v1 = vand.u32 4294901760, %v11856_v54  ;;  %v4179_v17 = vand.u32 4294901760, %v4178_v32  ;;  %v16186_v54 = vand.u32 4294901760, %v12115_v34  ;;  %v16188_v11 = vand.u32 4294901760, %v11871_v27  ;;  %v16191_v27 = vld [vmem:[#allocation29_spill] sm:$0xff] }
 0x4e4   :  { %4168 = vmatpush.msra.mxu1 %v4167_v57  ;;  %v4184_v57 = vsub.f32 %v12102_v10, %v16184_v25  ;;  %v12198_v49 = vpop.permute.xlu0 %1925  ;;  %v12200_v41 = vpop.permute.xlu1 %1923  ;;  %v12207_v32 = vsub.f32 %v2803_v8, %v12163_v52  ;;  %v2616_v3 = vrot.slane %v2149_v18, 4  ;;  %v15614_v18 = vand.u32 4294901760, %v12188_v40 }
 0x4e5   :  { %4065 = vmatpush.msrb.mxu2 %v16183_v1  ;;  %4098 = vmatpush.msrb.mxu3 %v11723_v36  ;;  %v4190_v36 = vsub.f32 %v12115_v34, %v16186_v54  ;;  %v16187_v1 = vand.u32 4294901760, %v12118_v61 }
 0x4e6   :  { %4129 = vmatpush.msra.mxu0 %v12085_v37  ;;  %4174 = vmatpush.msra.mxu1 %v4173_v43  ;;  %v16189_v43 = vld [vmem:[#allocation56_spill] sm:$0xff] }
 0x4e7   :  { %v4196_v25 = vsub.f32 %v12118_v61, %v16187_v1  ;;  %4069 = vmatpush.msrb.mxu2 %v16188_v11  ;;  %4100 = vmatpush.msrb.mxu3 %v11748_v47  ;;  %v1945_v54 = vsel %vm1943_vm5, %v12198_v49, %v16189_v43  ;;  %v16190_v1 = vld [vmem:[#allocation51_spill] sm:$0xff]  ;;  %v1859_v47 = vsel %vm1854_vm2, %v11805_v60, %v16191_v27  ;;  %v16192_v11 = vand.u32 4294901760, %v11877_v51 }
 0x4e8   :  { %v1944_v26 = vsel %vm1943_vm5, %v12200_v41, %v16190_v1  ;;  %4131 = vmatpush.msra.mxu0 %v12122_v56  ;;  %4180 = vmatpush.msra.mxu1 %v4179_v17  ;;  %v1979_v8 = vsel %vm111_vm0, %v1945_v54, 0.0  ;;  %v4185_v43 = vand.u32 4294901760, %v4184_v57  ;;  %v2617_v27 = vsel %vm16193_vm14, %v2608_v0, %v2616_v3  ;;  %v12241_v57 = vpop.permute.xlu2 %2188 }
 0x4e9   :  { %4073 = vmatpush.msrb.mxu2 %v16192_v11  ;;  %4102 = vmatpush.msrb.mxu3 %v11772_v16  ;;  %v2520_v1 = vrot.slane %v1979_v8, 4  ;;  %v1975_v19 = vsel %vm111_vm0, %v1944_v26, 0.0  ;;  %v4191_v17 = vand.u32 4294901760, %v4190_v36  ;;  %v12236_v51 = vsub.f32 %v16181_v22, %v12170_v38  ;;  %vm16196_vm0 = vmmov %vm16169_vm8  ;;  %v16203_v8 = vld [vmem:[#allocation149_spill] sm:$0xff] }
 0x4ea   :  { %4075 = vmatmul.f32.vlgmr.msrb.gmra.mxu2 %v16135_v42  ;;  %4133 = vmatpush.msra.mxu0 %v12143_v45  ;;  %v2513_v54 = vrot.slane %v1975_v19, 4  ;;  %v1902_v16 = vsel %vm127_vm6, %v1859_v47, 0.0  ;;  %v16194_v26 = vand.u32 4294901760, %v12166_v29  ;;  %v16195_v36 = vrot.slane %v11755_v15, 4  ;;  %v16198_v19 = vld [vmem:[#allocation7_spill] sm:$0xff]  ;;  %vm16199_vm8 = vmmov %vm16196_vm0 }
 0x4eb   :  { %4186 = vmatpush.msra.mxu1 %v4185_v43  ;;  %4260 = vmatpush.msra.mxu2 %v12031_v23  ;;  %v12255_v47 = vand.u32 4294901760, %v16198_v19  ;;  %vm16201_vm1 = vmmov %vm16196_vm0  ;;  %v16204_v15 = vrot.slane %v16203_v8, 4  ;;  %v12273_v11 = vsub.f32 %v16185_v39, %v12185_v24  ;;  %vm16208_vm14 = vcmp.lt.s32.totalorder %v16085_v50, 15 }
 0x4ec   :  { %v4202_v3 = vsub.f32 %v12166_v29, %v16194_v26  ;;  %v12250_v22 = vsel %vm16196_vm0, %v2520_v1, %v16195_v36  ;;  %4104 = vmatpush.msrb.mxu3 %v11807_v31  ;;  %4135 = vmatpush.msra.mxu0 %v12163_v52  ;;  %v12259_v43 = vsel %vm16199_vm8, %v2513_v54, %v2520_v1  ;;  %vm16205_vm9 = vmmov %vm16196_vm0  ;;  %v4197_v31 = vand.u32 4294901760, %v4196_v25  ;;  %v16206_v1 = vld [vmem:[#allocation79_spill] sm:$0xff] }
 0x4ed   :  { %16197 = vst [vmem:[#allocation123_spill] sm:$0xff] %v12250_v22  ;;  %v12262_v26 = vsel %vm16201_vm1, %v1902_v16, %v2513_v54  ;;  %v2609_v36 = vsel %vm16205_vm9, %v16204_v15, %v2608_v0  ;;  %4192 = vmatpush.msra.mxu1 %v4191_v17  ;;  %4263 = vmatpush.msra.mxu2 %v12034_v4  ;;  %v12281_v0 = vand.u32 4294901760, %v2617_v27  ;;  %v16207_v17 = vand.u32 4294901760, %v12207_v32  ;;  %vm16212_vm0 = vmmov %vm16208_vm14 }
 0x4ee   :  { %16200 = vst [vmem:[#allocation110_spill] sm:$0xff] %v12259_v43  ;;  %v4208_v22 = vsub.f32 %v12188_v40, %v15614_v18  ;;  %4106 = vmatpush.msrb.mxu3 %v11829_v53  ;;  %v2210_v54 = vsel %vm1284_vm13, %v12241_v57, %v16206_v1  ;;  %4137 = vmatpush.msra.mxu0 %v12125_v44  ;;  %v4203_v25 = vand.u32 4294901760, %v4202_v3  ;;  %v15615_v16 = vand.u32 4294901760, %v12236_v51  ;;  %vm16214_vm8 = vmmov %vm16201_vm1 }
 0x4ef   :  { %16202 = vst [vmem:[#allocation50_spill] sm:$0xff] %v12262_v26  ;;  %4198 = vmatpush.msra.mxu1 %v4197_v31  ;;  %4266 = vmatpush.msra.mxu2 %v12066_v35  ;;  %v4214_v39 = vsub.f32 %v12207_v32, %v16207_v17  ;;  %v12290_v53 = vand.u32 4294901760, %v2609_v36  ;;  %v12294_v8 = vsub.f32 %v16198_v19, %v12255_v47  ;;  %v12298_v15 = vsel %vm16208_vm14, %v2210_v54, 0.0  ;;  %v12305_v17 = vpop.permute.xlu0 %2190  ;;  %v16210_v54 = vld [vmem:[#allocation42_spill] sm:$0xff]  ;;  %vm16227_vm9 = vmmov %vm16212_vm0 }
 0x4f0   :  { %4108 = vmatpush.msrb.mxu3 %v11838_v14  ;;  %4139 = vmatpush.msra.mxu0 %v12170_v38  ;;  %v4209_v3 = vand.u32 4294901760, %v4208_v22  ;;  %v16209_v31 = vand.u32 4294901760, %v12174_v55  ;;  %v12310_v19 = vsub.f32 %v2617_v27, %v12281_v0  ;;  %v2211_v22 = vsel %vm1284_vm13, %v12305_v17, %v16210_v54  ;;  %vm16231_vm14 = vmmov %vm16214_vm8 }
 0x4f1   :  { %4204 = vmatpush.msra.mxu1 %v4203_v25  ;;  %4269 = vmatpush.msra.mxu2 %v12078_v20  ;;  %v12316_v25 = vpop.permute.xlu1 %2266  ;;  %v2231_v18 = vsel %vm16212_vm0, %v2211_v22, 0.0  ;;  %v2688_v27 = vrot.slane %v12298_v15, 4  ;;  %v12329_v1 = vsub.f32 %v2609_v36, %v12290_v53  ;;  %v12342_v36 = vpop.permute.xlu2 %1834  ;;  %vm121_vm1 = vcmp.lt.s32.totalorder %v16014_v46, 12  ;;  %vm16233_vm0 = vmmov %vm16214_vm8 }
 0x4f2   :  { %v4220_v14 = vsub.f32 %v12174_v55, %v16209_v31  ;;  %4110 = vmatpush.msrb.mxu3 %v11847_v33  ;;  %4141 = vmatpush.msra.mxu0 %v12185_v24  ;;  %16211 = vst [vmem:[#allocation76_spill] sm:$0xff] %v12316_v25  ;;  %v4215_v31 = vand.u32 4294901760, %v4214_v39  ;;  %v4226_v33 = vsub.f32 %v12236_v51, %v15615_v16  ;;  %v16213_v16 = vand.u32 4294901760, %v12273_v11 }
 0x4f3   :  { %4112 = vmatmul.f32.vlgmr.msrb.gmra.mxu3 %v16135_v42  ;;  %4210 = vmatpush.msra.mxu1 %v4209_v3  ;;  %v2696_v3 = vrot.slane %v2231_v18, 4  ;;  %v15618_v15 = vand.u32 4294901760, %v12310_v19  ;;  %16216 = vst [vmem:[#allocation27_spill] sm:$0xff] %v12342_v36  ;;  %v16224_v42 = vld [vmem:[#allocation70_spill] sm:$0xff] }
 0x4f4   :  { %4272 = vmatpush.msra.mxu2 %v12102_v10  ;;  %4313 = vmatpush.msra.mxu3 %v11978_v2  ;;  %v4221_v39 = vand.u32 4294901760, %v4220_v14  ;;  %v4232_v22 = vsub.f32 %v12273_v11, %v16213_v16  ;;  %v4227_v18 = vand.u32 4294901760, %v4226_v33  ;;  %v16217_v16 = vand.u32 4294901760, %v12294_v8 }
 0x4f5   :  { %4143 = vmatpush.msra.mxu0 %v12255_v47  ;;  %4216 = vmatpush.msra.mxu1 %v4215_v31  ;;  %v12339_v54 = vsel %vm16214_vm8, %v2688_v27, %v2696_v3  ;;  %v4244_v33 = vsub.f32 %v12310_v19, %v15618_v15  ;;  %v16220_v31 = vand.u32 4294901760, %v12031_v23  ;;  %v16223_v15 = vand.u32 4294901760, %v12329_v1 }
 0x4f6   :  { %4275 = vmatpush.msra.mxu2 %v12115_v34  ;;  %4315 = vmatpush.msra.mxu3 %v11980_v58  ;;  %16215 = vst [vmem:[#allocation73_spill] sm:$0xff] %v12339_v54  ;;  %v4238_v14 = vsub.f32 %v12294_v8, %v16217_v16  ;;  %v4233_v3 = vand.u32 4294901760, %v4232_v22  ;;  %v16219_v54 = vld [vmem:[#allocation45_spill] sm:$0xff]  ;;  %v16226_v23 = vand.u32 4294901760, %v12034_v4  ;;  %v16230_v4 = vand.u32 4294901760, %v12066_v35 }
 0x4f7   :  { %4145 = vmatpush.msra.mxu0 %v12281_v0  ;;  %4222 = vmatpush.msra.mxu1 %v4221_v39  ;;  %v16218_v39 = vld [vmem:[#allocation140_spill] sm:$0xff]  ;;  %v4250_v43 = vsub.f32 %v12329_v1, %v16223_v15  ;;  %v4245_v15 = vand.u32 4294901760, %v4244_v33 }
 0x4f8   :  { %4278 = vmatpush.msra.mxu2 %v12118_v61  ;;  %4317 = vmatpush.msra.mxu3 %v11982_v62  ;;  %v2451_v16 = vsel %vm2441_vm7, %v16219_v54, %v16218_v39  ;;  %v4239_v26 = vand.u32 4294901760, %v4238_v14 }
 0x4f9   :  { %4147 = vmatpush.msra.mxu0 %v12290_v53  ;;  %4228 = vmatpush.msra.mxu1 %v4227_v18  ;;  %v16222_v18 = vld [vmem:[#allocation138_spill] sm:$0xff]  ;;  %v2487_v14 = vsel %vm121_vm1, %v2451_v16, 0.0  ;;  %v4251_v16 = vand.u32 4294901760, %v4250_v43 }
 0x4fa   :  { %4281 = vmatpush.msra.mxu2 %v12166_v29  ;;  %4319 = vmatpush.msra.mxu3 %v12042_v63  ;;  %v12363_v22 = vpop.permute.xlu0 %2186  ;;  %v12374_v39 = vpop.permute.xlu1 %1836  ;;  %v2835_v33 = vsel %vm16233_vm0, %v2487_v14, 0  ;;  %v16240_v14 = vld [vmem:[#allocation81_spill] sm:$0xff] }
 0x4fb   :  { %4354 = vmatpush.msrb.mxu0 %v16220_v31  ;;  %4234 = vmatpush.msra.mxu1 %v4233_v3  ;;  %16221 = vst [vmem:[#allocation53_spill] sm:$0xff] %v12363_v22  ;;  %v2209_v54 = vsel %vm1284_vm13, %v12363_v22, %v16224_v42  ;;  %v16228_v3 = vld [vmem:[#allocation145_spill] sm:$0xff] }
 0x4fc   :  { %4153 = vmatmul.f32.vlgmr.msra.gmra.mxu0 %v16222_v18  ;;  %4284 = vmatpush.msra.mxu2 %v12188_v40  ;;  %16225 = vst [vmem:[#allocation67_spill] sm:$0xff] %v12374_v39  ;;  %v12381_v31 = vsel %vm16227_vm9, %v2209_v54, 0.0  ;;  %v16229_v18 = vld [vmem:[#allocation21_spill] sm:$0xff] }
 0x4fd   :  { %4321 = vmatpush.msra.mxu3 %v12072_v12  ;;  %4358 = vmatpush.msrb.mxu0 %v16226_v23  ;;  %v15622_v42 = vrot.slane %v12381_v31, 4  ;;  %v2450_v22 = vsel %vm2441_vm7, %v16229_v18, %v16228_v3  ;;  %v16234_v18 = vand.u32 4294901760, %v12078_v20  ;;  %v16235_v54 = vld [vmem:[#allocation33_spill] sm:$0xff]  ;;  %v16239_v20 = vld [vmem:[#allocation114_spill] sm:$0xff] }
 0x4fe   :  { %4240 = vmatpush.msra.mxu1 %v4239_v26  ;;  %4287 = vmatpush.msra.mxu2 %v12207_v32  ;;  %v2483_v35 = vsel %vm121_vm1, %v2450_v22, 0.0  ;;  %v16236_v23 = vld [vmem:[#allocation129_spill] sm:$0xff]  ;;  %v12419_v22 = vand.u32 4294901760, %v2835_v33 }
 0x4ff   :  { %4323 = vmatpush.msra.mxu3 %v12083_v21  ;;  %4362 = vmatpush.msrb.mxu0 %v16230_v4  ;;  %v12398_v26 = vsel %vm16231_vm14, %v15622_v42, %v2688_v27  ;;  %v2449_v43 = vsel %vm2441_vm7, %v16236_v23, %v16235_v54  ;;  %v16238_v4 = vld [vmem:[#allocation35_spill] sm:$0xff]  ;;  %v12414_v42 = vpop.permute.xlu2 %2182  ;;  %vm16262_vm14 = vmmov %vm16233_vm0 }
 0x500   :  { %4246 = vmatpush.msra.mxu1 %v4245_v15  ;;  %4290 = vmatpush.msra.mxu2 %v12174_v55  ;;  %16232 = vst [vmem:[#allocation58_spill] sm:$0xff] %v12398_v26  ;;  %v16237_v15 = vld [vmem:[#allocation36_spill] sm:$0xff]  ;;  %v16242_v26 = vand.u32 4294901760, %v12102_v10  ;;  %v16244_v10 = vand.u32 4294901760, %v12115_v34 }
 0x501   :  { %4325 = vmatpush.msra.mxu3 %v12085_v37  ;;  %4366 = vmatpush.msrb.mxu0 %v16234_v18  ;;  %v2362_v27 = vsel %vm2352_vm15, %v16238_v4, %v16237_v15  ;;  %v16241_v18 = vld [vmem:[#allocation65_spill] sm:$0xff]  ;;  %v12428_v4 = vand.u32 4294901760, %v2483_v35  ;;  %v16243_v15 = vld [vmem:[#allocation127_spill] sm:$0xff] }
 0x502   :  { %4252 = vmatpush.msra.mxu1 %v4251_v16  ;;  %4293 = vmatpush.msra.mxu2 %v12236_v51  ;;  %v2448_v23 = vsel %vm2441_vm7, %v16241_v18, %v16240_v14  ;;  %v2479_v16 = vsel %vm121_vm1, %v2449_v43, 0.0  ;;  %v2398_v54 = vsel %vm105_vm3, %v2362_v27, 0.0  ;;  %v2207_v3 = vsel %vm1284_vm13, %v12414_v42, %v16243_v15  ;;  %v16245_v43 = vld [vmem:[#allocation68_spill] sm:$0xff]  ;;  %vm16246_vm3 = vmmov %vm16227_vm9  ;;  %v16368_v14 = vld [vmem:[#allocation53_spill] sm:$0xff] }
 0x503   :  { %4327 = vmatpush.msra.mxu3 %v12122_v56  ;;  %4254 = vmatmul.f32.vlgmr.msra.gmra.mxu1 %v16239_v20  ;;  %v2447_v27 = vsel %vm2441_vm7, %v16245_v43, %v11626_v30  ;;  %v12454_v15 = vsub.f32 %v2835_v33, %v12419_v22  ;;  %v12456_v34 = vand.u32 4294901760, %v2479_v16  ;;  %v12460_v18 = vsel %vm16246_vm3, %v2207_v3, 0.0  ;;  %v16249_v33 = vld [vmem:[#allocation120_spill] sm:$0xff]  ;;  %vm16251_vm8 = vmmov %vm16246_vm3 }
 0x504   :  { %4370 = vmatpush.msrb.mxu0 %v16242_v26  ;;  %4421 = vmatpush.msrb.mxu1 %v11978_v2  ;;  %v12443_v2 = vpop.permute.xlu1 %2184  ;;  %v2475_v26 = vsel %vm121_vm1, %v2448_v23, 0.0  ;;  %16247 = vst [vmem:[#allocation46_spill] sm:$0xff] %v12460_v18  ;;  %v16248_v23 = vand.u32 4294901760, %v12118_v61  ;;  %v2471_v61 = vsel %vm121_vm1, %v2447_v27, 0.0  ;;  %v16250_v3 = vand.u32 4294901760, %v12166_v29  ;;  %v16252_v27 = vld [vmem:[#allocation57_spill] sm:$0xff]  ;;  %vm16254_vm1 = vmmov %vm16233_vm0 }
 0x505   :  { %4296 = vmatpush.msra.mxu2 %v12273_v11  ;;  %4329 = vmatpush.msra.mxu3 %v12143_v45  ;;  %v12474_v43 = vand.u32 4294901760, %v2475_v26  ;;  %v12488_v46 = vsub.f32 %v2479_v16, %v12456_v34  ;;  %v16253_v29 = vrot.slane %v16252_v27, 4  ;;  %v16257_v16 = vrot.slane %v12460_v18, 4  ;;  %vm16258_vm9 = vmmov %vm16233_vm0 }
 0x506   :  { %4374 = vmatpush.msrb.mxu0 %v16244_v10  ;;  %4423 = vmatpush.msrb.mxu1 %v11980_v58  ;;  %v2768_v58 = vrot.slane %v2398_v54, 4  ;;  %v12466_v10 = vsub.f32 %v2483_v35, %v12428_v4  ;;  %v2208_v54 = vsel %vm1284_vm13, %v12443_v2, %v16249_v33  ;;  %v12496_v35 = vand.u32 4294901760, %v2471_v61  ;;  %v12501_v33 = vpop.permute.xlu0 %2098 }
 0x507   :  { %4299 = vmatpush.msra.mxu2 %v12294_v8  ;;  %4331 = vmatpush.msra.mxu3 %v12163_v52 }
 0x508   :  { %4378 = vmatpush.msrb.mxu0 %v16248_v23  ;;  %4425 = vmatpush.msrb.mxu1 %v11982_v62  ;;  %v2219_v62 = vsel %vm16251_vm8, %v2208_v54, 0.0  ;;  %v16256_v54 = vand.u32 4294901760, %v12188_v40  ;;  %v16260_v40 = vand.u32 4294901760, %v12207_v32 }
 0x509   :  { %4302 = vmatpush.msra.mxu2 %v12310_v19  ;;  %4333 = vmatpush.msra.mxu3 %v12125_v44  ;;  %v2672_v23 = vrot.slane %v2219_v62, 4  ;;  %v15625_v62 = vand.u32 4294901760, %v12466_v10 }
 0x50a   :  { %4382 = vmatpush.msrb.mxu0 %v16250_v3  ;;  %4427 = vmatpush.msrb.mxu1 %v12042_v63  ;;  %v2769_v3 = vsel %vm16254_vm1, %v16253_v29, %v2768_v58  ;;  %v16255_v63 = vld [vmem:[#allocation121_spill] sm:$0xff]  ;;  %v12509_v58 = vsub.f32 %v2475_v26, %v12474_v43  ;;  %v16264_v26 = vand.u32 4294901760, %v12174_v55 }
 0x50b   :  { %4305 = vmatpush.msra.mxu2 %v12329_v1  ;;  %4335 = vmatpush.msra.mxu3 %v12170_v38  ;;  %v12506_v27 = vsel %vm16258_vm9, %v16257_v16, %v2672_v23  ;;  %v16265_v16 = vand.u32 4294901760, %v12454_v15  ;;  %v4507_v55 = vsub.f32 %v12466_v10, %v15625_v62  ;;  %vm107_vm9 = vcmp.lt.s32.totalorder %v16085_v50, 13  ;;  %v16363_v50 = vld [vmem:[#allocation113_spill] sm:$0xff] }
 0x50c   :  { %4308 = vmatmul.f32.vlgmr.msra.gmra.mxu2 %v16255_v63  ;;  %4386 = vmatpush.msrb.mxu0 %v16256_v54  ;;  %16259 = vst [vmem:[#allocation22_spill] sm:$0xff] %v12506_v27  ;;  %v12521_v54 = vand.u32 4294901760, %v2769_v3  ;;  %v16270_v27 = vld [vmem:[#allocation32_spill] sm:$0xff] }
 0x50d   :  { %4429 = vmatpush.msrb.mxu1 %v12072_v12  ;;  %4465 = vmatpush.msrb.mxu2 %v12419_v22  ;;  %v16261_v12 = vrot.slane %v12381_v31, 4  ;;  %v4501_v32 = vsub.f32 %v12454_v15, %v16265_v16 }
 0x50e   :  { %4337 = vmatpush.msra.mxu3 %v12185_v24  ;;  %4390 = vmatpush.msrb.mxu0 %v16260_v40  ;;  %v16266_v40 = vld [vmem:[#allocation125_spill] sm:$0xff]  ;;  %v12561_v62 = vsub.f32 %v2769_v3, %v12521_v54  ;;  %v4508_v3 = vand.u32 4294901760, %v4507_v55 }
 0x50f   :  { %v12517_v29 = vsel %vm16262_vm14, %v2672_v23, %v16261_v12  ;;  %4431 = vmatpush.msrb.mxu1 %v12083_v21  ;;  %4467 = vmatpush.msrb.mxu2 %v12428_v4  ;;  %v2115_v31 = vsel %vm1105_vm12, %v12501_v33, %v16266_v40  ;;  %v12534_v23 = vpop.permute.xlu1 %2100  ;;  %v12537_v12 = vsub.f32 %v2471_v61, %v12496_v35  ;;  %v16268_v40 = vand.u32 4294901760, %v12236_v51  ;;  %vm16298_vm14 = vmmov %vm16233_vm0 }
 0x510   :  { %16263 = vst [vmem:[#allocation77_spill] sm:$0xff] %v12517_v29  ;;  %4339 = vmatpush.msra.mxu3 %v12255_v47  ;;  %4394 = vmatpush.msrb.mxu0 %v16264_v26  ;;  %v16267_v26 = vld [vmem:[#allocation151_spill] sm:$0xff]  ;;  %v12558_v61 = vand.u32 4294901760, %v11678_v5  ;;  %v2116_v51 = vsel %vm1105_vm12, %v12534_v23, %v16270_v27  ;;  %v16273_v29 = vld [vmem:[#allocation134_spill] sm:$0xff] }
 0x511   :  { %4433 = vmatpush.msrb.mxu1 %v12085_v37  ;;  %4469 = vmatpush.msrb.mxu2 %v12456_v34  ;;  %v12545_v16 = vand.u32 4294901760, %v16267_v26  ;;  %v12555_v37 = vsel %vm79_vm11, %v2115_v31, 0.0  ;;  %v16272_v31 = vand.u32 4294901760, %v12488_v46  ;;  %v4524_v18 = vand.u32 4294901760, %v12537_v12 }
 0x512   :  { %4341 = vmatpush.msra.mxu3 %v12281_v0  ;;  %4398 = vmatpush.msrb.mxu0 %v16268_v40  ;;  %16269 = vst [vmem:[#allocation31_spill] sm:$0xff] %v12555_v37  ;;  %v4502_v40 = vand.u32 4294901760, %v4501_v32  ;;  %v2151_v27 = vsel %vm79_vm11, %v2116_v51, 0.0  ;;  %v16274_v32 = vand.u32 4294901760, %v12509_v58  ;;  %v16276_v51 = vand.u32 4294901760, %v12294_v8 }
 0x513   :  { %4435 = vmatpush.msrb.mxu1 %v12122_v56  ;;  %4471 = vmatpush.msrb.mxu2 %v12474_v43  ;;  %v16271_v56 = vand.u32 4294901760, %v12273_v11  ;;  %v4513_v21 = vsub.f32 %v12488_v46, %v16272_v31  ;;  %v12580_v63 = vsub.f32 %v16267_v26, %v12545_v16  ;;  %v15629_v11 = vrot.slane %v12555_v37, 4  ;;  %v12590_v31 = vpop.permute.xlu2 %2815 }
 0x514   :  { %4343 = vmatpush.msra.mxu3 %v12290_v53  ;;  %v2620_v55 = vrot.slane %v2151_v27, 4  ;;  %16275 = vst [vmem:[#allocation62_spill] sm:$0xff] %v12590_v31  ;;  %v15631_v26 = vand.u32 4294901760, %v12561_v62  ;;  %v16278_v8 = vand.u32 4294901760, %v12310_v19 }
 0x515   :  { %4402 = vmatpush.msrb.mxu0 %v16271_v56  ;;  %4347 = vmatmul.f32.vlgmr.msra.gmra.mxu3 %v16273_v29  ;;  %v4519_v56 = vsub.f32 %v12509_v58, %v16274_v32  ;;  %v4514_v32 = vand.u32 4294901760, %v4513_v21 }
 0x516   :  { %4437 = vmatpush.msrb.mxu1 %v12143_v45  ;;  %4473 = vmatpush.msrb.mxu2 %v12496_v35  ;;  %v12588_v45 = vand.u32 4294901760, %v11673_v48  ;;  %v12604_v27 = vsel %vm16233_vm0, %v15629_v11, %v2620_v55  ;;  %v16279_v55 = vand.u32 4294901760, %v12329_v1 }
 0x517   :  { %4503 = vmatpush.msrb.mxu3 %v4502_v40  ;;  %4406 = vmatpush.msrb.mxu0 %v16276_v51  ;;  %v12598_v40 = vsub.f32 %v11678_v5, %v12558_v61  ;;  %16277 = vst [vmem:[#allocation25_spill] sm:$0xff] %v12604_v27  ;;  %v15630_v5 = vand.u32 4294901760, %v12580_v63  ;;  %v4520_v21 = vand.u32 4294901760, %v4519_v56  ;;  %v16280_v51 = vld [vmem:[#allocation61_spill] sm:$0xff]  ;;  %v16313_v27 = vld [vmem:[#allocation92_spill] sm:$0xff] }
 0x518   :  { %4439 = vmatpush.msrb.mxu1 %v12163_v52  ;;  %4475 = vmatpush.msrb.mxu2 %v12521_v54  ;;  %v4525_v52 = vsub.f32 %v12537_v12, %v4524_v18  ;;  %v2118_v56 = vsel %vm1105_vm12, %v16280_v51, %v11868_v13  ;;  %v16284_v13 = vld [vmem:[#allocation83_spill] sm:$0xff] }
 0x519   :  { %4509 = vmatpush.msrb.mxu3 %v4508_v3  ;;  %4410 = vmatpush.msrb.mxu0 %v16278_v8  ;;  %v12616_v3 = vsub.f32 %v11673_v48, %v12588_v45  ;;  %v15632_v19 = vand.u32 4294901760, %v12598_v40  ;;  %v16283_v8 = vld [vmem:[#allocation124_spill] sm:$0xff] }
 0x51a   :  { %4441 = vmatpush.msrb.mxu1 %v12125_v44  ;;  %4477 = vmatpush.msrb.mxu2 %v12545_v16  ;;  %v4531_v44 = vsub.f32 %v12561_v62, %v15631_v26  ;;  %v4526_v48 = vand.u32 4294901760, %v4525_v52  ;;  %v16285_v52 = vld [vmem:[#allocation19_spill] sm:$0xff] }
 0x51b   :  { %4515 = vmatpush.msrb.mxu3 %v4514_v32  ;;  %4414 = vmatpush.msrb.mxu0 %v16279_v55  ;;  %v12635_v1 = vpop.permute.xlu1 %2437  ;;  %v16282_v32 = vld [vmem:[#allocation153_spill] sm:$0xff]  ;;  %vm16286_vm3 = vcmp.ge.s32.totalorder %v16285_v52, 1  ;;  %vm16299_vm0 = vcmp.ge.s32.totalorder %v16285_v52, 2 }
 0x51c   :  { %4443 = vmatpush.msrb.mxu1 %v12170_v38  ;;  %4479 = vmatpush.msrb.mxu2 %v12558_v61  ;;  %v4537_v38 = vsub.f32 %v12580_v63, %v15630_v5  ;;  %16281 = vst [vmem:[#allocation56_spill] sm:$0xff] %v12635_v1  ;;  %v2119_v55 = vsel %vm1105_vm12, %v16283_v8, %v16282_v32  ;;  %v2138_v51 = vsel %vm16286_vm3, %v2118_v56, 0.0  ;;  %v4532_v11 = vand.u32 4294901760, %v4531_v44  ;;  %vm16288_vm8 = vmmov %vm16286_vm3  ;;  %v16291_v44 = vld [vmem:[#allocation154_spill] sm:$0xff] }
 0x51d   :  { %4521 = vmatpush.msrb.mxu3 %v4520_v21  ;;  %4566 = vmatpush.msra.mxu0 %v12454_v15  ;;  %v2117_v21 = vsel %vm1105_vm12, %v16284_v13, %v11992_v9  ;;  %v4543_v8 = vsub.f32 %v12598_v40, %v15632_v19  ;;  %v16287_v5 = vand.u32 4294901760, %v12454_v15  ;;  %v12659_v9 = vsel %vm16288_vm8, %v2119_v55, 0.0  ;;  %vm16289_vm1 = vmmov %vm16286_vm3  ;;  %v16295_v19 = vld [vmem:[#allocation37_spill] sm:$0xff] }
 0x51e   :  { %4445 = vmatpush.msrb.mxu1 %v12185_v24  ;;  %4416 = vmatmul.f32.vlgmr.msrb.gmra.mxu0 %v16239_v20  ;;  %v15634_v24 = vand.u32 4294901760, %v12616_v3  ;;  %v2134_v56 = vsel %vm16289_vm1, %v2117_v21, 0.0  ;;  %v4538_v13 = vand.u32 4294901760, %v4537_v38  ;;  %v2594_v26 = vrot.slane %v2138_v51, 4  ;;  %v16294_v21 = vld [vmem:[#allocation133_spill] sm:$0xff]  ;;  %vm16304_vm8 = vmmov %vm16298_vm14 }
 0x51f   :  { %4481 = vmatpush.msrb.mxu2 %v12588_v45  ;;  %4527 = vmatpush.msrb.mxu3 %v4526_v48  ;;  %v12663_v48 = vpop.permute.xlu2 %2350  ;;  %v16292_v15 = vand.u32 4294901760, %v12466_v10  ;;  %v15633_v55 = vrot.slane %v12659_v9, 4  ;;  %v2588_v51 = vrot.slane %v2134_v56, 4  ;;  %vm110_vm3 = vcmp.ge.s32.totalorder %v16285_v52, 3  ;;  %vm16306_vm1 = vmmov %vm16299_vm0 }
 0x520   :  { %4569 = vmatpush.msra.mxu0 %v12466_v10  ;;  %4447 = vmatpush.msrb.mxu1 %v12255_v47  ;;  %16290 = vst [vmem:[#allocation51_spill] sm:$0xff] %v12663_v48  ;;  %v4549_v47 = vsub.f32 %v12616_v3, %v15634_v24  ;;  %v2372_v10 = vsel %vm2352_vm15, %v12663_v48, %v16295_v19 }
 0x521   :  { %4639 = vmatpush.msra.mxu2 %v16287_v5  ;;  %4533 = vmatpush.msrb.mxu3 %v4532_v11  ;;  %v4544_v5 = vand.u32 4294901760, %v4543_v8  ;;  %v16293_v11 = vld [vmem:[#allocation59_spill] sm:$0xff]  ;;  %v2603_v56 = vsel %vm16298_vm14, %v2594_v26, %v15633_v55  ;;  %v2400_v19 = vsel %vm107_vm9, %v2372_v10, 0.0  ;;  %v16308_v55 = vld [vmem:[#allocation90_spill] sm:$0xff]  ;;  %vm16312_vm14 = vmmov %vm16304_vm8 }
 0x522   :  { %4487 = vmatmul.f32.vlgmr.msrb.gmra.mxu2 %v16291_v44  ;;  %4572 = vmatpush.msra.mxu0 %v12488_v46  ;;  %v2040_v38 = vsel %vm999_vm10, %v16294_v21, %v16293_v11  ;;  %v16303_v21 = vld [vmem:[#allocation112_spill] sm:$0xff]  ;;  %v2772_v24 = vrot.slane %v2400_v19, 4 }
 0x523   :  { %4643 = vmatpush.msra.mxu2 %v16292_v15  ;;  %4449 = vmatpush.msrb.mxu1 %v12281_v0  ;;  %v16296_v15 = vand.u32 4294901760, %v12488_v46  ;;  %v16297_v0 = vld [vmem:[#allocation38_spill] sm:$0xff]  ;;  %v4550_v46 = vand.u32 4294901760, %v4549_v47  ;;  %v16337_v44 = vld [vmem:[#allocation132_spill] sm:$0xff] }
 0x524   :  { %4539 = vmatpush.msrb.mxu3 %v4538_v13  ;;  %4575 = vmatpush.msra.mxu0 %v12509_v58  ;;  %v2041_v8 = vsel %vm999_vm10, %v16297_v0, %v11708_v59  ;;  %v16300_v59 = vand.u32 4294901760, %v12509_v58  ;;  %v16307_v0 = vld [vmem:[#allocation41_spill] sm:$0xff] }
 0x525   :  { %4647 = vmatpush.msra.mxu2 %v16296_v15  ;;  %4451 = vmatpush.msrb.mxu1 %v12290_v53  ;;  %v2066_v53 = vsel %vm16299_vm0, %v2040_v38, 0.0  ;;  %v2595_v15 = vsel %vm16304_vm8, %v2588_v51, %v2594_v26  ;;  %v16305_v38 = vld [vmem:[#allocation87_spill] sm:$0xff]  ;;  %v2070_v10 = vsel %vm16306_vm1, %v2041_v8, 0.0  ;;  %v12724_v26 = vand.u32 4294901760, %v2603_v56  ;;  %vm16316_vm0 = vmmov %vm16304_vm8 }
 0x526   :  { %4545 = vmatpush.msrb.mxu3 %v4544_v5  ;;  %4453 = vmatmul.f32.vlgmr.msrb.gmra.mxu1 %v16239_v20  ;;  %v12703_v13 = vpop.permute.xlu1 %2348  ;;  %v16302_v5 = vld [vmem:[#allocation60_spill] sm:$0xff]  ;;  %vm16318_vm8 = vmmov %vm16306_vm1 }
 0x527   :  { %4578 = vmatpush.msra.mxu0 %v12537_v12  ;;  %4605 = vmatpush.msra.mxu1 %v12419_v22  ;;  %16301 = vst [vmem:[#allocation29_spill] sm:$0xff] %v12703_v13  ;;  %v1952_v47 = vsel %vm1943_vm5, %v16303_v21, %v16302_v5  ;;  %v2371_v58 = vsel %vm2352_vm15, %v12703_v13, %v16305_v38  ;;  %v16310_v5 = vld [vmem:[#allocation84_spill] sm:$0xff]  ;;  %v16315_v12 = vand.u32 4294901760, %v12561_v62  ;;  %v16372_v13 = vld [vmem:[#allocation146_spill] sm:$0xff] }
 0x528   :  { %4651 = vmatpush.msra.mxu2 %v16300_v59  ;;  %4551 = vmatpush.msrb.mxu3 %v4550_v46  ;;  %v1953_v59 = vsel %vm1943_vm5, %v16307_v0, %v11803_v6  ;;  %v12728_v46 = vsel %vm107_vm9, %v2371_v58, 0.0  ;;  %v16311_v21 = vld [vmem:[#allocation24_spill] sm:$0xff]  ;;  %v2800_v38 = vsel %vm16312_vm14, %v2070_v10, %v2588_v51  ;;  %v12739_v0 = vand.u32 4294901760, %v2066_v53  ;;  %v16314_v58 = vld [vmem:[#allocation137_spill] sm:$0xff]  ;;  %vm16330_vm14 = vmmov %vm16316_vm0 }
 0x529   :  { %4581 = vmatpush.msra.mxu0 %v12561_v62  ;;  %4553 = vmatmul.f32.vlgmr.msrb.gmra.mxu3 %v16308_v55  ;;  %16309 = vst [vmem:[#allocation7_spill] sm:$0xff] %v12728_v46  ;;  %v2039_v8 = vsel %vm999_vm10, %v16311_v21, %v16310_v5  ;;  %v15637_v6 = vrot.slane %v12728_v46, 4  ;;  %v1951_v37 = vsel %vm1943_vm5, %v16314_v58, %v16313_v27  ;;  %v12747_v51 = vand.u32 4294901760, %v2595_v15  ;;  %v16319_v10 = vld [vmem:[#allocation64_spill] sm:$0xff]  ;;  %v16320_v21 = vld [vmem:[#allocation93_spill] sm:$0xff] }
 0x52a   :  { %4607 = vmatpush.msra.mxu1 %v12428_v4  ;;  %4655 = vmatpush.msra.mxu2 %v4524_v18  ;;  %v1986_v18 = vsel %vm110_vm3, %v1952_v47, 0.0  ;;  %v2062_v19 = vsel %vm16318_vm8, %v2039_v8, 0.0  ;;  %v2038_v47 = vsel %vm999_vm10, %v16320_v21, %v16319_v10  ;;  %v12770_v62 = vsub.f32 %v2603_v56, %v12724_v26  ;;  %v16323_v21 = vld [vmem:[#allocation102_spill] sm:$0xff]  ;;  %vm16332_vm8 = vmmov %vm16316_vm0 }
 0x52b   :  { %4685 = vmatpush.msra.mxu3 %v12419_v22  ;;  %4584 = vmatpush.msra.mxu0 %v12580_v63  ;;  %v1990_v22 = vsel %vm110_vm3, %v1953_v59, 0.0  ;;  %v12759_v27 = vsel %vm16316_vm0, %v15637_v6, %v2772_v24  ;;  %v1982_v24 = vsel %vm110_vm3, %v1951_v37, 0.0  ;;  %v16321_v59 = vld [vmem:[#allocation116_spill] sm:$0xff]  ;;  %v16322_v58 = vand.u32 4294901760, %v12580_v63  ;;  %v16324_v6 = vld [vmem:[#allocation97_spill] sm:$0xff] }
 0x52c   :  { %4609 = vmatpush.msra.mxu1 %v12456_v34  ;;  %4659 = vmatpush.msra.mxu2 %v16315_v12  ;;  %16317 = vst [vmem:[#allocation149_spill] sm:$0xff] %v12759_v27  ;;  %v1950_v8 = vsel %vm1943_vm5, %v16321_v59, %v12198_v49  ;;  %v12784_v12 = vsub.f32 %v2066_v53, %v12739_v0  ;;  %v2542_v56 = vrot.slane %v1990_v22, 4  ;;  %v2534_v63 = vrot.slane %v1986_v18, 4  ;;  %v16325_v53 = vld [vmem:[#allocation115_spill] sm:$0xff] }
 0x52d   :  { %4687 = vmatpush.msra.mxu3 %v12428_v4  ;;  %4587 = vmatpush.msra.mxu0 %v12598_v40  ;;  %v12772_v4 = vand.u32 4294901760, %v2800_v38  ;;  %v2037_v27 = vsel %vm999_vm10, %v16324_v6, %v16323_v21  ;;  %v12793_v49 = vsub.f32 %v2595_v15, %v12747_v51  ;;  %v12795_v37 = vand.u32 4294901760, %v2062_v19  ;;  %v16336_v21 = vld [vmem:[#allocation94_spill] sm:$0xff] }
 0x52e   :  { %4611 = vmatpush.msra.mxu1 %v12474_v43  ;;  %4663 = vmatpush.msra.mxu2 %v16322_v58  ;;  %v1949_v22 = vsel %vm1943_vm5, %v16325_v53, %v12200_v41  ;;  %v16326_v6 = vand.u32 4294901760, %v12598_v40  ;;  %v2526_v59 = vrot.slane %v1982_v24, 4  ;;  %v1978_v15 = vsel %vm110_vm3, %v1950_v8, 0.0  ;;  %vm16327_vm5 = vmmov %vm16306_vm1  ;;  %v16328_v40 = vld [vmem:[#allocation150_spill] sm:$0xff] }
 0x52f   :  { %4689 = vmatpush.msra.mxu3 %v12456_v34  ;;  %4590 = vmatpush.msra.mxu0 %v12616_v3  ;;  %v2058_v34 = vsel %vm16306_vm1, %v2038_v47, 0.0  ;;  %v12811_v18 = vsub.f32 %v2800_v38, %v12772_v4  ;;  %v15639_v47 = vand.u32 4294901760, %v12770_v62  ;;  %v2054_v41 = vsel %vm16327_vm5, %v2037_v27, 0.0  ;;  %vm16338_vm1 = vmmov %vm16316_vm0 }
 0x530   :  { %4613 = vmatpush.msra.mxu1 %v12496_v35  ;;  %4667 = vmatpush.msra.mxu2 %v16326_v6  ;;  %v2543_v24 = vsel %vm16330_vm14, %v2534_v63, %v2542_v56  ;;  %v12820_v8 = vand.u32 4294901760, %v2058_v34  ;;  %v1974_v58 = vsel %vm110_vm3, %v1949_v22, 0.0  ;;  %v15641_v38 = vand.u32 4294901760, %v12793_v49  ;;  %vm16341_vm14 = vmmov %vm16316_vm0 }
 0x531   :  { %4691 = vmatpush.msra.mxu3 %v12474_v43  ;;  %4708 = vmatpush.msrb.mxu0 %v12724_v26  ;;  %v16329_v43 = vand.u32 4294901760, %v12616_v3  ;;  %v12828_v27 = vsub.f32 %v2062_v19, %v12795_v37  ;;  %v2518_v53 = vrot.slane %v1978_v15, 4  ;;  %v15642_v3 = vand.u32 4294901760, %v12784_v12  ;;  %v16333_v19 = vld [vmem:[#allocation88_spill] sm:$0xff] }
 0x532   :  { %4615 = vmatpush.msra.mxu1 %v12521_v54  ;;  %4593 = vmatmul.f32.vlgmr.msra.gmra.mxu0 %v16328_v40  ;;  %v2535_v56 = vsel %vm16316_vm0, %v2526_v59, %v2534_v63  ;;  %v12834_v6 = vand.u32 4294901760, %v2054_v41  ;;  %v2512_v22 = vrot.slane %v1974_v58, 4  ;;  %v12844_v15 = vand.u32 4294901760, %v2543_v24  ;;  %v16331_v63 = vld [vmem:[#allocation106_spill] sm:$0xff] }
 0x533   :  { %4671 = vmatpush.msra.mxu2 %v16329_v43  ;;  %4693 = vmatpush.msra.mxu3 %v12496_v35  ;;  %v4751_v35 = vsub.f32 %v12770_v62, %v15639_v47  ;;  %vm126_vm3 = vcmp.ge.s32.totalorder %v16285_v52, 4  ;;  %v12852_v43 = vsub.f32 %v2058_v34, %v12820_v8  ;;  %v4757_v58 = vsub.f32 %v12793_v49, %v15641_v38 }
 0x534   :  { %4710 = vmatpush.msrb.mxu0 %v12747_v51  ;;  %4617 = vmatpush.msra.mxu1 %v12545_v16  ;;  %v2527_v47 = vsel %vm16332_vm8, %v2518_v53, %v2526_v59  ;;  %v12865_v34 = vand.u32 4294901760, %v2535_v56  ;;  %v12873_v38 = vsub.f32 %v2054_v41, %v12834_v6  ;;  %v16335_v40 = vand.u32 4294901760, %v12811_v18 }
 0x535   :  { %4851 = vmatpush.msrb.mxu2 %v12770_v62  ;;  %4695 = vmatpush.msra.mxu3 %v12521_v54  ;;  %v1864_v54 = vsel %vm1854_vm2, %v16331_v63, %v11805_v60  ;;  %v4769_v60 = vsub.f32 %v12784_v12, %v15642_v3  ;;  %v4752_v59 = vand.u32 4294901760, %v4751_v35  ;;  %v2519_v41 = vsel %vm16338_vm1, %v2512_v22, %v2518_v53  ;;  %v16340_v35 = vld [vmem:[#allocation139_spill] sm:$0xff] }
 0x536   :  { %4673 = vmatmul.f32.vlgmr.msra.gmra.mxu2 %v16308_v55  ;;  %4712 = vmatpush.msrb.mxu0 %v12772_v4  ;;  %v4763_v3 = vsub.f32 %v12811_v18, %v16335_v40  ;;  %v1901_v63 = vsel %vm126_vm3, %v1864_v54, 0.0  ;;  %v1862_v40 = vsel %vm1854_vm2, %v16340_v35, %v12063_v28  ;;  %v4758_v54 = vand.u32 4294901760, %v4757_v58 }
 0x537   :  { %4854 = vmatpush.msrb.mxu2 %v12793_v49  ;;  %4619 = vmatpush.msra.mxu1 %v12558_v61  ;;  %v12897_v10 = vand.u32 4294901760, %v2527_v47  ;;  %vm106_vm5 = vcmp.lt.s32.totalorder %v16285_v52, 13  ;;  %v2796_v53 = vsel %vm16341_vm14, %v1901_v63, %v2512_v22  ;;  %v12913_v28 = vand.u32 4294901760, %v2519_v41 }
 0x538   :  { %4697 = vmatpush.msra.mxu3 %v12545_v16  ;;  %4714 = vmatpush.msrb.mxu0 %v12739_v0  ;;  %v16334_v16 = vld [vmem:[#allocation142_spill] sm:$0xff]  ;;  %v4770_v22 = vand.u32 4294901760, %v4769_v60  ;;  %vm16345_vm0 = vcmp.lt.s32.totalorder %v9101_v7, 126  ;;  %v1893_v63 = vsel %vm126_vm3, %v1862_v40, 0.0  ;;  %vm16350_vm8 = vcmp.lt.s32.totalorder %v16285_v52, 14 }
 0x539   :  { %4857 = vmatpush.msrb.mxu2 %v12811_v18  ;;  %v2353_v46 = vsel %vm2352_vm15, %v16334_v16, %v16333_v19  ;;  %4621 = vmatpush.msra.mxu1 %v12588_v45  ;;  %v1863_v16 = vsel %vm1854_vm2, %v16337_v44, %v16336_v21  ;;  %v16339_v19 = vld [vmem:[#allocation107_spill] sm:$0xff]  ;;  %v4764_v44 = vand.u32 4294901760, %v4763_v3  ;;  %v16346_v3 = vand.u32 4294901760, %v12852_v43  ;;  %vm16356_vm14 = vmmov %vm16345_vm0 }
 0x53a   :  { %4699 = vmatpush.msra.mxu3 %v12558_v61  ;;  %4625 = vmatmul.f32.vlgmr.msra.gmra.mxu1 %v16339_v19  ;;  %v12890_v61 = vsub.f32 %v2543_v24, %v12844_v15  ;;  %v16342_v24 = vand.u32 4294901760, %v12828_v27  ;;  %v1897_v58 = vsel %vm126_vm3, %v1863_v16, 0.0  ;;  %v12930_v21 = vand.u32 4294901760, %v2796_v53 }
 0x53b   :  { %4716 = vmatpush.msrb.mxu0 %v12795_v37  ;;  %4753 = vmatpush.msrb.mxu1 %v4752_v59  ;;  %v12908_v59 = vsub.f32 %v2535_v56, %v12865_v34  ;;  %v16343_v56 = vld [vmem:[#allocation39_spill] sm:$0xff]  ;;  %v12934_v60 = vsel %vm106_vm5, %v2353_v46, 0.0  ;;  %v16349_v46 = vand.u32 4294901760, %v12873_v38  ;;  %v12951_v40 = vsub.f32 %v2519_v41, %v12913_v28 }
 0x53c   :  { %4860 = vmatpush.msrb.mxu2 %v12784_v12  ;;  %4701 = vmatpush.msra.mxu3 %v12588_v45  ;;  %v4775_v35 = vsub.f32 %v12828_v27, %v16342_v24  ;;  %v16344_v24 = vld [vmem:[#allocation141_spill] sm:$0xff]  ;;  %v12928_v45 = vsub.f32 %v2527_v47, %v12897_v10  ;;  %16347 = vst [vmem:[#allocation79_spill] sm:$0xff] %v12934_v60  ;;  %v12971_v5 = vand.u32 4294901760, %v1893_v63 }
 0x53d   :  { %4718 = vmatpush.msrb.mxu0 %v12820_v8  ;;  %4703 = vmatmul.f32.vlgmr.msra.gmra.mxu3 %v16308_v55  ;;  %v2276_v16 = vsel %vm16345_vm0, %v16344_v24, %v16343_v56  ;;  %v12938_v24 = vand.u32 4294901760, %v1897_v58  ;;  %v4787_v56 = vsub.f32 %v12873_v38, %v16349_v46  ;;  %v12967_v19 = vsub.f32 %v2796_v53, %v12930_v21 }
 0x53e   :  { %4759 = vmatpush.msrb.mxu1 %v4758_v54  ;;  %4863 = vmatpush.msrb.mxu2 %v12828_v27  ;;  %v4781_v54 = vsub.f32 %v12852_v43, %v16346_v3  ;;  %v16348_v3 = vld [vmem:[#allocation111_spill] sm:$0xff]  ;;  %v15647_v55 = vrot.slane %v12934_v60, 4  ;;  %v16353_v53 = vand.u32 4294901760, %v12908_v59  ;;  %v2274_v32 = vsel %vm16345_vm0, %v16363_v50, %v12316_v25  ;;  %v16369_v50 = vld [vmem:[#allocation136_spill] sm:$0xff] }
 0x53f   :  { %4904 = vmatpush.msrb.mxu3 %v12724_v26  ;;  %4720 = vmatpush.msrb.mxu0 %v12834_v6  ;;  %v1861_v47 = vsel %vm1854_vm2, %v16348_v3, %v12374_v39  ;;  %v16351_v3 = vand.u32 4294901760, %v12890_v61  ;;  %v16352_v39 = vld [vmem:[#allocation119_spill] sm:$0xff]  ;;  %v16362_v60 = vand.u32 4294901760, %v12967_v19  ;;  %v2194_v25 = vsel %vm1284_vm13, %v16369_v50, %v16368_v14 }
 0x540   :  { %4765 = vmatpush.msrb.mxu1 %v4764_v44  ;;  %4866 = vmatpush.msrb.mxu2 %v12852_v43  ;;  %v4776_v44 = vand.u32 4294901760, %v4775_v35  ;;  %v2310_v35 = vsel %vm16350_vm8, %v2276_v16, 0.0  ;;  %v1860_v46 = vsel %vm1854_vm2, %v16352_v39, %v12342_v36  ;;  %v4782_v41 = vand.u32 4294901760, %v4781_v54  ;;  %v16354_v16 = vld [vmem:[#allocation47_spill] sm:$0xff] }
 0x541   :  { %4906 = vmatpush.msrb.mxu3 %v12747_v51  ;;  %4722 = vmatpush.msrb.mxu0 %v12844_v15  ;;  %v1889_v11 = vsel %vm126_vm3, %v1861_v47, 0.0  ;;  %v4788_v39 = vand.u32 4294901760, %v4787_v56  ;;  %v4799_v54 = vsub.f32 %v12908_v59, %v16353_v53  ;;  %v16355_v47 = vld [vmem:[#allocation131_spill] sm:$0xff]  ;;  %v1885_v29 = vsel %vm126_vm3, %v1860_v46, 0.0  ;;  %vm16358_vm3 = vmmov %vm16350_vm8 }
 0x542   :  { %4771 = vmatpush.msrb.mxu1 %v4770_v22  ;;  %4869 = vmatpush.msrb.mxu2 %v12873_v38  ;;  %v4793_v22 = vsub.f32 %v12890_v61, %v16351_v3  ;;  %v12974_v3 = vsub.f32 %v1897_v58, %v12938_v24  ;;  %v2808_v58 = vsel %vm16338_vm1, %v2310_v35, %v15647_v55  ;;  %v12996_v56 = vand.u32 4294901760, %v1889_v11  ;;  %vm16367_vm8 = vmmov %vm16345_vm0 }
 0x543   :  { %4908 = vmatpush.msrb.mxu3 %v12772_v4  ;;  %4724 = vmatpush.msrb.mxu0 %v12865_v34  ;;  %v2275_v36 = vsel %vm16356_vm14, %v16355_v47, %v16354_v16  ;;  %v16357_v35 = vand.u32 4294901760, %v12928_v45  ;;  %v13004_v47 = vsub.f32 %v1893_v63, %v12971_v5  ;;  %v13017_v55 = vand.u32 4294901760, %v2808_v58  ;;  %v16360_v16 = vld [vmem:[#allocation108_spill] sm:$0xff]  ;;  %vm16373_vm14 = vmmov %vm16345_vm0 }
 0x544   :  { %4777 = vmatpush.msrb.mxu1 %v4776_v44  ;;  %4872 = vmatpush.msrb.mxu2 %v12890_v61  ;;  %v2306_v44 = vsel %vm16358_vm3, %v2275_v36, 0.0  ;;  %v2195_v46 = vsel %vm1284_vm13, %v16360_v16, %v12241_v57  ;;  %v16361_v36 = vld [vmem:[#allocation135_spill] sm:$0xff]  ;;  %v4817_v57 = vsub.f32 %v12967_v19, %v16362_v60  ;;  %vm16370_vm1 = vcmp.lt.s32.totalorder %v16285_v52, 15 }
 0x545   :  { %4910 = vmatpush.msrb.mxu3 %v12739_v0  ;;  %4726 = vmatpush.msrb.mxu0 %v12897_v10  ;;  %v4805_v53 = vsub.f32 %v12928_v45, %v16357_v35  ;;  %v16359_v35 = vand.u32 4294901760, %v12951_v40  ;;  %v13036_v16 = vand.u32 4294901760, %v2306_v44  ;;  %vm16374_vm3 = vmmov %vm16370_vm1  ;;  %vm16375_vm0 = vcmp.lt.s32.totalorder %v16285_v52, 14 }
 0x546   :  { %4783 = vmatpush.msrb.mxu1 %v4782_v41  ;;  %4875 = vmatpush.msrb.mxu2 %v12908_v59  ;;  %v4794_v41 = vand.u32 4294901760, %v4793_v22  ;;  %v4800_v22 = vand.u32 4294901760, %v4799_v54  ;;  %v2196_v54 = vsel %vm1284_vm13, %v16361_v36, %v12305_v17  ;;  %v16364_v17 = vand.u32 4294901760, %v12974_v3  ;;  %v16366_v36 = vld [vmem:[#allocation143_spill] sm:$0xff] }
 0x547   :  { %4912 = vmatpush.msrb.mxu3 %v12795_v37  ;;  %4728 = vmatpush.msrb.mxu0 %v12913_v28  ;;  %v4811_v63 = vsub.f32 %v12951_v40, %v16359_v35  ;;  %v4806_v35 = vand.u32 4294901760, %v4805_v53  ;;  %v16371_v53 = vld [vmem:[#allocation101_spill] sm:$0xff]  ;;  %v2302_v14 = vsel %vm16375_vm0, %v2274_v32, 0.0  ;;  %v2222_v32 = vsel %vm16370_vm1, %v2194_v25, 0.0 }
 0x548   :  { %4789 = vmatpush.msrb.mxu1 %v4788_v39  ;;  %4878 = vmatpush.msrb.mxu2 %v12928_v45  ;;  %v13011_v39 = vand.u32 4294901760, %v1885_v29 }
 0x549   :  { %4914 = vmatpush.msrb.mxu3 %v12820_v8  ;;  %4730 = vmatpush.msrb.mxu0 %v12930_v21  ;;  %v4812_v48 = vand.u32 4294901760, %v4811_v63  ;;  %v16376_v63 = vld [vmem:[#allocation91_spill] sm:$0xff] }
 0x54a   :  { %4795 = vmatpush.msrb.mxu1 %v4794_v41  ;;  %4881 = vmatpush.msrb.mxu2 %v12951_v40  ;;  %v13030_v41 = vsub.f32 %v1889_v11, %v12996_v56  ;;  %v4823_v11 = vsub.f32 %v12974_v3, %v16364_v17  ;;  %v13053_v30 = vsub.f32 %v1885_v29, %v13011_v39  ;;  %v2226_v17 = vsel %vm16370_vm1, %v2195_v46, 0.0 }
 0x54b   :  { %4916 = vmatpush.msrb.mxu3 %v12834_v6  ;;  %4732 = vmatpush.msrb.mxu0 %v12938_v24  ;;  %v2230_v29 = vsel %vm16374_vm3, %v2196_v54, 0.0  ;;  %v2193_v46 = vsel %vm1284_vm13, %v16376_v63, %v12443_v2  ;;  %v13079_v54 = vsub.f32 %v2808_v58, %v13017_v55  ;;  %v16378_v2 = vand.u32 4294901760, %v13004_v47  ;;  %vm16380_vm3 = vmmov %vm16370_vm1 }
 0x54c   :  { %4801 = vmatpush.msrb.mxu1 %v4800_v22  ;;  %4884 = vmatpush.msrb.mxu2 %v12967_v19  ;;  %v16365_v22 = vld [vmem:[#allocation95_spill] sm:$0xff]  ;;  %v2694_v63 = vrot.slane %v2230_v29, 4  ;;  %v4824_v58 = vand.u32 4294901760, %v4823_v11 }
 0x54d   :  { %4918 = vmatpush.msrb.mxu3 %v12844_v15  ;;  %v2273_v60 = vsel %vm16367_vm8, %v16366_v36, %v16365_v22  ;;  %4734 = vmatpush.msrb.mxu0 %v12971_v5  ;;  %v2272_v36 = vsel %vm16373_vm14, %v16372_v13, %v16371_v53  ;;  %vm16377_vm8 = vmmov %vm16375_vm0  ;;  %v2686_v13 = vrot.slane %v2226_v17, 4  ;;  %v13097_v53 = vand.u32 4294901760, %v2302_v14  ;;  %v16381_v29 = vld [vmem:[#allocation71_spill] sm:$0xff] }
 0x54e   :  { %4807 = vmatpush.msrb.mxu1 %v4806_v35  ;;  %4887 = vmatpush.msrb.mxu2 %v12974_v3  ;;  %v4818_v35 = vand.u32 4294901760, %v4817_v57  ;;  %v2298_v50 = vsel %vm16377_vm8, %v2273_v60, 0.0  ;;  %v13091_v57 = vsub.f32 %v2306_v44, %v13036_v16  ;;  %vm16379_vm14 = vmmov %vm16375_vm0  ;;  %v2218_v22 = vsel %vm16380_vm3, %v2193_v46, 0.0 }
 0x54f   :  { %4920 = vmatpush.msrb.mxu3 %v12865_v34  ;;  %4736 = vmatpush.msrb.mxu0 %v12996_v56  ;;  %v2294_v25 = vsel %vm16379_vm14, %v2272_v36, 0.0  ;;  %v13103_v44 = vand.u32 4294901760, %v2298_v50  ;;  %v2192_v11 = vsel %vm1284_vm13, %v16381_v29, %v12414_v42  ;;  %v2678_v17 = vrot.slane %v2222_v32, 4  ;;  %vm16387_vm8 = vmmov %vm16370_vm1 }
 0x550   :  { %4813 = vmatpush.msrb.mxu1 %v4812_v48  ;;  %4890 = vmatpush.msrb.mxu2 %v13004_v47  ;;  %v4829_v48 = vsub.f32 %v13004_v47, %v16378_v2  ;;  %v16383_v36 = vand.u32 4294901760, %v13030_v41  ;;  %v16384_v46 = vand.u32 4294901760, %v12770_v62  ;;  %v13117_v20 = vand.u32 4294901760, %v2294_v25 }
 0x551   :  { %4922 = vmatpush.msrb.mxu3 %v12897_v10  ;;  %4738 = vmatpush.msrb.mxu0 %v13011_v39  ;;  %vm16385_vm0 = vcmask 1043456   ;;  %v2670_v32 = vrot.slane %v2218_v22, 4  ;;  %v2214_v62 = vsel %vm16387_vm8, %v2192_v11, 0.0  ;;  %v13133_v22 = vsub.f32 %v2298_v50, %v13103_v44 }
 0x552   :  { %4819 = vmatpush.msrb.mxu1 %v4818_v35  ;;  %4893 = vmatpush.msrb.mxu2 %v13030_v41  ;;  %v16382_v35 = vld [vmem:[#allocation75_spill] sm:$0xff]  ;;  %v4835_v2 = vsub.f32 %v13030_v41, %v16383_v36  ;;  %v4830_v60 = vand.u32 4294901760, %v4829_v48  ;;  %v2695_v42 = vsel %vm16385_vm0, %v2686_v13, %v2694_v63  ;;  %v13128_v48 = vsub.f32 %v2302_v14, %v13097_v53  ;;  %vm16389_vm1 = vmmov %vm16385_vm0 }
 0x553   :  { %4924 = vmatpush.msrb.mxu3 %v12913_v28  ;;  %4744 = vmatmul.f32.vlgmr.msrb.gmra.mxu0 %v16382_v35  ;;  %v16388_v36 = vand.u32 4294901760, %v12793_v49  ;;  %v2687_v63 = vsel %vm16389_vm1, %v2678_v17, %v2686_v13  ;;  %v16391_v11 = vand.u32 4294901760, %v12811_v18  ;;  %v16392_v49 = vand.u32 4294901760, %v13079_v54  ;;  %vm16393_vm14 = vmmov %vm16385_vm0 }
 0x554   :  { %4825 = vmatpush.msrb.mxu1 %v4824_v58  ;;  %4945 = vmatpush.msra.mxu0 %v16384_v46  ;;  %v16386_v58 = vand.u32 4294901760, %v13053_v30  ;;  %v16390_v46 = vld [vmem:[#allocation126_spill] sm:$0xff]  ;;  %v13145_v50 = vand.u32 4294901760, %v2695_v42  ;;  %v13148_v13 = vsub.f32 %v2294_v25, %v13117_v20  ;;  %v16394_v18 = vand.u32 4294901760, %v12784_v12  ;;  %vm16395_vm3 = vmmov %vm16385_vm0 }
 0x555   :  { %4896 = vmatpush.msrb.mxu2 %v13053_v30  ;;  %4926 = vmatpush.msrb.mxu3 %v12930_v21  ;;  %v5092_v14 = vsub.f32 %v13079_v54, %v16392_v49  ;;  %v16396_v25 = vand.u32 4294901760, %v13091_v57  ;;  %v16398_v12 = vand.u32 4294901760, %v12828_v27  ;;  %v16400_v49 = vld [vmem:[#allocation144_spill] sm:$0xff]  ;;  %vm16406_vm8 = vcmp.ge.s32.totalorder %v16285_v52, 1 }
 0x556   :  { %v4841_v29 = vsub.f32 %v13053_v30, %v16386_v58  ;;  %4949 = vmatpush.msra.mxu0 %v16388_v36  ;;  %4831 = vmatpush.msrb.mxu1 %v4830_v60  ;;  %v4836_v58 = vand.u32 4294901760, %v4835_v2  ;;  %v2664_v60 = vrot.slane %v2214_v62, 4  ;;  %v2679_v36 = vsel %vm16393_vm14, %v2670_v32, %v2678_v17  ;;  %v16397_v62 = vld [vmem:[#allocation122_spill] sm:$0xff]  ;;  %vm16410_vm1 = vmmov %vm16406_vm8 }
 0x557   :  { %5049 = vmatpush.msra.mxu2 %v13017_v55  ;;  %4928 = vmatpush.msrb.mxu3 %v12938_v24  ;;  %v5098_v17 = vsub.f32 %v13091_v57, %v16396_v25  ;;  %v5093_v25 = vand.u32 4294901760, %v5092_v14  ;;  %v2121_v27 = vsel %vm1105_vm12, %v16400_v49, %v12534_v23  ;;  %v16404_v23 = vand.u32 4294901760, %v13133_v22  ;;  %vm16418_vm14 = vmmov %vm16385_vm0 }
 0x558   :  { %4899 = vmatmul.f32.vlgmr.msrb.gmra.mxu2 %v16390_v46  ;;  %4953 = vmatpush.msra.mxu0 %v16391_v11  ;;  %v4842_v2 = vand.u32 4294901760, %v4841_v29  ;;  %v13155_v11 = vand.u32 4294901760, %v2687_v63  ;;  %v2671_v1 = vsel %vm16395_vm3, %v2664_v60, %v2670_v32  ;;  %v16399_v32 = vld [vmem:[#allocation11_spill] sm:$0xff]  ;;  %vm16422_vm3 = vmmov %vm16385_vm0 }
 0x559   :  { %5051 = vmatpush.msra.mxu2 %v13036_v16  ;;  %4837 = vmatpush.msrb.mxu1 %v4836_v58  ;;  %v13167_v58 = vand.u32 4294901760, %v2679_v36  ;;  %v5099_v29 = vand.u32 4294901760, %v5098_v17  ;;  %v5110_v49 = vsub.f32 %v13133_v22, %v16404_v23  ;;  %v16407_v17 = vand.u32 4294901760, %v12873_v38  ;;  %v16408_v23 = vld [vmem:[#allocation89_spill] sm:$0xff] }
 0x55a   :  { %4930 = vmatpush.msrb.mxu3 %v12971_v5  ;;  %4957 = vmatpush.msra.mxu0 %v16394_v18  ;;  %v13170_v18 = vsub.f32 %v2695_v42, %v13145_v50  ;;  %v16401_v42 = vand.u32 4294901760, %v12852_v43  ;;  %v13190_v14 = vsub.f32 %v2687_v63, %v13155_v11  ;;  %v16405_v43 = vld [vmem:[#allocation152_spill] sm:$0xff] }
 0x55b   :  { %5053 = vmatpush.msra.mxu2 %v13097_v53  ;;  %4843 = vmatpush.msrb.mxu1 %v4842_v2  ;;  %v2804_v2 = vsel %vm16385_vm0, %v16399_v32, %v2664_v60  ;;  %v16403_v32 = vld [vmem:[#allocation8_spill] sm:$0xff]  ;;  %vm122_vm0 = vcmp.lt.s32.totalorder %v16285_v52, 12 }
 0x55c   :  { %4932 = vmatpush.msrb.mxu3 %v12996_v56  ;;  %4845 = vmatmul.f32.vlgmr.msrb.gmra.mxu1 %v16397_v62 }
 0x55d   :  { %4961 = vmatpush.msra.mxu0 %v16398_v12  ;;  %5012 = vmatpush.msra.mxu1 %v12724_v26  ;;  %v16402_v12 = vand.u32 4294901760, %v13128_v48  ;;  %v13187_v26 = vand.u32 4294901760, %v2671_v1 }
 0x55e   :  { %5055 = vmatpush.msra.mxu2 %v13103_v44  ;;  %4934 = vmatpush.msrb.mxu3 %v13011_v39 }
 0x55f   :  { %4965 = vmatpush.msra.mxu0 %v16401_v42  ;;  %v5104_v60 = vsub.f32 %v13128_v48, %v16402_v12  ;;  %4938 = vmatmul.f32.vlgmr.msrb.gmra.mxu3 %v16403_v32  ;;  %v2120_v42 = vsel %vm1105_vm12, %v16405_v43, %v12501_v33  ;;  %v13202_v12 = vand.u32 4294901760, %v2804_v2  ;;  %v13206_v32 = vsub.f32 %v2679_v36, %v13167_v58 }
 0x560   :  { %5014 = vmatpush.msra.mxu1 %v12747_v51  ;;  %5057 = vmatpush.msra.mxu2 %v13117_v20  ;;  %v2150_v51 = vsel %vm16406_vm8, %v2121_v27, 0.0  ;;  %v13214_v33 = vand.u32 4294901760, %v16408_v23  ;;  %v16409_v43 = vand.u32 4294901760, %v13148_v13  ;;  %v13222_v27 = vsub.f32 %v2671_v1, %v13187_v26  ;;  %vm16439_vm8 = vmmov %vm16422_vm3 }
 0x561   :  { %5094 = vmatpush.msra.mxu3 %v5093_v25  ;;  %4969 = vmatpush.msra.mxu0 %v16407_v17  ;;  %v5105_v25 = vand.u32 4294901760, %v5104_v60  ;;  %v2146_v38 = vsel %vm16410_vm1, %v2120_v42, 0.0  ;;  %v5111_v17 = vand.u32 4294901760, %v5110_v49  ;;  %v16412_v60 = vand.u32 4294901760, %v13170_v18  ;;  %vm16453_vm1 = vmmov %vm16422_vm3 }
 0x562   :  { %5016 = vmatpush.msra.mxu1 %v12772_v4  ;;  %5059 = vmatpush.msra.mxu2 %v13145_v50  ;;  %v5116_v36 = vsub.f32 %v13148_v13, %v16409_v43  ;;  %v16411_v4 = vand.u32 4294901760, %v12890_v61  ;;  %v5133_v1 = vand.u32 4294901760, %v13206_v32  ;;  %v13235_v63 = vsub.f32 %v2804_v2, %v13202_v12 }
 0x563   :  { %5100 = vmatpush.msra.mxu3 %v5099_v29  ;;  %v2618_v29 = vrot.slane %v2150_v51, 4  ;;  %v5122_v43 = vsub.f32 %v13170_v18, %v16412_v60  ;;  %v16413_v42 = vand.u32 4294901760, %v12908_v59  ;;  %v13245_v49 = vsub.f32 %v16408_v23, %v13214_v33  ;;  %v16417_v60 = vld [vmem:[#allocation96_spill] sm:$0xff] }
 0x564   :  { %4973 = vmatpush.msra.mxu0 %v16411_v4  ;;  %5018 = vmatpush.msra.mxu1 %v12739_v0  ;;  %v16414_v0 = vld [vmem:[#allocation85_spill] sm:$0xff]  ;;  %v2610_v51 = vrot.slane %v2146_v38, 4  ;;  %v16415_v2 = vand.u32 4294901760, %v13190_v14  ;;  %v15656_v59 = vand.u32 4294901760, %v13222_v27  ;;  %v5134_v38 = vsub.f32 %v13206_v32, %v5133_v1 }
 0x565   :  { %5061 = vmatpush.msra.mxu2 %v13155_v11  ;;  %5106 = vmatpush.msra.mxu3 %v5105_v25  ;;  %v13241_v61 = vand.u32 4294901760, %v16414_v0  ;;  %v5117_v25 = vand.u32 4294901760, %v5116_v36  ;;  %v5123_v36 = vand.u32 4294901760, %v5122_v43 }
 0x566   :  { %4977 = vmatpush.msra.mxu0 %v16413_v42  ;;  %5020 = vmatpush.msra.mxu1 %v12795_v37  ;;  %v5128_v4 = vsub.f32 %v13190_v14, %v16415_v2  ;;  %v16416_v37 = vand.u32 4294901760, %v12928_v45  ;;  %v13256_v42 = vand.u32 4294901760, %v16417_v60  ;;  %v2619_v23 = vsel %vm16418_vm14, %v2610_v51, %v2618_v29  ;;  %vm16460_vm14 = vmmov %vm16453_vm1 }
 0x567   :  { %5063 = vmatpush.msra.mxu2 %v13167_v58  ;;  %5112 = vmatpush.msra.mxu3 %v5111_v17  ;;  %v5145_v17 = vand.u32 4294901760, %v13235_v63  ;;  %v16419_v45 = vand.u32 4294901760, %v12951_v40  ;;  %v13272_v29 = vsub.f32 %v16414_v0, %v13241_v61  ;;  %v5151_v40 = vand.u32 4294901760, %v13245_v49 }
 0x568   :  { %4981 = vmatpush.msra.mxu0 %v16416_v37  ;;  %5022 = vmatpush.msra.mxu1 %v12820_v8  ;;  %v16420_v8 = vld [vmem:[#allocation15_spill] sm:$0xff]  ;;  %v5129_v43 = vand.u32 4294901760, %v5128_v4  ;;  %v16421_v37 = vrot.slane %v12659_v9, 4  ;;  %v13285_v0 = vand.u32 4294901760, %v2619_v23  ;;  %v13289_v4 = vsub.f32 %v16417_v60, %v13256_v42 }
 0x569   :  { %5065 = vmatpush.msra.mxu2 %v13187_v26  ;;  %5118 = vmatpush.msra.mxu3 %v5117_v25  ;;  %v13268_v2 = vand.u32 4294901760, %v16420_v8  ;;  %v5140_v25 = vsub.f32 %v13222_v27, %v15656_v59  ;;  %v5135_v59 = vand.u32 4294901760, %v5134_v38  ;;  %v5146_v9 = vsub.f32 %v13235_v63, %v5145_v17 }
 0x56a   :  { %4985 = vmatpush.msra.mxu0 %v16419_v45  ;;  %5024 = vmatpush.msra.mxu1 %v12834_v6  ;;  %v2611_v6 = vsel %vm16422_vm3, %v16421_v37, %v2610_v51  ;;  %v16423_v45 = vand.u32 4294901760, %v12967_v19  ;;  %v16424_v19 = vand.u32 4294901760, %v12974_v3  ;;  %v5152_v38 = vsub.f32 %v13245_v49, %v5151_v40  ;;  %v2982_v37 = vpop.f32.mrf.mxu1  ;;  %vm16463_vm3 = vmmov %vm16453_vm1 }
 0x56b   :  { %5067 = vmatpush.msra.mxu2 %v13202_v12  ;;  %5124 = vmatpush.msra.mxu3 %v5123_v36  ;;  %v2881_v36 = vpop.f32.mrf.mxu0  ;;  %v13301_v51 = vsub.f32 %v16420_v8, %v13268_v2  ;;  %v5141_v60 = vand.u32 4294901760, %v5140_v25  ;;  %v16425_v3 = vand.u32 4294901760, %v13004_v47  ;;  %v13314_v8 = vsub.f32 %v2619_v23, %v13285_v0 }
 0x56c   :  { %4989 = vmatpush.msra.mxu0 %v16423_v45  ;;  %5026 = vmatpush.msra.mxu1 %v12844_v15  ;;  %v5157_v15 = vand.u32 4294901760, %v13272_v29  ;;  %v3036_v45 = vpop.f32.mrf.mxu2  ;;  %v16426_v25 = vand.u32 4294901760, %v13030_v41  ;;  %v5153_v23 = vand.u32 4294901760, %v5152_v38  ;;  %v16428_v38 = vand.u32 4294901760, %v13079_v54 }
 0x56d   :  { %5069 = vmatpush.msra.mxu2 %v13214_v33  ;;  %5130 = vmatpush.msra.mxu3 %v5129_v43  ;;  %v13307_v43 = vand.u32 4294901760, %v2611_v6  ;;  %v5169_v47 = vand.u32 4294901760, %v13301_v51  ;;  %v15657_v41 = vand.u32 4294901760, %v13314_v8 }
 0x56e   :  { %4993 = vmatpush.msra.mxu0 %v16424_v19  ;;  %5028 = vmatpush.msra.mxu1 %v12865_v34  ;;  %v5163_v34 = vand.u32 4294901760, %v13289_v4  ;;  %v3075_v19 = vpop.f32.mrf.mxu3 }
 0x56f   :  { %5071 = vmatpush.msra.mxu2 %v13241_v61  ;;  %5136 = vmatpush.msra.mxu3 %v5135_v59  ;;  %v5147_v59 = vand.u32 4294901760, %v5146_v9  ;;  %v16427_v9 = vand.u32 4294901760, %v13053_v30  ;;  %v5170_v30 = vsub.f32 %v13301_v51, %v5169_v47 }
 0x570   :  { %4997 = vmatpush.msra.mxu0 %v16425_v3  ;;  %5030 = vmatpush.msra.mxu1 %v12897_v10  ;;  %v5158_v10 = vsub.f32 %v13272_v29, %v5157_v15  ;;  %v13326_v3 = vsub.f32 %v2611_v6, %v13307_v43 }
 0x571   :  { %5073 = vmatpush.msra.mxu2 %v13256_v42  ;;  %5142 = vmatpush.msra.mxu3 %v5141_v60 }
 0x572   :  { %5001 = vmatpush.msra.mxu0 %v16426_v25  ;;  %5032 = vmatpush.msra.mxu1 %v12913_v28  ;;  %v5164_v28 = vsub.f32 %v13289_v4, %v5163_v34  ;;  %v5159_v6 = vand.u32 4294901760, %v5158_v10  ;;  %v2882_v25 = vadd.f32 %v2881_v36, %v12590_v31  ;;  %v13352_v10 = vpop.f32.mrf.mxu1  ;;  %v16430_v36 = vand.u32 4294901760, %v13091_v57 }
 0x573   :  { %5075 = vmatpush.msra.mxu2 %v13268_v2  ;;  %5148 = vmatpush.msra.mxu3 %v5147_v59  ;;  %v13335_v60 = vpop.f32.mrf.mxu0 }
 0x574   :  { %5005 = vmatpush.msra.mxu0 %v16427_v9  ;;  %5034 = vmatpush.msra.mxu1 %v12930_v21  ;;  %v5181_v21 = vand.u32 4294901760, %v13326_v3  ;;  %v5165_v59 = vand.u32 4294901760, %v5164_v28  ;;  %v16429_v9 = vld [vmem:[#allocation138_spill] sm:$0xff]  ;;  %v13361_v28 = vpop.permute.xlu0 %2439 }
 0x575   :  { %5077 = vmatpush.msra.mxu2 %v13285_v0  ;;  %5154 = vmatpush.msra.mxu3 %v5153_v23  ;;  %v13354_v23 = vpop.f32.mrf.mxu2 }
 0x576   :  { %5007 = vmatmul.f32.vlgmr.msra.gmra.mxu0 %v16397_v62  ;;  %5036 = vmatpush.msra.mxu1 %v12938_v24  ;;  %v5176_v24 = vsub.f32 %v13314_v8, %v15657_v41 }
 0x577   :  { %5192 = vmatpush.msrb.mxu0 %v13079_v54  ;;  %5079 = vmatpush.msra.mxu2 %v13307_v43  ;;  %v5171_v54 = vand.u32 4294901760, %v5170_v30  ;;  %v16431_v30 = vand.u32 4294901760, %v13128_v48 }
 0x578   :  { %5160 = vmatpush.msra.mxu3 %v5159_v6  ;;  %5038 = vmatpush.msra.mxu1 %v12971_v5  ;;  %v13359_v6 = vpop.f32.mrf.mxu3  ;;  %v5177_v5 = vand.u32 4294901760, %v5176_v24 }
 0x579   :  { %5286 = vmatpush.msrb.mxu2 %v16428_v38  ;;  %5195 = vmatpush.msrb.mxu0 %v13091_v57  ;;  %v5182_v38 = vsub.f32 %v13326_v3, %v5181_v21 }
 0x57a   :  { %5166 = vmatpush.msra.mxu3 %v5165_v59  ;;  %5085 = vmatmul.f32.vlgmr.msra.gmra.mxu2 %v16429_v9  ;;  %v2983_v59 = vadd.f32 %v2982_v37, %v2882_v25  ;;  %v13381_v24 = vpop.f32.mrf.mxu1 }
 0x57b   :  { %5198 = vmatpush.msrb.mxu0 %v13128_v48  ;;  %5290 = vmatpush.msrb.mxu2 %v16430_v36  ;;  %v13374_v41 = vpop.f32.mrf.mxu0  ;;  %v5183_v57 = vand.u32 4294901760, %v5182_v38  ;;  %v16435_v36 = vand.u32 4294901760, %v13170_v18  ;;  %v16436_v38 = vld [vmem:[#allocation140_spill] sm:$0xff] }
 0x57c   :  { %5040 = vmatpush.msra.mxu1 %v12996_v56  ;;  %5172 = vmatpush.msra.mxu3 %v5171_v54  ;;  %v16432_v56 = vand.u32 4294901760, %v13133_v22  ;;  %v3037_v37 = vadd.f32 %v3036_v45, %v2983_v59  ;;  %v16434_v54 = vand.u32 4294901760, %v13148_v13  ;;  %v13395_v45 = vpop.permute.xlu0 %2433 }
 0x57d   :  { %5201 = vmatpush.msrb.mxu0 %v13133_v22  ;;  %5294 = vmatpush.msrb.mxu2 %v16431_v30  ;;  %v13383_v48 = vpop.f32.mrf.mxu2 }
 0x57e   :  { %5042 = vmatpush.msra.mxu1 %v13011_v39  ;;  %5178 = vmatpush.msra.mxu3 %v5177_v5  ;;  %v16433_v39 = vld [vmem:[#allocation114_spill] sm:$0xff]  ;;  %v3076_v22 = vadd.f32 %v3075_v19, %v3037_v37  ;;  %v16437_v19 = vand.u32 4294901760, %v13190_v14  ;;  %v16443_v37 = vld [vmem:[#allocation147_spill] sm:$0xff] }
 0x57f   :  { %5044 = vmatmul.f32.vlgmr.msra.gmra.mxu1 %v16397_v62  ;;  %5204 = vmatpush.msrb.mxu0 %v13148_v13  ;;  %v2446_v13 = vsel %vm2441_vm7, %v16436_v38, %v13361_v28  ;;  %v16446_v38 = vld [vmem:[#allocation33_spill] sm:$0xff] }
 0x580   :  { %5245 = vmatpush.msrb.mxu1 %v13017_v55  ;;  %5298 = vmatpush.msrb.mxu2 %v16432_v56  ;;  %v13388_v25 = vpop.f32.mrf.mxu3  ;;  %v2488_v5 = vsel %vm122_vm0, %v2446_v13, 0.0  ;;  %v16441_v56 = vld [vmem:[#allocation145_spill] sm:$0xff] }
 0x581   :  { %5184 = vmatpush.msra.mxu3 %v5183_v57  ;;  %5207 = vmatpush.msrb.mxu0 %v13170_v18  ;;  %v13412_v18 = vpop.permute.xlu2 %2435  ;;  %v16440_v57 = vld [vmem:[#allocation56_spill] sm:$0xff] }
 0x582   :  { %5186 = vmatmul.f32.vlgmr.msra.gmra.mxu3 %v16433_v39  ;;  %5247 = vmatpush.msrb.mxu1 %v13036_v16  ;;  %v13419_v59 = vpop.f32.mrf.mxu1 }
 0x583   :  { %5302 = vmatpush.msrb.mxu2 %v16434_v54  ;;  %5353 = vmatpush.msrb.mxu3 %v13017_v55  ;;  %v13406_v55 = vpop.f32.mrf.mxu0  ;;  %v13445_v54 = vpop.permute.xlu1 %2346 }
 0x584   :  { %5210 = vmatpush.msrb.mxu0 %v13190_v14  ;;  %5249 = vmatpush.msrb.mxu1 %v13097_v53  ;;  %v16438_v14 = vand.u32 4294901760, %v13222_v27 }
 0x585   :  { %5306 = vmatpush.msrb.mxu2 %v16435_v36  ;;  %5355 = vmatpush.msrb.mxu3 %v13036_v16  ;;  %v3145_v16 = vadd.f32 %v13335_v60, %v3076_v22  ;;  %v13421_v30 = vpop.f32.mrf.mxu2  ;;  %v2838_v60 = vsel %vm16439_vm8, %v2488_v5, 0  ;;  %v16445_v22 = vld [vmem:[#allocation36_spill] sm:$0xff] }
 0x586   :  { %5213 = vmatpush.msrb.mxu0 %v13206_v32  ;;  %5251 = vmatpush.msrb.mxu1 %v13103_v44  ;;  %v2445_v32 = vsel %vm2441_vm7, %v16441_v56, %v16440_v57  ;;  %v13460_v13 = vand.u32 4294901760, %v2838_v60 }
 0x587   :  { %5310 = vmatpush.msrb.mxu2 %v16437_v19  ;;  %5357 = vmatpush.msrb.mxu3 %v13097_v53  ;;  %v13468_v19 = vpop.permute.xlu0 %2431 }
 0x588   :  { %5216 = vmatpush.msrb.mxu0 %v13222_v27  ;;  %5253 = vmatpush.msrb.mxu1 %v13117_v20  ;;  %v13428_v53 = vpop.f32.mrf.mxu3  ;;  %16448 = vst [vmem:[#allocation42_spill] sm:$0xff] %v13468_v19 }
 0x589   :  { %5314 = vmatpush.msrb.mxu2 %v5133_v1  ;;  %5359 = vmatpush.msrb.mxu3 %v13103_v44  ;;  %v3182_v44 = vadd.f32 %v13352_v10, %v3145_v16  ;;  %v16442_v1 = vld [vmem:[#allocation29_spill] sm:$0xff]  ;;  %v2444_v10 = vsel %vm2441_vm7, %v16446_v38, %v13412_v18 }
 0x58a   :  { %5219 = vmatpush.msrb.mxu0 %v13235_v63  ;;  %5255 = vmatpush.msrb.mxu1 %v13145_v50  ;;  %v2356_v27 = vsel %vm2352_vm15, %v16443_v37, %v16442_v1  ;;  %v16447_v63 = vld [vmem:[#allocation81_spill] sm:$0xff]  ;;  %v13493_v37 = vpop.permute.xlu2 %2344 }
 0x58b   :  { %5318 = vmatpush.msrb.mxu2 %v16438_v14  ;;  %5361 = vmatpush.msrb.mxu3 %v13117_v20  ;;  %v16444_v20 = vld [vmem:[#allocation51_spill] sm:$0xff]  ;;  %v13470_v16 = vpop.f32.mrf.mxu0  ;;  %v2395_v5 = vsel %vm106_vm5, %v2356_v27, 0.0  ;;  %v16449_v14 = vld [vmem:[#allocation148_spill] sm:$0xff]  ;;  %16450 = vst [vmem:[#allocation45_spill] sm:$0xff] %v13493_v37 }
 0x58c   :  { %5222 = vmatpush.msrb.mxu0 %v13245_v49  ;;  %5257 = vmatpush.msrb.mxu1 %v13155_v11  ;;  %v2357_v36 = vsel %vm2352_vm15, %v16445_v22, %v16444_v20  ;;  %v2355_v56 = vsel %vm2352_vm15, %v16449_v14, %v13445_v54  ;;  %v3223_v49 = vadd.f32 %v13354_v23, %v3182_v44  ;;  %v16451_v23 = vld [vmem:[#allocation66_spill] sm:$0xff] }
 0x58d   :  { %5322 = vmatpush.msrb.mxu2 %v5145_v17  ;;  %5363 = vmatpush.msrb.mxu3 %v13145_v50  ;;  %v2443_v50 = vsel %vm2441_vm7, %v16447_v63, %v13395_v45  ;;  %v2484_v17 = vsel %vm122_vm0, %v2445_v32, 0.0  ;;  %v2399_v32 = vsel %vm106_vm5, %v2357_v36, 0.0  ;;  %v3813_v1 = vpop.f32.mrf.mxu2  ;;  %v2442_v44 = vsel %vm2441_vm7, %v16451_v23, %v13468_v19  ;;  %v16452_v63 = vld [vmem:[#allocation63_spill] sm:$0xff]  ;;  %v16457_v23 = vld [vmem:[#allocation153_spill] sm:$0xff] }
 0x58e   :  { %5225 = vmatpush.msrb.mxu0 %v13272_v29  ;;  %5259 = vmatpush.msrb.mxu1 %v13167_v58  ;;  %v2476_v27 = vsel %vm122_vm0, %v2443_v50, 0.0  ;;  %v13497_v20 = vand.u32 4294901760, %v2484_v17  ;;  %v13506_v29 = vsub.f32 %v2838_v60, %v13460_v13  ;;  %v2770_v36 = vrot.slane %v2399_v32, 4 }
 0x58f   :  { %5326 = vmatpush.msrb.mxu2 %v5151_v40  ;;  %5365 = vmatpush.msrb.mxu3 %v13155_v11  ;;  %v2480_v11 = vsel %vm122_vm0, %v2444_v10, 0.0  ;;  %v13488_v40 = vpop.f32.mrf.mxu1  ;;  %v3814_v10 = vadd.f32 %v3813_v1, %v12590_v31  ;;  %v3324_v60 = vadd.f32 %v13359_v6, %v3223_v49  ;;  %v2354_v50 = vsel %vm2352_vm15, %v16452_v63, %v13493_v37  ;;  %v16456_v1 = vld [vmem:[#allocation74_spill] sm:$0xff]  ;;  %v16526_v37 = vld [vmem:[#allocation47_spill] sm:$0xff] }
 0x590   :  { %5228 = vmatpush.msrb.mxu0 %v13289_v4  ;;  %5261 = vmatpush.msrb.mxu1 %v13187_v26  ;;  %v3914_v22 = vpop.f32.mrf.mxu3  ;;  %v13513_v38 = vand.u32 4294901760, %v2480_v11  ;;  %v13523_v4 = vand.u32 4294901760, %v2476_v27  ;;  %v5432_v14 = vand.u32 4294901760, %v13506_v29  ;;  %v16454_v49 = vand.u32 4294901760, %v13314_v8  ;;  %v16497_v31 = vld [vmem:[#allocation94_spill] sm:$0xff] }
 0x591   :  { %5330 = vmatpush.msrb.mxu2 %v5157_v15  ;;  %5367 = vmatpush.msrb.mxu3 %v13167_v58  ;;  %v2762_v58 = vrot.slane %v2395_v5, 4  ;;  %v2391_v15 = vsel %vm106_vm5, %v2355_v56, 0.0  ;;  %v3915_v6 = vadd.f32 %v3914_v22, %v3814_v10 }
 0x592   :  { %5231 = vmatpush.msrb.mxu0 %v13301_v51  ;;  %5263 = vmatpush.msrb.mxu1 %v13202_v12  ;;  %v2754_v5 = vrot.slane %v2391_v15, 4  ;;  %v2387_v51 = vsel %vm106_vm5, %v2354_v50, 0.0  ;;  %vm16458_vm5 = vmmov %vm16453_vm1 }
 0x593   :  { %5334 = vmatpush.msrb.mxu2 %v5163_v34  ;;  %5369 = vmatpush.msrb.mxu3 %v13187_v26  ;;  %v2472_v26 = vsel %vm122_vm0, %v2442_v44, 0.0  ;;  %v13531_v34 = vsub.f32 %v2484_v17, %v13497_v20  ;;  %v2771_v56 = vsel %vm16453_vm1, %v2762_v58, %v2770_v36  ;;  %v3968_v32 = vpop.f32.mrf.mxu0  ;;  %v16455_v17 = vld [vmem:[#allocation121_spill] sm:$0xff]  ;;  %v3378_v44 = vadd.f32 %v13374_v41, %v3324_v60  ;;  %vm16467_vm0 = vmmov %vm16453_vm1 }
 0x594   :  { %5234 = vmatpush.msrb.mxu0 %v13314_v8  ;;  %5265 = vmatpush.msrb.mxu1 %v13214_v33  ;;  %v2114_v8 = vsel %vm1105_vm12, %v16457_v23, %v16456_v1  ;;  %v2763_v15 = vsel %vm16458_vm5, %v2754_v5, %v2762_v58  ;;  %v3969_v22 = vadd.f32 %v3968_v32, %v3915_v6  ;;  %v13563_v36 = vand.u32 4294901760, %v2771_v56 }
 0x595   :  { %5338 = vmatpush.msrb.mxu2 %v5169_v47  ;;  %5371 = vmatpush.msrb.mxu3 %v13202_v12  ;;  %v13541_v12 = vsub.f32 %v2480_v11, %v13513_v38  ;;  %v13545_v47 = vand.u32 4294901760, %v2472_v26  ;;  %v15663_v41 = vand.u32 4294901760, %v13531_v34  ;;  %v2746_v10 = vrot.slane %v2387_v51, 4  ;;  %v4076_v60 = vpop.f32.mrf.mxu2  ;;  %v16461_v51 = vld [vmem:[#allocation79_spill] sm:$0xff] }
 0x596   :  { %5237 = vmatpush.msrb.mxu0 %v13326_v3  ;;  %5267 = vmatpush.msrb.mxu1 %v13241_v61  ;;  %v5433_v3 = vsub.f32 %v13506_v29, %v5432_v14  ;;  %v13580_v63 = vsel %vm79_vm11, %v2114_v8, 0.0  ;;  %v16462_v1 = vrot.slane %v16461_v51, 4 }
 0x597   :  { %5342 = vmatpush.msrb.mxu2 %v16454_v49  ;;  %5373 = vmatpush.msrb.mxu3 %v13214_v33  ;;  %v13555_v33 = vsub.f32 %v2476_v27, %v13523_v4  ;;  %v4007_v11 = vpop.f32.mrf.mxu1  ;;  %v3417_v27 = vadd.f32 %v13381_v24, %v3378_v44  ;;  %v15659_v58 = vand.u32 4294901760, %v13541_v12  ;;  %v16459_v24 = vld [vmem:[#allocation20_spill] sm:$0xff]  ;;  %v2755_v50 = vsel %vm16460_vm14, %v2746_v10, %v2754_v5 }
 0x598   :  { %5240 = vmatmul.f32.vlgmr.msrb.gmra.mxu0 %v16455_v17  ;;  %5269 = vmatpush.msrb.mxu1 %v13256_v42  ;;  %v4113_v6 = vpop.f32.mrf.mxu3  ;;  %v13593_v49 = vsub.f32 %v2771_v56, %v13563_v36  ;;  %v2747_v23 = vsel %vm16463_vm3, %v16462_v1, %v2746_v10  ;;  %vm16470_vm8 = vcmp.ge.s32.totalorder %v16459_v24, 2  ;;  %vm16523_vm3 = vmmov %vm16467_vm0 }
 0x599   :  { %5397 = vmatpush.msra.mxu0 %v13460_v13  ;;  %5346 = vmatpush.msrb.mxu2 %v5181_v21  ;;  %v4008_v21 = vadd.f32 %v4007_v11, %v3969_v22  ;;  %v15658_v5 = vand.u32 4294901760, %v13555_v33  ;;  %v3486_v8 = vadd.f32 %v13383_v48, %v3417_v27  ;;  %v5445_v56 = vsub.f32 %v13541_v12, %v15659_v58  ;;  %v16469_v58 = vld [vmem:[#allocation59_spill] sm:$0xff]  ;;  %vm16477_vm1 = vmmov %vm16470_vm8 }
 0x59a   :  { %5375 = vmatpush.msrb.mxu3 %v13241_v61  ;;  %5271 = vmatpush.msrb.mxu1 %v13268_v2  ;;  %v13573_v61 = vsub.f32 %v2472_v26, %v13545_v47  ;;  %v13585_v26 = vand.u32 4294901760, %v2763_v15  ;;  %v13607_v11 = vand.u32 4294901760, %v2755_v50  ;;  %v15660_v48 = vrot.slane %v13580_v63, 4  ;;  %vm16479_vm5 = vmmov %vm16477_vm1 }
 0x59b   :  { %5498 = vmatpush.msra.mxu2 %v13506_v29  ;;  %5399 = vmatpush.msra.mxu0 %v13497_v20  ;;  %v4077_v32 = vadd.f32 %v4076_v60, %v4008_v21  ;;  %v3523_v10 = vadd.f32 %v13388_v25, %v3486_v8  ;;  %v4154_v27 = vpop.f32.mrf.mxu0  ;;  %v16464_v60 = vld [vmem:[#allocation134_spill] sm:$0xff]  ;;  %v5451_v21 = vsub.f32 %v13555_v33, %v15658_v5  ;;  %v15661_v25 = vand.u32 4294901760, %v13593_v49  ;;  %vm16485_vm14 = vmmov %vm16477_vm1 }
 0x59c   :  { %5377 = vmatpush.msrb.mxu3 %v13256_v42  ;;  %5348 = vmatmul.f32.vlgmr.msrb.gmra.mxu2 %v16433_v39  ;;  %v5439_v42 = vsub.f32 %v13531_v34, %v15663_v41  ;;  %v15662_v22 = vand.u32 4294901760, %v13573_v61  ;;  %v5446_v8 = vand.u32 4294901760, %v5445_v56  ;;  %v13636_v5 = vsub.f32 %v2755_v50, %v13607_v11 }
 0x59d   :  { %5401 = vmatpush.msra.mxu0 %v13513_v38  ;;  %5501 = vmatpush.msra.mxu2 %v13531_v34  ;;  %v4114_v44 = vadd.f32 %v4113_v6, %v4077_v32  ;;  %v13621_v6 = vand.u32 4294901760, %v2747_v23  ;;  %v16465_v32 = vld [vmem:[#allocation72_spill] sm:$0xff]  ;;  %v5452_v50 = vand.u32 4294901760, %v5451_v21 }
 0x59e   :  { %5273 = vmatpush.msrb.mxu1 %v13285_v0  ;;  %5379 = vmatpush.msrb.mxu3 %v13268_v2  ;;  %v5434_v2 = vand.u32 4294901760, %v5433_v3  ;;  %v13615_v3 = vsub.f32 %v2763_v15, %v13585_v26  ;;  %v16466_v51 = vrot.slane %v16465_v32, 4  ;;  %v16468_v32 = vld [vmem:[#allocation78_spill] sm:$0xff] }
 0x59f   :  { %5403 = vmatpush.msra.mxu0 %v13523_v4  ;;  %5504 = vmatpush.msra.mxu2 %v13541_v12  ;;  %v4255_v15 = vpop.f32.mrf.mxu1 }
 0x5a0   :  { %5275 = vmatpush.msrb.mxu1 %v13307_v43  ;;  %5381 = vmatpush.msrb.mxu3 %v13285_v0  ;;  %v5440_v0 = vand.u32 4294901760, %v5439_v42  ;;  %v2605_v1 = vsel %vm16467_vm0, %v16466_v51, %v15660_v48  ;;  %v4155_v42 = vadd.f32 %v4154_v27, %v4114_v44  ;;  %v2035_v51 = vsel %vm999_vm10, %v16469_v58, %v16468_v32  ;;  %v4309_v48 = vpop.f32.mrf.mxu2  ;;  %v16472_v32 = vld [vmem:[#allocation84_spill] sm:$0xff] }
 0x5a1   :  { %5279 = vmatmul.f32.vlgmr.msrb.gmra.mxu1 %v16464_v60  ;;  %5405 = vmatpush.msra.mxu0 %v13545_v47  ;;  %v15664_v44 = vand.u32 4294901760, %v13615_v3  ;;  %v5463_v27 = vsub.f32 %v13593_v49, %v15661_v25  ;;  %v13651_v58 = vsub.f32 %v2747_v23, %v13621_v6  ;;  %v2067_v23 = vsel %vm16470_vm8, %v2035_v51, 0.0  ;;  %v16474_v25 = vld [vmem:[#allocation44_spill] sm:$0xff] }
 0x5a2   :  { %5435 = vmatpush.msra.mxu1 %v5434_v2  ;;  %5507 = vmatpush.msra.mxu2 %v13555_v33  ;;  %v5457_v2 = vsub.f32 %v13573_v61, %v15662_v22  ;;  %v4256_v56 = vadd.f32 %v4255_v15, %v4155_v42  ;;  %v15665_v42 = vand.u32 4294901760, %v13636_v5 }
 0x5a3   :  { %5383 = vmatpush.msrb.mxu3 %v13307_v43  ;;  %5407 = vmatpush.msra.mxu0 %v13563_v36  ;;  %v3557_v43 = vadd.f32 %v13406_v55, %v3523_v10  ;;  %v4348_v10 = vpop.f32.mrf.mxu3  ;;  %v5464_v51 = vand.u32 4294901760, %v5463_v27  ;;  %v4417_v41 = vpop.f32.mrf.mxu0  ;;  %v13689_v27 = vand.u32 4294901760, %v2067_v23 }
 0x5a4   :  { %5385 = vmatmul.f32.vlgmr.msrb.gmra.mxu3 %v16433_v39  ;;  %5441 = vmatpush.msra.mxu1 %v5440_v0  ;;  %v13656_v0 = vand.u32 4294901760, %v2605_v1  ;;  %v4310_v15 = vadd.f32 %v4309_v48, %v4256_v56  ;;  %v5458_v21 = vand.u32 4294901760, %v5457_v2  ;;  %v5469_v48 = vsub.f32 %v13615_v3, %v15664_v44  ;;  %v16476_v44 = vld [vmem:[#allocation40_spill] sm:$0xff] }
 0x5a5   :  { %5510 = vmatpush.msra.mxu2 %v13573_v61  ;;  %5537 = vmatpush.msra.mxu3 %v13460_v13  ;;  %v3623_v55 = vadd.f32 %v13419_v59, %v3557_v43  ;;  %v16473_v43 = vld [vmem:[#allocation118_spill] sm:$0xff] }
 0x5a6   :  { %5409 = vmatpush.msra.mxu0 %v13585_v26  ;;  %5447 = vmatpush.msra.mxu1 %v5446_v8  ;;  %v16471_v8 = vld [vmem:[#allocation100_spill] sm:$0xff]  ;;  %v13672_v2 = vand.u32 4294901760, %v16473_v43  ;;  %v4349_v56 = vadd.f32 %v4348_v10, %v4310_v15  ;;  %v13684_v10 = vand.u32 4294901760, %v16476_v44  ;;  %v13687_v15 = vsub.f32 %v2605_v1, %v13656_v0 }
 0x5a7   :  { %5513 = vmatpush.msra.mxu2 %v13593_v49  ;;  %5539 = vmatpush.msra.mxu3 %v13497_v20  ;;  %v2034_v59 = vsel %vm999_vm10, %v16472_v32, %v16471_v8  ;;  %v16475_v8 = vld [vmem:[#allocation64_spill] sm:$0xff]  ;;  %v3663_v22 = vadd.f32 %v13421_v30, %v3623_v55  ;;  %v5475_v30 = vsub.f32 %v13636_v5, %v15665_v42  ;;  %v16478_v55 = vld [vmem:[#allocation154_spill] sm:$0xff]  ;;  %v5470_v1 = vand.u32 4294901760, %v5469_v48 }
 0x5a8   :  { %5411 = vmatpush.msra.mxu0 %v13607_v11  ;;  %5453 = vmatpush.msra.mxu1 %v5452_v50  ;;  %v2033_v32 = vsel %vm999_vm10, %v16475_v8, %v16474_v25  ;;  %v4454_v8 = vpop.f32.mrf.mxu1  ;;  %v13703_v50 = vsub.f32 %v16473_v43, %v13672_v2  ;;  %v4418_v42 = vadd.f32 %v4417_v41, %v4349_v56 }
 0x5a9   :  { %5516 = vmatpush.msra.mxu2 %v13615_v3  ;;  %5541 = vmatpush.msra.mxu3 %v13513_v38  ;;  %v3695_v25 = vadd.f32 %v13428_v53, %v3663_v22  ;;  %v2059_v29 = vsel %vm16479_vm5, %v2033_v32, 0.0  ;;  %v16482_v53 = vand.u32 4294901760, %v13531_v34  ;;  %v16483_v22 = vand.u32 4294901760, %v13651_v58  ;;  %v16484_v34 = vld [vmem:[#allocation150_spill] sm:$0xff] }
 0x5aa   :  { %5413 = vmatpush.msra.mxu0 %v13621_v6  ;;  %5459 = vmatpush.msra.mxu1 %v5458_v21  ;;  %v2063_v21 = vsel %vm16477_vm1, %v2034_v59, 0.0  ;;  %v16481_v59 = vld [vmem:[#allocation102_spill] sm:$0xff]  ;;  %v13726_v41 = vsub.f32 %v2067_v23, %v13689_v27  ;;  %v5476_v56 = vand.u32 4294901760, %v5475_v30  ;;  %v16486_v32 = vand.u32 4294901760, %v13541_v12 }
 0x5ab   :  { %5519 = vmatpush.msra.mxu2 %v13636_v5  ;;  %5543 = vmatpush.msra.mxu3 %v13523_v4  ;;  %v5481_v48 = vsub.f32 %v13651_v58, %v16483_v22  ;;  %v13717_v43 = vand.u32 4294901760, %v2063_v21  ;;  %v3743_v22 = vadd.f32 %v13470_v16, %v3695_v25  ;;  %v15666_v23 = vand.u32 4294901760, %v13703_v50 }
 0x5ac   :  { %5571 = vmatpush.msrb.mxu0 %v5432_v14  ;;  %5465 = vmatpush.msra.mxu1 %v5464_v51  ;;  %v16480_v14 = vld [vmem:[#allocation48_spill] sm:$0xff]  ;;  %v16487_v16 = vand.u32 4294901760, %v13555_v33  ;;  %v16488_v12 = vand.u32 4294901760, %v13687_v15  ;;  %v16489_v33 = vld [vmem:[#allocation90_spill] sm:$0xff] }
 0x5ad   :  { %5419 = vmatmul.f32.vlgmr.msra.gmra.mxu0 %v16478_v55  ;;  %5522 = vmatpush.msra.mxu2 %v13651_v58  ;;  %v2032_v51 = vsel %vm999_vm10, %v16481_v59, %v16480_v14  ;;  %v13723_v14 = vsub.f32 %v16476_v44, %v13684_v10  ;;  %v4455_v59 = vadd.f32 %v4454_v8, %v4418_v42  ;;  %v4488_v44 = vpop.f32.mrf.mxu2  ;;  %v5482_v30 = vand.u32 4294901760, %v5481_v48  ;;  %v16501_v55 = vld [vmem:[#allocation43_spill] sm:$0xff] }
 0x5ae   :  { %5545 = vmatpush.msra.mxu3 %v13545_v47  ;;  %5575 = vmatpush.msrb.mxu0 %v16482_v53  ;;  %v13730_v53 = vand.u32 4294901760, %v2059_v29  ;;  %v13741_v42 = vsub.f32 %v2063_v21, %v13717_v43  ;;  %v13744_v8 = vadd.f32 %v13488_v40, %v3743_v22  ;;  %v5683_v25 = vsub.f32 %v13687_v15, %v16488_v12 }
 0x5af   :  { %5640 = vmatpush.msrb.mxu2 %v13656_v0  ;;  %5471 = vmatpush.msra.mxu1 %v5470_v1  ;;  %v2055_v1 = vsel %vm16485_vm14, %v2032_v51, 0.0  ;;  %v4554_v51 = vpop.f32.mrf.mxu3  ;;  %v4489_v21 = vadd.f32 %v4488_v44, %v4455_v59  ;;  %v16490_v48 = vand.u32 4294901760, %v13573_v61  ;;  %v5689_v22 = vsub.f32 %v13703_v50, %v15666_v23  ;;  %v16491_v59 = vld [vmem:[#allocation52_spill] sm:$0xff]  ;;  %v4594_v23 = vpop.f32.mrf.mxu0 }
 0x5b0   :  { %5547 = vmatpush.msra.mxu3 %v13563_v36  ;;  %5525 = vmatmul.f32.vlgmr.msra.gmra.mxu2 %v16484_v34  ;;  %v13757_v40 = vsub.f32 %v2059_v29, %v13730_v53  ;;  %v13769_v44 = vand.u32 4294901760, %v16491_v59  ;;  %v6571_v29 = vmin.f32 %v13744_v8, 20.0  ;;  %v16492_v61 = vand.u32 4294901760, %v13593_v49 }
 0x5b1   :  { %5579 = vmatpush.msrb.mxu0 %v16486_v32  ;;  %5642 = vmatpush.msrb.mxu2 %v13672_v2  ;;  %v15668_v32 = vand.u32 4294901760, %v13723_v14  ;;  %v5684_v12 = vand.u32 4294901760, %v5683_v25  ;;  %v5690_v49 = vand.u32 4294901760, %v5689_v22  ;;  %v16495_v25 = vand.u32 4294901760, %v13726_v41 }
 0x5b2   :  { %5477 = vmatpush.msra.mxu1 %v5476_v56  ;;  %5549 = vmatpush.msra.mxu3 %v13585_v26  ;;  %v13753_v56 = vand.u32 4294901760, %v2055_v1  ;;  %v6575_v17 = vmul.f32 1.442695, %v6571_v29 }
 0x5b3   :  { %5583 = vmatpush.msrb.mxu0 %v16487_v16  ;;  %5644 = vmatpush.msrb.mxu2 %v13684_v10  ;;  %v16494_v16 = vld [vmem:[#allocation98_spill] sm:$0xff] }
 0x5b4   :  { %5483 = vmatpush.msra.mxu1 %v5482_v30  ;;  %5551 = vmatpush.msra.mxu3 %v13607_v11  ;;  %v4555_v30 = vadd.f32 %v4554_v51, %v4489_v21  ;;  %v13780_v51 = vsub.f32 %v2055_v1, %v13753_v56  ;;  %v16493_v21 = vld [vmem:[#allocation107_spill] sm:$0xff]  ;;  %v13785_v52 = vand.u32 4294901760, %v16494_v16  ;;  %v16496_v1 = vld [vmem:[#allocation109_spill] sm:$0xff]  ;;  %8760 = vpow2.f32 %v6575_v17 }
 0x5b5   :  { %5485 = vmatmul.f32.vlgmr.msra.gmra.mxu1 %v16489_v33  ;;  %5587 = vmatpush.msrb.mxu0 %v16490_v48  ;;  %v5695_v48 = vsub.f32 %v13723_v14, %v15668_v32  ;;  %v16500_v32 = vld [vmem:[#allocation99_spill] sm:$0xff] }
 0x5b6   :  { %5617 = vmatpush.msrb.mxu1 %v13460_v13  ;;  %5646 = vmatpush.msrb.mxu2 %v13689_v27  ;;  %v4595_v34 = vadd.f32 %v4594_v23, %v4555_v30  ;;  %v1857_v60 = vsel %vm1854_vm2, %v16501_v55, %v16500_v32  ;;  %v16503_v23 = vand.u32 4294901760, %v13636_v5  ;;  %v16504_v30 = vld [vmem:[#allocation110_spill] sm:$0xff]  ;;  %v13823_v32 = vsub.f32 %v16494_v16, %v13785_v52 }
 0x5b7   :  { %5553 = vmatpush.msra.mxu3 %v13621_v6  ;;  %5591 = vmatpush.msrb.mxu0 %v16492_v61  ;;  %v5701_v61 = vsub.f32 %v13726_v41, %v16495_v25  ;;  %v4626_v13 = vpop.f32.mrf.mxu1  ;;  %v13804_v25 = vsub.f32 %v16491_v59, %v13769_v44  ;;  %v13818_v59 = vand.u32 4294901760, %v16504_v30  ;;  %v16508_v16 = vand.u32 4294901760, %v13651_v58 }
 0x5b8   :  { %5557 = vmatmul.f32.vlgmr.msra.gmra.mxu3 %v16493_v21  ;;  %5619 = vmatpush.msrb.mxu1 %v13497_v20  ;;  %v1858_v21 = vsel %vm1854_vm2, %v16497_v31, %v16496_v1  ;;  %v16498_v20 = vand.u32 4294901760, %v13615_v3  ;;  %v5696_v31 = vand.u32 4294901760, %v5695_v48  ;;  %v4627_v55 = vadd.f32 %v4626_v13, %v4595_v34  ;;  %v16509_v13 = vld [vmem:[#allocation50_spill] sm:$0xff]  ;;  %v16511_v1 = vld [vmem:[#allocation27_spill] sm:$0xff] }
 0x5b9   :  { %5648 = vmatpush.msrb.mxu2 %v13717_v43  ;;  %5685 = vmatpush.msrb.mxu3 %v5684_v12  ;;  %v16499_v12 = vld [vmem:[#allocation123_spill] sm:$0xff]  ;;  %v1898_v29 = vsel %vm127_vm6, %v1858_v21, 0.0  ;;  %v5702_v5 = vand.u32 4294901760, %v5701_v61  ;;  %v16505_v48 = vand.u32 4294901760, %v13757_v40  ;;  %v13839_v21 = vand.u32 4294901760, %v16509_v13 }
 0x5ba   :  { %5595 = vmatpush.msrb.mxu0 %v16498_v20  ;;  %5621 = vmatpush.msrb.mxu1 %v13513_v38  ;;  %v13800_v22 = vand.u32 4294901760, %v16499_v12  ;;  %v16502_v38 = vand.u32 4294901760, %v13741_v42  ;;  %v16506_v20 = vld [vmem:[#allocation54_spill] sm:$0xff]  ;;  %v15672_v61 = vand.u32 4294901760, %v13804_v25  ;;  %v13863_v17 = vand.u32 4294901760, %v1898_v29 }
 0x5bb   :  { %5650 = vmatpush.msrb.mxu2 %v13730_v53  ;;  %5691 = vmatpush.msrb.mxu3 %v5690_v49  ;;  %v4674_v49 = vpop.f32.mrf.mxu2 }
 0x5bc   :  { %v5707_v3 = vsub.f32 %v13741_v42, %v16502_v38  ;;  %5599 = vmatpush.msrb.mxu0 %v16503_v23  ;;  %5623 = vmatpush.msrb.mxu1 %v13523_v4  ;;  %v5713_v4 = vsub.f32 %v13757_v40, %v16505_v48  ;;  %v16507_v38 = vld [vmem:[#allocation67_spill] sm:$0xff]  ;;  %v1894_v23 = vsel %vm127_vm6, %v1857_v60, 0.0  ;;  %v16510_v48 = vld [vmem:[#allocation49_spill] sm:$0xff]  ;;  %v15671_v60 = vand.u32 4294901760, %v13823_v32 }
 0x5bd   :  { %5652 = vmatpush.msrb.mxu2 %v13753_v56  ;;  %5697 = vmatpush.msrb.mxu3 %v5696_v31  ;;  %v1856_v34 = vsel %vm1854_vm2, %v16507_v38, %v16506_v20  ;;  %v13844_v31 = vsub.f32 %v16499_v12, %v13800_v22  ;;  %v1855_v58 = vsel %vm1854_vm2, %v16511_v1, %v16510_v48  ;;  %v16512_v12 = vand.u32 4294901760, %v13780_v51 }
 0x5be   :  { %5603 = vmatpush.msrb.mxu0 %v16508_v16  ;;  %5625 = vmatpush.msrb.mxu1 %v13545_v47  ;;  %v5708_v47 = vand.u32 4294901760, %v5707_v3  ;;  %v4675_v38 = vadd.f32 %v4674_v49, %v4627_v55  ;;  %v13861_v16 = vsub.f32 %v16504_v30, %v13818_v59  ;;  %v1890_v3 = vsel %vm127_vm6, %v1856_v34, 0.0 }
 0x5bf   :  { %5654 = vmatpush.msrb.mxu2 %v13769_v44  ;;  %5703 = vmatpush.msrb.mxu3 %v5702_v5  ;;  %v5719_v20 = vsub.f32 %v13780_v51, %v16512_v12  ;;  %v5725_v55 = vsub.f32 %v13804_v25, %v15672_v61  ;;  %v15674_v30 = vand.u32 4294901760, %v13844_v31  ;;  %v13878_v49 = vsub.f32 %v16509_v13, %v13839_v21 }
 0x5c0   :  { %5783 = vmatpush.msra.mxu0 %v13687_v15  ;;  %5627 = vmatpush.msrb.mxu1 %v13563_v36  ;;  %v5714_v36 = vand.u32 4294901760, %v5713_v4  ;;  %v4704_v1 = vpop.f32.mrf.mxu3  ;;  %v13880_v34 = vand.u32 4294901760, %v1894_v23  ;;  %v1886_v4 = vsel %vm127_vm6, %v1855_v58, 0.0  ;;  %v15673_v13 = vand.u32 4294901760, %v13861_v16 }
 0x5c1   :  { %5605 = vmatmul.f32.vlgmr.msrb.gmra.mxu0 %v16489_v33  ;;  %5656 = vmatpush.msrb.mxu2 %v13785_v52  ;;  %v13874_v5 = vadd.f32 %v4704_v1, %v4675_v38  ;;  %v5720_v48 = vand.u32 4294901760, %v5719_v20  ;;  %v8761_v38 = vpop.eup %8760  ;;  %v13893_v1 = vsub.f32 %v1898_v29, %v13863_v17  ;;  %v13895_v58 = vand.u32 4294901760, %v1890_v3 }
 0x5c2   :  { %5709 = vmatpush.msrb.mxu3 %v5708_v47  ;;  %5786 = vmatpush.msra.mxu0 %v13703_v50  ;;  %v5731_v47 = vsub.f32 %v13823_v32, %v15671_v60  ;;  %v5737_v20 = vsub.f32 %v13844_v31, %v15674_v30  ;;  %v15675_v60 = vand.u32 4294901760, %v13878_v49  ;;  %v13905_v29 = vsub.f32 %v1894_v23, %v13880_v34 }
 0x5c3   :  { %5629 = vmatpush.msrb.mxu1 %v13585_v26  ;;  %5658 = vmatpush.msrb.mxu2 %v13800_v22  ;;  %v6572_v12 = vmin.f32 %v13874_v5, 20.0  ;;  %v5726_v26 = vand.u32 4294901760, %v5725_v55  ;;  %v13907_v61 = vand.u32 4294901760, %v1886_v4  ;;  %vm16517_vm2 = vcmp.lt.s32.totalorder %v9101_v7, 126 }
 0x5c4   :  { %5715 = vmatpush.msrb.mxu3 %v5714_v36  ;;  %5789 = vmatpush.msra.mxu0 %v13723_v14  ;;  %v5732_v55 = vand.u32 4294901760, %v5731_v47  ;;  %v5738_v23 = vand.u32 4294901760, %v5737_v20  ;;  %v5749_v47 = vsub.f32 %v13878_v49, %v15675_v60  ;;  %v15676_v30 = vand.u32 4294901760, %v13905_v29  ;;  %v16515_v60 = vld [vmem:[#allocation26_spill] sm:$0xff]  ;;  %vm16527_vm0 = vmmov %vm16517_vm2 }
 0x5c5   :  { %5631 = vmatpush.msrb.mxu1 %v13607_v11  ;;  %5660 = vmatpush.msrb.mxu2 %v13818_v59  ;;  %v6577_v36 = vmul.f32 1.442695, %v6572_v12  ;;  %v6583_v11 = vadd.f32 2.0, %v8761_v38  ;;  %v13916_v12 = vsub.f32 %v1890_v3, %v13895_v58  ;;  %vm16520_vm6 = vcmp.lt.s32.totalorder %v16459_v24, 14  ;;  %vm16531_vm8 = vmmov %vm16527_vm0 }
 0x5c6   :  { %5721 = vmatpush.msrb.mxu3 %v5720_v48  ;;  %5792 = vmatpush.msra.mxu0 %v13726_v41  ;;  %v5743_v48 = vsub.f32 %v13861_v16, %v15673_v13  ;;  %v16514_v13 = vld [vmem:[#allocation88_spill] sm:$0xff]  ;;  %vm16533_vm1 = vmmov %vm16520_vm6 }
 0x5c7   :  { %5633 = vmatpush.msrb.mxu1 %v13621_v6  ;;  %5662 = vmatpush.msrb.mxu2 %v13839_v21  ;;  %8762 = vpow2.f32 %v6577_v36  ;;  %v13930_v36 = vsub.f32 %v1886_v4, %v13907_v61  ;;  %v16516_v6 = vld [vmem:[#allocation39_spill] sm:$0xff]  ;;  %v16518_v4 = vand.u32 4294901760, %v13893_v1  ;;  %vm16537_vm5 = vmmov %vm16527_vm0 }
 0x5c8   :  { %5727 = vmatpush.msrb.mxu3 %v5726_v26  ;;  %5635 = vmatmul.f32.vlgmr.msrb.gmra.mxu1 %v16489_v33  ;;  %v16513_v26 = vld [vmem:[#allocation104_spill] sm:$0xff]  ;;  %v5744_v20 = vand.u32 4294901760, %v5743_v48  ;;  %v5750_v48 = vand.u32 4294901760, %v5749_v47  ;;  %vm16540_vm14 = vmmov %vm16527_vm0 }
 0x5c9   :  { %5795 = vmatpush.msra.mxu0 %v13741_v42  ;;  %5836 = vmatpush.msra.mxu1 %v13656_v0  ;;  %v2368_v3 = vsel %vm2352_vm15, %v16514_v13, %v16513_v26  ;;  %v2291_v13 = vsel %vm16517_vm2, %v16516_v6, %v16515_v60  ;;  %v5755_v26 = vsub.f32 %v13893_v1, %v16518_v4  ;;  %v16521_v4 = vand.u32 4294901760, %v13916_v12  ;;  %vm16541_vm2 = vmmov %vm16533_vm1 }
 0x5ca   :  { %5664 = vmatpush.msrb.mxu2 %v13863_v17  ;;  %5733 = vmatpush.msrb.mxu3 %v5732_v55  ;;  %v13935_v55 = vmul.f32 %v8761_v38, %v6583_v11  ;;  %v5761_v6 = vsub.f32 %v13905_v29, %v15676_v30  ;;  %v2311_v38 = vsel %vm16520_vm6, %v2291_v13, 0.0  ;;  %v16522_v13 = vand.u32 4294901760, %v13687_v15  ;;  %vm16543_vm6 = vmmov %vm16533_vm1 }
 0x5cb   :  { %5798 = vmatpush.msra.mxu0 %v13757_v40  ;;  %5838 = vmatpush.msra.mxu1 %v13672_v2  ;;  %v5756_v30 = vand.u32 4294901760, %v5755_v26  ;;  %v5767_v33 = vsub.f32 %v13916_v12, %v16521_v4  ;;  %v16524_v26 = vand.u32 4294901760, %v13930_v36  ;;  %v16525_v4 = vld [vmem:[#allocation69_spill] sm:$0xff] }
 0x5cc   :  { %5666 = vmatpush.msrb.mxu2 %v13880_v34  ;;  %5739 = vmatpush.msrb.mxu3 %v5738_v23  ;;  %v13950_v23 = vsel %vm107_vm9, %v2368_v3, 0.0  ;;  %v13962_v3 = vadd.f32 2.0, %v13935_v55  ;;  %v2290_v15 = vsel %vm16527_vm0, %v16526_v37, %v16525_v4  ;;  %v16532_v4 = vand.u32 4294901760, %v13723_v14  ;;  %v16539_v14 = vld [vmem:[#allocation101_spill] sm:$0xff] }
 0x5cd   :  { %5801 = vmatpush.msra.mxu0 %v13780_v51  ;;  %5840 = vmatpush.msra.mxu1 %v13684_v10  ;;  %v8763_v11 = vpop.eup %8762  ;;  %16519 = vst [vmem:[#allocation70_spill] sm:$0xff] %v13950_v23  ;;  %v15679_v47 = vrot.slane %v13950_v23, 4  ;;  %v16546_v23 = vand.u32 4294901760, %v13780_v51  ;;  %vm16554_vm0 = vcmask 1043456  }
 0x5ce   :  { %5668 = vmatpush.msrb.mxu2 %v13895_v58  ;;  %5745 = vmatpush.msrb.mxu3 %v5744_v20  ;;  %v6584_v60 = vadd.f32 2.0, %v8763_v11  ;;  %8764 = vrcp.f32 %v13962_v3 }
 0x5cf   :  { %5804 = vmatpush.msra.mxu0 %v13804_v25  ;;  %5842 = vmatpush.msra.mxu1 %v13689_v27 }
 0x5d0   :  { %5670 = vmatpush.msrb.mxu2 %v13907_v61  ;;  %5751 = vmatpush.msrb.mxu3 %v5750_v48  ;;  %v13966_v20 = vmul.f32 %v8763_v11, %v6584_v60  ;;  %v2809_v48 = vsel %vm16523_vm3, %v2311_v38, %v15679_v47  ;;  %v5773_v60 = vsub.f32 %v13930_v36, %v16524_v26  ;;  %v16528_v38 = vand.u32 4294901760, %v13703_v50  ;;  %v16530_v26 = vld [vmem:[#allocation76_spill] sm:$0xff]  ;;  %v16536_v47 = vld [vmem:[#allocation95_spill] sm:$0xff]  ;;  %vm16544_vm3 = vmmov %vm16533_vm1 }
 0x5d1   :  { %5676 = vmatmul.f32.vlgmr.msrb.gmra.mxu2 %v16382_v35  ;;  %5807 = vmatpush.msra.mxu0 %v13823_v32  ;;  %v5762_v35 = vand.u32 4294901760, %v5761_v6  ;;  %v13996_v6 = vand.u32 4294901760, %v2809_v48  ;;  %v2307_v50 = vsel %vm16533_vm1, %v2290_v15, 0.0 }
 0x5d2   :  { %5844 = vmatpush.msra.mxu1 %v13717_v43  ;;  %5877 = vmatpush.msra.mxu2 %v16522_v13  ;;  %v13980_v11 = vadd.f32 2.0, %v13966_v20  ;;  %v16529_v13 = vld [vmem:[#allocation55_spill] sm:$0xff] }
 0x5d3   :  { %5757 = vmatpush.msrb.mxu3 %v5756_v30  ;;  %5810 = vmatpush.msra.mxu0 %v13844_v31  ;;  %v5768_v30 = vand.u32 4294901760, %v5767_v33  ;;  %v2289_v37 = vsel %vm16531_vm8, %v16530_v26, %v16529_v13  ;;  %v16534_v33 = vand.u32 4294901760, %v13726_v41  ;;  %v16538_v26 = vld [vmem:[#allocation117_spill] sm:$0xff]  ;;  %v14025_v41 = vsub.f32 %v2809_v48, %v13996_v6 }
 0x5d4   :  { %5846 = vmatpush.msra.mxu1 %v13730_v53  ;;  %5881 = vmatpush.msra.mxu2 %v16528_v38  ;;  %8766 = vrcp.f32 %v13980_v11  ;;  %v16535_v38 = vld [vmem:[#allocation105_spill] sm:$0xff]  ;;  %v2303_v15 = vsel %vm16541_vm2, %v2289_v37, 0.0  ;;  %vm6600_vm2 = vweird.f32 %v13962_v3 }
 0x5d5   :  { %5763 = vmatpush.msrb.mxu3 %v5762_v35  ;;  %5813 = vmatpush.msra.mxu0 %v13861_v16  ;;  %v5774_v35 = vand.u32 4294901760, %v5773_v60  ;;  %v2288_v13 = vsel %vm16537_vm5, %v16536_v47, %v16535_v38  ;;  %v14022_v60 = vpop.eup %8764  ;;  %vm6615_vm5 = vweird.f32 %v13980_v11 }
 0x5d6   :  { %5848 = vmatpush.msra.mxu1 %v13753_v56  ;;  %5885 = vmatpush.msra.mxu2 %v16532_v4  ;;  %v2287_v4 = vsel %vm16540_vm14, %v16539_v14, %v16538_v26  ;;  %v2299_v37 = vsel %vm16543_vm6, %v2288_v13, 0.0  ;;  %v15681_v26 = vand.u32 4294901760, %v14025_v41  ;;  %vm6601_vm1 = vweird.f32 %v14022_v60 }
 0x5d7   :  { %5769 = vmatpush.msrb.mxu3 %v5768_v30  ;;  %5816 = vmatpush.msra.mxu0 %v13878_v49  ;;  %v14027_v30 = vand.u32 4294901760, %v2307_v50  ;;  %v2295_v48 = vsel %vm16544_vm3, %v2287_v4, 0.0  ;;  %v14057_v14 = vand.u32 4294901760, %v2299_v37  ;;  %vm14166_vm6 = vmor %vm6600_vm2, %vm6601_vm1 }
 0x5d8   :  { %5850 = vmatpush.msra.mxu1 %v13769_v44  ;;  %5889 = vmatpush.msra.mxu2 %v16534_v33  ;;  %v16542_v33 = vand.u32 4294901760, %v13741_v42  ;;  %v6596_v42 = vmul.f32 %v14022_v60, %v13962_v3  ;;  %v14059_v4 = vand.u32 4294901760, %v2295_v48 }
 0x5d9   :  { %5775 = vmatpush.msrb.mxu3 %v5774_v35  ;;  %5819 = vmatpush.msra.mxu0 %v13893_v1  ;;  %v14040_v35 = vand.u32 4294901760, %v2303_v15  ;;  %v14052_v13 = vsub.f32 %v2307_v50, %v14027_v30  ;;  %v16547_v50 = vand.u32 4294901760, %v13804_v25 }
 0x5da   :  { %5777 = vmatmul.f32.vlgmr.msrb.gmra.mxu3 %v16397_v62  ;;  %5852 = vmatpush.msra.mxu1 %v13785_v52  ;;  %v14031_v47 = vpop.eup %8766 }
 0x5db   :  { %5893 = vmatpush.msra.mxu2 %v16542_v33  ;;  %5944 = vmatpush.msra.mxu3 %v13656_v0  ;;  %v6611_v38 = vmul.f32 %v14031_v47, %v13980_v11  ;;  %v16545_v0 = vand.u32 4294901760, %v13757_v40  ;;  %v6597_v40 = vsub.f32 1.0, %v6596_v42  ;;  %v15682_v51 = vand.u32 4294901760, %v14052_v13 }
 0x5dc   :  { %5822 = vmatpush.msra.mxu0 %v13905_v29  ;;  %5854 = vmatpush.msra.mxu1 %v13800_v22  ;;  %vm6616_vm8 = vweird.f32 %v14031_v47 }
 0x5dd   :  { %5897 = vmatpush.msra.mxu2 %v16545_v0  ;;  %5946 = vmatpush.msra.mxu3 %v13672_v2  ;;  %v6612_v33 = vsub.f32 1.0, %v6611_v38  ;;  %v14065_v2 = vsub.f32 %v2303_v15, %v14040_v35  ;;  %v14082_v15 = vsub.f32 %v2295_v48, %v14059_v4  ;;  %v16549_v38 = vld [vmem:[#allocation73_spill] sm:$0xff]  ;;  %v6598_v0 = vmul.f32 %v14022_v60, %v6597_v40  ;;  %vm14142_vm14 = vmor %vm6615_vm5, %vm6616_vm8 }
 0x5de   :  { %5825 = vmatpush.msra.mxu0 %v13916_v12  ;;  %5856 = vmatpush.msra.mxu1 %v13818_v59  ;;  %v14091_v42 = vand.u32 4294901760, %v16549_v38  ;;  %v16550_v48 = vand.u32 4294901760, %v13844_v31  ;;  %v6030_v40 = vsub.f32 %v14052_v13, %v15682_v51  ;;  %v16558_v51 = vand.u32 4294901760, %v13878_v49 }
 0x5df   :  { %5901 = vmatpush.msra.mxu2 %v16546_v23  ;;  %5948 = vmatpush.msra.mxu3 %v13684_v10  ;;  %v6024_v10 = vsub.f32 %v14025_v41, %v15681_v26  ;;  %v14079_v23 = vsub.f32 %v2299_v37, %v14057_v14  ;;  %v6613_v25 = vmul.f32 %v14031_v47, %v6612_v33  ;;  %v15683_v37 = vand.u32 4294901760, %v14065_v2 }
 0x5e0   :  { %5828 = vmatpush.msra.mxu0 %v13930_v36  ;;  %5858 = vmatpush.msra.mxu1 %v13839_v21  ;;  %vm16579_vm8 = vcmask 1043456  }
 0x5e1   :  { %5905 = vmatpush.msra.mxu2 %v16547_v50  ;;  %5950 = vmatpush.msra.mxu3 %v13689_v27  ;;  %v16548_v27 = vand.u32 4294901760, %v13823_v32  ;;  %v16553_v32 = vld [vmem:[#allocation23_spill] sm:$0xff]  ;;  %v6614_v31 = vadd.f32 %v14031_v47, %v6613_v25  ;;  %v6036_v25 = vsub.f32 %v14065_v2, %v15683_v37  ;;  %v6606_v37 = vand.u32 2147483648, %v13962_v3  ;;  %vm16581_vm1 = vmmov %vm16579_vm8 }
 0x5e2   :  { %5981 = vmatpush.msrb.mxu0 %v13996_v6  ;;  %5860 = vmatpush.msra.mxu1 %v13863_v17  ;;  %vm16582_vm5 = vmmov %vm16581_vm1 }
 0x5e3   :  { %5831 = vmatmul.f32.vlgmr.msra.gmra.mxu0 %v16390_v46  ;;  %5909 = vmatpush.msra.mxu2 %v16548_v27  ;;  %v16551_v46 = vld [vmem:[#allocation46_spill] sm:$0xff]  ;;  %v6618_v19 = vsel %vm14142_vm14, %v14031_v47, %v6614_v31  ;;  %vm123_vm14 = vcmp.lt.s32.totalorder %v16459_v24, 12  ;;  %vm16589_vm2 = vmmov %vm16581_vm1 }
 0x5e4   :  { %5952 = vmatpush.msra.mxu3 %v13717_v43  ;;  %5983 = vmatpush.msrb.mxu0 %v14027_v30  ;;  %v16552_v33 = vrot.slane %v16551_v46, 4  ;;  %v6025_v43 = vand.u32 4294901760, %v6024_v10  ;;  %v16555_v27 = vld [vmem:[#allocation58_spill] sm:$0xff]  ;;  %v6621_v46 = vand.u32 2147483648, %v13980_v11  ;;  %v6031_v10 = vand.u32 4294901760, %v6030_v40 }
 0x5e5   :  { %5862 = vmatpush.msra.mxu1 %v13880_v34  ;;  %5913 = vmatpush.msra.mxu2 %v16550_v48  ;;  %v14110_v26 = vand.u32 4294901760, %v16555_v27  ;;  %v16556_v48 = vand.u32 4294901760, %v13861_v16  ;;  %v14130_v16 = vsub.f32 %v16549_v38, %v14091_v42 }
 0x5e6   :  { %v14102_v50 = vsel %vm16554_vm0, %v16553_v32, %v16552_v33  ;;  %5954 = vmatpush.msra.mxu3 %v13730_v53  ;;  %5985 = vmatpush.msrb.mxu0 %v14040_v35  ;;  %v16557_v33 = vld [vmem:[#allocation77_spill] sm:$0xff]  ;;  %v16562_v53 = vld [vmem:[#allocation22_spill] sm:$0xff] }
 0x5e7   :  { %5864 = vmatpush.msra.mxu1 %v13895_v58  ;;  %5917 = vmatpush.msra.mxu2 %v16556_v48  ;;  %v14126_v32 = vand.u32 4294901760, %v16557_v33  ;;  %v6599_v48 = vadd.f32 %v14022_v60, %v6598_v0  ;;  %v16561_v0 = vld [vmem:[#allocation8_spill] sm:$0xff]  ;;  %v14153_v49 = vsub.f32 %v16555_v27, %v14110_v26  ;;  %v14174_v47 = vand.u32 4294901760, %v14102_v50 }
 0x5e8   :  { %5956 = vmatpush.msra.mxu3 %v13753_v56  ;;  %5987 = vmatpush.msrb.mxu0 %v14057_v14  ;;  %v6619_v56 = vand.u32 2147483647, %v13980_v11  ;;  %v14149_v11 = vand.u32 4294901760, %v16562_v53 }
 0x5e9   :  { %5866 = vmatpush.msra.mxu1 %v13907_v61  ;;  %5921 = vmatpush.msra.mxu2 %v16558_v51  ;;  %v6604_v51 = vand.u32 2147483647, %v13962_v3  ;;  %v16566_v3 = vand.u32 4294901760, %v13893_v1  ;;  %v14179_v31 = vsub.f32 %v16557_v33, %v14126_v32  ;;  %v6603_v38 = vsel %vm14166_vm6, %v14022_v60, %v6599_v48 }
 0x5ea   :  { %5958 = vmatpush.msra.mxu3 %v13769_v44  ;;  %5870 = vmatmul.f32.vlgmr.msra.gmra.mxu1 %v16561_v0  ;;  %v16563_v44 = vand.u32 4294901760, %v14079_v23  ;;  %v6622_v0 = vor.u32 1.1754944e-38, %v6621_v46  ;;  %vm6620_vm3 = vcmp.eq.f32.partialorder %v6619_v56, 8.507059e+37  ;;  %v6037_v1 = vand.u32 4294901760, %v6036_v25  ;;  %v16569_v25 = vld [vmem:[#allocation30_spill] sm:$0xff] }
 0x5eb   :  { %5989 = vmatpush.msrb.mxu0 %v14059_v4  ;;  %6026 = vmatpush.msrb.mxu1 %v6025_v43  ;;  %v16568_v43 = vand.u32 4294901760, %v13905_v29  ;;  %v6059_v33 = vand.u32 4294901760, %v14153_v49  ;;  %v14194_v60 = vsub.f32 %v16562_v53, %v14149_v11  ;;  %vm6605_vm0 = vcmp.eq.f32.partialorder %v6604_v51, 8.507059e+37 }
 0x5ec   :  { %v6042_v40 = vsub.f32 %v14079_v23, %v16563_v44  ;;  %5925 = vmatpush.msra.mxu2 %v16566_v3  ;;  %5960 = vmatpush.msra.mxu3 %v13785_v52  ;;  %v16567_v52 = vand.u32 4294901760, %v14082_v15  ;;  %v6607_v44 = vor.u32 1.1754944e-38, %v6606_v37  ;;  %v6623_v3 = vsel %vm6620_vm3, %v6622_v0, %v6618_v19  ;;  %vm16614_vm3 = vmmov %vm16581_vm1 }
 0x5ed   :  { %5991 = vmatpush.msrb.mxu0 %v14091_v42  ;;  %6032 = vmatpush.msrb.mxu1 %v6031_v10  ;;  %v14198_v48 = vand.u32 4294901760, %v16569_v25  ;;  %v16570_v29 = vand.u32 4294901760, %v13916_v12  ;;  %v6065_v53 = vand.u32 4294901760, %v14179_v31  ;;  %v14209_v56 = vsub.f32 %v14102_v50, %v14174_v47 }
 0x5ee   :  { %v6048_v46 = vsub.f32 %v14082_v15, %v16567_v52  ;;  %5929 = vmatpush.msra.mxu2 %v16568_v43  ;;  %5962 = vmatpush.msra.mxu3 %v13800_v22  ;;  %v6043_v10 = vand.u32 4294901760, %v6042_v40  ;;  %v6608_v19 = vsel %vm6605_vm0, %v6607_v44, %v6603_v38  ;;  %v16571_v22 = vand.u32 4294901760, %v14130_v16  ;;  %v16572_v40 = vld [vmem:[#allocation28_spill] sm:$0xff]  ;;  %v16574_v43 = vld [vmem:[#allocation10_spill] sm:$0xff] }
 0x5ef   :  { %5993 = vmatpush.msrb.mxu0 %v14110_v26  ;;  %6038 = vmatpush.msrb.mxu1 %v6037_v1  ;;  %v6624_v51 = vmul.f32 %v6623_v3, %v13966_v20  ;;  %v14214_v12 = vand.u32 4294901760, %v16572_v40  ;;  %v6060_v0 = vsub.f32 %v14153_v49, %v6059_v33  ;;  %v6071_v50 = vand.u32 4294901760, %v14194_v60 }
 0x5f0   :  { %5933 = vmatpush.msra.mxu2 %v16570_v29  ;;  %5964 = vmatpush.msra.mxu3 %v13818_v59  ;;  %v6054_v37 = vsub.f32 %v14130_v16, %v16571_v22  ;;  %v16573_v59 = vand.u32 4294901760, %v13930_v36  ;;  %v6049_v27 = vand.u32 4294901760, %v6048_v46  ;;  %v6609_v20 = vmul.f32 %v6608_v19, %v13935_v55  ;;  %v16575_v46 = vld [vmem:[#allocation9_spill] sm:$0xff] }
 0x5f1   :  { %5995 = vmatpush.msrb.mxu0 %v14126_v32  ;;  %6044 = vmatpush.msrb.mxu1 %v6043_v10  ;;  %v14227_v38 = vand.u32 4294901760, %v16574_v43  ;;  %v14231_v36 = vsub.f32 %v16569_v25, %v14198_v48  ;;  %v6066_v1 = vsub.f32 %v14179_v31, %v6065_v53  ;;  %v6077_v55 = vand.u32 4294901760, %v14209_v56  ;;  %v16576_v10 = vld [vmem:[#allocation31_spill] sm:$0xff] }
 0x5f2   :  { %5937 = vmatpush.msra.mxu2 %v16573_v59  ;;  %5966 = vmatpush.msra.mxu3 %v13839_v21  ;;  %v6055_v21 = vand.u32 4294901760, %v6054_v37  ;;  %v14239_v52 = vmul.f32 %v6624_v51, %v13874_v5  ;;  %v14244_v44 = vand.u32 4294901760, %v16575_v46  ;;  %v14248_v3 = vsub.f32 %v16572_v40, %v14214_v12  ;;  %v16580_v37 = vld [vmem:[#allocation25_spill] sm:$0xff] }
 0x5f3   :  { %5939 = vmatmul.f32.vlgmr.msra.gmra.mxu2 %v16397_v62  ;;  %5997 = vmatpush.msrb.mxu0 %v14149_v11  ;;  %v16577_v25 = vrot.slane %v16576_v10, 4  ;;  %v16578_v19 = vrot.slane %v13580_v63, 4  ;;  %v6061_v5 = vand.u32 4294901760, %v6060_v0  ;;  %v14260_v22 = vmul.f32 %v6609_v20, %v13744_v8 }
 0x5f4   :  { %6050 = vmatpush.msrb.mxu1 %v6049_v27  ;;  %6124 = vmatpush.msrb.mxu2 %v14025_v41  ;;  %v14265_v51 = vand.u32 4294901760, %v16580_v37  ;;  %v6083_v63 = vand.u32 4294901760, %v14231_v36  ;;  %v14270_v40 = vsub.f32 %v16574_v43, %v14227_v38  ;;  %v6067_v59 = vand.u32 4294901760, %v6066_v1 }
 0x5f5   :  { %5968 = vmatpush.msra.mxu3 %v13863_v17  ;;  %5999 = vmatpush.msrb.mxu0 %v14174_v47  ;;  %v2613_v29 = vsel %vm16579_vm8, %v16578_v19, %v16577_v25  ;;  %v6072_v17 = vsub.f32 %v14194_v60, %v6071_v50  ;;  %v6078_v8 = vsub.f32 %v14209_v56, %v6077_v55  ;;  %v6089_v0 = vand.u32 4294901760, %v14248_v3 }
 0x5f6   :  { %6056 = vmatpush.msrb.mxu1 %v6055_v21  ;;  %6127 = vmatpush.msrb.mxu2 %v14052_v13  ;;  %v14280_v27 = vand.u32 4294901760, %v2613_v29  ;;  %v14285_v20 = vsub.f32 %v16575_v46, %v14244_v44  ;;  %v6084_v21 = vsub.f32 %v14231_v36, %v6083_v63  ;;  %v6095_v1 = vand.u32 4294901760, %v14270_v40 }
 0x5f7   :  { %5970 = vmatpush.msra.mxu3 %v13880_v34  ;;  %6001 = vmatpush.msrb.mxu0 %v14198_v48  ;;  %v6684_v34 = vsel %vm16581_vm1, %v14239_v52, 0.0  ;;  %v6073_v43 = vand.u32 4294901760, %v6072_v17  ;;  %v14298_v46 = vsub.f32 %v16580_v37, %v14265_v51  ;;  %v6079_v10 = vand.u32 4294901760, %v6078_v8 }
 0x5f8   :  { %6062 = vmatpush.msrb.mxu1 %v6061_v5  ;;  %6130 = vmatpush.msrb.mxu2 %v14065_v2  ;;  %v6090_v25 = vsub.f32 %v14248_v3, %v6089_v0  ;;  %v6101_v19 = vand.u32 4294901760, %v14285_v20  ;;  %v14308_v5 = vsub.f32 %v2613_v29, %v14280_v27  ;;  %v6096_v17 = vsub.f32 %v14270_v40, %v6095_v1 }
 0x5f9   :  { %5972 = vmatpush.msra.mxu3 %v13895_v58  ;;  %6003 = vmatpush.msrb.mxu0 %v14214_v12  ;;  %v6683_v58 = vsel %vm16582_vm5, %v14260_v22, 0.0  ;;  %v6107_v37 = vand.u32 4294901760, %v14298_v46  ;;  %vm16613_vm6 = vcmask 31744  }
 0x5fa   :  { %6068 = vmatpush.msrb.mxu1 %v6067_v59  ;;  %6133 = vmatpush.msrb.mxu2 %v14079_v23  ;;  %v6091_v29 = vand.u32 4294901760, %v6090_v25  ;;  %v6102_v59 = vsub.f32 %v14285_v20, %v6101_v19  ;;  %v6113_v8 = vand.u32 4294901760, %v14308_v5 }
 0x5fb   :  { %5974 = vmatpush.msra.mxu3 %v13907_v61  ;;  %6005 = vmatpush.msrb.mxu0 %v14227_v38  ;;  %v6685_v61 = vadd.f32 %v6684_v34, %v6683_v58  ;;  %v6097_v34 = vand.u32 4294901760, %v6096_v17  ;;  %v16583_v58 = vand.u32 4294901760, %v14025_v41  ;;  %v16585_v41 = vand.u32 4294901760, %v14052_v13  ;;  %v16587_v13 = vld [vmem:[#allocation80_spill] sm:$0xff] }
 0x5fc   :  { %5976 = vmatmul.f32.vlgmr.msra.gmra.mxu3 %v16397_v62  ;;  %6074 = vmatpush.msrb.mxu1 %v6073_v43  ;;  %v6085_v62 = vand.u32 4294901760, %v6084_v21  ;;  %v6108_v43 = vsub.f32 %v14298_v46, %v6107_v37  ;;  %v6103_v21 = vand.u32 4294901760, %v6102_v59  ;;  %v16588_v59 = vand.u32 4294901760, %v14079_v23 }
 0x5fd   :  { %6136 = vmatpush.msrb.mxu2 %v14082_v15  ;;  %6177 = vmatpush.msrb.mxu3 %v13996_v6 }
 0x5fe   :  { %6007 = vmatpush.msrb.mxu0 %v14244_v44  ;;  %6080 = vmatpush.msrb.mxu1 %v6079_v10  ;;  %v6114_v10 = vsub.f32 %v14308_v5, %v6113_v8 }
 0x5ff   :  { %6139 = vmatpush.msrb.mxu2 %v14130_v16  ;;  %6179 = vmatpush.msrb.mxu3 %v14027_v30 }
 0x600   :  { %6690 = vadd.xlane.f32.xlu0 %v6685_v61  ;;  %6009 = vmatpush.msrb.mxu0 %v14265_v51  ;;  %v16584_v61 = vld [vmem:[#allocation34_spill] sm:$0xff]  ;;  %v6115_v17 = vand.u32 4294901760, %v6114_v10 }
 0x601   :  { %6086 = vmatpush.msrb.mxu1 %v6085_v62  ;;  %6142 = vmatpush.msrb.mxu2 %v14153_v49  ;;  %v2461_v25 = vsel %vm2441_vm7, %v13361_v28, %v16584_v61  ;;  %v16586_v28 = vand.u32 4294901760, %v14065_v2  ;;  %v16590_v2 = vld [vmem:[#allocation82_spill] sm:$0xff]  ;;  %v16594_v61 = vand.u32 4294901760, %v14130_v16  ;;  %v8155_v49 = vld [vmem:[%s15317_s13 + $0x8] sm:$0x3] }
 0x602   :  { %6181 = vmatpush.msrb.mxu3 %v14040_v35  ;;  %6011 = vmatpush.msrb.mxu0 %v14280_v27  ;;  %v2489_v62 = vsel %vm123_vm14, %v2461_v25, 0.0  ;;  %v16596_v16 = vld [vmem:[#allocation42_spill] sm:$0xff] }
 0x603   :  { %6092 = vmatpush.msrb.mxu1 %v6091_v29  ;;  %6145 = vmatpush.msrb.mxu2 %v14179_v31  ;;  %v2460_v29 = vsel %vm2441_vm7, %v16440_v57, %v16587_v13 }
 0x604   :  { %6183 = vmatpush.msrb.mxu3 %v14057_v14  ;;  %6218 = vmatpush.msra.mxu0 %v16583_v58  ;;  %v16591_v58 = vand.u32 4294901760, %v14082_v15  ;;  %v2485_v57 = vsel %vm123_vm14, %v2460_v29, 0.0 }
 0x605   :  { %6017 = vmatmul.f32.vlgmr.msrb.gmra.mxu0 %v16429_v9  ;;  %6098 = vmatpush.msrb.mxu1 %v6097_v34  ;;  %v6109_v9 = vand.u32 4294901760, %v6108_v43  ;;  %v2841_v34 = vsel %vm16589_vm2, %v2489_v62, 0  ;;  %v2459_v43 = vsel %vm2441_vm7, %v13412_v18, %v16590_v2  ;;  %v16593_v18 = vld [vmem:[#allocation86_spill] sm:$0xff]  ;;  %v14390_v25 = vand.u32 4294901760, %v2485_v57  ;;  %v16597_v62 = vld [vmem:[#allocation128_spill] sm:$0xff] }
 0x606   :  { %6148 = vmatpush.msrb.mxu2 %v14194_v60  ;;  %6185 = vmatpush.msrb.mxu3 %v14059_v4  ;;  %v14373_v23 = vand.u32 4294901760, %v2841_v34  ;;  %v2370_v15 = vsel %vm2352_vm15, %v13445_v54, %v16593_v18  ;;  %v16595_v54 = vld [vmem:[#allocation103_spill] sm:$0xff] }
 0x607   :  { %6222 = vmatpush.msra.mxu0 %v16585_v41  ;;  %6104 = vmatpush.msrb.mxu1 %v6103_v21  ;;  %v16592_v21 = vld [vmem:[#allocation130_spill] sm:$0xff]  ;;  %v2457_v41 = vsel %vm2441_vm7, %v16596_v16, %v16595_v54  ;;  %v14425_v13 = vsub.f32 %v2485_v57, %v14390_v25 }
 0x608   :  { %6151 = vmatpush.msrb.mxu2 %v14209_v56  ;;  %6187 = vmatpush.msrb.mxu3 %v14091_v42  ;;  %v2458_v10 = vsel %vm2441_vm7, %v13395_v45, %v16592_v21  ;;  %v2473_v29 = vsel %vm123_vm14, %v2457_v41, 0.0  ;;  %v16603_v56 = vld [vmem:[#allocation149_spill] sm:$0xff]  ;;  %vm16604_vm7 = vmmov %vm16581_vm1 }
 0x609   :  { %6226 = vmatpush.msra.mxu0 %v16586_v28  ;;  %6110 = vmatpush.msrb.mxu1 %v6109_v9  ;;  %v2477_v45 = vsel %vm123_vm14, %v2458_v10, 0.0  ;;  %v14411_v9 = vsub.f32 %v2841_v34, %v14373_v23  ;;  %v16598_v28 = vld [vmem:[#allocation45_spill] sm:$0xff]  ;;  %v14441_v2 = vand.u32 4294901760, %v2473_v29 }
 0x60a   :  { %6154 = vmatpush.msrb.mxu2 %v14231_v36  ;;  %6189 = vmatpush.msrb.mxu3 %v14110_v26 }
 0x60b   :  { %6230 = vmatpush.msra.mxu0 %v16588_v59  ;;  %6116 = vmatpush.msrb.mxu1 %v6115_v17  ;;  %v2369_v17 = vsel %vm2352_vm15, %v16598_v28, %v16597_v62  ;;  %v6364_v34 = vand.u32 4294901760, %v14411_v9  ;;  %vm16602_vm15 = vmmov %vm16581_vm1 }
 0x60c   :  { %6157 = vmatpush.msrb.mxu2 %v14248_v3  ;;  %6191 = vmatpush.msrb.mxu3 %v14126_v32  ;;  %v2388_v31 = vsel %vm107_vm9, %v2369_v17, 0.0 }
 0x60d   :  { %6118 = vmatmul.f32.vlgmr.msrb.gmra.mxu1 %v16433_v39  ;;  %6234 = vmatpush.msra.mxu0 %v16591_v58  ;;  %v6365_v10 = vsub.f32 %v14411_v9, %v6364_v34 }
 0x60e   :  { %6285 = vmatpush.msra.mxu1 %v13996_v6  ;;  %6160 = vmatpush.msrb.mxu2 %v14270_v40  ;;  %v2481_v6 = vsel %vm123_vm14, %v2459_v43, 0.0  ;;  %v2748_v43 = vrot.slane %v2388_v31, 4  ;;  %v16609_v31 = vld [vmem:[#allocation154_spill] sm:$0xff] }
 0x60f   :  { %6193 = vmatpush.msrb.mxu3 %v14149_v11  ;;  %6238 = vmatpush.msra.mxu0 %v16594_v61  ;;  %v16605_v61 = vld [vmem:[#allocation70_spill] sm:$0xff]  ;;  %v6366_v54 = vand.u32 4294901760, %v6365_v10 }
 0x610   :  { %6287 = vmatpush.msra.mxu1 %v14027_v30  ;;  %6163 = vmatpush.msrb.mxu2 %v14285_v20  ;;  %v2392_v30 = vsel %vm107_vm9, %v2370_v15, 0.0  ;;  %vm16607_vm9 = vmmov %vm16581_vm1  ;;  %v16615_v10 = vld [vmem:[#allocation62_spill] sm:$0xff] }
 0x611   :  { %6195 = vmatpush.msrb.mxu3 %v14174_v47  ;;  %6242 = vmatpush.msra.mxu0 %v6059_v33  ;;  %v14408_v33 = vand.u32 4294901760, %v2481_v6  ;;  %v2756_v59 = vrot.slane %v2392_v30, 4 }
 0x612   :  { %6289 = vmatpush.msra.mxu1 %v14040_v35  ;;  %6166 = vmatpush.msrb.mxu2 %v14298_v46  ;;  %v14422_v35 = vand.u32 4294901760, %v2477_v45  ;;  %v8701_v46 = vld [vmem:[%s15317_s13 + $0x28] sm:$0x3] }
 0x613   :  { %6197 = vmatpush.msrb.mxu3 %v14198_v48  ;;  %6246 = vmatpush.msra.mxu0 %v6065_v53  ;;  %v16599_v53 = vld [vmem:[#allocation121_spill] sm:$0xff]  ;;  %v2757_v21 = vsel %vm16604_vm7, %v2748_v43, %v2756_v59 }
 0x614   :  { %6291 = vmatpush.msra.mxu1 %v14057_v14  ;;  %6169 = vmatpush.msrb.mxu2 %v14308_v5  ;;  %v14436_v14 = vsub.f32 %v2481_v6, %v14408_v33  ;;  %v14447_v60 = vsub.f32 %v2477_v45, %v14422_v35  ;;  %v16606_v6 = vrot.slane %v16605_v61, 4  ;;  %v14489_v3 = vand.u32 4294901760, %v2757_v21 }
 0x615   :  { %6199 = vmatpush.msrb.mxu3 %v14214_v12  ;;  %8195 = vperm.xlu0 %8725, %v8155_v49  }
 0x616   :  { %6172 = vmatmul.f32.vlgmr.msrb.gmra.mxu2 %v16599_v53  ;;  %6250 = vmatpush.msra.mxu0 %v6071_v50  ;;  %v16600_v50 = vld [vmem:[#allocation7_spill] sm:$0xff]  ;;  %v6376_v36 = vand.u32 4294901760, %v14436_v14  ;;  %v6382_v15 = vand.u32 4294901760, %v14447_v60  ;;  %v2749_v45 = vsel %vm16607_vm9, %v16606_v6, %v2748_v43  ;;  %v14518_v62 = vsub.f32 %v2757_v21, %v14489_v3  ;;  %vm16616_vm9 = vmmov %vm16614_vm3 }
 0x617   :  { %6293 = vmatpush.msra.mxu1 %v14059_v4  ;;  %6329 = vmatpush.msra.mxu2 %v14373_v23  ;;  %v16601_v58 = vrot.slane %v16600_v50, 4  ;;  %v6370_v4 = vand.u32 4294901760, %v14425_v13  ;;  %v14512_v49 = vand.u32 4294901760, %v2749_v45 }
 0x618   :  { %6201 = vmatpush.msrb.mxu3 %v14227_v38  ;;  %6254 = vmatpush.msra.mxu0 %v6077_v55  ;;  %v14459_v55 = vand.u32 4294901760, %v16603_v56  ;;  %v6377_v16 = vsub.f32 %v14436_v14, %v6376_v36  ;;  %v6406_v17 = vand.u32 4294901760, %v14518_v62 }
 0x619   :  { %v2765_v57 = vsel %vm16602_vm15, %v2756_v59, %v16601_v58  ;;  %6295 = vmatpush.msra.mxu1 %v14091_v42  ;;  %6331 = vmatpush.msra.mxu2 %v14390_v25  ;;  %v8698_v42 = vld [vmem:[%s15317_s13 + $0x10] sm:$0xff]  ;;  %v6371_v18 = vsub.f32 %v14425_v13, %v6370_v4 }
 0x61a   :  { %6203 = vmatpush.msrb.mxu3 %v14244_v44  ;;  %6258 = vmatpush.msra.mxu0 %v6083_v63  ;;  %v14472_v63 = vsub.f32 %v2473_v29, %v14441_v2  ;;  %v6378_v20 = vand.u32 4294901760, %v6377_v16  ;;  %v6407_v59 = vsub.f32 %v14518_v62, %v6406_v17 }
 0x61b   :  { %6297 = vmatpush.msra.mxu1 %v14110_v26  ;;  %6333 = vmatpush.msra.mxu2 %v14408_v33  ;;  %v14477_v26 = vand.u32 4294901760, %v2765_v57  ;;  %v6372_v40 = vand.u32 4294901760, %v6371_v18 }
 0x61c   :  { %6205 = vmatpush.msrb.mxu3 %v14265_v51  ;;  %6262 = vmatpush.msra.mxu0 %v6089_v0  ;;  %v16608_v0 = vld [vmem:[#allocation134_spill] sm:$0xff]  ;;  %v6388_v41 = vand.u32 4294901760, %v14472_v63  ;;  %v6408_v43 = vand.u32 4294901760, %v6407_v59 }
 0x61d   :  { %6299 = vmatpush.msra.mxu1 %v14126_v32  ;;  %6335 = vmatpush.msra.mxu2 %v14422_v35  ;;  %v14493_v32 = vsub.f32 %v16603_v56, %v14459_v55  ;;  %v14505_v30 = vsub.f32 %v2765_v57, %v14477_v26  ;;  %v4745_v57 = vpop.f32.mrf.mxu0  ;;  %v4846_v56 = vpop.f32.mrf.mxu1 }
 0x61e   :  { %6207 = vmatpush.msrb.mxu3 %v14280_v27  ;;  %8287 = vperm.xlu0 %8725, %v8698_v42   ;;  %v4939_v42 = vpop.f32.mrf.mxu3 }
 0x61f   :  { %6211 = vmatmul.f32.vlgmr.msrb.gmra.mxu3 %v16608_v0  ;;  %6266 = vmatpush.msra.mxu0 %v6095_v1  ;;  %v6383_v1 = vsub.f32 %v14447_v60, %v6382_v15 }
 0x620   :  { %6301 = vmatpush.msra.mxu1 %v14149_v11  ;;  %6337 = vmatpush.msra.mxu2 %v14441_v2  ;;  %v6394_v11 = vand.u32 4294901760, %v14493_v32 }
 0x621   :  { %6367 = vmatpush.msra.mxu3 %v6366_v54  ;;  %6270 = vmatpush.msra.mxu0 %v6101_v19  ;;  %v6400_v19 = vand.u32 4294901760, %v14505_v30  ;;  %v6384_v28 = vand.u32 4294901760, %v6383_v1 }
 0x622   :  { %6303 = vmatpush.msra.mxu1 %v14174_v47  ;;  %6339 = vmatpush.msra.mxu2 %v14459_v55  ;;  %v6389_v47 = vsub.f32 %v14472_v63, %v6388_v41 }
 0x623   :  { %6373 = vmatpush.msra.mxu3 %v6372_v40  ;;  %6274 = vmatpush.msra.mxu0 %v6107_v37  ;;  %v6411_v37 = vsub.f32 %v2749_v45, %v14512_v49 }
 0x624   :  { %6305 = vmatpush.msra.mxu1 %v14198_v48  ;;  %6341 = vmatpush.msra.mxu2 %v14477_v26  ;;  %v6395_v48 = vsub.f32 %v14493_v32, %v6394_v11  ;;  %v6390_v5 = vand.u32 4294901760, %v6389_v47 }
 0x625   :  { %6379 = vmatpush.msra.mxu3 %v6378_v20  ;;  %6278 = vmatpush.msra.mxu0 %v6113_v8  ;;  %v6401_v8 = vsub.f32 %v14505_v30, %v6400_v19  ;;  %v5045_v61 = vpop.f32.mrf.mxu1 }
 0x626   :  { %6307 = vmatpush.msra.mxu1 %v14214_v12  ;;  %6343 = vmatpush.msra.mxu2 %v14489_v3  ;;  %v6412_v12 = vand.u32 4294901760, %v6411_v37  ;;  %v6396_v29 = vand.u32 4294901760, %v6395_v48 }
 0x627   :  { %6385 = vmatpush.msra.mxu3 %v6384_v28  ;;  %6430 = vmatpush.msrb.mxu0 %v14411_v9  ;;  %v6402_v53 = vand.u32 4294901760, %v6401_v8 }
 0x628   :  { %8361 = vperm.xlu0 %8725, %v8701_v46   ;;  %6280 = vmatmul.f32.vlgmr.msra.gmra.mxu0 %v16433_v39 }
 0x629   :  { %6309 = vmatpush.msra.mxu1 %v14227_v38  ;;  %6345 = vmatpush.msra.mxu2 %v14512_v49  ;;  %v6413_v38 = vsub.f32 %v6411_v37, %v6412_v12 }
 0x62a   :  { %6391 = vmatpush.msra.mxu3 %v6390_v5  ;;  %6433 = vmatpush.msrb.mxu0 %v14425_v13 }
 0x62b   :  { %6503 = vmatpush.msrb.mxu2 %v6364_v34  ;;  %6311 = vmatpush.msra.mxu1 %v14244_v44  ;;  %v8702_v44 = vld [vmem:[%s15317_s13 + $0x30] sm:$0xff]  ;;  %v6414_v9 = vand.u32 4294901760, %v6413_v38 }
 0x62c   :  { %6397 = vmatpush.msra.mxu3 %v6396_v29  ;;  %6351 = vmatmul.f32.vlgmr.msra.gmra.mxu2 %v16609_v31 }
 0x62d   :  { %6436 = vmatpush.msrb.mxu0 %v14436_v14  ;;  %6507 = vmatpush.msrb.mxu2 %v6370_v4 }
 0x62e   :  { %6313 = vmatpush.msra.mxu1 %v14265_v51  ;;  %6403 = vmatpush.msra.mxu3 %v6402_v53  ;;  %v16610_v51 = vld [vmem:[#allocation90_spill] sm:$0xff] }
 0x62f   :  { %6439 = vmatpush.msrb.mxu0 %v14447_v60  ;;  %6511 = vmatpush.msrb.mxu2 %v6376_v36  ;;  %v4746_v36 = vadd.f32 %v4745_v57, %v16615_v10 }
 0x630   :  { %6315 = vmatpush.msra.mxu1 %v14280_v27  ;;  %6409 = vmatpush.msra.mxu3 %v6408_v43  ;;  %v16612_v27 = vld [vmem:[#allocation107_spill] sm:$0xff] }
 0x631   :  { %6317 = vmatmul.f32.vlgmr.msra.gmra.mxu1 %v16433_v39  ;;  %6442 = vmatpush.msrb.mxu0 %v14472_v63  ;;  %v16611_v39 = vld [vmem:[#allocation150_spill] sm:$0xff] }
 0x632   :  { %6469 = vmatpush.msrb.mxu1 %v14373_v23  ;;  %6515 = vmatpush.msrb.mxu2 %v6382_v15  ;;  %v5008_v15 = vpop.f32.mrf.mxu0 }
 0x633   :  { %8457 = vperm.xlu0 %8725, %v8702_v44   ;;  %6415 = vmatpush.msra.mxu3 %v6414_v9 }
 0x634   :  { %6417 = vmatmul.f32.vlgmr.msra.gmra.mxu3 %v16610_v51  ;;  %6445 = vmatpush.msrb.mxu0 %v14493_v32 }
 0x635   :  { %6471 = vmatpush.msrb.mxu1 %v14390_v25  ;;  %6519 = vmatpush.msrb.mxu2 %v6388_v41  ;;  %v5280_v41 = vpop.f32.mrf.mxu1 }
 0x636   :  { %6549 = vmatpush.msrb.mxu3 %v14373_v23  ;;  %6448 = vmatpush.msrb.mxu0 %v14505_v30  ;;  %v6693_v23 = vld [vmem:[%s15311_s7] sm:$0xff]  ;;  %s8836_s7 = smov 8  }
 0x637   :  { %6473 = vmatpush.msrb.mxu1 %v14408_v33  ;;  %6523 = vmatpush.msrb.mxu2 %v6394_v11 }
 0x638   :  { %6551 = vmatpush.msrb.mxu3 %v14390_v25  ;;  %6451 = vmatpush.msrb.mxu0 %v14518_v62  ;;  %v6696_v25 = vsel %vm16613_vm6, %v6693_v23, 0  ;;  %vm16617_vm6 = vmmov %vm16614_vm3 }
 0x639   :  { %6475 = vmatpush.msrb.mxu1 %v14422_v35  ;;  %6527 = vmatpush.msrb.mxu2 %v6400_v19 }
 0x63a   :  { %6553 = vmatpush.msrb.mxu3 %v14408_v33  ;;  %6454 = vmatpush.msrb.mxu0 %v6411_v37  ;;  %v14596_v33 = vand.u32 4294901760, %v6696_v25  ;;  %v5241_v54 = vpop.f32.mrf.mxu0 }
 0x63b   :  { %6477 = vmatpush.msrb.mxu1 %v14441_v2  ;;  %6531 = vmatpush.msrb.mxu2 %v6406_v17 }
 0x63c   :  { %6555 = vmatpush.msrb.mxu3 %v14422_v35  ;;  %6457 = vmatmul.f32.vlgmr.msrb.gmra.mxu0 %v16611_v39  ;;  %v14599_v35 = vsub.f32 %v6696_v25, %v14596_v33 }
 0x63d   :  { %6479 = vmatpush.msrb.mxu1 %v14459_v55  ;;  %6535 = vmatpush.msrb.mxu2 %v6412_v12  ;;  %v5486_v20 = vpop.f32.mrf.mxu1 }
 0x63e   :  { %6557 = vmatpush.msrb.mxu3 %v14441_v2  ;;  %6537 = vmatmul.f32.vlgmr.msrb.gmra.mxu2 %v16610_v51  ;;  %v14602_v13 = vand.u32 4294901760, %v14599_v35 }
 0x63f   :  { %6481 = vmatpush.msrb.mxu1 %v14477_v26 }
 0x640   :  { %6559 = vmatpush.msrb.mxu3 %v14459_v55  ;;  %v6721_v14 = vsub.f32 %v14599_v35, %v14602_v13  ;;  %v4900_v55 = vpop.f32.mrf.mxu2 }
 0x641   :  { %6483 = vmatpush.msrb.mxu1 %v14489_v3 }
 0x642   :  { %6561 = vmatpush.msrb.mxu3 %v14477_v26  ;;  %v14607_v50 = vand.u32 4294901760, %v6721_v14  ;;  %v4847_v26 = vadd.f32 %v4846_v56, %v4746_v36  ;;  %v5420_v11 = vpop.f32.mrf.mxu0 }
 0x643   :  { %6485 = vmatpush.msrb.mxu1 %v14512_v49 }
 0x644   :  { %6563 = vmatpush.msrb.mxu3 %v14489_v3  ;;  %6489 = vmatmul.f32.vlgmr.msrb.gmra.mxu1 %v16612_v27  ;;  %v4901_v45 = vadd.f32 %v4900_v55, %v4847_v26  ;;  %v5187_v3 = vpop.f32.mrf.mxu3 }
 0x645   :  { %v5636_v17 = vpop.f32.mrf.mxu1 }
 0x646   :  { %6565 = vmatpush.msrb.mxu3 %v14512_v49  ;;  %v4940_v32 = vadd.f32 %v4939_v42, %v4901_v45 }
 0x647   :  { %6567 = vmatmul.f32.vlgmr.msrb.gmra.mxu3 %v16610_v51 }
 0x648   :  { %v5086_v6 = vpop.f32.mrf.mxu2  ;;  %v5009_v0 = vadd.f32 %v5008_v15, %v4940_v32 }
 0x64a   :  { %v5046_v16 = vadd.f32 %v5045_v61, %v5009_v0  ;;  %v5606_v37 = vpop.f32.mrf.mxu0 }
 0x64c   :  { %v5386_v40 = vpop.f32.mrf.mxu3  ;;  %v5087_v1 = vadd.f32 %v5086_v6, %v5046_v16 }
 0x64e   :  { %v5188_v49 = vadd.f32 %v5187_v3, %v5087_v1 }
 0x650   :  { %v5349_v30 = vpop.f32.mrf.mxu2  ;;  %v5242_v62 = vadd.f32 %v5241_v54, %v5188_v49 }
 0x652   :  { %v5281_v19 = vadd.f32 %v5280_v41, %v5242_v62 }
 0x654   :  { %v5558_v28 = vpop.f32.mrf.mxu3  ;;  %v5350_v46 = vadd.f32 %v5349_v30, %v5281_v19 }
 0x656   :  { %v5387_v48 = vadd.f32 %v5386_v40, %v5350_v46 }
 0x658   :  { %v5526_v47 = vpop.f32.mrf.mxu2  ;;  %v5421_v12 = vadd.f32 %v5420_v11, %v5387_v48 }
 0x65a   :  { %v5487_v59 = vadd.f32 %v5486_v20, %v5421_v12 }
 0x65c   :  { %v5527_v43 = vadd.f32 %v5526_v47, %v5487_v59 }
 0x65d   :  { %v5778_v8 = vpop.f32.mrf.mxu3 }
 0x65e   :  { %v5559_v51 = vadd.f32 %v5558_v28, %v5527_v43 }
 0x660   :  { %v5677_v5 = vpop.f32.mrf.mxu2  ;;  %v5832_v53 = vpop.f32.mrf.mxu0  ;;  %v5607_v25 = vadd.f32 %v5606_v37, %v5559_v51 }
 0x661   :  { %v5678_v29 = vadd.f32 %v5677_v5, %v16615_v10 }
 0x663   :  { %v5779_v31 = vadd.f32 %v5778_v8, %v5678_v29 }
 0x665   :  { %v5833_v44 = vadd.f32 %v5832_v53, %v5779_v31 }
 0x667   :  { %v5871_v38 = vpop.f32.mrf.mxu1 }
 0x668   :  { %v5872_v39 = vadd.f32 %v5871_v38, %v5833_v44 }
 0x673   :  { %v6691_v34 = vpop.xlane.xlu0 %6690 }
 0x674   :  { %v6692_v2 = vmul.f32 0.00390625, %v6691_v34 }
 0x676   :  { %v6699_v60 = vsel %vm16614_vm3, %v6692_v2, 0  ;;  %v5940_v9 = vpop.f32.mrf.mxu2  ;;  %v14617_v2 = vadd.f32 %v5636_v17, %v5607_v25  ;;  %vm6871_vm3 = vcmask 64512  }
 0x677   :  { %v6716_v58 = vand.u32 4294901760, %v6699_v60  ;;  %v5941_v23 = vadd.f32 %v5940_v9, %v5872_v39 }
 0x679   :  { %v6743_v4 = vsub.f32 %v6699_v60, %v6716_v58  ;;  %6717 = vmatpush.msra.mxu0 %v6716_v58  ;;  %6793 = vmatpush.msra.mxu3 %v6716_v58 }
 0x67a   :  { %6723 = vmatmul.f32.vlgmr.msra.gmra.mxu0 %v14607_v50  ;;  %6797 = vmatmul.f32.vlgmr.msra.gmra.mxu3 %v14602_v13 }
 0x67b   :  { %6770 = vmatpush.msra.mxu2 %v6743_v4  ;;  %v6744_v21 = vand.u32 4294901760, %v6743_v4 }
 0x67c   :  { %6773 = vmatmul.f32.vlgmr.msra.gmra.mxu2 %v14599_v35 }
 0x67d   :  { %6819 = vmatpush.msrb.mxu0 %v6744_v21  ;;  %v6745_v63 = vsub.f32 %v6743_v4, %v6744_v21  ;;  %v6573_v4 = vmin.f32 %v14617_v2, 20.0 }
 0x67f   :  { %v6746_v18 = vand.u32 4294901760, %v6745_v63  ;;  %v5977_v27 = vpop.f32.mrf.mxu3  ;;  %v6579_v42 = vmul.f32 1.442695, %v6573_v4 }
 0x680   :  { %v5978_v14 = vadd.f32 %v5977_v27, %v5941_v23 }
 0x681   :  { %6747 = vmatpush.msra.mxu1 %v6746_v18  ;;  %8768 = vpow2.f32 %v6579_v42  ;;  %v14632_v42 = vld [vmem:[%s15312_s8] sm:$0xff] }
 0x682   :  { %6749 = vmatmul.f32.vlgmr.msra.gmra.mxu1 %v14596_v33  ;;  %6821 = vmatmul.f32.vlgmr.msrb.gmra.mxu0 %v14596_v33  ;;  %v6018_v34 = vpop.f32.mrf.mxu0 }
 0x683   :  { %6841 = vmatpush.msrb.mxu1 %v6716_v58  ;;  %v6019_v58 = vadd.f32 %v6018_v34, %v5978_v14 }
 0x687   :  { %v8769_v6 = vpop.eup %8768 }
 0x688   :  { %v6585_v32 = vadd.f32 2.0, %v8769_v6 }
 0x68a   :  { %6843 = vmatmul.f32.vlgmr.msrb.gmra.mxu1 %v14596_v33  ;;  %v6119_v60 = vpop.f32.mrf.mxu1  ;;  %v6589_v41 = vmul.f32 %v8769_v6, %v6585_v32 }
 0x68b   :  { %v6120_v56 = vadd.f32 %v6119_v60, %v6019_v58 }
 0x68c   :  { %v6593_v1 = vadd.f32 2.0, %v6589_v41 }
 0x68e   :  { %8770 = vrcp.f32 %v6593_v1  ;;  %v6636_v29 = vand.u32 2147483648, %v6593_v1  ;;  %vm6630_vm8 = vweird.f32 %v6593_v1  ;;  %v6634_v59 = vand.u32 2147483647, %v6593_v1 }
 0x690   :  { %v6637_v43 = vor.u32 1.1754944e-38, %v6636_v29  ;;  %vm6635_vm5 = vcmp.eq.f32.partialorder %v6634_v59, 8.507059e+37 }
 0x694   :  { %v8771_v19 = vpop.eup %8770 }
 0x695   :  { %v6626_v28 = vmul.f32 %v8771_v19, %v6593_v1  ;;  %vm6631_vm0 = vweird.f32 %v8771_v19 }
 0x696   :  { %vm6632_vm1 = vmor %vm6630_vm8, %vm6631_vm0 }
 0x697   :  { %v6627_v48 = vsub.f32 1.0, %v6626_v28 }
 0x699   :  { %v6173_v57 = vpop.f32.mrf.mxu2  ;;  %v6628_v8 = vmul.f32 %v8771_v19, %v6627_v48 }
 0x69a   :  { %v6174_v21 = vadd.f32 %v6173_v57, %v6120_v56 }
 0x69b   :  { %v6629_v12 = vadd.f32 %v8771_v19, %v6628_v8 }
 0x69d   :  { %v6633_v53 = vsel %vm6632_vm1, %v8771_v19, %v6629_v12 }
 0x69e   :  { %v6638_v9 = vsel %vm6635_vm5, %v6637_v43, %v6633_v53 }
 0x69f   :  { %v6639_v23 = vmul.f32 %v6638_v9, %v6589_v41 }
 0x6a1   :  { %v14621_v58 = vmul.f32 %v6639_v23, %v14617_v2 }
 0x6a2   :  { %v6212_v55 = vpop.f32.mrf.mxu3 }
 0x6a3   :  { %v6213_v10 = vadd.f32 %v6212_v55, %v6174_v21  ;;  %v7076_v56 = vsel %vm16616_vm9, %v14621_v58, 0.0 }
 0x6a5   :  { %v6281_v36 = vpop.f32.mrf.mxu0 }
 0x6a6   :  { %v6282_v26 = vadd.f32 %v6281_v36, %v6213_v10 }
 0x6ae   :  { %v6318_v63 = vpop.f32.mrf.mxu1 }
 0x6af   :  { %v6319_v18 = vadd.f32 %v6318_v63, %v6282_v26  ;;  %v6352_v15 = vpop.f32.mrf.mxu2 }
 0x6b1   :  { %v6353_v45 = vadd.f32 %v6352_v15, %v6319_v18 }
 0x6b7   :  { %v6418_v61 = vpop.f32.mrf.mxu3 }
 0x6b8   :  { %v6419_v3 = vadd.f32 %v6418_v61, %v6353_v45 }
 0x6b9   :  { %v6458_v0 = vpop.f32.mrf.mxu0 }
 0x6ba   :  { %v6459_v16 = vadd.f32 %v6458_v0, %v6419_v3 }
 0x6c1   :  { %v6490_v54 = vpop.f32.mrf.mxu1  ;;  %v6538_v40 = vpop.f32.mrf.mxu2 }
 0x6c2   :  { %v6491_v30 = vadd.f32 %v6490_v54, %v6459_v16  ;;  %v8154_v54 = vld [vmem:[%s15317_s13] sm:$0xff] }
 0x6c4   :  { %v6539_v49 = vadd.f32 %v6538_v40, %v6491_v30  ;;  %v8700_v30 = vld [vmem:[%s15317_s13 + $0x20] sm:$0xff] }
 0x6ca   :  { %v6568_v11 = vpop.f32.mrf.mxu3 }
 0x6cb   :  { %v6569_v62 = vadd.f32 %v6568_v11, %v6539_v49  ;;  %v6869_v11 = vld [vmem:[%s15313_s9] sm:$0xf] }
 0x6cd   :  { %v6574_v20 = vmin.f32 %v6569_v62, 20.0 }
 0x6cf   :  { %v6581_v47 = vmul.f32 1.442695, %v6574_v20  ;;  %v6873_v20 = vsel %vm6871_vm3, %v6869_v11, 0 }
 0x6d1   :  { %8772 = vpow2.f32 %v6581_v47  ;;  %v14647_v47 = vand.u32 4294901760, %v6873_v20 }
 0x6d7   :  { %v8773_v46 = vpop.eup %8772 }
 0x6d8   :  { %v6586_v37 = vadd.f32 2.0, %v8773_v46 }
 0x6da   :  { %v6590_v17 = vmul.f32 %v8773_v46, %v6586_v37  ;;  %v14650_v37 = vsub.f32 %v6873_v20, %v14647_v47 }
 0x6dc   :  { %v6594_v5 = vadd.f32 2.0, %v6590_v17  ;;  %v14653_v12 = vand.u32 4294901760, %v14650_v37 }
 0x6de   :  { %8774 = vrcp.f32 %v6594_v5  ;;  %v6651_v51 = vand.u32 2147483648, %v6594_v5  ;;  %v6649_v27 = vand.u32 2147483647, %v6594_v5  ;;  %vm6645_vm2 = vweird.f32 %v6594_v5 }
 0x6df   :  { %v6895_v53 = vsub.f32 %v14650_v37, %v14653_v12 }
 0x6e0   :  { %v6652_v14 = vor.u32 1.1754944e-38, %v6651_v51  ;;  %vm6650_vm7 = vcmp.eq.f32.partialorder %v6649_v27, 8.507059e+37 }
 0x6e4   :  { %v8775_v31 = vpop.eup %8774 }
 0x6e5   :  { %v6641_v38 = vmul.f32 %v8775_v31, %v6594_v5  ;;  %vm6646_vm14 = vweird.f32 %v8775_v31 }
 0x6e6   :  { %vm6647_vm15 = vmor %vm6645_vm2, %vm6646_vm14 }
 0x6e7   :  { %v6642_v44 = vsub.f32 1.0, %v6641_v38  ;;  %vm16618_vm14 = vmmov %vm16617_vm6 }
 0x6e9   :  { %v6643_v39 = vmul.f32 %v8775_v31, %v6642_v44  ;;  %v14657_v44 = vand.u32 4294901760, %v6895_v53 }
 0x6eb   :  { %v6644_v25 = vadd.f32 %v8775_v31, %v6643_v39 }
 0x6ed   :  { %v6648_v34 = vsel %vm6647_vm15, %v8775_v31, %v6644_v25 }
 0x6ee   :  { %v6653_v60 = vsel %vm6650_vm7, %v6652_v14, %v6648_v34 }
 0x6ef   :  { %v6654_v57 = vmul.f32 %v6653_v60, %v6590_v17 }
 0x6f1   :  { %v14623_v4 = vmul.f32 %v6654_v57, %v6569_v62  ;;  %v8704_v62 = vld [vmem:[%s15317_s13 + $0x40] sm:$0xff] }
 0x6f3   :  { %v7078_v55 = vsel %vm16617_vm6, %v14623_v4, 0.0 }
 0x6f4   :  { %v7079_v21 = vadd.f32 %v7078_v55, %v7076_v56 }
 0x6f6   :  { %7080 = vadd.xlane.f32.xlu1 %v7079_v21 }
 0x6f7   :  { %v6724_v10 = vpop.f32.mrf.mxu0 }
 0x6f8   :  { %v6725_v2 = vadd.f32 %v6724_v10, %v14632_v42 }
 0x6fd   :  { %v6798_v18 = vpop.f32.mrf.mxu3 }
 0x6ff   :  { %v6750_v36 = vpop.f32.mrf.mxu1  ;;  %v6774_v63 = vpop.f32.mrf.mxu2 }
 0x700   :  { %v6751_v26 = vadd.f32 %v6750_v36, %v6725_v2  ;;  %v6822_v61 = vpop.f32.mrf.mxu0 }
 0x702   :  { %v6775_v15 = vadd.f32 %v6774_v63, %v6751_v26 }
 0x704   :  { %v6799_v6 = vadd.f32 %v6798_v18, %v6775_v15 }
 0x706   :  { %v6823_v45 = vadd.f32 %v6822_v61, %v6799_v6 }
 0x707   :  { %v6844_v3 = vpop.f32.mrf.mxu1 }
 0x708   :  { %v6845_v32 = vadd.f32 %v6844_v3, %v6823_v45 }
 0x70a   :  { %v6847_v0 = vmin.f32 %v6845_v32, 20.0 }
 0x70c   :  { %v6848_v16 = vmul.f32 1.442695, %v6847_v0 }
 0x70e   :  { %8776 = vpow2.f32 %v6848_v16 }
 0x70f   :  { %8190 = vperm.xlu1 %8726, %v8154_v54  }
 0x714   :  { %v8777_v41 = vpop.eup %8776 }
 0x715   :  { %v6850_v40 = vadd.f32 2.0, %v8777_v41 }
 0x717   :  { %v6851_v1 = vmul.f32 %v8777_v41, %v6850_v40  ;;  %8356 = vperm.xlu1 %8726, %v8700_v30  }
 0x719   :  { %v6852_v49 = vadd.f32 2.0, %v6851_v1 }
 0x71b   :  { %8778 = vrcp.f32 %v6852_v49  ;;  %v6864_v46 = vand.u32 2147483648, %v6852_v49  ;;  %vm6858_vm0 = vweird.f32 %v6852_v49  ;;  %v6862_v17 = vand.u32 2147483647, %v6852_v49 }
 0x71d   :  { %v6865_v8 = vor.u32 1.1754944e-38, %v6864_v46  ;;  %vm6863_vm5 = vcmp.eq.f32.partialorder %v6862_v17, 8.507059e+37 }
 0x71f   :  { %8558 = vperm.xlu1 %8726, %v8704_v62  }
 0x721   :  { %v8779_v19 = vpop.eup %8778 }
 0x722   :  { %v6854_v28 = vmul.f32 %v8779_v19, %v6852_v49  ;;  %vm6859_vm8 = vweird.f32 %v8779_v19 }
 0x723   :  { %vm6860_vm1 = vmor %vm6858_vm0, %vm6859_vm8 }
 0x724   :  { %v6855_v48 = vsub.f32 1.0, %v6854_v28 }
 0x726   :  { %v6856_v5 = vmul.f32 %v8779_v19, %v6855_v48 }
 0x728   :  { %v6857_v29 = vadd.f32 %v8779_v19, %v6856_v5 }
 0x72a   :  { %v6861_v59 = vsel %vm6860_vm1, %v8779_v19, %v6857_v29  ;;  %vm16619_vm1 = vcmask 31744  }
 0x72b   :  { %v6866_v31 = vsel %vm6863_vm5, %v6865_v8, %v6861_v59  ;;  %vm16620_vm5 = vmmov %vm16618_vm14 }
 0x72c   :  { %v6867_v38 = vmul.f32 %v6866_v31, %v6851_v1 }
 0x72e   :  { %v6868_v43 = vmul.f32 %v6867_v38, %v6845_v32 }
 0x730   :  { %v6890_v9 = vand.u32 4294901760, %v6868_v43 }
 0x732   :  { %v6917_v51 = vsub.f32 %v6868_v43, %v6890_v9  ;;  %6891 = vmatpush.msrb.mxu2 %v6890_v9  ;;  %6967 = vmatpush.msra.mxu1 %v6890_v9 }
 0x733   :  { %6897 = vmatmul.f32.vlgmr.msrb.gmra.mxu2 %v14657_v44  ;;  %6971 = vmatmul.f32.vlgmr.msra.gmra.mxu1 %v14653_v12 }
 0x734   :  { %6944 = vmatpush.msra.mxu0 %v6917_v51  ;;  %v6918_v39 = vand.u32 4294901760, %v6917_v51 }
 0x735   :  { %6947 = vmatmul.f32.vlgmr.msra.gmra.mxu0 %v14650_v37 }
 0x736   :  { %6993 = vmatpush.msra.mxu2 %v6918_v39  ;;  %v6919_v27 = vsub.f32 %v6917_v51, %v6918_v39 }
 0x738   :  { %v6920_v23 = vand.u32 4294901760, %v6919_v27 }
 0x73a   :  { %6921 = vmatpush.msrb.mxu3 %v6920_v23 }
 0x73b   :  { %6923 = vmatmul.f32.vlgmr.msrb.gmra.mxu3 %v14647_v47  ;;  %6995 = vmatmul.f32.vlgmr.msra.gmra.mxu2 %v14647_v47 }
 0x73c   :  { %7015 = vmatpush.msra.mxu3 %v6890_v9 }
 0x743   :  { %7017 = vmatmul.f32.vlgmr.msra.gmra.mxu3 %v14647_v47 }
 0x769   :  { %v7081_v25 = vpop.xlane.xlu1 %7080 }
 0x76a   :  { %v7082_v14 = vmul.f32 0.00390625, %v7081_v25 }
 0x76c   :  { %v7084_v34 = vsel %vm16618_vm14, %v7082_v14, 0  ;;  %vm16621_vm14 = vmmov %vm16620_vm5 }
 0x76d   :  { %v7101_v60 = vand.u32 4294901760, %v7084_v34 }
 0x76f   :  { %v7128_v57 = vsub.f32 %v7084_v34, %v7101_v60  ;;  %7102 = vmatpush.msrb.mxu0 %v7101_v60  ;;  %7178 = vmatpush.msrb.mxu3 %v7101_v60 }
 0x770   :  { %7108 = vmatmul.f32.vlgmr.msrb.gmra.mxu0 %v14607_v50  ;;  %7182 = vmatmul.f32.vlgmr.msrb.gmra.mxu3 %v14602_v13  ;;  %v14675_v50 = vld [vmem:[%s15314_s10] sm:$0xf] }
 0x771   :  { %7155 = vmatpush.msrb.mxu2 %v7128_v57  ;;  %v7129_v56 = vand.u32 4294901760, %v7128_v57 }
 0x772   :  { %7158 = vmatmul.f32.vlgmr.msrb.gmra.mxu2 %v14599_v35 }
 0x773   :  { %7204 = vmatpush.msra.mxu0 %v7129_v56  ;;  %v7130_v55 = vsub.f32 %v7128_v57, %v7129_v56 }
 0x775   :  { %v7131_v21 = vand.u32 4294901760, %v7130_v55 }
 0x777   :  { %7132 = vmatpush.msrb.mxu1 %v7131_v21 }
 0x778   :  { %7134 = vmatmul.f32.vlgmr.msrb.gmra.mxu1 %v14596_v33  ;;  %7206 = vmatmul.f32.vlgmr.msra.gmra.mxu0 %v14596_v33 }
 0x779   :  { %7226 = vmatpush.msra.mxu1 %v7101_v60 }
 0x780   :  { %7228 = vmatmul.f32.vlgmr.msra.gmra.mxu1 %v14596_v33 }
 0x7b0   :  { %v6972_v63 = vpop.f32.mrf.mxu1 }
 0x7b2   :  { %v6948_v2 = vpop.f32.mrf.mxu0 }
 0x7b6   :  { %v6898_v13 = vpop.f32.mrf.mxu2 }
 0x7b7   :  { %v6899_v10 = vadd.f32 %v6898_v13, %v14675_v50 }
 0x7be   :  { %v6924_v35 = vpop.f32.mrf.mxu3  ;;  %v6996_v18 = vpop.f32.mrf.mxu2 }
 0x7bf   :  { %v6925_v36 = vadd.f32 %v6924_v35, %v6899_v10 }
 0x7c1   :  { %v6949_v26 = vadd.f32 %v6948_v2, %v6925_v36 }
 0x7c3   :  { %v6973_v15 = vadd.f32 %v6972_v63, %v6949_v26 }
 0x7c5   :  { %v6997_v61 = vadd.f32 %v6996_v18, %v6973_v15  ;;  %v7436_v15 = vld [vmem:[%s15315_s11] sm:$0x3] }
 0x7c6   :  { %v7018_v6 = vpop.f32.mrf.mxu3 }
 0x7c7   :  { %v7019_v45 = vadd.f32 %v7018_v6, %v6997_v61 }
 0x7c9   :  { %v7021_v3 = vsub.f32 0.0, %v7019_v45 }
 0x7cb   :  { %v7022_v33 = vmul.f32 1.442695, %v7021_v3 }
 0x7cd   :  { %8780 = vpow2.f32 %v7022_v33 }
 0x7d3   :  { %v8781_v32 = vpop.eup %8780 }
 0x7d4   :  { %v7024_v0 = vadd.f32 1.0, %v8781_v32 }
 0x7d6   :  { %8782 = vrcp.f32 %v7024_v0  ;;  %v7036_v41 = vand.u32 2147483648, %v7024_v0  ;;  %vm7030_vm2 = vweird.f32 %v7024_v0  ;;  %v7034_v40 = vand.u32 2147483647, %v7024_v0 }
 0x7d8   :  { %v7037_v49 = vor.u32 1.1754944e-38, %v7036_v41  ;;  %vm7035_vm9 = vcmp.eq.f32.partialorder %v7034_v40, 8.507059e+37 }
 0x7dc   :  { %v8783_v54 = vpop.eup %8782 }
 0x7dd   :  { %v7026_v16 = vmul.f32 %v8783_v54, %v7024_v0  ;;  %vm7031_vm15 = vweird.f32 %v8783_v54 }
 0x7de   :  { %vm7032_vm7 = vmor %vm7030_vm2, %vm7031_vm15 }
 0x7df   :  { %v7027_v30 = vsub.f32 1.0, %v7026_v16 }
 0x7e1   :  { %v7028_v1 = vmul.f32 %v8783_v54, %v7027_v30 }
 0x7e3   :  { %v7029_v11 = vadd.f32 %v8783_v54, %v7028_v1 }
 0x7e5   :  { %v7033_v62 = vsel %vm7032_vm7, %v8783_v54, %v7029_v11 }
 0x7e6   :  { %v7038_v20 = vsel %vm7035_vm9, %v7037_v49, %v7033_v62 }
 0x7e7   :  { %7042 = vperm.xlu2 %8727, %v7038_v20  }
 0x7ed   :  { %v7109_v19 = vpop.f32.mrf.mxu0 }
 0x7ee   :  { %v7110_v28 = vadd.f32 %v7109_v19, %v14632_v42 }
 0x7f3   :  { %v7183_v5 = vpop.f32.mrf.mxu3 }
 0x7f5   :  { %v7135_v46 = vpop.f32.mrf.mxu1  ;;  %v7159_v48 = vpop.f32.mrf.mxu2 }
 0x7f6   :  { %v7136_v17 = vadd.f32 %v7135_v46, %v7110_v28  ;;  %v7207_v29 = vpop.f32.mrf.mxu0 }
 0x7f8   :  { %v7160_v8 = vadd.f32 %v7159_v48, %v7136_v17 }
 0x7fa   :  { %v7184_v59 = vadd.f32 %v7183_v5, %v7160_v8 }
 0x7fc   :  { %v7208_v31 = vadd.f32 %v7207_v29, %v7184_v59 }
 0x7fd   :  { %v7229_v53 = vpop.f32.mrf.mxu1 }
 0x7fe   :  { %v7230_v38 = vadd.f32 %v7229_v53, %v7208_v31 }
 0x800   :  { %v7232_v43 = vmin.f32 %v7230_v38, 20.0 }
 0x802   :  { %v7233_v9 = vmul.f32 1.442695, %v7232_v43 }
 0x804   :  { %8784 = vpow2.f32 %v7233_v9 }
 0x80a   :  { %v8785_v51 = vpop.eup %8784 }
 0x80b   :  { %v7235_v39 = vadd.f32 2.0, %v8785_v51 }
 0x80d   :  { %v7236_v27 = vmul.f32 %v8785_v51, %v7235_v39 }
 0x80f   :  { %v7237_v23 = vadd.f32 2.0, %v7236_v27 }
 0x811   :  { %8786 = vrcp.f32 %v7237_v23  ;;  %v7249_v34 = vand.u32 2147483648, %v7237_v23  ;;  %v7247_v57 = vand.u32 2147483647, %v7237_v23  ;;  %vm7243_vm3 = vweird.f32 %v7237_v23 }
 0x813   :  { %v7250_v55 = vor.u32 1.1754944e-38, %v7249_v34  ;;  %vm7248_vm8 = vcmp.eq.f32.partialorder %v7247_v57, 8.507059e+37  ;;  %v7437_v57 = vld [vmem:[%s15316_s12] sm:$0x3] }
 0x817   :  { %v8787_v25 = vpop.eup %8786 }
 0x818   :  { %v7239_v42 = vmul.f32 %v8787_v25, %v7237_v23  ;;  %vm7244_vm6 = vweird.f32 %v8787_v25 }
 0x819   :  { %vm7245_vm0 = vmor %vm7243_vm3, %vm7244_vm6 }
 0x81a   :  { %v7240_v14 = vsub.f32 1.0, %v7239_v42  ;;  %vm16622_vm6 = vmmov %vm16620_vm5 }
 0x81b   :  { %vm16623_vm3 = vmmov %vm16620_vm5 }
 0x81c   :  { %v7241_v60 = vmul.f32 %v8787_v25, %v7240_v14 }
 0x81e   :  { %v7242_v56 = vadd.f32 %v8787_v25, %v7241_v60 }
 0x820   :  { %v7246_v21 = vsel %vm7245_vm0, %v8787_v25, %v7242_v56  ;;  %v8699_v56 = vld [vmem:[%s15317_s13 + $0x18] sm:$0x3]  ;;  %vm16624_vm0 = vcmp.lt.s32.totalorder %v9101_v7, 96 }
 0x821   :  { %v7251_v13 = vsel %vm7248_vm8, %v7250_v55, %v7246_v21  ;;  %vm16625_vm8 = vmmov %vm16623_vm3 }
 0x822   :  { %v7252_v10 = vmul.f32 %v7251_v13, %v7236_v27 }
 0x824   :  { %v7253_v35 = vmul.f32 %v7252_v10, %v7230_v38 }
 0x826   :  { %v7269_v2 = vand.u32 4294901760, %v7253_v35 }
 0x828   :  { %v7296_v36 = vsub.f32 %v7253_v35, %v7269_v2  ;;  %7270 = vmatpush.msra.mxu2 %v7269_v2  ;;  %7346 = vmatpush.msrb.mxu1 %v7269_v2 }
 0x829   :  { %7276 = vmatmul.f32.vlgmr.msra.gmra.mxu2 %v14657_v44  ;;  %7350 = vmatmul.f32.vlgmr.msrb.gmra.mxu1 %v14653_v12  ;;  %v7444_v44 = vsel %vm16619_vm1, %v7436_v15, 0  ;;  %vm16627_vm1 = vmmov %vm16623_vm3 }
 0x82a   :  { %7323 = vmatpush.msrb.mxu0 %v7296_v36  ;;  %v7297_v63 = vand.u32 4294901760, %v7296_v36  ;;  %v14688_v12 = vand.u32 4294901760, %v7444_v44 }
 0x82b   :  { %7326 = vmatmul.f32.vlgmr.msrb.gmra.mxu0 %v14650_v37 }
 0x82c   :  { %7372 = vmatpush.msrb.mxu2 %v7297_v63  ;;  %v7298_v26 = vsub.f32 %v7296_v36, %v7297_v63  ;;  %v14691_v61 = vsub.f32 %v7444_v44, %v14688_v12 }
 0x82e   :  { %v7299_v18 = vand.u32 4294901760, %v7298_v26  ;;  %v14695_v37 = vand.u32 4294901760, %v14691_v61 }
 0x830   :  { %7300 = vmatpush.msra.mxu3 %v7299_v18  ;;  %v7478_v6 = vsub.f32 %v14691_v61, %v14695_v37 }
 0x831   :  { %7302 = vmatmul.f32.vlgmr.msra.gmra.mxu3 %v14647_v47  ;;  %7374 = vmatmul.f32.vlgmr.msrb.gmra.mxu2 %v14647_v47 }
 0x832   :  { %7394 = vmatpush.msrb.mxu3 %v7269_v2  ;;  %v14703_v54 = vand.u32 4294901760, %v7478_v6 }
 0x839   :  { %7396 = vmatmul.f32.vlgmr.msrb.gmra.mxu3 %v14647_v47 }
 0x841   :  { %v7043_v45 = vpop.permute.xlu2 %7042 }
 0x842   :  { %v7432_v3 = vmul.f32 %v7043_v45, %v14260_v22  ;;  %v7433_v33 = vmul.f32 %v7043_v45, %v14239_v52 }
 0x844   :  { %v7447_v32 = vsel %vm16620_vm5, %v7432_v3, 0  ;;  %v7450_v0 = vsel %vm16621_vm14, %v7433_v33, 0  ;;  %vm8644_vm5 = vcmask 1045508   ;;  %vm16629_vm14 = vcmask 1041408  }
 0x845   :  { %v7473_v16 = vand.u32 4294901760, %v7447_v32  ;;  %v7619_v41 = vand.u32 4294901760, %v7450_v0 }
 0x847   :  { %v7500_v47 = vsub.f32 %v7447_v32, %v7473_v16  ;;  %v7646_v30 = vsub.f32 %v7450_v0, %v7619_v41  ;;  %7474 = vmatpush.msra.mxu0 %v7473_v16  ;;  %7550 = vmatpush.msra.mxu3 %v7473_v16 }
 0x848   :  { %7480 = vmatmul.f32.vlgmr.msra.gmra.mxu0 %v14703_v54  ;;  %7554 = vmatmul.f32.vlgmr.msra.gmra.mxu3 %v14695_v37 }
 0x849   :  { %7527 = vmatpush.msra.mxu2 %v7500_v47  ;;  %v7501_v22 = vand.u32 4294901760, %v7500_v47  ;;  %v7647_v40 = vand.u32 4294901760, %v7646_v30 }
 0x84a   :  { %7530 = vmatmul.f32.vlgmr.msra.gmra.mxu2 %v14691_v61 }
 0x84b   :  { %7620 = vmatpush.msrb.mxu2 %v7619_v41  ;;  %7576 = vmatpush.msrb.mxu0 %v7501_v22  ;;  %v7502_v52 = vsub.f32 %v7500_v47, %v7501_v22  ;;  %v7648_v1 = vsub.f32 %v7646_v30, %v7647_v40 }
 0x84d   :  { %7722 = vmatpush.msra.mxu2 %v7647_v40  ;;  %7673 = vmatpush.msra.mxu0 %v7646_v30  ;;  %v7503_v49 = vand.u32 4294901760, %v7502_v52  ;;  %v7649_v11 = vand.u32 4294901760, %v7648_v1 }
 0x84f   :  { %7504 = vmatpush.msra.mxu1 %v7503_v49  ;;  %7650 = vmatpush.msrb.mxu3 %v7649_v11 }
 0x850   :  { %7506 = vmatmul.f32.vlgmr.msra.gmra.mxu1 %v14688_v12  ;;  %7578 = vmatmul.f32.vlgmr.msrb.gmra.mxu0 %v14688_v12 }
 0x851   :  { %7598 = vmatpush.msrb.mxu1 %v7473_v16  ;;  %7744 = vmatpush.msra.mxu3 %v7619_v41 }
 0x852   :  { %7652 = vmatmul.f32.vlgmr.msrb.gmra.mxu3 %v14688_v12  ;;  %7626 = vmatmul.f32.vlgmr.msrb.gmra.mxu2 %v14703_v54 }
 0x853   :  { %7696 = vmatpush.msra.mxu1 %v7619_v41 }
 0x858   :  { %7600 = vmatmul.f32.vlgmr.msrb.gmra.mxu1 %v14688_v12  ;;  %7676 = vmatmul.f32.vlgmr.msra.gmra.mxu0 %v14691_v61 }
 0x85a   :  { %7746 = vmatmul.f32.vlgmr.msra.gmra.mxu3 %v14688_v12  ;;  %7724 = vmatmul.f32.vlgmr.msra.gmra.mxu2 %v14688_v12 }
 0x860   :  { %7700 = vmatmul.f32.vlgmr.msra.gmra.mxu1 %v14695_v37 }
 0x8a6   :  { %v7351_v48 = vpop.f32.mrf.mxu1 }
 0x8a8   :  { %v7327_v28 = vpop.f32.mrf.mxu0 }
 0x8ac   :  { %v7277_v62 = vpop.f32.mrf.mxu2 }
 0x8ad   :  { %v7278_v20 = vadd.f32 %v7277_v62, %v14675_v50 }
 0x8b4   :  { %v7303_v19 = vpop.f32.mrf.mxu3  ;;  %v7375_v5 = vpop.f32.mrf.mxu2 }
 0x8b5   :  { %v7304_v46 = vadd.f32 %v7303_v19, %v7278_v20 }
 0x8b7   :  { %v7328_v17 = vadd.f32 %v7327_v28, %v7304_v46 }
 0x8b9   :  { %v7352_v8 = vadd.f32 %v7351_v48, %v7328_v17 }
 0x8bb   :  { %v7376_v29 = vadd.f32 %v7375_v5, %v7352_v8 }
 0x8bc   :  { %v7397_v59 = vpop.f32.mrf.mxu3 }
 0x8bd   :  { %v7398_v31 = vadd.f32 %v7397_v59, %v7376_v29 }
 0x8bf   :  { %v7400_v53 = vsub.f32 0.0, %v7398_v31 }
 0x8c1   :  { %v7401_v38 = vmul.f32 1.442695, %v7400_v53 }
 0x8c3   :  { %8788 = vpow2.f32 %v7401_v38 }
 0x8c5   :  { %v7481_v55 = vpop.f32.mrf.mxu0 }
 0x8c9   :  { %v8789_v43 = vpop.eup %8788 }
 0x8ca   :  { %v7403_v9 = vadd.f32 1.0, %v8789_v43 }
 0x8cb   :  { %v7555_v10 = vpop.f32.mrf.mxu3 }
 0x8cc   :  { %8790 = vrcp.f32 %v7403_v9  ;;  %v7415_v50 = vand.u32 2147483648, %v7403_v9  ;;  %v7413_v25 = vand.u32 2147483647, %v7403_v9  ;;  %vm7409_vm15 = vweird.f32 %v7403_v9 }
 0x8cd   :  { %v7507_v21 = vpop.f32.mrf.mxu1  ;;  %v7531_v13 = vpop.f32.mrf.mxu2 }
 0x8ce   :  { %v7416_v14 = vor.u32 1.1754944e-38, %v7415_v50  ;;  %vm7414_vm9 = vcmp.eq.f32.partialorder %v7413_v25, 8.507059e+37  ;;  %v7579_v2 = vpop.f32.mrf.mxu0 }
 0x8d2   :  { %v8791_v51 = vpop.eup %8790 }
 0x8d3   :  { %v7405_v39 = vmul.f32 %v8791_v51, %v7403_v9  ;;  %vm7410_vm2 = vweird.f32 %v8791_v51 }
 0x8d4   :  { %vm7411_vm7 = vmor %vm7409_vm15, %vm7410_vm2  ;;  %vm16631_vm15 = vcmp.lt.s32.totalorder %v9101_v7, 16 }
 0x8d5   :  { %v7406_v27 = vsub.f32 1.0, %v7405_v39  ;;  %v7601_v26 = vpop.f32.mrf.mxu1  ;;  %v7627_v45 = vpop.f32.mrf.mxu2  ;;  %vm16630_vm2 = vmmov %vm16627_vm1 }
 0x8d6   :  { %v7653_v32 = vpop.f32.mrf.mxu3  ;;  %v7677_v47 = vpop.f32.mrf.mxu0 }
 0x8d7   :  { %v7407_v23 = vmul.f32 %v8791_v51, %v7406_v27 }
 0x8d9   :  { %v7408_v42 = vadd.f32 %v8791_v51, %v7407_v23 }
 0x8db   :  { %v7412_v34 = vsel %vm7411_vm7, %v8791_v51, %v7408_v42  ;;  %vm16632_vm7 = vmmov %vm16624_vm0 }
 0x8dc   :  { %v7417_v60 = vsel %vm7414_vm9, %v7416_v14, %v7412_v34 }
 0x8dd   :  { %7421 = vperm.xlu2 %8727, %v7417_v60   ;;  %v7701_v1 = vpop.f32.mrf.mxu1  ;;  %v7725_v19 = vpop.f32.mrf.mxu2 }
 0x8de   :  { %v7747_v48 = vpop.f32.mrf.mxu3 }
 0x8e5   :  { %7440 = vperm.xlu2 %8727, %v7437_v57  }
 0x8ed   :  { %8292 = vperm.xlu2 %8727, %v8699_v56  }
 0x937   :  { %v7422_v35 = vpop.permute.xlu2 %7421 }
 0x938   :  { %v7434_v36 = vmul.f32 %v7422_v35, %v14621_v58  ;;  %v7435_v63 = vmul.f32 %v7422_v35, %v14623_v4 }
 0x93a   :  { %v7453_v18 = vsel %vm16622_vm6, %v7434_v36, 0  ;;  %v7456_v15 = vsel %vm16623_vm3, %v7435_v63, 0  ;;  %vm16635_vm6 = vcmp.lt.s32.totalorder %v9101_v7, 32  ;;  %vm16636_vm3 = vmmov %vm16629_vm14 }
 0x93b   :  { %v7765_v44 = vand.u32 4294901760, %v7453_v18  ;;  %v7911_v6 = vand.u32 4294901760, %v7456_v15 }
 0x93d   :  { %v7792_v3 = vsub.f32 %v7453_v18, %v7765_v44  ;;  %v7938_v33 = vsub.f32 %v7456_v15, %v7911_v6  ;;  %7766 = vmatpush.msrb.mxu0 %v7765_v44  ;;  %7842 = vmatpush.msrb.mxu3 %v7765_v44 }
 0x93e   :  { %7772 = vmatmul.f32.vlgmr.msrb.gmra.mxu0 %v14703_v54  ;;  %7846 = vmatmul.f32.vlgmr.msrb.gmra.mxu3 %v14695_v37 }
 0x93f   :  { %7819 = vmatpush.msrb.mxu2 %v7792_v3  ;;  %v14730_v58 = vpop.permute.xlu2 %7440  ;;  %v7793_v4 = vand.u32 4294901760, %v7792_v3  ;;  %v7939_v0 = vand.u32 4294901760, %v7938_v33 }
 0x940   :  { %v7482_v16 = vadd.f32 %v7481_v55, %v14730_v58  ;;  %7822 = vmatmul.f32.vlgmr.msrb.gmra.mxu2 %v14691_v61  ;;  %v7628_v41 = vadd.f32 %v7627_v45, %v14730_v58 }
 0x941   :  { %7912 = vmatpush.msra.mxu2 %v7911_v6  ;;  %7868 = vmatpush.msra.mxu0 %v7793_v4  ;;  %v7794_v30 = vsub.f32 %v7792_v3, %v7793_v4  ;;  %v7940_v22 = vsub.f32 %v7938_v33, %v7939_v0 }
 0x942   :  { %v7508_v40 = vadd.f32 %v7507_v21, %v7482_v16  ;;  %v7654_v52 = vadd.f32 %v7653_v32, %v7628_v41 }
 0x943   :  { %8014 = vmatpush.msrb.mxu2 %v7939_v0  ;;  %7965 = vmatpush.msrb.mxu0 %v7938_v33  ;;  %v7795_v49 = vand.u32 4294901760, %v7794_v30  ;;  %v7941_v11 = vand.u32 4294901760, %v7940_v22  ;;  %v16626_v33 = vld [vmem:[#allocation5_spill] sm:$0xff]  ;;  %v16628_v0 = vld [vmem:[#allocation6_spill] sm:$0xff] }
 0x944   :  { %v7532_v62 = vadd.f32 %v7531_v13, %v7508_v40  ;;  %v7678_v20 = vadd.f32 %v7677_v47, %v7654_v52 }
 0x945   :  { %7796 = vmatpush.msrb.mxu1 %v7795_v49  ;;  %7942 = vmatpush.msra.mxu3 %v7941_v11 }
 0x946   :  { %v7556_v28 = vadd.f32 %v7555_v10, %v7532_v62  ;;  %v7702_v46 = vadd.f32 %v7701_v1, %v7678_v20  ;;  %7798 = vmatmul.f32.vlgmr.msrb.gmra.mxu1 %v14688_v12  ;;  %7870 = vmatmul.f32.vlgmr.msra.gmra.mxu0 %v14688_v12 }
 0x947   :  { %8036 = vmatpush.msrb.mxu3 %v7911_v6  ;;  %7890 = vmatpush.msra.mxu1 %v7765_v44  ;;  %v14827_v1 = vpop.permute.xlu2 %8292 }
 0x948   :  { %v7580_v17 = vadd.f32 %v7579_v2, %v7556_v28  ;;  %v7726_v5 = vadd.f32 %v7725_v19, %v7702_v46  ;;  %7918 = vmatmul.f32.vlgmr.msra.gmra.mxu2 %v14703_v54  ;;  %7944 = vmatmul.f32.vlgmr.msra.gmra.mxu3 %v14688_v12 }
 0x949   :  { %7988 = vmatpush.msrb.mxu1 %v7911_v6 }
 0x94a   :  { %v14739_v8 = vadd.f32 %v7601_v26, %v7580_v17  ;;  %v14741_v29 = vadd.f32 %v7747_v48, %v7726_v5 }
 0x94c   :  { %8092 = vrot.lane.b32.xlu0 %v14741_v29, %s8819_s3  ;;  %8058 = vrot.lane.b32.xlu1 %v14739_v8, %s8821_s30  ;;  %v8123_v45 = vrot.slane %v14741_v29, 4 }
 0x94d   :  { %8042 = vrot.lane.b32.xlu2 %v14739_v8, %s8820_s4 }
 0x94e   :  { %7892 = vmatmul.f32.vlgmr.msra.gmra.mxu1 %v14688_v12  ;;  %7968 = vmatmul.f32.vlgmr.msrb.gmra.mxu0 %v14691_v61  ;;  %v14764_v61 = vpop.permute.xlu0 %8195  ;;  %v8632_v3 = vsel %vm16625_vm8, %v14739_v8, %v8123_v45 }
 0x94f   :  { %v8636_v32 = vadd.f32 %v8632_v3, %v16626_v33 }
 0x950   :  { %8016 = vmatmul.f32.vlgmr.msrb.gmra.mxu2 %v14688_v12  ;;  %8038 = vmatmul.f32.vlgmr.msrb.gmra.mxu3 %v14688_v12  ;;  %v14766_v12 = vpop.permute.xlu1 %8190 }
 0x951   :  { %v8640_v41 = vrot.slane %v8636_v32, 2 }
 0x953   :  { %v8643_v22 = vsel %vm16629_vm14, %v8636_v32, %v8640_v41  ;;  %vm16641_vm14 = vcmask 1045504  }
 0x954   :  { %8090 = vrot.lane.b32.xlu1 %v14739_v8, %s8819_s3 }
 0x955   :  { %8074 = vrot.lane.b32.xlu2 %v14739_v8, %s8822_s5 }
 0x956   :  { %7992 = vmatmul.f32.vlgmr.msrb.gmra.mxu1 %v14695_v37  ;;  %v14768_v54 = vpop.permute.xlu0 %8287 }
 0x958   :  { %v14770_v59 = vpop.permute.xlu1 %8356 }
 0x95c   :  { %8076 = vrot.lane.b32.xlu1 %v14741_v29, %s8822_s5 }
 0x95d   :  { %8044 = vrot.lane.b32.xlu2 %v14741_v29, %s8820_s4 }
 0x95e   :  { %v14772_v31 = vpop.permute.xlu0 %8361 }
 0x960   :  { %v14774_v37 = vpop.permute.xlu1 %8558 }
 0x965   :  { %8060 = vrot.lane.b32.xlu2 %v14741_v29, %s8821_s30 }
 0x966   :  { %v14776_v38 = vpop.permute.xlu0 %8457 }
 0x9a7   :  { %v14829_v49 = vpop.permute.xlu2 %8042 }
 0x9af   :  { %v14831_v11 = vpop.permute.xlu2 %8074 }
 0x9b7   :  { %v8045_v62 = vpop.permute.xlu2 %8044 }
 0x9bb   :  { %v7773_v53 = vpop.f32.mrf.mxu0 }
 0x9bc   :  { %v7774_v9 = vadd.f32 %v7773_v53, %v14730_v58 }
 0x9be   :  { %v14778_v43 = vpop.permute.xlu1 %8058  ;;  %v8093_v25 = vpop.permute.xlu0 %8092 }
 0x9bf   :  { %v8061_v20 = vpop.permute.xlu2 %8060 }
 0x9c0   :  { %v8068_v17 = vsel %vm16631_vm15, %v14778_v43, %v8061_v20 }
 0x9c1   :  { %v7847_v51 = vpop.f32.mrf.mxu3 }
 0x9c3   :  { %v7799_v39 = vpop.f32.mrf.mxu1  ;;  %v7823_v27 = vpop.f32.mrf.mxu2 }
 0x9c4   :  { %v7800_v50 = vadd.f32 %v7799_v39, %v7774_v9  ;;  %v7871_v23 = vpop.f32.mrf.mxu0  ;;  %v16633_v9 = vld [vmem:[#allocation12_spill] sm:$0xff]  ;;  %v8111_v39 = vrot.slane %v8068_v17, 6 }
 0x9c5   :  { %vm16634_vm9 = vcmp.lt.s32.totalorder %v16633_v9, 224  ;;  %vm16638_vm8 = vcmp.lt.s32.totalorder %v16633_v9, 240 }
 0x9c6   :  { %v7824_v42 = vadd.f32 %v7823_v27, %v7800_v50  ;;  %v14781_v14 = vpop.permute.xlu1 %8090  ;;  %v8052_v27 = vsel %vm16635_vm6, %v14829_v49, %v8045_v62 }
 0x9c7   :  { %v14786_v34 = vsel %vm16624_vm0, %v14781_v14, %v8093_v25  ;;  %vm16637_vm0 = vcmp.lt.s32.totalorder %v9101_v7, 112 }
 0x9c8   :  { %v7848_v60 = vadd.f32 %v7847_v51, %v7824_v42  ;;  %8255 = vrot.lane.b32.xlu1 %v14786_v34, %s8825_s18  ;;  %8158 = vrot.lane.b32.xlu2 %v14786_v34, %s8824_s17 }
 0x9ca   :  { %v7872_v57 = vadd.f32 %v7871_v23, %v7848_v60  ;;  %v8143_v23 = vsel %vm16636_vm3, %v8052_v27, %v8111_v39 }
 0x9cb   :  { %v7893_v56 = vpop.f32.mrf.mxu1  ;;  %v7919_v55 = vpop.f32.mrf.mxu2 }
 0x9cc   :  { %v14792_v21 = vadd.f32 %v7893_v56, %v7872_v57  ;;  %v7920_v13 = vadd.f32 %v7919_v55, %v14730_v58  ;;  %v7945_v10 = vpop.f32.mrf.mxu3  ;;  %v7969_v2 = vpop.f32.mrf.mxu0 }
 0x9ce   :  { %v7946_v35 = vadd.f32 %v7945_v10, %v7920_v13  ;;  %8078 = vrot.lane.b32.xlu0 %v14792_v21, %s8822_s5  ;;  %v14835_v46 = vpop.permute.xlu1 %8076  ;;  %v16642_v10 = vld [vmem:[#allocation13_spill] sm:$0xff]  ;;  %v8124_v41 = vrot.slane %v14792_v21, 4 }
 0x9d0   :  { %8425 = vrot.lane.b32.xlu1 %v14786_v34, %s8826_s19  ;;  %8046 = vrot.lane.b32.xlu2 %v14792_v21, %s8820_s4  ;;  %v7970_v36 = vadd.f32 %v7969_v2, %v7946_v35 }
 0x9d3   :  { %v7993_v63 = vpop.f32.mrf.mxu1  ;;  %v8017_v26 = vpop.f32.mrf.mxu2 }
 0x9d4   :  { %v7994_v18 = vadd.f32 %v7993_v63, %v7970_v36  ;;  %v8039_v15 = vpop.f32.mrf.mxu3 }
 0x9d6   :  { %v8018_v44 = vadd.f32 %v8017_v26, %v7994_v18 }
 0x9d8   :  { %v14801_v6 = vadd.f32 %v8039_v15, %v8018_v44  ;;  %8062 = vrot.lane.b32.xlu2 %v14792_v21, %s8821_s30 }
 0x9da   :  { %8048 = vrot.lane.b32.xlu0 %v14801_v6, %s8820_s4  ;;  %8096 = vrot.lane.b32.xlu1 %v14801_v6, %s8819_s3  ;;  %v8125_v58 = vrot.slane %v14801_v6, 4 }
 0x9dc   :  { %v8633_v4 = vsel %vm16627_vm1, %v14792_v21, %v8125_v58  ;;  %vm16639_vm1 = vmmov %vm16631_vm15 }
 0x9dd   :  { %v8637_v16 = vadd.f32 %v8633_v4, %v16628_v0  ;;  %vm16644_vm15 = vmmov %vm16635_vm6  ;;  %v16649_v4 = vld [vmem:[#allocation14_spill] sm:$0xff] }
 0x9de   :  { %vm16647_vm6 = vmmov %vm16636_vm3  ;;  %vm16648_vm3 = vcmp.lt.s32.totalorder %v9101_v7, 96 }
 0x9df   :  { %v8641_v47 = vrot.slane %v8637_v16, 4  ;;  %v8642_v30 = vrot.slane %v8637_v16, 6 }
 0x9e0   :  { %8094 = vrot.lane.b32.xlu2 %v14792_v21, %s8819_s3 }
 0x9e1   :  { %v8645_v40 = vsel %vm8644_vm5, %v8641_v47, %v8642_v30  ;;  %vm16640_vm5 = vmmov %vm16630_vm2 }
 0x9e2   :  { %8064 = vrot.lane.b32.xlu0 %v14801_v6, %s8821_s30  ;;  %v8646_v52 = vsel %vm16630_vm2, %v8643_v22, %v8645_v40  ;;  %v8147_v55 = vsel %vm16640_vm5, %v8143_v23, %v8123_v45  ;;  %vm16643_vm2 = vcmp.ge.s32.totalorder %v16642_v10, 16 }
 0x9e3   :  { %8648 = vst [vmem:[#allocation2] sm:$0xff] %v8646_v52 }
 0x9e8   :  { %8080 = vrot.lane.b32.xlu2 %v14801_v6, %s8822_s5 }
 0xa22   :  { %v14833_v19 = vpop.permute.xlu2 %8158 }
 0xa2a   :  { %v8047_v28 = vpop.permute.xlu2 %8046 }
 0xa2b   :  { %v8051_v36 = vsel %vm16644_vm15, %v8045_v62, %v8047_v28 }
 0xa32   :  { %v8063_v48 = vpop.permute.xlu2 %8062 }
 0xa33   :  { %v8067_v60 = vsel %vm16639_vm1, %v8061_v20, %v8063_v48  ;;  %vm16652_vm1 = vmmov %vm16641_vm14 }
 0xa34   :  { %v8072_v35 = vsel %vm16643_vm2, %v8067_v60, 0.0 }
 0xa35   :  { %v8112_v63 = vrot.slane %v8072_v35, 6 }
 0xa3a   :  { %v8095_v5 = vpop.permute.xlu2 %8094  ;;  %v14840_v29 = vpop.permute.xlu1 %8255 }
 0xa3b   :  { %v8099_v53 = vsel %vm16632_vm7, %v8093_v25, %v8095_v5  ;;  %vm16645_vm7 = vmmov %vm16637_vm0 }
 0xa3c   :  { %v14846_v51 = vsel %vm16634_vm9, %v8099_v53, 0.0  ;;  %vm16646_vm9 = vcmp.ge.s32.totalorder %v16642_v10, 32  ;;  %vm16655_vm2 = vmmov %vm16645_vm7 }
 0xa3d   :  { %8259 = vrot.lane.b32.xlu2 %v14846_v51, %s8825_s18  ;;  %8162 = vrot.lane.b32.xlu0 %v14846_v51, %s8824_s17  ;;  %v8056_v18 = vsel %vm16646_vm9, %v8051_v36, 0.0  ;;  %vm16657_vm9 = vcmp.lt.s32.totalorder %v16649_v4, 240  ;;  %v8122_v36 = vrot.slane %v14739_v8, 4  ;;  %v8705_v8 = vld [vmem:[%s15317_s13 + $0x48] sm:$0x3] }
 0xa3e   :  { %v8144_v45 = vsel %vm16647_vm6, %v8056_v18, %v8112_v63  ;;  %v8703_v18 = vld [vmem:[%s15317_s13 + $0x38] sm:$0x3]  ;;  %s8834_s13 = smov [#allocation2]  }
 0xa40   :  { %v8079_v50 = vpop.permute.xlu0 %8078 }
 0xa41   :  { %v8083_v25 = vsel %vm16637_vm0, %v14835_v46, %v8079_v50  ;;  %vm16650_vm0 = vcmp.lt.s32.totalorder %v16649_v4, 224 }
 0xa42   :  { %v8087_v42 = vsel %vm16638_vm8, %v8083_v25, 0.0  ;;  %v14863_v56 = vpop.permute.xlu1 %8425  ;;  %v8081_v2 = vpop.permute.xlu2 %8080  ;;  %vm16651_vm8 = vmmov %vm16640_vm5 }
 0xa43   :  { %v8135_v57 = vrot.slane %v8087_v42, 2  ;;  %v8082_v26 = vsel %vm16645_vm7, %v8079_v50, %v8081_v2  ;;  %v8148_v47 = vsel %vm16651_vm8, %v8144_v45, %v8124_v41  ;;  %vm16653_vm5 = vmmov %vm16648_vm3  ;;  %v8085_v21 = vsel %vm16655_vm2, %v8081_v2, %v14831_v11 }
 0xa44   :  { %v8136_v3 = vrot.slane %v8082_v26, 2  ;;  %vm16656_vm7 = vmmov %vm16647_vm6  ;;  %v8084_v2 = vsel %vm16655_vm2, %v14831_v11, %v14835_v46  ;;  %v8622_v11 = vld [vmem:[%s15318_s14] sm:$0x3]  ;;  %s8676_s14 = sshll.u32 %s8834_s13, 4  ;;  %s8677_s14 = int_to_ptr.vmem [resolvable:$true] %s8676_s14 }
 0xa45   :  { %8429 = vrot.lane.b32.xlu2 %v14846_v51, %s8826_s19  ;;  %v14869_v13 = vsel %vm16641_vm14, %v8147_v55, %v8135_v57  ;;  %vm16654_vm14 = vcmp.lt.s32.totalorder %v9101_v7, 16  ;;  %vm16658_vm6 = vmmov %vm16651_vm8  ;;  %v8134_v63 = vrot.slane %v8084_v2, 2 }
 0xa46   :  { %8257 = vrot.lane.b32.xlu0 %v14869_v13, %s8825_s18  ;;  %8160 = vrot.lane.b32.xlu1 %v14869_v13, %s8824_s17  ;;  %v8152_v30 = vsel %vm16652_vm1, %v8148_v47, %v8136_v3 }
 0xa47   :  { %v8366_v22 = vmul.f32 %v14770_v59, %v8152_v30 }
 0xa49   :  { %v8390_v9 = vrot.slane %v8366_v22, 4  ;;  %v8402_v25 = vrot.slane %v8366_v22, 6 }
 0xa4c   :  { %v8049_v15 = vpop.permute.xlu0 %8048  ;;  %v8097_v44 = vpop.permute.xlu1 %8096 }
 0xa4d   :  { %v8101_v32 = vsel %vm16648_vm3, %v8097_v44, %v14781_v14  ;;  %v8098_v40 = vsel %vm16653_vm5, %v8095_v5, %v8097_v44  ;;  %v8050_v20 = vsel %vm16644_vm15, %v8047_v28, %v8049_v15  ;;  %v8378_v5 = vrot.slane %v8366_v22, 2  ;;  %vm16659_vm3 = vmmov %vm16652_vm1 }
 0xa4e   :  { %v14889_v16 = vsel %vm16650_vm0, %v8101_v32, 0.0  ;;  %8427 = vrot.lane.b32.xlu0 %v14869_v13, %s8826_s19  ;;  %8528 = vrot.lane.b32.xlu1 %v14869_v13, %s8823_s16  ;;  %v8370_v50 = vmul.f32 %v14772_v31, %v8098_v40  ;;  %vm16661_vm0 = vmmov %vm16654_vm14 }
 0xa4f   :  { %8170 = vrot.lane.b32.xlu2 %v14889_v16, %s8824_s17  ;;  %v8386_v53 = vadd.f32 %v8378_v5, %v8366_v22  ;;  %vm16664_vm1 = vmmov %vm16644_vm15 }
 0xa50   :  { %v8053_v55 = vsel %vm16664_vm1, %v8049_v15, %v14829_v49  ;;  %vm16667_vm15 = vmmov %vm16658_vm6 }
 0xa51   :  { %v8398_v23 = vadd.f32 %v8390_v9, %v8386_v53 }
 0xa53   :  { %v8410_v42 = vadd.f32 %v8402_v25, %v8398_v23 }
 0xa54   :  { %v8065_v14 = vpop.permute.xlu0 %8064 }
 0xa55   :  { %v8066_v52 = vsel %vm16654_vm14, %v8063_v48, %v8065_v14  ;;  %v8089_v48 = vsel %vm16657_vm9, %v8085_v21, 0.0  ;;  %v14925_v60 = vadd.f32 %v8410_v42, %v8370_v50  ;;  %v8069_v6 = vsel %vm16661_vm0, %v8065_v14, %v14778_v43  ;;  %vm16666_vm14 = vmmov %vm16656_vm7 }
 0xa56   :  { %v8113_v62 = vrot.slane %v8066_v52, 6  ;;  %8263 = vrot.lane.b32.xlu0 %v8098_v40, %s8825_s18  ;;  %8166 = vrot.lane.b32.xlu1 %v8098_v40, %s8824_s17  ;;  %v8137_v27 = vrot.slane %v8089_v48, 2  ;;  %v8365_v14 = vmul.f32 %v14770_v59, %v14869_v13 }
 0xa57   :  { %8164 = vrot.lane.b32.xlu2 %v8152_v30, %s8824_s17  ;;  %16660 = vst [vmem:[#allocation21_spill] sm:$0xff] %v14925_v60 }
 0xa58   :  { %v8145_v17 = vsel %vm16656_vm7, %v8050_v20, %v8113_v62  ;;  %vm16668_vm7 = vmmov %vm16659_vm3  ;;  %v8377_v62 = vrot.slane %v8365_v14, 2  ;;  %v16669_v20 = vld [vmem:[#allocation19_spill] sm:$0xff]  ;;  %v8389_v23 = vrot.slane %v8365_v14, 4 }
 0xa59   :  { %v8149_v39 = vsel %vm16658_vm6, %v8145_v17, %v8125_v58  ;;  %v16662_v58 = vld [vmem:[#allocation16_spill] sm:$0xff]  ;;  %vm16670_vm9 = vcmp.ge.s32.totalorder %v16669_v20, 2 }
 0xa5a   :  { %v8153_v28 = vsel %vm16659_vm3, %v8149_v39, %v8137_v27  ;;  %vm16663_vm8 = vcmp.ge.s32.totalorder %v16662_v58, 16  ;;  %vm16665_vm5 = vcmp.ge.s32.totalorder %v16662_v58, 32  ;;  %v8385_v27 = vadd.f32 %v8377_v62, %v8365_v14  ;;  %v16671_v62 = vld [vmem:[#allocation17_spill] sm:$0xff]  ;;  %vm16680_vm1 = vmmov %vm16670_vm9 }
 0xa5b   :  { %v8070_v57 = vsel %vm16663_vm8, %v8069_v6, 0.0  ;;  %v8054_v35 = vsel %vm16665_vm5, %v8053_v55, 0.0  ;;  %v8401_v55 = vrot.slane %v8365_v14, 6  ;;  %vm16672_vm6 = vcmp.ge.s32.totalorder %v16671_v62, 1 }
 0xa5c   :  { %v8110_v10 = vrot.slane %v8070_v57, 6  ;;  %v8397_v6 = vadd.f32 %v8389_v23, %v8385_v27  ;;  %v16673_v27 = vld [vmem:[#allocation18_spill] sm:$0xff]  ;;  %vm16675_vm0 = vcmp.ge.s32.totalorder %v16671_v62, 2  ;;  %vm16681_vm5 = vcmp.ge.s32.totalorder %v16669_v20, 1 }
 0xa5d   :  { %vm16674_vm3 = vcmp.ge.s32.totalorder %v16673_v27, 2  ;;  %vm16679_vm8 = vcmp.lt.s32.totalorder %v16673_v27, 15 }
 0xa5e   :  { %8433 = vrot.lane.b32.xlu0 %v8098_v40, %s8826_s19  ;;  %8267 = vrot.lane.b32.xlu1 %v14889_v16, %s8825_s18  ;;  %v8142_v43 = vsel %vm16666_vm14, %v8054_v35, %v8110_v10  ;;  %vm16682_vm14 = vcmp.lt.s32.totalorder %v9101_v7, 126 }
 0xa5f   :  { %8265 = vrot.lane.b32.xlu2 %v8153_v28, %s8825_s18  ;;  %v8146_v49 = vsel %vm16667_vm15, %v8142_v43, %v8122_v36  ;;  %vm16683_vm2 = vmmov %vm16682_vm14  ;;  %vm16684_vm15 = vcmp.ge.s32.totalorder %v16459_v24, 2 }
 0xa60   :  { %v8150_v26 = vsel %vm16668_vm7, %v8146_v49, %v8134_v63  ;;  %vm16685_vm7 = vcmp.ge.s32.totalorder %v16673_v27, 1 }
 0xa61   :  { %v8364_v52 = vmul.f32 %v14770_v59, %v8150_v26 }
 0xa63   :  { %v8376_v5 = vrot.slane %v8364_v52, 2  ;;  %v8388_v25 = vrot.slane %v8364_v52, 4  ;;  %v8400_v2 = vrot.slane %v8364_v52, 6 }
 0xa65   :  { %v8384_v50 = vadd.f32 %v8376_v5, %v8364_v52  ;;  %v8371_v5 = vmul.f32 %v14772_v31, %v14889_v16 }
 0xa66   :  { %8532 = vrot.lane.b32.xlu0 %v8152_v30, %s8823_s16  ;;  %8437 = vrot.lane.b32.xlu1 %v14889_v16, %s8826_s19 }
 0xa67   :  { %8435 = vrot.lane.b32.xlu2 %v8153_v28, %s8826_s19  ;;  %v8396_v58 = vadd.f32 %v8388_v25, %v8384_v50 }
 0xa6e   :  { %8168 = vrot.lane.b32.xlu0 %v8153_v28, %s8824_s17  ;;  %8261 = vrot.lane.b32.xlu1 %v8152_v30, %s8825_s18 }
 0xa6f   :  { %8536 = vrot.lane.b32.xlu2 %v8153_v28, %s8823_s16 }
 0xa76   :  { %8156 = vrot.lane.b32.xlu0 %v8150_v26, %s8824_s17  ;;  %8431 = vrot.lane.b32.xlu1 %v8152_v30, %s8826_s19 }
 0xa77   :  { %8526 = vrot.lane.b32.xlu2 %v14786_v34, %s8823_s16 }
 0xa7e   :  { %8462 = vperm.xlu0 %8725, %v8703_v18   ;;  %8530 = vrot.lane.b32.xlu1 %v14846_v51, %s8823_s16 }
 0xa7f   :  { %8253 = vrot.lane.b32.xlu2 %v8150_v26, %s8825_s18 }
 0xa86   :  { %8534 = vrot.lane.b32.xlu0 %v8098_v40, %s8823_s16  ;;  %8563 = vperm.xlu1 %8726, %v8705_v8   ;;  %v8367_v40 = vmul.f32 %v14770_v59, %v8153_v28 }
 0xa87   :  { %8423 = vrot.lane.b32.xlu2 %v8150_v26, %s8826_s19  ;;  %s8678_s19 = sshll.u32 %s15319_s15, 4  ;;  %s8679_s19 = int_to_ptr.hbm [resolvable:$true] %s8678_s19 }
 0xa88   :  { %v8379_v48 = vrot.slane %v8367_v40, 2  ;;  %v8391_v28 = vrot.slane %v8367_v40, 4  ;;  %v8403_v36 = vrot.slane %v8367_v40, 6 }
 0xa8a   :  { %v8387_v59 = vadd.f32 %v8379_v48, %v8367_v40 }
 0xa8c   :  { %v8399_v57 = vadd.f32 %v8391_v28, %v8387_v59 }
 0xa8e   :  { %8625 = vperm.xlu0 %8725, %v8622_v11   ;;  %v8408_v11 = vadd.f32 %v8400_v2, %v8396_v58  ;;  %v8411_v14 = vadd.f32 %v8403_v36, %v8399_v57 }
 0xa8f   :  { %8524 = vrot.lane.b32.xlu2 %v8150_v26, %s8823_s16  ;;  %v8409_v26 = vadd.f32 %v8401_v55, %v8397_v6 }
 0xa90   :  { %v15040_v25 = vadd.f32 %v8411_v14, %v8371_v5 }
 0xa92   :  { %16678 = vst [vmem:[#allocation65_spill] sm:$0xff] %v15040_v25 }
 0xa97   :  { %v8260_v46 = vpop.permute.xlu2 %8259  ;;  %8538 = vrot.lane.b32.xlu2 %v14889_v16, %s8823_s16 }
 0xa98   :  { %v8274_v10 = vsel %vm1105_vm12, %v14840_v29, %v8260_v46 }
 0xa99   :  { %v8282_v40 = vsel %vm16672_vm6, %v8274_v10, 0.0  ;;  %vm16687_vm6 = vmmov %vm16685_vm7 }
 0xa9f   :  { %v14973_v15 = vpop.permute.xlu2 %8429 }
 0xaa9   :  { %v8171_v44 = vpop.permute.xlu2 %8170 }
 0xaaa   :  { %v8179_v18 = vsel %vm999_vm10, %v8171_v44, %v14833_v19 }
 0xaaf   :  { %v8163_v45 = vpop.permute.xlu0 %8162 }
 0xab0   :  { %v8177_v8 = vsel %vm999_vm10, %v14833_v19, %v8163_v45  ;;  %v8444_v19 = vsel %vm1284_vm13, %v14863_v56, %v14973_v15 }
 0xab1   :  { %v14975_v3 = vpop.permute.xlu2 %8164  ;;  %v8185_v50 = vsel %vm16675_vm0, %v8177_v8, 0.0  ;;  %vm16689_vm0 = vcmp.lt.s32.totalorder %v16671_v62, 15 }
 0xab8   :  { %v14977_v32 = vpop.permute.xlu0 %8257  ;;  %v14979_v4 = vpop.permute.xlu1 %8160 }
 0xab9   :  { %v14981_v41 = vpop.permute.xlu2 %8265  ;;  %v8174_v21 = vsel %vm999_vm10, %v14979_v4, %v14975_v3 }
 0xaba   :  { %v8182_v17 = vsel %vm16670_vm9, %v8174_v21, 0.0  ;;  %v8369_v21 = vmul.f32 %v14772_v31, %v14846_v51  ;;  %v8184_v51 = vsel %vm16674_vm3, %v8179_v18, 0.0  ;;  %vm16686_vm9 = vcmp.lt.s32.totalorder %v16669_v20, 14 }
 0xabb   :  { %v8200_v13 = vmul.f32 %v14766_v12, %v8182_v17  ;;  %v8368_v17 = vmul.f32 %v14772_v31, %v14786_v34  ;;  %v15034_v34 = vmul.f32 %v14827_v1, %v8282_v40  ;;  %v15051_v58 = vmul.f32 %v14764_v61, %v8184_v51 }
 0xabc   :  { %v15031_v23 = vadd.f32 %v8409_v26, %v8369_v21  ;;  %vm16688_vm3 = vcmp.ge.s32.totalorder %v16671_v62, 1 }
 0xabd   :  { %v8212_v42 = vrot.slane %v8200_v13, 2  ;;  %v8224_v52 = vrot.slane %v8200_v13, 4  ;;  %v15038_v16 = vadd.f32 %v8408_v11, %v8368_v17  ;;  %v8236_v28 = vrot.slane %v8200_v13, 6 }
 0xabe   :  { %16676 = vst [vmem:[#allocation129_spill] sm:$0xff] %v15031_v23 }
 0xabf   :  { %v8220_v49 = vadd.f32 %v8212_v42, %v8200_v13  ;;  %16677 = vst [vmem:[#allocation35_spill] sm:$0xff] %v15038_v16 }
 0xac0   :  { %v14983_v47 = vpop.permute.xlu0 %8427  ;;  %v14985_v30 = vpop.permute.xlu1 %8528 }
 0xac1   :  { %v14989_v22 = vpop.permute.xlu2 %8435  ;;  %v8232_v59 = vadd.f32 %v8224_v52, %v8220_v49 }
 0xac8   :  { %v8264_v53 = vpop.permute.xlu0 %8263  ;;  %v8167_v9 = vpop.permute.xlu1 %8166 }
 0xac9   :  { %v15000_v39 = vpop.permute.xlu2 %8536  ;;  %v8175_v48 = vsel %vm999_vm10, %v8163_v45, %v8167_v9  ;;  %v8272_v31 = vsel %vm1105_vm12, %v8260_v46, %v8264_v53  ;;  %v15044_v45 = vsel %vm16679_vm8, %v8444_v19, 0.0  ;;  %v8173_v42 = vsel %vm999_vm10, %v8167_v9, %v8171_v44 }
 0xaca   :  { %v8186_v6 = vsel %vm16680_vm1, %v8175_v48, 0.0  ;;  %v15054_v46 = vmul.f32 %v14764_v61, %v8185_v50  ;;  %v8283_v44 = vsel %vm16681_vm5, %v8272_v31, 0.0  ;;  %v8244_v9 = vadd.f32 %v8236_v28, %v8232_v59  ;;  %vm16692_vm5 = vmmov %vm16684_vm15 }
 0xacb   :  { %v15104_v51 = vmul.f32 %v14827_v1, %v8283_v44  ;;  %vm16690_vm8 = vcmp.lt.s32.totalorder %v16669_v20, 15  ;;  %vm16691_vm1 = vcmp.lt.s32.totalorder %v16459_v24, 15 }
 0xad0   :  { %v8434_v35 = vpop.permute.xlu0 %8433  ;;  %v8268_v43 = vpop.permute.xlu1 %8267 }
 0xad1   :  { %v15005_v63 = vpop.permute.xlu2 %8526  ;;  %v8270_v57 = vsel %vm1105_vm12, %v8264_v53, %v8268_v43  ;;  %v8276_v55 = vsel %vm1105_vm12, %v8268_v43, %v14840_v29  ;;  %v8187_v53 = vsel %vm16684_vm15, %v8173_v42, 0.0  ;;  %v8204_v29 = vmul.f32 %v14764_v61, %v8186_v6  ;;  %vm16698_vm15 = vmmov %vm16690_vm8 }
 0xad2   :  { %v8442_v43 = vsel %vm1284_vm13, %v14973_v15, %v8434_v35  ;;  %v8281_v18 = vsel %vm16685_vm7, %v8276_v55, 0.0  ;;  %v8284_v8 = vsel %vm79_vm11, %v8270_v57, 0.0  ;;  %v15107_v50 = vmul.f32 %v14764_v61, %v8187_v53 }
 0xad3   :  { %v15109_v59 = vadd.f32 %v8244_v9, %v8204_v29  ;;  %v15113_v31 = vsel %vm16689_vm0, %v8442_v43, 0.0  ;;  %v15122_v6 = vmul.f32 %v14827_v1, %v8284_v8  ;;  %vm16699_vm7 = vcmp.lt.s32.totalorder %v9101_v7, 126 }
 0xad8   :  { %v8533_v13 = vpop.permute.xlu0 %8532  ;;  %v8438_v10 = vpop.permute.xlu1 %8437 }
 0xad9   :  { %v8540_v2 = vsel %vm16682_vm14, %v8533_v13, %v15000_v39  ;;  %v8542_v36 = vsel %vm16683_vm2, %v14985_v30, %v8533_v13  ;;  %v8254_v49 = vpop.permute.xlu2 %8253  ;;  %v8440_v17 = vsel %vm1284_vm13, %v8434_v35, %v8438_v10  ;;  %v8446_v5 = vsel %vm1284_vm13, %v8438_v10, %v14863_v56 }
 0xada   :  { %v8549_v26 = vsel %vm89_vm4, %v8542_v36, 0.0  ;;  %v8273_v11 = vsel %vm1105_vm12, %v8254_v49, %v14977_v32  ;;  %v8275_v14 = vsel %vm1105_vm12, %v14981_v41, %v8254_v49  ;;  %v8550_v15 = vsel %vm16686_vm9, %v8540_v2, 0.0  ;;  %vm16700_vm9 = vmmov %vm16699_vm7 }
 0xadb   :  { %v15090_v21 = vmul.f32 %v14774_v37, %v8549_v26  ;;  %v8277_v40 = vsel %vm16687_vm6, %v8275_v14, 0.0  ;;  %v8278_v52 = vsel %vm16688_vm3, %v8273_v11, 0.0  ;;  %v15116_v35 = vmul.f32 %v14827_v1, %v8281_v18 }
 0xadc   :  { %v8295_v19 = vmul.f32 %v14768_v54, %v8277_v40  ;;  %v8296_v48 = vmul.f32 %v14768_v54, %v8278_v52  ;;  %v15119_v56 = vmul.f32 %v14774_v37, %v8550_v15  ;;  %v15127_v57 = vsel %vm16690_vm8, %v8440_v17, 0.0 }
 0xadd   :  { %v8579_v61 = vrot.slane %v15090_v21, 2  ;;  %v15131_v55 = vsel %vm16691_vm1, %v8446_v5, 0.0  ;;  %vm16693_vm14 = vcmp.ge.s32.totalorder %v16669_v20, 1  ;;  %vm16696_vm2 = vcmp.ge.s32.totalorder %v16673_v27, 2 }
 0xade   :  { %v8307_v28 = vrot.slane %v8295_v19, 2  ;;  %v8308_v42 = vrot.slane %v8296_v48, 2  ;;  %v8319_v49 = vrot.slane %v8295_v19, 4  ;;  %v8580_v26 = vrot.slane %v15119_v56, 2 }
 0xadf   :  { %v8320_v18 = vrot.slane %v8296_v48, 4  ;;  %v8331_v5 = vrot.slane %v8295_v19, 6  ;;  %vm16702_vm6 = vcmp.lt.s32.totalorder %v16673_v27, 14  ;;  %vm16703_vm3 = vcmp.lt.s32.totalorder %v16459_v24, 14 }
 0xae0   :  { %v8169_v13 = vpop.permute.xlu0 %8168  ;;  %v8262_v10 = vpop.permute.xlu1 %8261  ;;  %v8315_v44 = vadd.f32 %v8307_v28, %v8295_v19  ;;  %v8316_v9 = vadd.f32 %v8308_v42, %v8296_v48  ;;  %v16712_v24 = vrot.slane %v15119_v56, 4 }
 0xae1   :  { %v8172_v2 = vsel %vm999_vm10, %v14975_v3, %v8169_v13  ;;  %v8269_v1 = vsel %vm1105_vm12, %v8262_v10, %v14981_v41  ;;  %v8424_v36 = vpop.permute.xlu2 %8423  ;;  %v8271_v29 = vsel %vm1105_vm12, %v14977_v32, %v8262_v10  ;;  %v8332_v10 = vrot.slane %v8296_v48, 6  ;;  %vm16695_vm12 = vmmov %vm16691_vm1 }
 0xae2   :  { %v8183_v53 = vsel %vm16692_vm5, %v8172_v2, 0.0  ;;  %v8280_v43 = vsel %vm79_vm11, %v8269_v1, 0.0  ;;  %v8279_v41 = vsel %vm16693_vm14, %v8271_v29, 0.0  ;;  %v8327_v8 = vadd.f32 %v8319_v49, %v8315_v44  ;;  %vm16708_vm14 = vmmov %vm16702_vm6 }
 0xae3   :  { %v8201_v3 = vmul.f32 %v14766_v12, %v8183_v53  ;;  %v15151_v11 = vmul.f32 %v14768_v54, %v8279_v41  ;;  %v15154_v14 = vmul.f32 %v14768_v54, %v8280_v43  ;;  %v8443_v32 = vsel %vm1284_vm13, %v8424_v36, %v14983_v47 }
 0xae4   :  { %v8328_v15 = vadd.f32 %v8320_v18, %v8316_v9  ;;  %v8445_v52 = vsel %vm1284_vm13, %v14989_v22, %v8424_v36  ;;  %vm16694_vm11 = vcmp.lt.s32.totalorder %v16673_v27, 15  ;;  %v15169_v9 = vadd.f32 %v8579_v61, %v15090_v21 }
 0xae5   :  { %v8213_v40 = vrot.slane %v8201_v3, 2  ;;  %v8309_v28 = vrot.slane %v15151_v11, 2  ;;  %v8310_v42 = vrot.slane %v15154_v14, 2  ;;  %v8447_v44 = vsel %vm16694_vm11, %v8443_v32, 0.0  ;;  %vm16709_vm11 = vmmov %vm16703_vm3 }
 0xae6   :  { %v15172_v2 = vadd.f32 %v8580_v26, %v15119_v56  ;;  %v15174_v1 = vadd.f32 %v8331_v5, %v8327_v8  ;;  %v8450_v49 = vsel %vm16695_vm12, %v8445_v52, 0.0  ;;  %v15179_v29 = vadd.f32 %v8332_v10, %v8328_v15 }
 0xae7   :  { %v8221_v36 = vadd.f32 %v8213_v40, %v8201_v3  ;;  %v8317_v19 = vadd.f32 %v8309_v28, %v15151_v11  ;;  %v8318_v48 = vadd.f32 %v8310_v42, %v15154_v14  ;;  %v8225_v26 = vrot.slane %v8201_v3, 4 }
 0xae8   :  { %v8157_v53 = vpop.permute.xlu0 %8156  ;;  %v8237_v18 = vrot.slane %v8201_v3, 6  ;;  %v8321_v41 = vrot.slane %v15151_v11, 4  ;;  %v15189_v8 = vmul.f32 %v14776_v38, %v8450_v49  ;;  %v8432_v32 = vpop.permute.xlu1 %8431  ;;  %v8322_v15 = vrot.slane %v15154_v14, 4 }
 0xae9   :  { %v8176_v61 = vsel %vm999_vm10, %v8157_v53, %v14979_v4  ;;  %v8178_v43 = vsel %vm999_vm10, %v8169_v13, %v8157_v53  ;;  %v8333_v40 = vrot.slane %v15151_v11, 6  ;;  %v15194_v52 = vmul.f32 %v14776_v38, %v8447_v44  ;;  %v8525_v5 = vpop.permute.xlu2 %8524 }
 0xaea   :  { %v8180_v4 = vsel %vm16696_vm2, %v8178_v43, 0.0  ;;  %v8233_v13 = vadd.f32 %v8225_v26, %v8221_v36  ;;  %v8329_v28 = vadd.f32 %v8321_v41, %v8317_v19  ;;  %v8334_v3 = vrot.slane %v15154_v14, 6 }
 0xaeb   :  { %vm16697_vm10 = vcmp.ge.s32.totalorder %v16671_v62, 2  ;;  %v8330_v10 = vadd.f32 %v8322_v15, %v8318_v48  ;;  %v8198_v49 = vmul.f32 %v14766_v12, %v8180_v4  ;;  %v8439_v11 = vsel %vm1284_vm13, %v8432_v32, %v14989_v22 }
 0xaec   :  { %v8181_v42 = vsel %vm16697_vm10, %v8176_v61, 0.0  ;;  %v8480_v44 = vrot.slane %v15189_v8, 2  ;;  %v8441_v36 = vsel %vm1284_vm13, %v14983_v47, %v8432_v32  ;;  %v8449_v14 = vsel %vm16698_vm15, %v8439_v11, 0.0  ;;  %vm16701_vm13 = vmmov %vm16689_vm0 }
 0xaed   :  { %v8199_v53 = vmul.f32 %v14766_v12, %v8181_v42  ;;  %v8544_v19 = vsel %vm16699_vm7, %v8525_v5, %v14985_v30  ;;  %v8477_v48 = vrot.slane %v15194_v52, 2  ;;  %v8210_v12 = vrot.slane %v8198_v49, 2  ;;  %vm16704_vm0 = vmmov %vm16699_vm7 }
 0xaee   :  { %v8546_v22 = vsel %vm16700_vm9, %v15000_v39, %v8525_v5  ;;  %v15219_v43 = vadd.f32 %v8237_v18, %v8233_v13  ;;  %v8489_v26 = vrot.slane %v15194_v52, 4  ;;  %v8448_v47 = vsel %vm16701_vm13, %v8441_v36, 0.0  ;;  %vm16705_vm8 = vmmov %vm16704_vm0 }
 0xaef   :  { %v8211_v61 = vrot.slane %v8199_v53, 2  ;;  %v8467_v41 = vmul.f32 %v14776_v38, %v8449_v14  ;;  %v8218_v15 = vadd.f32 %v8210_v12, %v8198_v49  ;;  %v8466_v4 = vmul.f32 %v14776_v38, %v8448_v47  ;;  %vm16706_vm1 = vmmov %vm16704_vm0 }
 0xaf0   :  { %v8463_v32 = vpop.permute.xlu0 %8462  ;;  %v8548_v42 = vsel %vm16702_vm6, %v8544_v19, 0.0  ;;  %v8488_v11 = vadd.f32 %v8480_v44, %v15189_v8  ;;  %v8222_v39 = vrot.slane %v8198_v49, 4  ;;  %v8551_v5 = vsel %vm16703_vm3, %v8546_v22, 0.0  ;;  %v8531_v22 = vpop.permute.xlu1 %8530  ;;  %vm16707_vm5 = vmmov %vm16704_vm0 }
 0xaf1   :  { %v8219_v30 = vadd.f32 %v8211_v61, %v8199_v53  ;;  %v8479_v18 = vrot.slane %v8467_v41, 2  ;;  %v8485_v13 = vadd.f32 %v8477_v48, %v15194_v52  ;;  %v8223_v36 = vrot.slane %v8199_v53, 4 }
 0xaf2   :  { %v8478_v54 = vrot.slane %v8466_v4, 2  ;;  %v15233_v14 = vmul.f32 %v14774_v37, %v8548_v42  ;;  %v15235_v12 = vadd.f32 %v8333_v40, %v8329_v28  ;;  %v8492_v38 = vrot.slane %v15189_v8, 4 }
 0xaf3   :  { %v8230_v61 = vadd.f32 %v8222_v39, %v8218_v15  ;;  %v8487_v19 = vadd.f32 %v8479_v18, %v8467_v41  ;;  %v8231_v47 = vadd.f32 %v8223_v36, %v8219_v30  ;;  %v8490_v17 = vrot.slane %v8466_v4, 4 }
 0xaf4   :  { %v8486_v44 = vadd.f32 %v8478_v54, %v8466_v4  ;;  %v15239_v0 = vmul.f32 %v14774_v37, %v8551_v5  ;;  %v8342_v33 = vadd.f32 %v8334_v3, %v8330_v10  ;;  %v8234_v48 = vrot.slane %v8198_v49, 6  ;;  %v8539_v54 = vpop.permute.xlu2 %8538 }
 0xaf5   :  { %v8491_v25 = vrot.slane %v8467_v41, 4  ;;  %v8500_v60 = vadd.f32 %v8492_v38, %v8488_v11  ;;  %v8235_v16 = vrot.slane %v8199_v53, 6  ;;  %v8578_v42 = vrot.slane %v15233_v14, 2 }
 0xaf6   :  { %v8497_v40 = vadd.f32 %v8489_v26, %v8485_v13  ;;  %v8498_v28 = vadd.f32 %v8490_v17, %v8486_v44  ;;  %v8242_v23 = vadd.f32 %v8234_v48, %v8230_v61  ;;  %v8504_v15 = vrot.slane %v15189_v8, 6 }
 0xaf7   :  { %v8499_v39 = vadd.f32 %v8491_v25, %v8487_v19  ;;  %v8502_v30 = vrot.slane %v8466_v4, 6  ;;  %v8243_v36 = vadd.f32 %v8235_v16, %v8231_v47  ;;  %v8581_v37 = vrot.slane %v15239_v0, 2 }
 0xaf8   :  { %v8535_v18 = vpop.permute.xlu0 %8534  ;;  %v8472_v3 = vmul.f32 %v8463_v32, %v15131_v55  ;;  %v8503_v10 = vrot.slane %v8467_v41, 6  ;;  %v8501_v49 = vrot.slane %v15194_v52, 6  ;;  %v8512_v53 = vadd.f32 %v8504_v15, %v8500_v60  ;;  %v8564_v47 = vpop.permute.xlu1 %8563 }
 0xaf9   :  { %v8510_v11 = vadd.f32 %v8502_v30, %v8498_v28  ;;  %v8545_v17 = vsel %vm16704_vm0, %v15005_v63, %v8531_v22  ;;  %v8547_v25 = vsel %vm16705_vm8, %v8539_v54, %v15005_v63  ;;  %v8541_v16 = vsel %vm16706_vm1, %v8535_v18, %v8539_v54 }
 0xafa   :  { %v8511_v26 = vadd.f32 %v8503_v10, %v8499_v39  ;;  %v8543_v55 = vsel %vm16707_vm5, %v8531_v22, %v8535_v18  ;;  %v8509_v8 = vadd.f32 %v8501_v49, %v8497_v40  ;;  %v8469_v52 = vmul.f32 %v8463_v32, %v15044_v45  ;;  %v16713_v10 = vld [vmem:[#allocation129_spill] sm:$0xff] }
 0xafb   :  { %v8470_v60 = vmul.f32 %v8463_v32, %v15113_v31  ;;  %v8471_v41 = vmul.f32 %v8463_v32, %v15127_v57  ;;  %v8516_v4 = vadd.f32 %v8512_v53, %v8472_v3  ;;  %v8552_v5 = vsel %vm16708_vm14, %v8545_v17, 0.0 }
 0xafc   :  { %v8586_v13 = vadd.f32 %v8578_v42, %v15233_v14  ;;  %v8589_v63 = vadd.f32 %v8581_v37, %v15239_v0  ;;  %v8555_v7 = vsel %vm16709_vm11, %v8547_v25, 0.0  ;;  %v8553_v61 = vsel %vm89_vm4, %v8543_v55, 0.0 }
 0xafd   :  { %v8514_v38 = vadd.f32 %v8510_v11, %v8470_v60  ;;  %vm16710_vm12 = vcmp.lt.s32.totalorder %v16669_v20, 14  ;;  %v8515_v31 = vadd.f32 %v8511_v26, %v8471_v41  ;;  %v8590_v57 = vrot.slane %v15233_v14, 4 }
 0xafe   :  { %v8554_v45 = vsel %vm16710_vm12, %v8541_v16, 0.0  ;;  %v8593_v27 = vrot.slane %v15239_v0, 4  ;;  %v16711_v32 = vrot.slane %v15090_v21, 4  ;;  %v8600_v44 = vadd.f32 %v16712_v24, %v15172_v2 }
 0xaff   :  { %v8602_v62 = vrot.slane %v15233_v14, 6  ;;  %v8603_v22 = vrot.slane %v15090_v21, 6  ;;  %v8604_v20 = vrot.slane %v15119_v56, 6  ;;  %v8598_v48 = vadd.f32 %v8590_v57, %v8586_v13 }
 0xb00   :  { %v8599_v19 = vadd.f32 %v16711_v32, %v15169_v9  ;;  %v8601_v42 = vadd.f32 %v8593_v27, %v8589_v63  ;;  %v8605_v40 = vrot.slane %v15239_v0, 6  ;;  %v8246_v28 = vadd.f32 %v8242_v23, %v15051_v58  ;;  %v8626_v26 = vpop.permute.xlu0 %8625  ;;  %v16719_v32 = vld [vmem:[#allocation5_spill] sm:$0xff] }
 0xb01   :  { %v8570_v15 = vmul.f32 %v8564_v47, %v8552_v5  ;;  %v8571_v39 = vmul.f32 %v8564_v47, %v8553_v61  ;;  %v8344_v9 = vadd.f32 %v15179_v29, %v15034_v34  ;;  %v8247_v30 = vadd.f32 %v8243_v36, %v15054_v46 }
 0xb02   :  { %v8611_v2 = vadd.f32 %v8603_v22, %v8599_v19  ;;  %v8572_v54 = vmul.f32 %v8564_v47, %v8554_v45  ;;  %v8249_v21 = vadd.f32 %v15219_v43, %v15107_v50  ;;  %v8343_v56 = vadd.f32 %v15174_v1, %v15116_v35  ;;  %v16714_v1 = vld [vmem:[#allocation35_spill] sm:$0xff] }
 0xb03   :  { %v8573_v14 = vmul.f32 %v8564_v47, %v8555_v7  ;;  %v8345_v0 = vadd.f32 %v15235_v12, %v15104_v51  ;;  %v8346_v23 = vadd.f32 %v8342_v33, %v15122_v6  ;;  %v8348_v58 = vadd.f32 %v8344_v9, %v8247_v30  ;;  %v16715_v51 = vld [vmem:[#allocation21_spill] sm:$0xff] }
 0xb04   :  { %v8610_v18 = vadd.f32 %v8602_v62, %v8598_v48  ;;  %v8612_v37 = vadd.f32 %v8604_v20, %v8600_v44  ;;  %v8613_v34 = vadd.f32 %v8605_v40, %v8601_v42  ;;  %v8347_v29 = vadd.f32 %v8343_v56, %v8246_v28  ;;  %v16716_v33 = vld [vmem:[#allocation65_spill] sm:$0xff] }
 0xb05   :  { %v8615_v46 = vadd.f32 %v8611_v2, %v8571_v39  ;;  %v8349_v36 = vadd.f32 %v8345_v0, %v15109_v59  ;;  %v8350_v3 = vadd.f32 %v8346_v23, %v8249_v21  ;;  %v8417_v50 = vadd.f32 %v16713_v10, %v8348_v58 }
 0xb06   :  { %v8513_v43 = vadd.f32 %v8509_v8, %v8469_v52  ;;  %v8614_v49 = vadd.f32 %v8610_v18, %v8570_v15  ;;  %v8616_v35 = vadd.f32 %v8612_v37, %v8572_v54  ;;  %v8416_v53 = vadd.f32 %v16714_v1, %v8347_v29 }
 0xb07   :  { %v8617_v11 = vadd.f32 %v8613_v34, %v8573_v14  ;;  %v8418_v12 = vadd.f32 %v16715_v51, %v8349_v36  ;;  %v8419_v6 = vadd.f32 %v16716_v33, %v8350_v3  ;;  %v8518_v17 = vadd.f32 %v8514_v38, %v8417_v50 }
 0xb08   :  { %v8517_v25 = vadd.f32 %v8513_v43, %v8416_v53  ;;  %vm16717_vm4 = vcmask 1043456  }
 0xb09   :  { %v8519_v16 = vadd.f32 %v8515_v31, %v8418_v12  ;;  %v8520_v55 = vadd.f32 %v8516_v4, %v8419_v6  ;;  %v8619_v60 = vadd.f32 %v8615_v46, %v8518_v17  ;;  %vm16718_vm2 = vmmov %vm16717_vm4  ;;  %v16720_v31 = vld [vmem:[#allocation6_spill] sm:$0xff] }
 0xb0a   :  { %v8618_v59 = vadd.f32 %v8614_v49, %v8517_v25 }
 0xb0b   :  { %v8620_v41 = vadd.f32 %v8616_v35, %v8519_v16  ;;  %v8621_v5 = vadd.f32 %v8617_v11, %v8520_v55  ;;  %v8629_v13 = vadd.f32 %v8626_v26, %v8619_v60 }
 0xb0c   :  { %v8628_v8 = vadd.f32 %v8626_v26, %v8618_v59 }
 0xb0d   :  { %v8631_v52 = vadd.f32 %v8626_v26, %v8621_v5  ;;  %v8653_v63 = vrot.slane %v8629_v13, 4  ;;  %v8630_v7 = vadd.f32 %v8626_v26, %v8620_v41 }
 0xb0f   :  { %v8654_v61 = vrot.slane %v8631_v52, 4  ;;  %v8655_v45 = vsel %vm16717_vm4, %v8628_v8, %v8653_v63 }
 0xb10   :  { %v8657_v57 = vrot.slane %v8655_v45, 6 }
 0xb11   :  { %v8656_v27 = vsel %vm16718_vm2, %v8630_v7, %v8654_v61 }
 0xb12   :  { %v8658_v38 = vrot.slane %v8656_v27, 6  ;;  %v8661_v19 = vadd.f32 %v8657_v57, %v16719_v32 }
 0xb14   :  { %v8662_v4 = vadd.f32 %v8658_v38, %v16720_v31  ;;  %8665 = vst.sshfl [vmem:[#allocation1] sm:$0xff pattern:$0x75643120] %v8661_v19 }
 0xb16   :  { %8666 = vst.sshfl [vmem:[#allocation1 + $0x8] sm:$0xff pattern:$0x75643120] %v8662_v4 }
 0xb1d   :  { %v8668_v47 = vld [vmem:[#allocation1 + $0x1] ss:$2 sm:$0xff] }
 0xb1e   :  { %8671 = vst [vmem:[#allocation2 + $0x8] sm:$0xff] %v8668_v47 }
 0xb1f   :  { %8684 = dma.vmem_to_hbm [thread:$0]  %s8677_s14, 256, %s8679_s19, [#allocation3], %s8835_s24, %s8835_s24, %s8836_s7  }
 0xb20   :  { %8816 = dma.done.wait [#allocation3], 256  }
 0xb21   :  { %8817 = vsyncadd [#allocation3], 4294967040 }
 0xb22   :  { %8689 = vsyncpa [#allocation3], 1 }

</bundles_post_ra>
